<compile_context>
chip_gen: v7x
topology: tpu7x:2x2x1
jax: 0.10.0
libtpu: 0.0.40
codegen_flags: <defaults>
</compile_context>

<pallas_src>
import functools

import jax
import jax.numpy as jnp
from jax import lax
from jax.experimental import pallas as pl
from jax.experimental.pallas import tpu as pltpu


# ----------------------------------------------------------------------------
# Fused Pallas kernel: full 2-layer BiLSTM recurrence + classifier head.
# ----------------------------------------------------------------------------
def make_bilstm_kernel(n_layers, unroll):
    """Builds the fused kernel for a fixed number of layers.

    Ref layout (in order):
      emb_ref                       : (T, B, E) bf16
      per layer l:
        wih_ref  l==0: (E, 8H) bf16   (cols [0:4H]=fwd gates i,f,g,o ; [4H:8H]=bwd gates)
                 l>=1: (2H, 8H) bf16  (rows [0:H] act on fwd half, [H:2H] on bwd half)
        whh_ref  (2, H, 4H) bf16      ([0]=fwd, [1]=bwd; PyTorch weight_hh transposed)
        b_ref    (1, 8H) f32          (bias_ih + bias_hh, fwd cols then bwd cols)
      fc_w (2H, out) f32, fc_b (1, out) f32
      out_ref (B, out) f32
      scratch: act (T,B,2H) f32, gx_f (T,B,4H) f32, gx_b (T,B,4H) f32
    """

    def kernel(*refs):
        emb_ref = refs[0]
        layer_refs = refs[1:1 + 3 * n_layers]
        fcw_ref, fcb_ref = refs[1 + 3 * n_layers:3 + 3 * n_layers]
        out_ref = refs[3 + 3 * n_layers]
        act_ref, gx_f_ref, gx_b_ref = refs[4 + 3 * n_layers:]

        T, B, E = emb_ref.shape
        H = layer_refs[1].shape[1]          # whh of layer 0: (2, H, 4H)
        G = 4 * H

        def run_layer(x2d, wih_ref, whh_ref, b_ref, write_seq):
            # --- Hoisted input projection: ONE big MXU GEMM covers both directions. ---
            gx = b_ref[...] + jnp.dot(x2d, wih_ref[...],
                                      preferred_element_type=jnp.float32)
            gx_f_ref[...] = gx[:, :G].reshape(T, B, G)        # fwd gate pre-activations
            gx_b_ref[...] = gx[:, G:].reshape(T, B, G)        # bwd gate pre-activations

            whh_f = whh_ref[0]                                # (H, 4H) bf16, loaded once
            whh_b = whh_ref[1]

            def cell(gx_t, h, c, whh):
                # bf16 MXU operands, f32 accumulation; gate elementwise stays f32.
                z = gx_t + jnp.dot(h.astype(whh.dtype), whh,
                                   preferred_element_type=jnp.float32)
                ifg = jax.nn.sigmoid(z[:, 0:2 * H])           # fused i/f sigmoid (1 EUP slab)
                i_g = ifg[:, 0:H]
                f_g = ifg[:, H:2 * H]
                g_g = jnp.tanh(z[:, 2 * H:3 * H])
                o_g = jax.nn.sigmoid(z[:, 3 * H:4 * H])
                c_new = f_g * c + i_g * g_g
                h_new = o_g * jnp.tanh(c_new)
                return h_new, c_new

            def step(s, carry):
                h_f, c_f, h_b, c_b = carry
                sb = T - 1 - s                                # backward-direction time index
                h_f, c_f = cell(gx_f_ref[s], h_f, c_f, whh_f)
                h_b, c_b = cell(gx_b_ref[sb], h_b, c_b, whh_b)
                if write_seq:                                 # next layer's input, VMEM-resident
                    act_ref[s, :, 0:H] = h_f                  # lane-aligned (8,128) stores
                    act_ref[sb, :, H:2 * H] = h_b
                return (h_f, c_f, h_b, c_b)

            z0 = jnp.zeros((B, H), jnp.float32)
            h_f, _, h_b, _ = lax.fori_loop(0, T, step, (z0, z0, z0, z0),
                                           unroll=unroll)
            return h_f, h_b                                   # final hidden states (fwd, bwd)

        finals = []
        for l in range(n_layers):
            wih_ref, whh_ref, b_ref = layer_refs[3 * l:3 * l + 3]
            if l == 0:
                x2d = emb_ref[...].reshape(T * B, E)          # already bf16
            else:
                # concat(fwd, bwd) per timestep is already the lane layout of act_ref.
                x2d = act_ref[...].reshape(T * B, 2 * H).astype(jnp.bfloat16)
            finals.append(run_layer(x2d, wih_ref, whh_ref, b_ref,
                                    write_seq=(l + 1 < n_layers)))

        # hidden.view(n_layers, 2, B, H).sum(0) -> per-direction sum over layers,
        # then tanh(concat(fwd, bwd)) @ fc + b as a single (B,2H)@(2H,out) matmul.
        fwd_sum = jnp.tanh(sum(hf for hf, _ in finals))
        bwd_sum = jnp.tanh(sum(hb for _, hb in finals))
        hid = jnp.concatenate([fwd_sum, bwd_sum], axis=-1)    # (B, 2H) f32
        out_ref[...] = (jnp.dot(hid, fcw_ref[...],
                                preferred_element_type=jnp.float32)
                        + fcb_ref[...])

    return kernel


# ----------------------------------------------------------------------------
# pallas_call wrapper
# ----------------------------------------------------------------------------
def fused_bilstm(emb, params, n_layers):
    T, B, _ = emb.shape
    H = params["l0_whh"].shape[1]
    out_dim = params["fc_w"].shape[1]
    vmem = pl.BlockSpec(memory_space=pltpu.MemorySpace.VMEM)

    args = [emb]
    for l in range(n_layers):
        args += [params[f"l{l}_wih"], params[f"l{l}_whh"], params[f"l{l}_b"]]
    args += [params["fc_w"], params["fc_b"]]

    unroll = T if T <= 16 else 4    # full unroll only for short sequences

    return pl.pallas_call(
        make_bilstm_kernel(n_layers, unroll),
        out_shape=jax.ShapeDtypeStruct((B, out_dim), jnp.float32),
        in_specs=[vmem] * len(args),
        out_specs=vmem,
        scratch_shapes=[
            pltpu.VMEM((T, B, 2 * H), jnp.float32),   # act : per-step [fwd | bwd] hidden
            pltpu.VMEM((T, B, 4 * H), jnp.float32),   # gx_f: hoisted fwd gate pre-acts
            pltpu.VMEM((T, B, 4 * H), jnp.float32),   # gx_b: hoisted bwd gate pre-acts
        ],
        compiler_params=pltpu.CompilerParams(
            vmem_limit_bytes=32 * 1024 * 1024),
    )(*args)


# ----------------------------------------------------------------------------
# Params
# ----------------------------------------------------------------------------
def init_params(key, vocab_size, emb_dim, hidden_dim, out_dim, n_layers, pad_idx):
    n_keys = 1 + 3 * n_layers + 2
    keys = iter(jax.random.split(key, n_keys))

    def nrm(shape, dtype=jnp.float32, scale=0.1):
        v = scale * jax.random.normal(next(keys), shape, dtype=jnp.float32)
        return v.astype(dtype)

    H = hidden_dim
    params = {}
    emb = nrm((vocab_size, emb_dim))
    emb = emb.at[pad_idx].set(0.0)            # nn.Embedding(padding_idx=...) zeros that row
    params["emb_table"] = emb

    for l in range(n_layers):
        # Mapping to PyTorch nn.LSTM weights (all pre-transposed to (in, out), bf16):
        #   l0_wih[:, :4H]  = weight_ih_l0.T        ; [:, 4H:] = weight_ih_l0_reverse.T
        #   l{l>=1}_wih     = [weight_ih_l{l}.T cols | weight_ih_l{l}_reverse.T cols] (2H, 8H)
        #   l{l}_whh[0]     = weight_hh_l{l}.T      ; [1] = weight_hh_l{l}_reverse.T
        #   l{l}_b[:, :4H]  = bias_ih_l{l} + bias_hh_l{l} ; [:, 4H:] = reverse biases
        din = emb_dim if l == 0 else 2 * H
        params[f"l{l}_wih"] = nrm((din, 8 * H), jnp.bfloat16)
        params[f"l{l}_whh"] = nrm((2, H, 4 * H), jnp.bfloat16)
        params[f"l{l}_b"] = nrm((1, 8 * H))

    params["fc_w"] = nrm((2 * H, out_dim))    # fc.weight.T
    params["fc_b"] = nrm((1, out_dim))
    return params


# ----------------------------------------------------------------------------
# Forward
# ----------------------------------------------------------------------------
@functools.partial(jax.jit, static_argnames=("n_layers",))
def bilstm_forward(text, text_lengths, params, n_layers=2):
    # The reference PyTorch forward never uses text_lengths (no pack_padded_sequence).
    del text_lengths
    emb = params["emb_table"][text]                  # (T, B, E) embedding gather (JAX glue)
    # dropout(emb): identity in eval mode.
    return fused_bilstm(emb.astype(jnp.bfloat16), params, n_layers)


# ----------------------------------------------------------------------------
# Main
# ----------------------------------------------------------------------------
if __name__ == "__main__":
    VOCAB = 50
    EMB_DIM = 128     # lane-aligned small stand-in for embedding_dim=300
    HIDDEN = 128      # lane-aligned small stand-in for hidden_dim=256
    OUT_DIM = 1
    N_LAYERS = 2
    PAD_IDX = 1
    T, B = 8, 8       # B=8 fills the f32 sublanes

    key = jax.random.PRNGKey(0)
    k_param, k_text = jax.random.split(key)

    params = init_params(k_param, VOCAB, EMB_DIM, HIDDEN, OUT_DIM, N_LAYERS, PAD_IDX)

    text = jax.random.randint(k_text, (T, B), 0, VOCAB, dtype=jnp.int32)
    text_lengths = jnp.full((B,), T, dtype=jnp.int32)

    out = bilstm_forward(text, text_lengths, params, n_layers=N_LAYERS)
    out = jax.block_until_ready(out)

    assert out.shape == (B, OUT_DIM), out.shape
    assert out.dtype == jnp.float32
    assert bool(jnp.all(jnp.isfinite(out)))
    print("KERNEL_OK")
</pallas_src>

<mosaic_0001>
module attributes {stable_mosaic.version = 11 : i64} {
  func.func @kernel(%arg0: memref<8x8x128xbf16, #tpu.memory_space<vmem>>, %arg1: memref<128x1024xbf16, #tpu.memory_space<vmem>>, %arg2: memref<2x128x512xbf16, #tpu.memory_space<vmem>>, %arg3: memref<1x1024xf32, #tpu.memory_space<vmem>>, %arg4: memref<256x1024xbf16, #tpu.memory_space<vmem>>, %arg5: memref<2x128x512xbf16, #tpu.memory_space<vmem>>, %arg6: memref<1x1024xf32, #tpu.memory_space<vmem>>, %arg7: memref<256x1xf32, #tpu.memory_space<vmem>>, %arg8: memref<1x1xf32, #tpu.memory_space<vmem>>, %arg9: memref<8x1xf32, #tpu.memory_space<vmem>>, %arg10: memref<8x8x256xf32, #tpu.memory_space<vmem>>, %arg11: memref<8x8x512xf32, #tpu.memory_space<vmem>>, %arg12: memref<8x8x512xf32, #tpu.memory_space<vmem>>) attributes {dimension_semantics = [], scalar_prefetch = 0 : i64, scratch_operands = 3 : i64, tpu.core_type = #tpu.core_type<tc>} {
    %c0 = arith.constant 0 : index
    %c0_0 = arith.constant 0 : index
    %c0_1 = arith.constant 0 : index
    %0 = vector.load %arg0[%c0, %c0_0, %c0_1] : memref<8x8x128xbf16, #tpu.memory_space<vmem>>, vector<8x8x128xbf16>
    %1 = vector.shape_cast %0 : vector<8x8x128xbf16> to vector<64x128xbf16>
    %c0_2 = arith.constant 0 : index
    %c0_3 = arith.constant 0 : index
    %2 = vector.load %arg3[%c0_2, %c0_3] : memref<1x1024xf32, #tpu.memory_space<vmem>>, vector<1x1024xf32>
    %c0_4 = arith.constant 0 : index
    %c0_5 = arith.constant 0 : index
    %3 = vector.load %arg1[%c0_4, %c0_5] : memref<128x1024xbf16, #tpu.memory_space<vmem>>, vector<128x1024xbf16>
    %cst = arith.constant dense<0.000000e+00> : vector<64x1024xf32>
    %4 = tpu.matmul %1, %3, %cst {dimension_numbers = #tpu.dot_dimension_numbers<[1], [0], [0], [1], [0, 0, 1, 1], [], []>} : vector<64x128xbf16>, vector<128x1024xbf16>, vector<64x1024xf32> -> vector<64x1024xf32>
    %5 = vector.broadcast %2 : vector<1x1024xf32> to vector<64x1024xf32>
    %6 = arith.addf %5, %4 : vector<64x1024xf32>
    %7 = vector.extract_strided_slice %6 {offsets = [0, 0], sizes = [64, 512], strides = [1, 1]} : vector<64x1024xf32> to vector<64x512xf32>
    %8 = vector.shape_cast %7 : vector<64x512xf32> to vector<8x8x512xf32>
    %c0_6 = arith.constant 0 : index
    %c0_7 = arith.constant 0 : index
    %c0_8 = arith.constant 0 : index
    %9 = vector.load %arg11[%c0_6, %c0_7, %c0_8] : memref<8x8x512xf32, #tpu.memory_space<vmem>>, vector<8x8x512xf32>
    tpu.vector_store %arg11[%c0_6, %c0_7, %c0_8], %8 {strides = array<i32>} : memref<8x8x512xf32, #tpu.memory_space<vmem>>, vector<8x8x512xf32>,
    %10 = vector.extract_strided_slice %6 {offsets = [0, 512], sizes = [64, 512], strides = [1, 1]} : vector<64x1024xf32> to vector<64x512xf32>
    %11 = vector.shape_cast %10 : vector<64x512xf32> to vector<8x8x512xf32>
    %c0_9 = arith.constant 0 : index
    %c0_10 = arith.constant 0 : index
    %c0_11 = arith.constant 0 : index
    %12 = vector.load %arg12[%c0_9, %c0_10, %c0_11] : memref<8x8x512xf32, #tpu.memory_space<vmem>>, vector<8x8x512xf32>
    tpu.vector_store %arg12[%c0_9, %c0_10, %c0_11], %11 {strides = array<i32>} : memref<8x8x512xf32, #tpu.memory_space<vmem>>, vector<8x8x512xf32>,
    %c0_12 = arith.constant 0 : index
    %c0_13 = arith.constant 0 : index
    %c0_14 = arith.constant 0 : index
    %13 = vector.load %arg2[%c0_12, %c0_13, %c0_14] : memref<2x128x512xbf16, #tpu.memory_space<vmem>>, vector<1x128x512xbf16>
    %14 = vector.shape_cast %13 : vector<1x128x512xbf16> to vector<128x512xbf16>
    %c1 = arith.constant 1 : index
    %c0_15 = arith.constant 0 : index
    %c0_16 = arith.constant 0 : index
    %15 = vector.load %arg2[%c1, %c0_15, %c0_16] : memref<2x128x512xbf16, #tpu.memory_space<vmem>>, vector<1x128x512xbf16>
    %16 = vector.shape_cast %15 : vector<1x128x512xbf16> to vector<128x512xbf16>
    %cst_17 = arith.constant 0.000000e+00 : f32
    %17 = vector.broadcast %cst_17 : f32 to vector<8x128xf32>
    %c0_i32 = arith.constant 0 : i32
    %c7_i32 = arith.constant 7 : i32
    %18 = arith.subi %c7_i32, %c0_i32 : i32
    %19 = arith.index_cast %c0_i32 : i32 to index
    %c0_18 = arith.constant 0 : index
    %c0_19 = arith.constant 0 : index
    %20 = vector.load %arg11[%19, %c0_18, %c0_19] : memref<8x8x512xf32, #tpu.memory_space<vmem>>, vector<1x8x512xf32>
    %21 = vector.shape_cast %20 : vector<1x8x512xf32> to vector<8x512xf32>
    %22 = arith.truncf %17 : vector<8x128xf32> to vector<8x128xbf16>
    %cst_20 = arith.constant dense<0.000000e+00> : vector<8x512xf32>
    %23 = tpu.matmul %22, %14, %cst_20 {dimension_numbers = #tpu.dot_dimension_numbers<[1], [0], [0], [1], [0, 0, 1, 1], [], []>} : vector<8x128xbf16>, vector<128x512xbf16>, vector<8x512xf32> -> vector<8x512xf32>
    %24 = arith.addf %21, %23 : vector<8x512xf32>
    %25 = vector.extract_strided_slice %24 {offsets = [0, 0], sizes = [8, 256], strides = [1, 1]} : vector<8x512xf32> to vector<8x256xf32>
    %26 = arith.negf %25 : vector<8x256xf32>
    %27 = math.exp %26 : vector<8x256xf32>
    %cst_21 = arith.constant 1.000000e+00 : f32
    %28 = vector.broadcast %cst_21 : f32 to vector<8x256xf32>
    %29 = arith.addf %28, %27 : vector<8x256xf32>
    %30 = arith.divf %28, %29 : vector<8x256xf32>
    %31 = vector.extract_strided_slice %30 {offsets = [0, 0], sizes = [8, 128], strides = [1, 1]} : vector<8x256xf32> to vector<8x128xf32>
    %32 = vector.extract_strided_slice %30 {offsets = [0, 128], sizes = [8, 128], strides = [1, 1]} : vector<8x256xf32> to vector<8x128xf32>
    %33 = vector.extract_strided_slice %24 {offsets = [0, 256], sizes = [8, 128], strides = [1, 1]} : vector<8x512xf32> to vector<8x128xf32>
    %34 = math.tanh %33 : vector<8x128xf32>
    %35 = vector.extract_strided_slice %24 {offsets = [0, 384], sizes = [8, 128], strides = [1, 1]} : vector<8x512xf32> to vector<8x128xf32>
    %36 = arith.negf %35 : vector<8x128xf32>
    %37 = math.exp %36 : vector<8x128xf32>
    %cst_22 = arith.constant 1.000000e+00 : f32
    %38 = vector.broadcast %cst_22 : f32 to vector<8x128xf32>
    %39 = arith.addf %38, %37 : vector<8x128xf32>
    %40 = arith.divf %38, %39 : vector<8x128xf32>
    %41 = arith.mulf %32, %17 : vector<8x128xf32>
    %42 = arith.mulf %31, %34 : vector<8x128xf32>
    %43 = arith.addf %41, %42 : vector<8x128xf32>
    %44 = math.tanh %43 : vector<8x128xf32>
    %45 = arith.mulf %40, %44 : vector<8x128xf32>
    %46 = arith.index_cast %18 : i32 to index
    %c0_23 = arith.constant 0 : index
    %c0_24 = arith.constant 0 : index
    %47 = vector.load %arg12[%46, %c0_23, %c0_24] : memref<8x8x512xf32, #tpu.memory_space<vmem>>, vector<1x8x512xf32>
    %48 = vector.shape_cast %47 : vector<1x8x512xf32> to vector<8x512xf32>
    %49 = arith.truncf %17 : vector<8x128xf32> to vector<8x128xbf16>
    %cst_25 = arith.constant dense<0.000000e+00> : vector<8x512xf32>
    %50 = tpu.matmul %49, %16, %cst_25 {dimension_numbers = #tpu.dot_dimension_numbers<[1], [0], [0], [1], [0, 0, 1, 1], [], []>} : vector<8x128xbf16>, vector<128x512xbf16>, vector<8x512xf32> -> vector<8x512xf32>
    %51 = arith.addf %48, %50 : vector<8x512xf32>
    %52 = vector.extract_strided_slice %51 {offsets = [0, 0], sizes = [8, 256], strides = [1, 1]} : vector<8x512xf32> to vector<8x256xf32>
    %53 = arith.negf %52 : vector<8x256xf32>
    %54 = math.exp %53 : vector<8x256xf32>
    %cst_26 = arith.constant 1.000000e+00 : f32
    %55 = vector.broadcast %cst_26 : f32 to vector<8x256xf32>
    %56 = arith.addf %55, %54 : vector<8x256xf32>
    %57 = arith.divf %55, %56 : vector<8x256xf32>
    %58 = vector.extract_strided_slice %57 {offsets = [0, 0], sizes = [8, 128], strides = [1, 1]} : vector<8x256xf32> to vector<8x128xf32>
    %59 = vector.extract_strided_slice %57 {offsets = [0, 128], sizes = [8, 128], strides = [1, 1]} : vector<8x256xf32> to vector<8x128xf32>
    %60 = vector.extract_strided_slice %51 {offsets = [0, 256], sizes = [8, 128], strides = [1, 1]} : vector<8x512xf32> to vector<8x128xf32>
    %61 = math.tanh %60 : vector<8x128xf32>
    %62 = vector.extract_strided_slice %51 {offsets = [0, 384], sizes = [8, 128], strides = [1, 1]} : vector<8x512xf32> to vector<8x128xf32>
    %63 = arith.negf %62 : vector<8x128xf32>
    %64 = math.exp %63 : vector<8x128xf32>
    %cst_27 = arith.constant 1.000000e+00 : f32
    %65 = vector.broadcast %cst_27 : f32 to vector<8x128xf32>
    %66 = arith.addf %65, %64 : vector<8x128xf32>
    %67 = arith.divf %65, %66 : vector<8x128xf32>
    %68 = arith.mulf %59, %17 : vector<8x128xf32>
    %69 = arith.mulf %58, %61 : vector<8x128xf32>
    %70 = arith.addf %68, %69 : vector<8x128xf32>
    %71 = math.tanh %70 : vector<8x128xf32>
    %72 = arith.mulf %67, %71 : vector<8x128xf32>
    %73 = arith.index_cast %c0_i32 : i32 to index
    %c0_28 = arith.constant 0 : index
    %c0_29 = arith.constant 0 : index
    %74 = vector.load %arg10[%73, %c0_28, %c0_29] : memref<8x8x256xf32, #tpu.memory_space<vmem>>, vector<1x8x128xf32>
    %75 = vector.shape_cast %74 : vector<1x8x128xf32> to vector<8x128xf32>
    %76 = vector.shape_cast %45 : vector<8x128xf32> to vector<1x8x128xf32>
    tpu.vector_store %arg10[%73, %c0_28, %c0_29], %76 {strides = array<i32>} : memref<8x8x256xf32, #tpu.memory_space<vmem>>, vector<1x8x128xf32>,
    %77 = arith.index_cast %18 : i32 to index
    %c0_30 = arith.constant 0 : index
    %c128 = arith.constant 128 : index
    %78 = vector.load %arg10[%77, %c0_30, %c128] : memref<8x8x256xf32, #tpu.memory_space<vmem>>, vector<1x8x128xf32>
    %79 = vector.shape_cast %78 : vector<1x8x128xf32> to vector<8x128xf32>
    %80 = vector.shape_cast %72 : vector<8x128xf32> to vector<1x8x128xf32>
    tpu.vector_store %arg10[%77, %c0_30, %c128], %80 {strides = array<i32>} : memref<8x8x256xf32, #tpu.memory_space<vmem>>, vector<1x8x128xf32>,
    %c1_i32 = arith.constant 1 : i32
    %c7_i32_31 = arith.constant 7 : i32
    %81 = arith.subi %c7_i32_31, %c1_i32 : i32
    %82 = arith.index_cast %c1_i32 : i32 to index
    %c0_32 = arith.constant 0 : index
    %c0_33 = arith.constant 0 : index
    %83 = vector.load %arg11[%82, %c0_32, %c0_33] : memref<8x8x512xf32, #tpu.memory_space<vmem>>, vector<1x8x512xf32>
    %84 = vector.shape_cast %83 : vector<1x8x512xf32> to vector<8x512xf32>
    %85 = arith.truncf %45 : vector<8x128xf32> to vector<8x128xbf16>
    %cst_34 = arith.constant dense<0.000000e+00> : vector<8x512xf32>
    %86 = tpu.matmul %85, %14, %cst_34 {dimension_numbers = #tpu.dot_dimension_numbers<[1], [0], [0], [1], [0, 0, 1, 1], [], []>} : vector<8x128xbf16>, vector<128x512xbf16>, vector<8x512xf32> -> vector<8x512xf32>
    %87 = arith.addf %84, %86 : vector<8x512xf32>
    %88 = vector.extract_strided_slice %87 {offsets = [0, 0], sizes = [8, 256], strides = [1, 1]} : vector<8x512xf32> to vector<8x256xf32>
    %89 = arith.negf %88 : vector<8x256xf32>
    %90 = math.exp %89 : vector<8x256xf32>
    %cst_35 = arith.constant 1.000000e+00 : f32
    %91 = vector.broadcast %cst_35 : f32 to vector<8x256xf32>
    %92 = arith.addf %91, %90 : vector<8x256xf32>
    %93 = arith.divf %91, %92 : vector<8x256xf32>
    %94 = vector.extract_strided_slice %93 {offsets = [0, 0], sizes = [8, 128], strides = [1, 1]} : vector<8x256xf32> to vector<8x128xf32>
    %95 = vector.extract_strided_slice %93 {offsets = [0, 128], sizes = [8, 128], strides = [1, 1]} : vector<8x256xf32> to vector<8x128xf32>
    %96 = vector.extract_strided_slice %87 {offsets = [0, 256], sizes = [8, 128], strides = [1, 1]} : vector<8x512xf32> to vector<8x128xf32>
    %97 = math.tanh %96 : vector<8x128xf32>
    %98 = vector.extract_strided_slice %87 {offsets = [0, 384], sizes = [8, 128], strides = [1, 1]} : vector<8x512xf32> to vector<8x128xf32>
    %99 = arith.negf %98 : vector<8x128xf32>
    %100 = math.exp %99 : vector<8x128xf32>
    %cst_36 = arith.constant 1.000000e+00 : f32
    %101 = vector.broadcast %cst_36 : f32 to vector<8x128xf32>
    %102 = arith.addf %101, %100 : vector<8x128xf32>
    %103 = arith.divf %101, %102 : vector<8x128xf32>
    %104 = arith.mulf %95, %43 : vector<8x128xf32>
    %105 = arith.mulf %94, %97 : vector<8x128xf32>
    %106 = arith.addf %104, %105 : vector<8x128xf32>
    %107 = math.tanh %106 : vector<8x128xf32>
    %108 = arith.mulf %103, %107 : vector<8x128xf32>
    %109 = arith.index_cast %81 : i32 to index
    %c0_37 = arith.constant 0 : index
    %c0_38 = arith.constant 0 : index
    %110 = vector.load %arg12[%109, %c0_37, %c0_38] : memref<8x8x512xf32, #tpu.memory_space<vmem>>, vector<1x8x512xf32>
    %111 = vector.shape_cast %110 : vector<1x8x512xf32> to vector<8x512xf32>
    %112 = arith.truncf %72 : vector<8x128xf32> to vector<8x128xbf16>
    %cst_39 = arith.constant dense<0.000000e+00> : vector<8x512xf32>
    %113 = tpu.matmul %112, %16, %cst_39 {dimension_numbers = #tpu.dot_dimension_numbers<[1], [0], [0], [1], [0, 0, 1, 1], [], []>} : vector<8x128xbf16>, vector<128x512xbf16>, vector<8x512xf32> -> vector<8x512xf32>
    %114 = arith.addf %111, %113 : vector<8x512xf32>
    %115 = vector.extract_strided_slice %114 {offsets = [0, 0], sizes = [8, 256], strides = [1, 1]} : vector<8x512xf32> to vector<8x256xf32>
    %116 = arith.negf %115 : vector<8x256xf32>
    %117 = math.exp %116 : vector<8x256xf32>
    %cst_40 = arith.constant 1.000000e+00 : f32
    %118 = vector.broadcast %cst_40 : f32 to vector<8x256xf32>
    %119 = arith.addf %118, %117 : vector<8x256xf32>
    %120 = arith.divf %118, %119 : vector<8x256xf32>
    %121 = vector.extract_strided_slice %120 {offsets = [0, 0], sizes = [8, 128], strides = [1, 1]} : vector<8x256xf32> to vector<8x128xf32>
    %122 = vector.extract_strided_slice %120 {offsets = [0, 128], sizes = [8, 128], strides = [1, 1]} : vector<8x256xf32> to vector<8x128xf32>
    %123 = vector.extract_strided_slice %114 {offsets = [0, 256], sizes = [8, 128], strides = [1, 1]} : vector<8x512xf32> to vector<8x128xf32>
    %124 = math.tanh %123 : vector<8x128xf32>
    %125 = vector.extract_strided_slice %114 {offsets = [0, 384], sizes = [8, 128], strides = [1, 1]} : vector<8x512xf32> to vector<8x128xf32>
    %126 = arith.negf %125 : vector<8x128xf32>
    %127 = math.exp %126 : vector<8x128xf32>
    %cst_41 = arith.constant 1.000000e+00 : f32
    %128 = vector.broadcast %cst_41 : f32 to vector<8x128xf32>
    %129 = arith.addf %128, %127 : vector<8x128xf32>
    %130 = arith.divf %128, %129 : vector<8x128xf32>
    %131 = arith.mulf %122, %70 : vector<8x128xf32>
    %132 = arith.mulf %121, %124 : vector<8x128xf32>
    %133 = arith.addf %131, %132 : vector<8x128xf32>
    %134 = math.tanh %133 : vector<8x128xf32>
    %135 = arith.mulf %130, %134 : vector<8x128xf32>
    %136 = arith.index_cast %c1_i32 : i32 to index
    %c0_42 = arith.constant 0 : index
    %c0_43 = arith.constant 0 : index
    %137 = vector.load %arg10[%136, %c0_42, %c0_43] : memref<8x8x256xf32, #tpu.memory_space<vmem>>, vector<1x8x128xf32>
    %138 = vector.shape_cast %137 : vector<1x8x128xf32> to vector<8x128xf32>
    %139 = vector.shape_cast %108 : vector<8x128xf32> to vector<1x8x128xf32>
    tpu.vector_store %arg10[%136, %c0_42, %c0_43], %139 {strides = array<i32>} : memref<8x8x256xf32, #tpu.memory_space<vmem>>, vector<1x8x128xf32>,
    %140 = arith.index_cast %81 : i32 to index
    %c0_44 = arith.constant 0 : index
    %c128_45 = arith.constant 128 : index
    %141 = vector.load %arg10[%140, %c0_44, %c128_45] : memref<8x8x256xf32, #tpu.memory_space<vmem>>, vector<1x8x128xf32>
    %142 = vector.shape_cast %141 : vector<1x8x128xf32> to vector<8x128xf32>
    %143 = vector.shape_cast %135 : vector<8x128xf32> to vector<1x8x128xf32>
    tpu.vector_store %arg10[%140, %c0_44, %c128_45], %143 {strides = array<i32>} : memref<8x8x256xf32, #tpu.memory_space<vmem>>, vector<1x8x128xf32>,
    %c2_i32 = arith.constant 2 : i32
    %c7_i32_46 = arith.constant 7 : i32
    %144 = arith.subi %c7_i32_46, %c2_i32 : i32
    %145 = arith.index_cast %c2_i32 : i32 to index
    %c0_47 = arith.constant 0 : index
    %c0_48 = arith.constant 0 : index
    %146 = vector.load %arg11[%145, %c0_47, %c0_48] : memref<8x8x512xf32, #tpu.memory_space<vmem>>, vector<1x8x512xf32>
    %147 = vector.shape_cast %146 : vector<1x8x512xf32> to vector<8x512xf32>
    %148 = arith.truncf %108 : vector<8x128xf32> to vector<8x128xbf16>
    %cst_49 = arith.constant dense<0.000000e+00> : vector<8x512xf32>
    %149 = tpu.matmul %148, %14, %cst_49 {dimension_numbers = #tpu.dot_dimension_numbers<[1], [0], [0], [1], [0, 0, 1, 1], [], []>} : vector<8x128xbf16>, vector<128x512xbf16>, vector<8x512xf32> -> vector<8x512xf32>
    %150 = arith.addf %147, %149 : vector<8x512xf32>
    %151 = vector.extract_strided_slice %150 {offsets = [0, 0], sizes = [8, 256], strides = [1, 1]} : vector<8x512xf32> to vector<8x256xf32>
    %152 = arith.negf %151 : vector<8x256xf32>
    %153 = math.exp %152 : vector<8x256xf32>
    %cst_50 = arith.constant 1.000000e+00 : f32
    %154 = vector.broadcast %cst_50 : f32 to vector<8x256xf32>
    %155 = arith.addf %154, %153 : vector<8x256xf32>
    %156 = arith.divf %154, %155 : vector<8x256xf32>
    %157 = vector.extract_strided_slice %156 {offsets = [0, 0], sizes = [8, 128], strides = [1, 1]} : vector<8x256xf32> to vector<8x128xf32>
    %158 = vector.extract_strided_slice %156 {offsets = [0, 128], sizes = [8, 128], strides = [1, 1]} : vector<8x256xf32> to vector<8x128xf32>
    %159 = vector.extract_strided_slice %150 {offsets = [0, 256], sizes = [8, 128], strides = [1, 1]} : vector<8x512xf32> to vector<8x128xf32>
    %160 = math.tanh %159 : vector<8x128xf32>
    %161 = vector.extract_strided_slice %150 {offsets = [0, 384], sizes = [8, 128], strides = [1, 1]} : vector<8x512xf32> to vector<8x128xf32>
    %162 = arith.negf %161 : vector<8x128xf32>
    %163 = math.exp %162 : vector<8x128xf32>
    %cst_51 = arith.constant 1.000000e+00 : f32
    %164 = vector.broadcast %cst_51 : f32 to vector<8x128xf32>
    %165 = arith.addf %164, %163 : vector<8x128xf32>
    %166 = arith.divf %164, %165 : vector<8x128xf32>
    %167 = arith.mulf %158, %106 : vector<8x128xf32>
    %168 = arith.mulf %157, %160 : vector<8x128xf32>
    %169 = arith.addf %167, %168 : vector<8x128xf32>
    %170 = math.tanh %169 : vector<8x128xf32>
    %171 = arith.mulf %166, %170 : vector<8x128xf32>
    %172 = arith.index_cast %144 : i32 to index
    %c0_52 = arith.constant 0 : index
    %c0_53 = arith.constant 0 : index
    %173 = vector.load %arg12[%172, %c0_52, %c0_53] : memref<8x8x512xf32, #tpu.memory_space<vmem>>, vector<1x8x512xf32>
    %174 = vector.shape_cast %173 : vector<1x8x512xf32> to vector<8x512xf32>
    %175 = arith.truncf %135 : vector<8x128xf32> to vector<8x128xbf16>
    %cst_54 = arith.constant dense<0.000000e+00> : vector<8x512xf32>
    %176 = tpu.matmul %175, %16, %cst_54 {dimension_numbers = #tpu.dot_dimension_numbers<[1], [0], [0], [1], [0, 0, 1, 1], [], []>} : vector<8x128xbf16>, vector<128x512xbf16>, vector<8x512xf32> -> vector<8x512xf32>
    %177 = arith.addf %174, %176 : vector<8x512xf32>
    %178 = vector.extract_strided_slice %177 {offsets = [0, 0], sizes = [8, 256], strides = [1, 1]} : vector<8x512xf32> to vector<8x256xf32>
    %179 = arith.negf %178 : vector<8x256xf32>
    %180 = math.exp %179 : vector<8x256xf32>
    %cst_55 = arith.constant 1.000000e+00 : f32
    %181 = vector.broadcast %cst_55 : f32 to vector<8x256xf32>
    %182 = arith.addf %181, %180 : vector<8x256xf32>
    %183 = arith.divf %181, %182 : vector<8x256xf32>
    %184 = vector.extract_strided_slice %183 {offsets = [0, 0], sizes = [8, 128], strides = [1, 1]} : vector<8x256xf32> to vector<8x128xf32>
    %185 = vector.extract_strided_slice %183 {offsets = [0, 128], sizes = [8, 128], strides = [1, 1]} : vector<8x256xf32> to vector<8x128xf32>
    %186 = vector.extract_strided_slice %177 {offsets = [0, 256], sizes = [8, 128], strides = [1, 1]} : vector<8x512xf32> to vector<8x128xf32>
    %187 = math.tanh %186 : vector<8x128xf32>
    %188 = vector.extract_strided_slice %177 {offsets = [0, 384], sizes = [8, 128], strides = [1, 1]} : vector<8x512xf32> to vector<8x128xf32>
    %189 = arith.negf %188 : vector<8x128xf32>
    %190 = math.exp %189 : vector<8x128xf32>
    %cst_56 = arith.constant 1.000000e+00 : f32
    %191 = vector.broadcast %cst_56 : f32 to vector<8x128xf32>
    %192 = arith.addf %191, %190 : vector<8x128xf32>
    %193 = arith.divf %191, %192 : vector<8x128xf32>
    %194 = arith.mulf %185, %133 : vector<8x128xf32>
    %195 = arith.mulf %184, %187 : vector<8x128xf32>
    %196 = arith.addf %194, %195 : vector<8x128xf32>
    %197 = math.tanh %196 : vector<8x128xf32>
    %198 = arith.mulf %193, %197 : vector<8x128xf32>
    %199 = arith.index_cast %c2_i32 : i32 to index
    %c0_57 = arith.constant 0 : index
    %c0_58 = arith.constant 0 : index
    %200 = vector.load %arg10[%199, %c0_57, %c0_58] : memref<8x8x256xf32, #tpu.memory_space<vmem>>, vector<1x8x128xf32>
    %201 = vector.shape_cast %200 : vector<1x8x128xf32> to vector<8x128xf32>
    %202 = vector.shape_cast %171 : vector<8x128xf32> to vector<1x8x128xf32>
    tpu.vector_store %arg10[%199, %c0_57, %c0_58], %202 {strides = array<i32>} : memref<8x8x256xf32, #tpu.memory_space<vmem>>, vector<1x8x128xf32>,
    %203 = arith.index_cast %144 : i32 to index
    %c0_59 = arith.constant 0 : index
    %c128_60 = arith.constant 128 : index
    %204 = vector.load %arg10[%203, %c0_59, %c128_60] : memref<8x8x256xf32, #tpu.memory_space<vmem>>, vector<1x8x128xf32>
    %205 = vector.shape_cast %204 : vector<1x8x128xf32> to vector<8x128xf32>
    %206 = vector.shape_cast %198 : vector<8x128xf32> to vector<1x8x128xf32>
    tpu.vector_store %arg10[%203, %c0_59, %c128_60], %206 {strides = array<i32>} : memref<8x8x256xf32, #tpu.memory_space<vmem>>, vector<1x8x128xf32>,
    %c3_i32 = arith.constant 3 : i32
    %c7_i32_61 = arith.constant 7 : i32
    %207 = arith.subi %c7_i32_61, %c3_i32 : i32
    %208 = arith.index_cast %c3_i32 : i32 to index
    %c0_62 = arith.constant 0 : index
    %c0_63 = arith.constant 0 : index
    %209 = vector.load %arg11[%208, %c0_62, %c0_63] : memref<8x8x512xf32, #tpu.memory_space<vmem>>, vector<1x8x512xf32>
    %210 = vector.shape_cast %209 : vector<1x8x512xf32> to vector<8x512xf32>
    %211 = arith.truncf %171 : vector<8x128xf32> to vector<8x128xbf16>
    %cst_64 = arith.constant dense<0.000000e+00> : vector<8x512xf32>
    %212 = tpu.matmul %211, %14, %cst_64 {dimension_numbers = #tpu.dot_dimension_numbers<[1], [0], [0], [1], [0, 0, 1, 1], [], []>} : vector<8x128xbf16>, vector<128x512xbf16>, vector<8x512xf32> -> vector<8x512xf32>
    %213 = arith.addf %210, %212 : vector<8x512xf32>
    %214 = vector.extract_strided_slice %213 {offsets = [0, 0], sizes = [8, 256], strides = [1, 1]} : vector<8x512xf32> to vector<8x256xf32>
    %215 = arith.negf %214 : vector<8x256xf32>
    %216 = math.exp %215 : vector<8x256xf32>
    %cst_65 = arith.constant 1.000000e+00 : f32
    %217 = vector.broadcast %cst_65 : f32 to vector<8x256xf32>
    %218 = arith.addf %217, %216 : vector<8x256xf32>
    %219 = arith.divf %217, %218 : vector<8x256xf32>
    %220 = vector.extract_strided_slice %219 {offsets = [0, 0], sizes = [8, 128], strides = [1, 1]} : vector<8x256xf32> to vector<8x128xf32>
    %221 = vector.extract_strided_slice %219 {offsets = [0, 128], sizes = [8, 128], strides = [1, 1]} : vector<8x256xf32> to vector<8x128xf32>
    %222 = vector.extract_strided_slice %213 {offsets = [0, 256], sizes = [8, 128], strides = [1, 1]} : vector<8x512xf32> to vector<8x128xf32>
    %223 = math.tanh %222 : vector<8x128xf32>
    %224 = vector.extract_strided_slice %213 {offsets = [0, 384], sizes = [8, 128], strides = [1, 1]} : vector<8x512xf32> to vector<8x128xf32>
    %225 = arith.negf %224 : vector<8x128xf32>
    %226 = math.exp %225 : vector<8x128xf32>
    %cst_66 = arith.constant 1.000000e+00 : f32
    %227 = vector.broadcast %cst_66 : f32 to vector<8x128xf32>
    %228 = arith.addf %227, %226 : vector<8x128xf32>
    %229 = arith.divf %227, %228 : vector<8x128xf32>
    %230 = arith.mulf %221, %169 : vector<8x128xf32>
    %231 = arith.mulf %220, %223 : vector<8x128xf32>
    %232 = arith.addf %230, %231 : vector<8x128xf32>
    %233 = math.tanh %232 : vector<8x128xf32>
    %234 = arith.mulf %229, %233 : vector<8x128xf32>
    %235 = arith.index_cast %207 : i32 to index
    %c0_67 = arith.constant 0 : index
    %c0_68 = arith.constant 0 : index
    %236 = vector.load %arg12[%235, %c0_67, %c0_68] : memref<8x8x512xf32, #tpu.memory_space<vmem>>, vector<1x8x512xf32>
    %237 = vector.shape_cast %236 : vector<1x8x512xf32> to vector<8x512xf32>
    %238 = arith.truncf %198 : vector<8x128xf32> to vector<8x128xbf16>
    %cst_69 = arith.constant dense<0.000000e+00> : vector<8x512xf32>
    %239 = tpu.matmul %238, %16, %cst_69 {dimension_numbers = #tpu.dot_dimension_numbers<[1], [0], [0], [1], [0, 0, 1, 1], [], []>} : vector<8x128xbf16>, vector<128x512xbf16>, vector<8x512xf32> -> vector<8x512xf32>
    %240 = arith.addf %237, %239 : vector<8x512xf32>
    %241 = vector.extract_strided_slice %240 {offsets = [0, 0], sizes = [8, 256], strides = [1, 1]} : vector<8x512xf32> to vector<8x256xf32>
    %242 = arith.negf %241 : vector<8x256xf32>
    %243 = math.exp %242 : vector<8x256xf32>
    %cst_70 = arith.constant 1.000000e+00 : f32
    %244 = vector.broadcast %cst_70 : f32 to vector<8x256xf32>
    %245 = arith.addf %244, %243 : vector<8x256xf32>
    %246 = arith.divf %244, %245 : vector<8x256xf32>
    %247 = vector.extract_strided_slice %246 {offsets = [0, 0], sizes = [8, 128], strides = [1, 1]} : vector<8x256xf32> to vector<8x128xf32>
    %248 = vector.extract_strided_slice %246 {offsets = [0, 128], sizes = [8, 128], strides = [1, 1]} : vector<8x256xf32> to vector<8x128xf32>
    %249 = vector.extract_strided_slice %240 {offsets = [0, 256], sizes = [8, 128], strides = [1, 1]} : vector<8x512xf32> to vector<8x128xf32>
    %250 = math.tanh %249 : vector<8x128xf32>
    %251 = vector.extract_strided_slice %240 {offsets = [0, 384], sizes = [8, 128], strides = [1, 1]} : vector<8x512xf32> to vector<8x128xf32>
    %252 = arith.negf %251 : vector<8x128xf32>
    %253 = math.exp %252 : vector<8x128xf32>
    %cst_71 = arith.constant 1.000000e+00 : f32
    %254 = vector.broadcast %cst_71 : f32 to vector<8x128xf32>
    %255 = arith.addf %254, %253 : vector<8x128xf32>
    %256 = arith.divf %254, %255 : vector<8x128xf32>
    %257 = arith.mulf %248, %196 : vector<8x128xf32>
    %258 = arith.mulf %247, %250 : vector<8x128xf32>
    %259 = arith.addf %257, %258 : vector<8x128xf32>
    %260 = math.tanh %259 : vector<8x128xf32>
    %261 = arith.mulf %256, %260 : vector<8x128xf32>
    %262 = arith.index_cast %c3_i32 : i32 to index
    %c0_72 = arith.constant 0 : index
    %c0_73 = arith.constant 0 : index
    %263 = vector.load %arg10[%262, %c0_72, %c0_73] : memref<8x8x256xf32, #tpu.memory_space<vmem>>, vector<1x8x128xf32>
    %264 = vector.shape_cast %263 : vector<1x8x128xf32> to vector<8x128xf32>
    %265 = vector.shape_cast %234 : vector<8x128xf32> to vector<1x8x128xf32>
    tpu.vector_store %arg10[%262, %c0_72, %c0_73], %265 {strides = array<i32>} : memref<8x8x256xf32, #tpu.memory_space<vmem>>, vector<1x8x128xf32>,
    %266 = arith.index_cast %207 : i32 to index
    %c0_74 = arith.constant 0 : index
    %c128_75 = arith.constant 128 : index
    %267 = vector.load %arg10[%266, %c0_74, %c128_75] : memref<8x8x256xf32, #tpu.memory_space<vmem>>, vector<1x8x128xf32>
    %268 = vector.shape_cast %267 : vector<1x8x128xf32> to vector<8x128xf32>
    %269 = vector.shape_cast %261 : vector<8x128xf32> to vector<1x8x128xf32>
    tpu.vector_store %arg10[%266, %c0_74, %c128_75], %269 {strides = array<i32>} : memref<8x8x256xf32, #tpu.memory_space<vmem>>, vector<1x8x128xf32>,
    %c4_i32 = arith.constant 4 : i32
    %c7_i32_76 = arith.constant 7 : i32
    %270 = arith.subi %c7_i32_76, %c4_i32 : i32
    %271 = arith.index_cast %c4_i32 : i32 to index
    %c0_77 = arith.constant 0 : index
    %c0_78 = arith.constant 0 : index
    %272 = vector.load %arg11[%271, %c0_77, %c0_78] : memref<8x8x512xf32, #tpu.memory_space<vmem>>, vector<1x8x512xf32>
    %273 = vector.shape_cast %272 : vector<1x8x512xf32> to vector<8x512xf32>
    %274 = arith.truncf %234 : vector<8x128xf32> to vector<8x128xbf16>
    %cst_79 = arith.constant dense<0.000000e+00> : vector<8x512xf32>
    %275 = tpu.matmul %274, %14, %cst_79 {dimension_numbers = #tpu.dot_dimension_numbers<[1], [0], [0], [1], [0, 0, 1, 1], [], []>} : vector<8x128xbf16>, vector<128x512xbf16>, vector<8x512xf32> -> vector<8x512xf32>
    %276 = arith.addf %273, %275 : vector<8x512xf32>
    %277 = vector.extract_strided_slice %276 {offsets = [0, 0], sizes = [8, 256], strides = [1, 1]} : vector<8x512xf32> to vector<8x256xf32>
    %278 = arith.negf %277 : vector<8x256xf32>
    %279 = math.exp %278 : vector<8x256xf32>
    %cst_80 = arith.constant 1.000000e+00 : f32
    %280 = vector.broadcast %cst_80 : f32 to vector<8x256xf32>
    %281 = arith.addf %280, %279 : vector<8x256xf32>
    %282 = arith.divf %280, %281 : vector<8x256xf32>
    %283 = vector.extract_strided_slice %282 {offsets = [0, 0], sizes = [8, 128], strides = [1, 1]} : vector<8x256xf32> to vector<8x128xf32>
    %284 = vector.extract_strided_slice %282 {offsets = [0, 128], sizes = [8, 128], strides = [1, 1]} : vector<8x256xf32> to vector<8x128xf32>
    %285 = vector.extract_strided_slice %276 {offsets = [0, 256], sizes = [8, 128], strides = [1, 1]} : vector<8x512xf32> to vector<8x128xf32>
    %286 = math.tanh %285 : vector<8x128xf32>
    %287 = vector.extract_strided_slice %276 {offsets = [0, 384], sizes = [8, 128], strides = [1, 1]} : vector<8x512xf32> to vector<8x128xf32>
    %288 = arith.negf %287 : vector<8x128xf32>
    %289 = math.exp %288 : vector<8x128xf32>
    %cst_81 = arith.constant 1.000000e+00 : f32
    %290 = vector.broadcast %cst_81 : f32 to vector<8x128xf32>
    %291 = arith.addf %290, %289 : vector<8x128xf32>
    %292 = arith.divf %290, %291 : vector<8x128xf32>
    %293 = arith.mulf %284, %232 : vector<8x128xf32>
    %294 = arith.mulf %283, %286 : vector<8x128xf32>
    %295 = arith.addf %293, %294 : vector<8x128xf32>
    %296 = math.tanh %295 : vector<8x128xf32>
    %297 = arith.mulf %292, %296 : vector<8x128xf32>
    %298 = arith.index_cast %270 : i32 to index
    %c0_82 = arith.constant 0 : index
    %c0_83 = arith.constant 0 : index
    %299 = vector.load %arg12[%298, %c0_82, %c0_83] : memref<8x8x512xf32, #tpu.memory_space<vmem>>, vector<1x8x512xf32>
    %300 = vector.shape_cast %299 : vector<1x8x512xf32> to vector<8x512xf32>
    %301 = arith.truncf %261 : vector<8x128xf32> to vector<8x128xbf16>
    %cst_84 = arith.constant dense<0.000000e+00> : vector<8x512xf32>
    %302 = tpu.matmul %301, %16, %cst_84 {dimension_numbers = #tpu.dot_dimension_numbers<[1], [0], [0], [1], [0, 0, 1, 1], [], []>} : vector<8x128xbf16>, vector<128x512xbf16>, vector<8x512xf32> -> vector<8x512xf32>
    %303 = arith.addf %300, %302 : vector<8x512xf32>
    %304 = vector.extract_strided_slice %303 {offsets = [0, 0], sizes = [8, 256], strides = [1, 1]} : vector<8x512xf32> to vector<8x256xf32>
    %305 = arith.negf %304 : vector<8x256xf32>
    %306 = math.exp %305 : vector<8x256xf32>
    %cst_85 = arith.constant 1.000000e+00 : f32
    %307 = vector.broadcast %cst_85 : f32 to vector<8x256xf32>
    %308 = arith.addf %307, %306 : vector<8x256xf32>
    %309 = arith.divf %307, %308 : vector<8x256xf32>
    %310 = vector.extract_strided_slice %309 {offsets = [0, 0], sizes = [8, 128], strides = [1, 1]} : vector<8x256xf32> to vector<8x128xf32>
    %311 = vector.extract_strided_slice %309 {offsets = [0, 128], sizes = [8, 128], strides = [1, 1]} : vector<8x256xf32> to vector<8x128xf32>
    %312 = vector.extract_strided_slice %303 {offsets = [0, 256], sizes = [8, 128], strides = [1, 1]} : vector<8x512xf32> to vector<8x128xf32>
    %313 = math.tanh %312 : vector<8x128xf32>
    %314 = vector.extract_strided_slice %303 {offsets = [0, 384], sizes = [8, 128], strides = [1, 1]} : vector<8x512xf32> to vector<8x128xf32>
    %315 = arith.negf %314 : vector<8x128xf32>
    %316 = math.exp %315 : vector<8x128xf32>
    %cst_86 = arith.constant 1.000000e+00 : f32
    %317 = vector.broadcast %cst_86 : f32 to vector<8x128xf32>
    %318 = arith.addf %317, %316 : vector<8x128xf32>
    %319 = arith.divf %317, %318 : vector<8x128xf32>
    %320 = arith.mulf %311, %259 : vector<8x128xf32>
    %321 = arith.mulf %310, %313 : vector<8x128xf32>
    %322 = arith.addf %320, %321 : vector<8x128xf32>
    %323 = math.tanh %322 : vector<8x128xf32>
    %324 = arith.mulf %319, %323 : vector<8x128xf32>
    %325 = arith.index_cast %c4_i32 : i32 to index
    %c0_87 = arith.constant 0 : index
    %c0_88 = arith.constant 0 : index
    %326 = vector.load %arg10[%325, %c0_87, %c0_88] : memref<8x8x256xf32, #tpu.memory_space<vmem>>, vector<1x8x128xf32>
    %327 = vector.shape_cast %326 : vector<1x8x128xf32> to vector<8x128xf32>
    %328 = vector.shape_cast %297 : vector<8x128xf32> to vector<1x8x128xf32>
    tpu.vector_store %arg10[%325, %c0_87, %c0_88], %328 {strides = array<i32>} : memref<8x8x256xf32, #tpu.memory_space<vmem>>, vector<1x8x128xf32>,
    %329 = arith.index_cast %270 : i32 to index
    %c0_89 = arith.constant 0 : index
    %c128_90 = arith.constant 128 : index
    %330 = vector.load %arg10[%329, %c0_89, %c128_90] : memref<8x8x256xf32, #tpu.memory_space<vmem>>, vector<1x8x128xf32>
    %331 = vector.shape_cast %330 : vector<1x8x128xf32> to vector<8x128xf32>
    %332 = vector.shape_cast %324 : vector<8x128xf32> to vector<1x8x128xf32>
    tpu.vector_store %arg10[%329, %c0_89, %c128_90], %332 {strides = array<i32>} : memref<8x8x256xf32, #tpu.memory_space<vmem>>, vector<1x8x128xf32>,
    %c5_i32 = arith.constant 5 : i32
    %c7_i32_91 = arith.constant 7 : i32
    %333 = arith.subi %c7_i32_91, %c5_i32 : i32
    %334 = arith.index_cast %c5_i32 : i32 to index
    %c0_92 = arith.constant 0 : index
    %c0_93 = arith.constant 0 : index
    %335 = vector.load %arg11[%334, %c0_92, %c0_93] : memref<8x8x512xf32, #tpu.memory_space<vmem>>, vector<1x8x512xf32>
    %336 = vector.shape_cast %335 : vector<1x8x512xf32> to vector<8x512xf32>
    %337 = arith.truncf %297 : vector<8x128xf32> to vector<8x128xbf16>
    %cst_94 = arith.constant dense<0.000000e+00> : vector<8x512xf32>
    %338 = tpu.matmul %337, %14, %cst_94 {dimension_numbers = #tpu.dot_dimension_numbers<[1], [0], [0], [1], [0, 0, 1, 1], [], []>} : vector<8x128xbf16>, vector<128x512xbf16>, vector<8x512xf32> -> vector<8x512xf32>
    %339 = arith.addf %336, %338 : vector<8x512xf32>
    %340 = vector.extract_strided_slice %339 {offsets = [0, 0], sizes = [8, 256], strides = [1, 1]} : vector<8x512xf32> to vector<8x256xf32>
    %341 = arith.negf %340 : vector<8x256xf32>
    %342 = math.exp %341 : vector<8x256xf32>
    %cst_95 = arith.constant 1.000000e+00 : f32
    %343 = vector.broadcast %cst_95 : f32 to vector<8x256xf32>
    %344 = arith.addf %343, %342 : vector<8x256xf32>
    %345 = arith.divf %343, %344 : vector<8x256xf32>
    %346 = vector.extract_strided_slice %345 {offsets = [0, 0], sizes = [8, 128], strides = [1, 1]} : vector<8x256xf32> to vector<8x128xf32>
    %347 = vector.extract_strided_slice %345 {offsets = [0, 128], sizes = [8, 128], strides = [1, 1]} : vector<8x256xf32> to vector<8x128xf32>
    %348 = vector.extract_strided_slice %339 {offsets = [0, 256], sizes = [8, 128], strides = [1, 1]} : vector<8x512xf32> to vector<8x128xf32>
    %349 = math.tanh %348 : vector<8x128xf32>
    %350 = vector.extract_strided_slice %339 {offsets = [0, 384], sizes = [8, 128], strides = [1, 1]} : vector<8x512xf32> to vector<8x128xf32>
    %351 = arith.negf %350 : vector<8x128xf32>
    %352 = math.exp %351 : vector<8x128xf32>
    %cst_96 = arith.constant 1.000000e+00 : f32
    %353 = vector.broadcast %cst_96 : f32 to vector<8x128xf32>
    %354 = arith.addf %353, %352 : vector<8x128xf32>
    %355 = arith.divf %353, %354 : vector<8x128xf32>
    %356 = arith.mulf %347, %295 : vector<8x128xf32>
    %357 = arith.mulf %346, %349 : vector<8x128xf32>
    %358 = arith.addf %356, %357 : vector<8x128xf32>
    %359 = math.tanh %358 : vector<8x128xf32>
    %360 = arith.mulf %355, %359 : vector<8x128xf32>
    %361 = arith.index_cast %333 : i32 to index
    %c0_97 = arith.constant 0 : index
    %c0_98 = arith.constant 0 : index
    %362 = vector.load %arg12[%361, %c0_97, %c0_98] : memref<8x8x512xf32, #tpu.memory_space<vmem>>, vector<1x8x512xf32>
    %363 = vector.shape_cast %362 : vector<1x8x512xf32> to vector<8x512xf32>
    %364 = arith.truncf %324 : vector<8x128xf32> to vector<8x128xbf16>
    %cst_99 = arith.constant dense<0.000000e+00> : vector<8x512xf32>
    %365 = tpu.matmul %364, %16, %cst_99 {dimension_numbers = #tpu.dot_dimension_numbers<[1], [0], [0], [1], [0, 0, 1, 1], [], []>} : vector<8x128xbf16>, vector<128x512xbf16>, vector<8x512xf32> -> vector<8x512xf32>
    %366 = arith.addf %363, %365 : vector<8x512xf32>
    %367 = vector.extract_strided_slice %366 {offsets = [0, 0], sizes = [8, 256], strides = [1, 1]} : vector<8x512xf32> to vector<8x256xf32>
    %368 = arith.negf %367 : vector<8x256xf32>
    %369 = math.exp %368 : vector<8x256xf32>
    %cst_100 = arith.constant 1.000000e+00 : f32
    %370 = vector.broadcast %cst_100 : f32 to vector<8x256xf32>
    %371 = arith.addf %370, %369 : vector<8x256xf32>
    %372 = arith.divf %370, %371 : vector<8x256xf32>
    %373 = vector.extract_strided_slice %372 {offsets = [0, 0], sizes = [8, 128], strides = [1, 1]} : vector<8x256xf32> to vector<8x128xf32>
    %374 = vector.extract_strided_slice %372 {offsets = [0, 128], sizes = [8, 128], strides = [1, 1]} : vector<8x256xf32> to vector<8x128xf32>
    %375 = vector.extract_strided_slice %366 {offsets = [0, 256], sizes = [8, 128], strides = [1, 1]} : vector<8x512xf32> to vector<8x128xf32>
    %376 = math.tanh %375 : vector<8x128xf32>
    %377 = vector.extract_strided_slice %366 {offsets = [0, 384], sizes = [8, 128], strides = [1, 1]} : vector<8x512xf32> to vector<8x128xf32>
    %378 = arith.negf %377 : vector<8x128xf32>
    %379 = math.exp %378 : vector<8x128xf32>
    %cst_101 = arith.constant 1.000000e+00 : f32
    %380 = vector.broadcast %cst_101 : f32 to vector<8x128xf32>
    %381 = arith.addf %380, %379 : vector<8x128xf32>
    %382 = arith.divf %380, %381 : vector<8x128xf32>
    %383 = arith.mulf %374, %322 : vector<8x128xf32>
    %384 = arith.mulf %373, %376 : vector<8x128xf32>
    %385 = arith.addf %383, %384 : vector<8x128xf32>
    %386 = math.tanh %385 : vector<8x128xf32>
    %387 = arith.mulf %382, %386 : vector<8x128xf32>
    %388 = arith.index_cast %c5_i32 : i32 to index
    %c0_102 = arith.constant 0 : index
    %c0_103 = arith.constant 0 : index
    %389 = vector.load %arg10[%388, %c0_102, %c0_103] : memref<8x8x256xf32, #tpu.memory_space<vmem>>, vector<1x8x128xf32>
    %390 = vector.shape_cast %389 : vector<1x8x128xf32> to vector<8x128xf32>
    %391 = vector.shape_cast %360 : vector<8x128xf32> to vector<1x8x128xf32>
    tpu.vector_store %arg10[%388, %c0_102, %c0_103], %391 {strides = array<i32>} : memref<8x8x256xf32, #tpu.memory_space<vmem>>, vector<1x8x128xf32>,
    %392 = arith.index_cast %333 : i32 to index
    %c0_104 = arith.constant 0 : index
    %c128_105 = arith.constant 128 : index
    %393 = vector.load %arg10[%392, %c0_104, %c128_105] : memref<8x8x256xf32, #tpu.memory_space<vmem>>, vector<1x8x128xf32>
    %394 = vector.shape_cast %393 : vector<1x8x128xf32> to vector<8x128xf32>
    %395 = vector.shape_cast %387 : vector<8x128xf32> to vector<1x8x128xf32>
    tpu.vector_store %arg10[%392, %c0_104, %c128_105], %395 {strides = array<i32>} : memref<8x8x256xf32, #tpu.memory_space<vmem>>, vector<1x8x128xf32>,
    %c6_i32 = arith.constant 6 : i32
    %c7_i32_106 = arith.constant 7 : i32
    %396 = arith.subi %c7_i32_106, %c6_i32 : i32
    %397 = arith.index_cast %c6_i32 : i32 to index
    %c0_107 = arith.constant 0 : index
    %c0_108 = arith.constant 0 : index
    %398 = vector.load %arg11[%397, %c0_107, %c0_108] : memref<8x8x512xf32, #tpu.memory_space<vmem>>, vector<1x8x512xf32>
    %399 = vector.shape_cast %398 : vector<1x8x512xf32> to vector<8x512xf32>
    %400 = arith.truncf %360 : vector<8x128xf32> to vector<8x128xbf16>
    %cst_109 = arith.constant dense<0.000000e+00> : vector<8x512xf32>
    %401 = tpu.matmul %400, %14, %cst_109 {dimension_numbers = #tpu.dot_dimension_numbers<[1], [0], [0], [1], [0, 0, 1, 1], [], []>} : vector<8x128xbf16>, vector<128x512xbf16>, vector<8x512xf32> -> vector<8x512xf32>
    %402 = arith.addf %399, %401 : vector<8x512xf32>
    %403 = vector.extract_strided_slice %402 {offsets = [0, 0], sizes = [8, 256], strides = [1, 1]} : vector<8x512xf32> to vector<8x256xf32>
    %404 = arith.negf %403 : vector<8x256xf32>
    %405 = math.exp %404 : vector<8x256xf32>
    %cst_110 = arith.constant 1.000000e+00 : f32
    %406 = vector.broadcast %cst_110 : f32 to vector<8x256xf32>
    %407 = arith.addf %406, %405 : vector<8x256xf32>
    %408 = arith.divf %406, %407 : vector<8x256xf32>
    %409 = vector.extract_strided_slice %408 {offsets = [0, 0], sizes = [8, 128], strides = [1, 1]} : vector<8x256xf32> to vector<8x128xf32>
    %410 = vector.extract_strided_slice %408 {offsets = [0, 128], sizes = [8, 128], strides = [1, 1]} : vector<8x256xf32> to vector<8x128xf32>
    %411 = vector.extract_strided_slice %402 {offsets = [0, 256], sizes = [8, 128], strides = [1, 1]} : vector<8x512xf32> to vector<8x128xf32>
    %412 = math.tanh %411 : vector<8x128xf32>
    %413 = vector.extract_strided_slice %402 {offsets = [0, 384], sizes = [8, 128], strides = [1, 1]} : vector<8x512xf32> to vector<8x128xf32>
    %414 = arith.negf %413 : vector<8x128xf32>
    %415 = math.exp %414 : vector<8x128xf32>
    %cst_111 = arith.constant 1.000000e+00 : f32
    %416 = vector.broadcast %cst_111 : f32 to vector<8x128xf32>
    %417 = arith.addf %416, %415 : vector<8x128xf32>
    %418 = arith.divf %416, %417 : vector<8x128xf32>
    %419 = arith.mulf %410, %358 : vector<8x128xf32>
    %420 = arith.mulf %409, %412 : vector<8x128xf32>
    %421 = arith.addf %419, %420 : vector<8x128xf32>
    %422 = math.tanh %421 : vector<8x128xf32>
    %423 = arith.mulf %418, %422 : vector<8x128xf32>
    %424 = arith.index_cast %396 : i32 to index
    %c0_112 = arith.constant 0 : index
    %c0_113 = arith.constant 0 : index
    %425 = vector.load %arg12[%424, %c0_112, %c0_113] : memref<8x8x512xf32, #tpu.memory_space<vmem>>, vector<1x8x512xf32>
    %426 = vector.shape_cast %425 : vector<1x8x512xf32> to vector<8x512xf32>
    %427 = arith.truncf %387 : vector<8x128xf32> to vector<8x128xbf16>
    %cst_114 = arith.constant dense<0.000000e+00> : vector<8x512xf32>
    %428 = tpu.matmul %427, %16, %cst_114 {dimension_numbers = #tpu.dot_dimension_numbers<[1], [0], [0], [1], [0, 0, 1, 1], [], []>} : vector<8x128xbf16>, vector<128x512xbf16>, vector<8x512xf32> -> vector<8x512xf32>
    %429 = arith.addf %426, %428 : vector<8x512xf32>
    %430 = vector.extract_strided_slice %429 {offsets = [0, 0], sizes = [8, 256], strides = [1, 1]} : vector<8x512xf32> to vector<8x256xf32>
    %431 = arith.negf %430 : vector<8x256xf32>
    %432 = math.exp %431 : vector<8x256xf32>
    %cst_115 = arith.constant 1.000000e+00 : f32
    %433 = vector.broadcast %cst_115 : f32 to vector<8x256xf32>
    %434 = arith.addf %433, %432 : vector<8x256xf32>
    %435 = arith.divf %433, %434 : vector<8x256xf32>
    %436 = vector.extract_strided_slice %435 {offsets = [0, 0], sizes = [8, 128], strides = [1, 1]} : vector<8x256xf32> to vector<8x128xf32>
    %437 = vector.extract_strided_slice %435 {offsets = [0, 128], sizes = [8, 128], strides = [1, 1]} : vector<8x256xf32> to vector<8x128xf32>
    %438 = vector.extract_strided_slice %429 {offsets = [0, 256], sizes = [8, 128], strides = [1, 1]} : vector<8x512xf32> to vector<8x128xf32>
    %439 = math.tanh %438 : vector<8x128xf32>
    %440 = vector.extract_strided_slice %429 {offsets = [0, 384], sizes = [8, 128], strides = [1, 1]} : vector<8x512xf32> to vector<8x128xf32>
    %441 = arith.negf %440 : vector<8x128xf32>
    %442 = math.exp %441 : vector<8x128xf32>
    %cst_116 = arith.constant 1.000000e+00 : f32
    %443 = vector.broadcast %cst_116 : f32 to vector<8x128xf32>
    %444 = arith.addf %443, %442 : vector<8x128xf32>
    %445 = arith.divf %443, %444 : vector<8x128xf32>
    %446 = arith.mulf %437, %385 : vector<8x128xf32>
    %447 = arith.mulf %436, %439 : vector<8x128xf32>
    %448 = arith.addf %446, %447 : vector<8x128xf32>
    %449 = math.tanh %448 : vector<8x128xf32>
    %450 = arith.mulf %445, %449 : vector<8x128xf32>
    %451 = arith.index_cast %c6_i32 : i32 to index
    %c0_117 = arith.constant 0 : index
    %c0_118 = arith.constant 0 : index
    %452 = vector.load %arg10[%451, %c0_117, %c0_118] : memref<8x8x256xf32, #tpu.memory_space<vmem>>, vector<1x8x128xf32>
    %453 = vector.shape_cast %452 : vector<1x8x128xf32> to vector<8x128xf32>
    %454 = vector.shape_cast %423 : vector<8x128xf32> to vector<1x8x128xf32>
    tpu.vector_store %arg10[%451, %c0_117, %c0_118], %454 {strides = array<i32>} : memref<8x8x256xf32, #tpu.memory_space<vmem>>, vector<1x8x128xf32>,
    %455 = arith.index_cast %396 : i32 to index
    %c0_119 = arith.constant 0 : index
    %c128_120 = arith.constant 128 : index
    %456 = vector.load %arg10[%455, %c0_119, %c128_120] : memref<8x8x256xf32, #tpu.memory_space<vmem>>, vector<1x8x128xf32>
    %457 = vector.shape_cast %456 : vector<1x8x128xf32> to vector<8x128xf32>
    %458 = vector.shape_cast %450 : vector<8x128xf32> to vector<1x8x128xf32>
    tpu.vector_store %arg10[%455, %c0_119, %c128_120], %458 {strides = array<i32>} : memref<8x8x256xf32, #tpu.memory_space<vmem>>, vector<1x8x128xf32>,
    %c7_i32_121 = arith.constant 7 : i32
    %c7_i32_122 = arith.constant 7 : i32
    %459 = arith.subi %c7_i32_122, %c7_i32_121 : i32
    %460 = arith.index_cast %c7_i32_121 : i32 to index
    %c0_123 = arith.constant 0 : index
    %c0_124 = arith.constant 0 : index
    %461 = vector.load %arg11[%460, %c0_123, %c0_124] : memref<8x8x512xf32, #tpu.memory_space<vmem>>, vector<1x8x512xf32>
    %462 = vector.shape_cast %461 : vector<1x8x512xf32> to vector<8x512xf32>
    %463 = arith.truncf %423 : vector<8x128xf32> to vector<8x128xbf16>
    %cst_125 = arith.constant dense<0.000000e+00> : vector<8x512xf32>
    %464 = tpu.matmul %463, %14, %cst_125 {dimension_numbers = #tpu.dot_dimension_numbers<[1], [0], [0], [1], [0, 0, 1, 1], [], []>} : vector<8x128xbf16>, vector<128x512xbf16>, vector<8x512xf32> -> vector<8x512xf32>
    %465 = arith.addf %462, %464 : vector<8x512xf32>
    %466 = vector.extract_strided_slice %465 {offsets = [0, 0], sizes = [8, 256], strides = [1, 1]} : vector<8x512xf32> to vector<8x256xf32>
    %467 = arith.negf %466 : vector<8x256xf32>
    %468 = math.exp %467 : vector<8x256xf32>
    %cst_126 = arith.constant 1.000000e+00 : f32
    %469 = vector.broadcast %cst_126 : f32 to vector<8x256xf32>
    %470 = arith.addf %469, %468 : vector<8x256xf32>
    %471 = arith.divf %469, %470 : vector<8x256xf32>
    %472 = vector.extract_strided_slice %471 {offsets = [0, 0], sizes = [8, 128], strides = [1, 1]} : vector<8x256xf32> to vector<8x128xf32>
    %473 = vector.extract_strided_slice %471 {offsets = [0, 128], sizes = [8, 128], strides = [1, 1]} : vector<8x256xf32> to vector<8x128xf32>
    %474 = vector.extract_strided_slice %465 {offsets = [0, 256], sizes = [8, 128], strides = [1, 1]} : vector<8x512xf32> to vector<8x128xf32>
    %475 = math.tanh %474 : vector<8x128xf32>
    %476 = vector.extract_strided_slice %465 {offsets = [0, 384], sizes = [8, 128], strides = [1, 1]} : vector<8x512xf32> to vector<8x128xf32>
    %477 = arith.negf %476 : vector<8x128xf32>
    %478 = math.exp %477 : vector<8x128xf32>
    %cst_127 = arith.constant 1.000000e+00 : f32
    %479 = vector.broadcast %cst_127 : f32 to vector<8x128xf32>
    %480 = arith.addf %479, %478 : vector<8x128xf32>
    %481 = arith.divf %479, %480 : vector<8x128xf32>
    %482 = arith.mulf %473, %421 : vector<8x128xf32>
    %483 = arith.mulf %472, %475 : vector<8x128xf32>
    %484 = arith.addf %482, %483 : vector<8x128xf32>
    %485 = math.tanh %484 : vector<8x128xf32>
    %486 = arith.mulf %481, %485 : vector<8x128xf32>
    %487 = arith.index_cast %459 : i32 to index
    %c0_128 = arith.constant 0 : index
    %c0_129 = arith.constant 0 : index
    %488 = vector.load %arg12[%487, %c0_128, %c0_129] : memref<8x8x512xf32, #tpu.memory_space<vmem>>, vector<1x8x512xf32>
    %489 = vector.shape_cast %488 : vector<1x8x512xf32> to vector<8x512xf32>
    %490 = arith.truncf %450 : vector<8x128xf32> to vector<8x128xbf16>
    %cst_130 = arith.constant dense<0.000000e+00> : vector<8x512xf32>
    %491 = tpu.matmul %490, %16, %cst_130 {dimension_numbers = #tpu.dot_dimension_numbers<[1], [0], [0], [1], [0, 0, 1, 1], [], []>} : vector<8x128xbf16>, vector<128x512xbf16>, vector<8x512xf32> -> vector<8x512xf32>
    %492 = arith.addf %489, %491 : vector<8x512xf32>
    %493 = vector.extract_strided_slice %492 {offsets = [0, 0], sizes = [8, 256], strides = [1, 1]} : vector<8x512xf32> to vector<8x256xf32>
    %494 = arith.negf %493 : vector<8x256xf32>
    %495 = math.exp %494 : vector<8x256xf32>
    %cst_131 = arith.constant 1.000000e+00 : f32
    %496 = vector.broadcast %cst_131 : f32 to vector<8x256xf32>
    %497 = arith.addf %496, %495 : vector<8x256xf32>
    %498 = arith.divf %496, %497 : vector<8x256xf32>
    %499 = vector.extract_strided_slice %498 {offsets = [0, 0], sizes = [8, 128], strides = [1, 1]} : vector<8x256xf32> to vector<8x128xf32>
    %500 = vector.extract_strided_slice %498 {offsets = [0, 128], sizes = [8, 128], strides = [1, 1]} : vector<8x256xf32> to vector<8x128xf32>
    %501 = vector.extract_strided_slice %492 {offsets = [0, 256], sizes = [8, 128], strides = [1, 1]} : vector<8x512xf32> to vector<8x128xf32>
    %502 = math.tanh %501 : vector<8x128xf32>
    %503 = vector.extract_strided_slice %492 {offsets = [0, 384], sizes = [8, 128], strides = [1, 1]} : vector<8x512xf32> to vector<8x128xf32>
    %504 = arith.negf %503 : vector<8x128xf32>
    %505 = math.exp %504 : vector<8x128xf32>
    %cst_132 = arith.constant 1.000000e+00 : f32
    %506 = vector.broadcast %cst_132 : f32 to vector<8x128xf32>
    %507 = arith.addf %506, %505 : vector<8x128xf32>
    %508 = arith.divf %506, %507 : vector<8x128xf32>
    %509 = arith.mulf %500, %448 : vector<8x128xf32>
    %510 = arith.mulf %499, %502 : vector<8x128xf32>
    %511 = arith.addf %509, %510 : vector<8x128xf32>
    %512 = math.tanh %511 : vector<8x128xf32>
    %513 = arith.mulf %508, %512 : vector<8x128xf32>
    %514 = arith.index_cast %c7_i32_121 : i32 to index
    %c0_133 = arith.constant 0 : index
    %c0_134 = arith.constant 0 : index
    %515 = vector.load %arg10[%514, %c0_133, %c0_134] : memref<8x8x256xf32, #tpu.memory_space<vmem>>, vector<1x8x128xf32>
    %516 = vector.shape_cast %515 : vector<1x8x128xf32> to vector<8x128xf32>
    %517 = vector.shape_cast %486 : vector<8x128xf32> to vector<1x8x128xf32>
    tpu.vector_store %arg10[%514, %c0_133, %c0_134], %517 {strides = array<i32>} : memref<8x8x256xf32, #tpu.memory_space<vmem>>, vector<1x8x128xf32>,
    %518 = arith.index_cast %459 : i32 to index
    %c0_135 = arith.constant 0 : index
    %c128_136 = arith.constant 128 : index
    %519 = vector.load %arg10[%518, %c0_135, %c128_136] : memref<8x8x256xf32, #tpu.memory_space<vmem>>, vector<1x8x128xf32>
    %520 = vector.shape_cast %519 : vector<1x8x128xf32> to vector<8x128xf32>
    %521 = vector.shape_cast %513 : vector<8x128xf32> to vector<1x8x128xf32>
    tpu.vector_store %arg10[%518, %c0_135, %c128_136], %521 {strides = array<i32>} : memref<8x8x256xf32, #tpu.memory_space<vmem>>, vector<1x8x128xf32>,
    %c8_i32 = arith.constant 8 : i32
    %c0_137 = arith.constant 0 : index
    %c0_138 = arith.constant 0 : index
    %c0_139 = arith.constant 0 : index
    %522 = vector.load %arg10[%c0_137, %c0_138, %c0_139] : memref<8x8x256xf32, #tpu.memory_space<vmem>>, vector<8x8x256xf32>
    %523 = vector.shape_cast %522 : vector<8x8x256xf32> to vector<64x256xf32>
    %524 = arith.truncf %523 : vector<64x256xf32> to vector<64x256xbf16>
    %c0_140 = arith.constant 0 : index
    %c0_141 = arith.constant 0 : index
    %525 = vector.load %arg6[%c0_140, %c0_141] : memref<1x1024xf32, #tpu.memory_space<vmem>>, vector<1x1024xf32>
    %c0_142 = arith.constant 0 : index
    %c0_143 = arith.constant 0 : index
    %526 = vector.load %arg4[%c0_142, %c0_143] : memref<256x1024xbf16, #tpu.memory_space<vmem>>, vector<256x1024xbf16>
    %cst_144 = arith.constant dense<0.000000e+00> : vector<64x1024xf32>
    %527 = tpu.matmul %524, %526, %cst_144 {dimension_numbers = #tpu.dot_dimension_numbers<[1], [0], [0], [1], [0, 0, 1, 1], [], []>} : vector<64x256xbf16>, vector<256x1024xbf16>, vector<64x1024xf32> -> vector<64x1024xf32>
    %528 = vector.broadcast %525 : vector<1x1024xf32> to vector<64x1024xf32>
    %529 = arith.addf %528, %527 : vector<64x1024xf32>
    %530 = vector.extract_strided_slice %529 {offsets = [0, 0], sizes = [64, 512], strides = [1, 1]} : vector<64x1024xf32> to vector<64x512xf32>
    %531 = vector.shape_cast %530 : vector<64x512xf32> to vector<8x8x512xf32>
    %c0_145 = arith.constant 0 : index
    %c0_146 = arith.constant 0 : index
    %c0_147 = arith.constant 0 : index
    %532 = vector.load %arg11[%c0_145, %c0_146, %c0_147] : memref<8x8x512xf32, #tpu.memory_space<vmem>>, vector<8x8x512xf32>
    tpu.vector_store %arg11[%c0_145, %c0_146, %c0_147], %531 {strides = array<i32>} : memref<8x8x512xf32, #tpu.memory_space<vmem>>, vector<8x8x512xf32>,
    %533 = vector.extract_strided_slice %529 {offsets = [0, 512], sizes = [64, 512], strides = [1, 1]} : vector<64x1024xf32> to vector<64x512xf32>
    %534 = vector.shape_cast %533 : vector<64x512xf32> to vector<8x8x512xf32>
    %c0_148 = arith.constant 0 : index
    %c0_149 = arith.constant 0 : index
    %c0_150 = arith.constant 0 : index
    %535 = vector.load %arg12[%c0_148, %c0_149, %c0_150] : memref<8x8x512xf32, #tpu.memory_space<vmem>>, vector<8x8x512xf32>
    tpu.vector_store %arg12[%c0_148, %c0_149, %c0_150], %534 {strides = array<i32>} : memref<8x8x512xf32, #tpu.memory_space<vmem>>, vector<8x8x512xf32>,
    %c0_151 = arith.constant 0 : index
    %c0_152 = arith.constant 0 : index
    %c0_153 = arith.constant 0 : index
    %536 = vector.load %arg5[%c0_151, %c0_152, %c0_153] : memref<2x128x512xbf16, #tpu.memory_space<vmem>>, vector<1x128x512xbf16>
    %537 = vector.shape_cast %536 : vector<1x128x512xbf16> to vector<128x512xbf16>
    %c1_154 = arith.constant 1 : index
    %c0_155 = arith.constant 0 : index
    %c0_156 = arith.constant 0 : index
    %538 = vector.load %arg5[%c1_154, %c0_155, %c0_156] : memref<2x128x512xbf16, #tpu.memory_space<vmem>>, vector<1x128x512xbf16>
    %539 = vector.shape_cast %538 : vector<1x128x512xbf16> to vector<128x512xbf16>
    %cst_157 = arith.constant 0.000000e+00 : f32
    %540 = vector.broadcast %cst_157 : f32 to vector<8x128xf32>
    %c0_i32_158 = arith.constant 0 : i32
    %c7_i32_159 = arith.constant 7 : i32
    %541 = arith.subi %c7_i32_159, %c0_i32_158 : i32
    %542 = arith.index_cast %c0_i32_158 : i32 to index
    %c0_160 = arith.constant 0 : index
    %c0_161 = arith.constant 0 : index
    %543 = vector.load %arg11[%542, %c0_160, %c0_161] : memref<8x8x512xf32, #tpu.memory_space<vmem>>, vector<1x8x512xf32>
    %544 = vector.shape_cast %543 : vector<1x8x512xf32> to vector<8x512xf32>
    %545 = arith.truncf %540 : vector<8x128xf32> to vector<8x128xbf16>
    %cst_162 = arith.constant dense<0.000000e+00> : vector<8x512xf32>
    %546 = tpu.matmul %545, %537, %cst_162 {dimension_numbers = #tpu.dot_dimension_numbers<[1], [0], [0], [1], [0, 0, 1, 1], [], []>} : vector<8x128xbf16>, vector<128x512xbf16>, vector<8x512xf32> -> vector<8x512xf32>
    %547 = arith.addf %544, %546 : vector<8x512xf32>
    %548 = vector.extract_strided_slice %547 {offsets = [0, 0], sizes = [8, 256], strides = [1, 1]} : vector<8x512xf32> to vector<8x256xf32>
    %549 = arith.negf %548 : vector<8x256xf32>
    %550 = math.exp %549 : vector<8x256xf32>
    %cst_163 = arith.constant 1.000000e+00 : f32
    %551 = vector.broadcast %cst_163 : f32 to vector<8x256xf32>
    %552 = arith.addf %551, %550 : vector<8x256xf32>
    %553 = arith.divf %551, %552 : vector<8x256xf32>
    %554 = vector.extract_strided_slice %553 {offsets = [0, 0], sizes = [8, 128], strides = [1, 1]} : vector<8x256xf32> to vector<8x128xf32>
    %555 = vector.extract_strided_slice %553 {offsets = [0, 128], sizes = [8, 128], strides = [1, 1]} : vector<8x256xf32> to vector<8x128xf32>
    %556 = vector.extract_strided_slice %547 {offsets = [0, 256], sizes = [8, 128], strides = [1, 1]} : vector<8x512xf32> to vector<8x128xf32>
    %557 = math.tanh %556 : vector<8x128xf32>
    %558 = vector.extract_strided_slice %547 {offsets = [0, 384], sizes = [8, 128], strides = [1, 1]} : vector<8x512xf32> to vector<8x128xf32>
    %559 = arith.negf %558 : vector<8x128xf32>
    %560 = math.exp %559 : vector<8x128xf32>
    %cst_164 = arith.constant 1.000000e+00 : f32
    %561 = vector.broadcast %cst_164 : f32 to vector<8x128xf32>
    %562 = arith.addf %561, %560 : vector<8x128xf32>
    %563 = arith.divf %561, %562 : vector<8x128xf32>
    %564 = arith.mulf %555, %540 : vector<8x128xf32>
    %565 = arith.mulf %554, %557 : vector<8x128xf32>
    %566 = arith.addf %564, %565 : vector<8x128xf32>
    %567 = math.tanh %566 : vector<8x128xf32>
    %568 = arith.mulf %563, %567 : vector<8x128xf32>
    %569 = arith.index_cast %541 : i32 to index
    %c0_165 = arith.constant 0 : index
    %c0_166 = arith.constant 0 : index
    %570 = vector.load %arg12[%569, %c0_165, %c0_166] : memref<8x8x512xf32, #tpu.memory_space<vmem>>, vector<1x8x512xf32>
    %571 = vector.shape_cast %570 : vector<1x8x512xf32> to vector<8x512xf32>
    %572 = arith.truncf %540 : vector<8x128xf32> to vector<8x128xbf16>
    %cst_167 = arith.constant dense<0.000000e+00> : vector<8x512xf32>
    %573 = tpu.matmul %572, %539, %cst_167 {dimension_numbers = #tpu.dot_dimension_numbers<[1], [0], [0], [1], [0, 0, 1, 1], [], []>} : vector<8x128xbf16>, vector<128x512xbf16>, vector<8x512xf32> -> vector<8x512xf32>
    %574 = arith.addf %571, %573 : vector<8x512xf32>
    %575 = vector.extract_strided_slice %574 {offsets = [0, 0], sizes = [8, 256], strides = [1, 1]} : vector<8x512xf32> to vector<8x256xf32>
    %576 = arith.negf %575 : vector<8x256xf32>
    %577 = math.exp %576 : vector<8x256xf32>
    %cst_168 = arith.constant 1.000000e+00 : f32
    %578 = vector.broadcast %cst_168 : f32 to vector<8x256xf32>
    %579 = arith.addf %578, %577 : vector<8x256xf32>
    %580 = arith.divf %578, %579 : vector<8x256xf32>
    %581 = vector.extract_strided_slice %580 {offsets = [0, 0], sizes = [8, 128], strides = [1, 1]} : vector<8x256xf32> to vector<8x128xf32>
    %582 = vector.extract_strided_slice %580 {offsets = [0, 128], sizes = [8, 128], strides = [1, 1]} : vector<8x256xf32> to vector<8x128xf32>
    %583 = vector.extract_strided_slice %574 {offsets = [0, 256], sizes = [8, 128], strides = [1, 1]} : vector<8x512xf32> to vector<8x128xf32>
    %584 = math.tanh %583 : vector<8x128xf32>
    %585 = vector.extract_strided_slice %574 {offsets = [0, 384], sizes = [8, 128], strides = [1, 1]} : vector<8x512xf32> to vector<8x128xf32>
    %586 = arith.negf %585 : vector<8x128xf32>
    %587 = math.exp %586 : vector<8x128xf32>
    %cst_169 = arith.constant 1.000000e+00 : f32
    %588 = vector.broadcast %cst_169 : f32 to vector<8x128xf32>
    %589 = arith.addf %588, %587 : vector<8x128xf32>
    %590 = arith.divf %588, %589 : vector<8x128xf32>
    %591 = arith.mulf %582, %540 : vector<8x128xf32>
    %592 = arith.mulf %581, %584 : vector<8x128xf32>
    %593 = arith.addf %591, %592 : vector<8x128xf32>
    %594 = math.tanh %593 : vector<8x128xf32>
    %595 = arith.mulf %590, %594 : vector<8x128xf32>
    %c1_i32_170 = arith.constant 1 : i32
    %c7_i32_171 = arith.constant 7 : i32
    %596 = arith.subi %c7_i32_171, %c1_i32_170 : i32
    %597 = arith.index_cast %c1_i32_170 : i32 to index
    %c0_172 = arith.constant 0 : index
    %c0_173 = arith.constant 0 : index
    %598 = vector.load %arg11[%597, %c0_172, %c0_173] : memref<8x8x512xf32, #tpu.memory_space<vmem>>, vector<1x8x512xf32>
    %599 = vector.shape_cast %598 : vector<1x8x512xf32> to vector<8x512xf32>
    %600 = arith.truncf %568 : vector<8x128xf32> to vector<8x128xbf16>
    %cst_174 = arith.constant dense<0.000000e+00> : vector<8x512xf32>
    %601 = tpu.matmul %600, %537, %cst_174 {dimension_numbers = #tpu.dot_dimension_numbers<[1], [0], [0], [1], [0, 0, 1, 1], [], []>} : vector<8x128xbf16>, vector<128x512xbf16>, vector<8x512xf32> -> vector<8x512xf32>
    %602 = arith.addf %599, %601 : vector<8x512xf32>
    %603 = vector.extract_strided_slice %602 {offsets = [0, 0], sizes = [8, 256], strides = [1, 1]} : vector<8x512xf32> to vector<8x256xf32>
    %604 = arith.negf %603 : vector<8x256xf32>
    %605 = math.exp %604 : vector<8x256xf32>
    %cst_175 = arith.constant 1.000000e+00 : f32
    %606 = vector.broadcast %cst_175 : f32 to vector<8x256xf32>
    %607 = arith.addf %606, %605 : vector<8x256xf32>
    %608 = arith.divf %606, %607 : vector<8x256xf32>
    %609 = vector.extract_strided_slice %608 {offsets = [0, 0], sizes = [8, 128], strides = [1, 1]} : vector<8x256xf32> to vector<8x128xf32>
    %610 = vector.extract_strided_slice %608 {offsets = [0, 128], sizes = [8, 128], strides = [1, 1]} : vector<8x256xf32> to vector<8x128xf32>
    %611 = vector.extract_strided_slice %602 {offsets = [0, 256], sizes = [8, 128], strides = [1, 1]} : vector<8x512xf32> to vector<8x128xf32>
    %612 = math.tanh %611 : vector<8x128xf32>
    %613 = vector.extract_strided_slice %602 {offsets = [0, 384], sizes = [8, 128], strides = [1, 1]} : vector<8x512xf32> to vector<8x128xf32>
    %614 = arith.negf %613 : vector<8x128xf32>
    %615 = math.exp %614 : vector<8x128xf32>
    %cst_176 = arith.constant 1.000000e+00 : f32
    %616 = vector.broadcast %cst_176 : f32 to vector<8x128xf32>
    %617 = arith.addf %616, %615 : vector<8x128xf32>
    %618 = arith.divf %616, %617 : vector<8x128xf32>
    %619 = arith.mulf %610, %566 : vector<8x128xf32>
    %620 = arith.mulf %609, %612 : vector<8x128xf32>
    %621 = arith.addf %619, %620 : vector<8x128xf32>
    %622 = math.tanh %621 : vector<8x128xf32>
    %623 = arith.mulf %618, %622 : vector<8x128xf32>
    %624 = arith.index_cast %596 : i32 to index
    %c0_177 = arith.constant 0 : index
    %c0_178 = arith.constant 0 : index
    %625 = vector.load %arg12[%624, %c0_177, %c0_178] : memref<8x8x512xf32, #tpu.memory_space<vmem>>, vector<1x8x512xf32>
    %626 = vector.shape_cast %625 : vector<1x8x512xf32> to vector<8x512xf32>
    %627 = arith.truncf %595 : vector<8x128xf32> to vector<8x128xbf16>
    %cst_179 = arith.constant dense<0.000000e+00> : vector<8x512xf32>
    %628 = tpu.matmul %627, %539, %cst_179 {dimension_numbers = #tpu.dot_dimension_numbers<[1], [0], [0], [1], [0, 0, 1, 1], [], []>} : vector<8x128xbf16>, vector<128x512xbf16>, vector<8x512xf32> -> vector<8x512xf32>
    %629 = arith.addf %626, %628 : vector<8x512xf32>
    %630 = vector.extract_strided_slice %629 {offsets = [0, 0], sizes = [8, 256], strides = [1, 1]} : vector<8x512xf32> to vector<8x256xf32>
    %631 = arith.negf %630 : vector<8x256xf32>
    %632 = math.exp %631 : vector<8x256xf32>
    %cst_180 = arith.constant 1.000000e+00 : f32
    %633 = vector.broadcast %cst_180 : f32 to vector<8x256xf32>
    %634 = arith.addf %633, %632 : vector<8x256xf32>
    %635 = arith.divf %633, %634 : vector<8x256xf32>
    %636 = vector.extract_strided_slice %635 {offsets = [0, 0], sizes = [8, 128], strides = [1, 1]} : vector<8x256xf32> to vector<8x128xf32>
    %637 = vector.extract_strided_slice %635 {offsets = [0, 128], sizes = [8, 128], strides = [1, 1]} : vector<8x256xf32> to vector<8x128xf32>
    %638 = vector.extract_strided_slice %629 {offsets = [0, 256], sizes = [8, 128], strides = [1, 1]} : vector<8x512xf32> to vector<8x128xf32>
    %639 = math.tanh %638 : vector<8x128xf32>
    %640 = vector.extract_strided_slice %629 {offsets = [0, 384], sizes = [8, 128], strides = [1, 1]} : vector<8x512xf32> to vector<8x128xf32>
    %641 = arith.negf %640 : vector<8x128xf32>
    %642 = math.exp %641 : vector<8x128xf32>
    %cst_181 = arith.constant 1.000000e+00 : f32
    %643 = vector.broadcast %cst_181 : f32 to vector<8x128xf32>
    %644 = arith.addf %643, %642 : vector<8x128xf32>
    %645 = arith.divf %643, %644 : vector<8x128xf32>
    %646 = arith.mulf %637, %593 : vector<8x128xf32>
    %647 = arith.mulf %636, %639 : vector<8x128xf32>
    %648 = arith.addf %646, %647 : vector<8x128xf32>
    %649 = math.tanh %648 : vector<8x128xf32>
    %650 = arith.mulf %645, %649 : vector<8x128xf32>
    %c2_i32_182 = arith.constant 2 : i32
    %c7_i32_183 = arith.constant 7 : i32
    %651 = arith.subi %c7_i32_183, %c2_i32_182 : i32
    %652 = arith.index_cast %c2_i32_182 : i32 to index
    %c0_184 = arith.constant 0 : index
    %c0_185 = arith.constant 0 : index
    %653 = vector.load %arg11[%652, %c0_184, %c0_185] : memref<8x8x512xf32, #tpu.memory_space<vmem>>, vector<1x8x512xf32>
    %654 = vector.shape_cast %653 : vector<1x8x512xf32> to vector<8x512xf32>
    %655 = arith.truncf %623 : vector<8x128xf32> to vector<8x128xbf16>
    %cst_186 = arith.constant dense<0.000000e+00> : vector<8x512xf32>
    %656 = tpu.matmul %655, %537, %cst_186 {dimension_numbers = #tpu.dot_dimension_numbers<[1], [0], [0], [1], [0, 0, 1, 1], [], []>} : vector<8x128xbf16>, vector<128x512xbf16>, vector<8x512xf32> -> vector<8x512xf32>
    %657 = arith.addf %654, %656 : vector<8x512xf32>
    %658 = vector.extract_strided_slice %657 {offsets = [0, 0], sizes = [8, 256], strides = [1, 1]} : vector<8x512xf32> to vector<8x256xf32>
    %659 = arith.negf %658 : vector<8x256xf32>
    %660 = math.exp %659 : vector<8x256xf32>
    %cst_187 = arith.constant 1.000000e+00 : f32
    %661 = vector.broadcast %cst_187 : f32 to vector<8x256xf32>
    %662 = arith.addf %661, %660 : vector<8x256xf32>
    %663 = arith.divf %661, %662 : vector<8x256xf32>
    %664 = vector.extract_strided_slice %663 {offsets = [0, 0], sizes = [8, 128], strides = [1, 1]} : vector<8x256xf32> to vector<8x128xf32>
    %665 = vector.extract_strided_slice %663 {offsets = [0, 128], sizes = [8, 128], strides = [1, 1]} : vector<8x256xf32> to vector<8x128xf32>
    %666 = vector.extract_strided_slice %657 {offsets = [0, 256], sizes = [8, 128], strides = [1, 1]} : vector<8x512xf32> to vector<8x128xf32>
    %667 = math.tanh %666 : vector<8x128xf32>
    %668 = vector.extract_strided_slice %657 {offsets = [0, 384], sizes = [8, 128], strides = [1, 1]} : vector<8x512xf32> to vector<8x128xf32>
    %669 = arith.negf %668 : vector<8x128xf32>
    %670 = math.exp %669 : vector<8x128xf32>
    %cst_188 = arith.constant 1.000000e+00 : f32
    %671 = vector.broadcast %cst_188 : f32 to vector<8x128xf32>
    %672 = arith.addf %671, %670 : vector<8x128xf32>
    %673 = arith.divf %671, %672 : vector<8x128xf32>
    %674 = arith.mulf %665, %621 : vector<8x128xf32>
    %675 = arith.mulf %664, %667 : vector<8x128xf32>
    %676 = arith.addf %674, %675 : vector<8x128xf32>
    %677 = math.tanh %676 : vector<8x128xf32>
    %678 = arith.mulf %673, %677 : vector<8x128xf32>
    %679 = arith.index_cast %651 : i32 to index
    %c0_189 = arith.constant 0 : index
    %c0_190 = arith.constant 0 : index
    %680 = vector.load %arg12[%679, %c0_189, %c0_190] : memref<8x8x512xf32, #tpu.memory_space<vmem>>, vector<1x8x512xf32>
    %681 = vector.shape_cast %680 : vector<1x8x512xf32> to vector<8x512xf32>
    %682 = arith.truncf %650 : vector<8x128xf32> to vector<8x128xbf16>
    %cst_191 = arith.constant dense<0.000000e+00> : vector<8x512xf32>
    %683 = tpu.matmul %682, %539, %cst_191 {dimension_numbers = #tpu.dot_dimension_numbers<[1], [0], [0], [1], [0, 0, 1, 1], [], []>} : vector<8x128xbf16>, vector<128x512xbf16>, vector<8x512xf32> -> vector<8x512xf32>
    %684 = arith.addf %681, %683 : vector<8x512xf32>
    %685 = vector.extract_strided_slice %684 {offsets = [0, 0], sizes = [8, 256], strides = [1, 1]} : vector<8x512xf32> to vector<8x256xf32>
    %686 = arith.negf %685 : vector<8x256xf32>
    %687 = math.exp %686 : vector<8x256xf32>
    %cst_192 = arith.constant 1.000000e+00 : f32
    %688 = vector.broadcast %cst_192 : f32 to vector<8x256xf32>
    %689 = arith.addf %688, %687 : vector<8x256xf32>
    %690 = arith.divf %688, %689 : vector<8x256xf32>
    %691 = vector.extract_strided_slice %690 {offsets = [0, 0], sizes = [8, 128], strides = [1, 1]} : vector<8x256xf32> to vector<8x128xf32>
    %692 = vector.extract_strided_slice %690 {offsets = [0, 128], sizes = [8, 128], strides = [1, 1]} : vector<8x256xf32> to vector<8x128xf32>
    %693 = vector.extract_strided_slice %684 {offsets = [0, 256], sizes = [8, 128], strides = [1, 1]} : vector<8x512xf32> to vector<8x128xf32>
    %694 = math.tanh %693 : vector<8x128xf32>
    %695 = vector.extract_strided_slice %684 {offsets = [0, 384], sizes = [8, 128], strides = [1, 1]} : vector<8x512xf32> to vector<8x128xf32>
    %696 = arith.negf %695 : vector<8x128xf32>
    %697 = math.exp %696 : vector<8x128xf32>
    %cst_193 = arith.constant 1.000000e+00 : f32
    %698 = vector.broadcast %cst_193 : f32 to vector<8x128xf32>
    %699 = arith.addf %698, %697 : vector<8x128xf32>
    %700 = arith.divf %698, %699 : vector<8x128xf32>
    %701 = arith.mulf %692, %648 : vector<8x128xf32>
    %702 = arith.mulf %691, %694 : vector<8x128xf32>
    %703 = arith.addf %701, %702 : vector<8x128xf32>
    %704 = math.tanh %703 : vector<8x128xf32>
    %705 = arith.mulf %700, %704 : vector<8x128xf32>
    %c3_i32_194 = arith.constant 3 : i32
    %c7_i32_195 = arith.constant 7 : i32
    %706 = arith.subi %c7_i32_195, %c3_i32_194 : i32
    %707 = arith.index_cast %c3_i32_194 : i32 to index
    %c0_196 = arith.constant 0 : index
    %c0_197 = arith.constant 0 : index
    %708 = vector.load %arg11[%707, %c0_196, %c0_197] : memref<8x8x512xf32, #tpu.memory_space<vmem>>, vector<1x8x512xf32>
    %709 = vector.shape_cast %708 : vector<1x8x512xf32> to vector<8x512xf32>
    %710 = arith.truncf %678 : vector<8x128xf32> to vector<8x128xbf16>
    %cst_198 = arith.constant dense<0.000000e+00> : vector<8x512xf32>
    %711 = tpu.matmul %710, %537, %cst_198 {dimension_numbers = #tpu.dot_dimension_numbers<[1], [0], [0], [1], [0, 0, 1, 1], [], []>} : vector<8x128xbf16>, vector<128x512xbf16>, vector<8x512xf32> -> vector<8x512xf32>
    %712 = arith.addf %709, %711 : vector<8x512xf32>
    %713 = vector.extract_strided_slice %712 {offsets = [0, 0], sizes = [8, 256], strides = [1, 1]} : vector<8x512xf32> to vector<8x256xf32>
    %714 = arith.negf %713 : vector<8x256xf32>
    %715 = math.exp %714 : vector<8x256xf32>
    %cst_199 = arith.constant 1.000000e+00 : f32
    %716 = vector.broadcast %cst_199 : f32 to vector<8x256xf32>
    %717 = arith.addf %716, %715 : vector<8x256xf32>
    %718 = arith.divf %716, %717 : vector<8x256xf32>
    %719 = vector.extract_strided_slice %718 {offsets = [0, 0], sizes = [8, 128], strides = [1, 1]} : vector<8x256xf32> to vector<8x128xf32>
    %720 = vector.extract_strided_slice %718 {offsets = [0, 128], sizes = [8, 128], strides = [1, 1]} : vector<8x256xf32> to vector<8x128xf32>
    %721 = vector.extract_strided_slice %712 {offsets = [0, 256], sizes = [8, 128], strides = [1, 1]} : vector<8x512xf32> to vector<8x128xf32>
    %722 = math.tanh %721 : vector<8x128xf32>
    %723 = vector.extract_strided_slice %712 {offsets = [0, 384], sizes = [8, 128], strides = [1, 1]} : vector<8x512xf32> to vector<8x128xf32>
    %724 = arith.negf %723 : vector<8x128xf32>
    %725 = math.exp %724 : vector<8x128xf32>
    %cst_200 = arith.constant 1.000000e+00 : f32
    %726 = vector.broadcast %cst_200 : f32 to vector<8x128xf32>
    %727 = arith.addf %726, %725 : vector<8x128xf32>
    %728 = arith.divf %726, %727 : vector<8x128xf32>
    %729 = arith.mulf %720, %676 : vector<8x128xf32>
    %730 = arith.mulf %719, %722 : vector<8x128xf32>
    %731 = arith.addf %729, %730 : vector<8x128xf32>
    %732 = math.tanh %731 : vector<8x128xf32>
    %733 = arith.mulf %728, %732 : vector<8x128xf32>
    %734 = arith.index_cast %706 : i32 to index
    %c0_201 = arith.constant 0 : index
    %c0_202 = arith.constant 0 : index
    %735 = vector.load %arg12[%734, %c0_201, %c0_202] : memref<8x8x512xf32, #tpu.memory_space<vmem>>, vector<1x8x512xf32>
    %736 = vector.shape_cast %735 : vector<1x8x512xf32> to vector<8x512xf32>
    %737 = arith.truncf %705 : vector<8x128xf32> to vector<8x128xbf16>
    %cst_203 = arith.constant dense<0.000000e+00> : vector<8x512xf32>
    %738 = tpu.matmul %737, %539, %cst_203 {dimension_numbers = #tpu.dot_dimension_numbers<[1], [0], [0], [1], [0, 0, 1, 1], [], []>} : vector<8x128xbf16>, vector<128x512xbf16>, vector<8x512xf32> -> vector<8x512xf32>
    %739 = arith.addf %736, %738 : vector<8x512xf32>
    %740 = vector.extract_strided_slice %739 {offsets = [0, 0], sizes = [8, 256], strides = [1, 1]} : vector<8x512xf32> to vector<8x256xf32>
    %741 = arith.negf %740 : vector<8x256xf32>
    %742 = math.exp %741 : vector<8x256xf32>
    %cst_204 = arith.constant 1.000000e+00 : f32
    %743 = vector.broadcast %cst_204 : f32 to vector<8x256xf32>
    %744 = arith.addf %743, %742 : vector<8x256xf32>
    %745 = arith.divf %743, %744 : vector<8x256xf32>
    %746 = vector.extract_strided_slice %745 {offsets = [0, 0], sizes = [8, 128], strides = [1, 1]} : vector<8x256xf32> to vector<8x128xf32>
    %747 = vector.extract_strided_slice %745 {offsets = [0, 128], sizes = [8, 128], strides = [1, 1]} : vector<8x256xf32> to vector<8x128xf32>
    %748 = vector.extract_strided_slice %739 {offsets = [0, 256], sizes = [8, 128], strides = [1, 1]} : vector<8x512xf32> to vector<8x128xf32>
    %749 = math.tanh %748 : vector<8x128xf32>
    %750 = vector.extract_strided_slice %739 {offsets = [0, 384], sizes = [8, 128], strides = [1, 1]} : vector<8x512xf32> to vector<8x128xf32>
    %751 = arith.negf %750 : vector<8x128xf32>
    %752 = math.exp %751 : vector<8x128xf32>
    %cst_205 = arith.constant 1.000000e+00 : f32
    %753 = vector.broadcast %cst_205 : f32 to vector<8x128xf32>
    %754 = arith.addf %753, %752 : vector<8x128xf32>
    %755 = arith.divf %753, %754 : vector<8x128xf32>
    %756 = arith.mulf %747, %703 : vector<8x128xf32>
    %757 = arith.mulf %746, %749 : vector<8x128xf32>
    %758 = arith.addf %756, %757 : vector<8x128xf32>
    %759 = math.tanh %758 : vector<8x128xf32>
    %760 = arith.mulf %755, %759 : vector<8x128xf32>
    %c4_i32_206 = arith.constant 4 : i32
    %c7_i32_207 = arith.constant 7 : i32
    %761 = arith.subi %c7_i32_207, %c4_i32_206 : i32
    %762 = arith.index_cast %c4_i32_206 : i32 to index
    %c0_208 = arith.constant 0 : index
    %c0_209 = arith.constant 0 : index
    %763 = vector.load %arg11[%762, %c0_208, %c0_209] : memref<8x8x512xf32, #tpu.memory_space<vmem>>, vector<1x8x512xf32>
    %764 = vector.shape_cast %763 : vector<1x8x512xf32> to vector<8x512xf32>
    %765 = arith.truncf %733 : vector<8x128xf32> to vector<8x128xbf16>
    %cst_210 = arith.constant dense<0.000000e+00> : vector<8x512xf32>
    %766 = tpu.matmul %765, %537, %cst_210 {dimension_numbers = #tpu.dot_dimension_numbers<[1], [0], [0], [1], [0, 0, 1, 1], [], []>} : vector<8x128xbf16>, vector<128x512xbf16>, vector<8x512xf32> -> vector<8x512xf32>
    %767 = arith.addf %764, %766 : vector<8x512xf32>
    %768 = vector.extract_strided_slice %767 {offsets = [0, 0], sizes = [8, 256], strides = [1, 1]} : vector<8x512xf32> to vector<8x256xf32>
    %769 = arith.negf %768 : vector<8x256xf32>
    %770 = math.exp %769 : vector<8x256xf32>
    %cst_211 = arith.constant 1.000000e+00 : f32
    %771 = vector.broadcast %cst_211 : f32 to vector<8x256xf32>
    %772 = arith.addf %771, %770 : vector<8x256xf32>
    %773 = arith.divf %771, %772 : vector<8x256xf32>
    %774 = vector.extract_strided_slice %773 {offsets = [0, 0], sizes = [8, 128], strides = [1, 1]} : vector<8x256xf32> to vector<8x128xf32>
    %775 = vector.extract_strided_slice %773 {offsets = [0, 128], sizes = [8, 128], strides = [1, 1]} : vector<8x256xf32> to vector<8x128xf32>
    %776 = vector.extract_strided_slice %767 {offsets = [0, 256], sizes = [8, 128], strides = [1, 1]} : vector<8x512xf32> to vector<8x128xf32>
    %777 = math.tanh %776 : vector<8x128xf32>
    %778 = vector.extract_strided_slice %767 {offsets = [0, 384], sizes = [8, 128], strides = [1, 1]} : vector<8x512xf32> to vector<8x128xf32>
    %779 = arith.negf %778 : vector<8x128xf32>
    %780 = math.exp %779 : vector<8x128xf32>
    %cst_212 = arith.constant 1.000000e+00 : f32
    %781 = vector.broadcast %cst_212 : f32 to vector<8x128xf32>
    %782 = arith.addf %781, %780 : vector<8x128xf32>
    %783 = arith.divf %781, %782 : vector<8x128xf32>
    %784 = arith.mulf %775, %731 : vector<8x128xf32>
    %785 = arith.mulf %774, %777 : vector<8x128xf32>
    %786 = arith.addf %784, %785 : vector<8x128xf32>
    %787 = math.tanh %786 : vector<8x128xf32>
    %788 = arith.mulf %783, %787 : vector<8x128xf32>
    %789 = arith.index_cast %761 : i32 to index
    %c0_213 = arith.constant 0 : index
    %c0_214 = arith.constant 0 : index
    %790 = vector.load %arg12[%789, %c0_213, %c0_214] : memref<8x8x512xf32, #tpu.memory_space<vmem>>, vector<1x8x512xf32>
    %791 = vector.shape_cast %790 : vector<1x8x512xf32> to vector<8x512xf32>
    %792 = arith.truncf %760 : vector<8x128xf32> to vector<8x128xbf16>
    %cst_215 = arith.constant dense<0.000000e+00> : vector<8x512xf32>
    %793 = tpu.matmul %792, %539, %cst_215 {dimension_numbers = #tpu.dot_dimension_numbers<[1], [0], [0], [1], [0, 0, 1, 1], [], []>} : vector<8x128xbf16>, vector<128x512xbf16>, vector<8x512xf32> -> vector<8x512xf32>
    %794 = arith.addf %791, %793 : vector<8x512xf32>
    %795 = vector.extract_strided_slice %794 {offsets = [0, 0], sizes = [8, 256], strides = [1, 1]} : vector<8x512xf32> to vector<8x256xf32>
    %796 = arith.negf %795 : vector<8x256xf32>
    %797 = math.exp %796 : vector<8x256xf32>
    %cst_216 = arith.constant 1.000000e+00 : f32
    %798 = vector.broadcast %cst_216 : f32 to vector<8x256xf32>
    %799 = arith.addf %798, %797 : vector<8x256xf32>
    %800 = arith.divf %798, %799 : vector<8x256xf32>
    %801 = vector.extract_strided_slice %800 {offsets = [0, 0], sizes = [8, 128], strides = [1, 1]} : vector<8x256xf32> to vector<8x128xf32>
    %802 = vector.extract_strided_slice %800 {offsets = [0, 128], sizes = [8, 128], strides = [1, 1]} : vector<8x256xf32> to vector<8x128xf32>
    %803 = vector.extract_strided_slice %794 {offsets = [0, 256], sizes = [8, 128], strides = [1, 1]} : vector<8x512xf32> to vector<8x128xf32>
    %804 = math.tanh %803 : vector<8x128xf32>
    %805 = vector.extract_strided_slice %794 {offsets = [0, 384], sizes = [8, 128], strides = [1, 1]} : vector<8x512xf32> to vector<8x128xf32>
    %806 = arith.negf %805 : vector<8x128xf32>
    %807 = math.exp %806 : vector<8x128xf32>
    %cst_217 = arith.constant 1.000000e+00 : f32
    %808 = vector.broadcast %cst_217 : f32 to vector<8x128xf32>
    %809 = arith.addf %808, %807 : vector<8x128xf32>
    %810 = arith.divf %808, %809 : vector<8x128xf32>
    %811 = arith.mulf %802, %758 : vector<8x128xf32>
    %812 = arith.mulf %801, %804 : vector<8x128xf32>
    %813 = arith.addf %811, %812 : vector<8x128xf32>
    %814 = math.tanh %813 : vector<8x128xf32>
    %815 = arith.mulf %810, %814 : vector<8x128xf32>
    %c5_i32_218 = arith.constant 5 : i32
    %c7_i32_219 = arith.constant 7 : i32
    %816 = arith.subi %c7_i32_219, %c5_i32_218 : i32
    %817 = arith.index_cast %c5_i32_218 : i32 to index
    %c0_220 = arith.constant 0 : index
    %c0_221 = arith.constant 0 : index
    %818 = vector.load %arg11[%817, %c0_220, %c0_221] : memref<8x8x512xf32, #tpu.memory_space<vmem>>, vector<1x8x512xf32>
    %819 = vector.shape_cast %818 : vector<1x8x512xf32> to vector<8x512xf32>
    %820 = arith.truncf %788 : vector<8x128xf32> to vector<8x128xbf16>
    %cst_222 = arith.constant dense<0.000000e+00> : vector<8x512xf32>
    %821 = tpu.matmul %820, %537, %cst_222 {dimension_numbers = #tpu.dot_dimension_numbers<[1], [0], [0], [1], [0, 0, 1, 1], [], []>} : vector<8x128xbf16>, vector<128x512xbf16>, vector<8x512xf32> -> vector<8x512xf32>
    %822 = arith.addf %819, %821 : vector<8x512xf32>
    %823 = vector.extract_strided_slice %822 {offsets = [0, 0], sizes = [8, 256], strides = [1, 1]} : vector<8x512xf32> to vector<8x256xf32>
    %824 = arith.negf %823 : vector<8x256xf32>
    %825 = math.exp %824 : vector<8x256xf32>
    %cst_223 = arith.constant 1.000000e+00 : f32
    %826 = vector.broadcast %cst_223 : f32 to vector<8x256xf32>
    %827 = arith.addf %826, %825 : vector<8x256xf32>
    %828 = arith.divf %826, %827 : vector<8x256xf32>
    %829 = vector.extract_strided_slice %828 {offsets = [0, 0], sizes = [8, 128], strides = [1, 1]} : vector<8x256xf32> to vector<8x128xf32>
    %830 = vector.extract_strided_slice %828 {offsets = [0, 128], sizes = [8, 128], strides = [1, 1]} : vector<8x256xf32> to vector<8x128xf32>
    %831 = vector.extract_strided_slice %822 {offsets = [0, 256], sizes = [8, 128], strides = [1, 1]} : vector<8x512xf32> to vector<8x128xf32>
    %832 = math.tanh %831 : vector<8x128xf32>
    %833 = vector.extract_strided_slice %822 {offsets = [0, 384], sizes = [8, 128], strides = [1, 1]} : vector<8x512xf32> to vector<8x128xf32>
    %834 = arith.negf %833 : vector<8x128xf32>
    %835 = math.exp %834 : vector<8x128xf32>
    %cst_224 = arith.constant 1.000000e+00 : f32
    %836 = vector.broadcast %cst_224 : f32 to vector<8x128xf32>
    %837 = arith.addf %836, %835 : vector<8x128xf32>
    %838 = arith.divf %836, %837 : vector<8x128xf32>
    %839 = arith.mulf %830, %786 : vector<8x128xf32>
    %840 = arith.mulf %829, %832 : vector<8x128xf32>
    %841 = arith.addf %839, %840 : vector<8x128xf32>
    %842 = math.tanh %841 : vector<8x128xf32>
    %843 = arith.mulf %838, %842 : vector<8x128xf32>
    %844 = arith.index_cast %816 : i32 to index
    %c0_225 = arith.constant 0 : index
    %c0_226 = arith.constant 0 : index
    %845 = vector.load %arg12[%844, %c0_225, %c0_226] : memref<8x8x512xf32, #tpu.memory_space<vmem>>, vector<1x8x512xf32>
    %846 = vector.shape_cast %845 : vector<1x8x512xf32> to vector<8x512xf32>
    %847 = arith.truncf %815 : vector<8x128xf32> to vector<8x128xbf16>
    %cst_227 = arith.constant dense<0.000000e+00> : vector<8x512xf32>
    %848 = tpu.matmul %847, %539, %cst_227 {dimension_numbers = #tpu.dot_dimension_numbers<[1], [0], [0], [1], [0, 0, 1, 1], [], []>} : vector<8x128xbf16>, vector<128x512xbf16>, vector<8x512xf32> -> vector<8x512xf32>
    %849 = arith.addf %846, %848 : vector<8x512xf32>
    %850 = vector.extract_strided_slice %849 {offsets = [0, 0], sizes = [8, 256], strides = [1, 1]} : vector<8x512xf32> to vector<8x256xf32>
    %851 = arith.negf %850 : vector<8x256xf32>
    %852 = math.exp %851 : vector<8x256xf32>
    %cst_228 = arith.constant 1.000000e+00 : f32
    %853 = vector.broadcast %cst_228 : f32 to vector<8x256xf32>
    %854 = arith.addf %853, %852 : vector<8x256xf32>
    %855 = arith.divf %853, %854 : vector<8x256xf32>
    %856 = vector.extract_strided_slice %855 {offsets = [0, 0], sizes = [8, 128], strides = [1, 1]} : vector<8x256xf32> to vector<8x128xf32>
    %857 = vector.extract_strided_slice %855 {offsets = [0, 128], sizes = [8, 128], strides = [1, 1]} : vector<8x256xf32> to vector<8x128xf32>
    %858 = vector.extract_strided_slice %849 {offsets = [0, 256], sizes = [8, 128], strides = [1, 1]} : vector<8x512xf32> to vector<8x128xf32>
    %859 = math.tanh %858 : vector<8x128xf32>
    %860 = vector.extract_strided_slice %849 {offsets = [0, 384], sizes = [8, 128], strides = [1, 1]} : vector<8x512xf32> to vector<8x128xf32>
    %861 = arith.negf %860 : vector<8x128xf32>
    %862 = math.exp %861 : vector<8x128xf32>
    %cst_229 = arith.constant 1.000000e+00 : f32
    %863 = vector.broadcast %cst_229 : f32 to vector<8x128xf32>
    %864 = arith.addf %863, %862 : vector<8x128xf32>
    %865 = arith.divf %863, %864 : vector<8x128xf32>
    %866 = arith.mulf %857, %813 : vector<8x128xf32>
    %867 = arith.mulf %856, %859 : vector<8x128xf32>
    %868 = arith.addf %866, %867 : vector<8x128xf32>
    %869 = math.tanh %868 : vector<8x128xf32>
    %870 = arith.mulf %865, %869 : vector<8x128xf32>
    %c6_i32_230 = arith.constant 6 : i32
    %c7_i32_231 = arith.constant 7 : i32
    %871 = arith.subi %c7_i32_231, %c6_i32_230 : i32
    %872 = arith.index_cast %c6_i32_230 : i32 to index
    %c0_232 = arith.constant 0 : index
    %c0_233 = arith.constant 0 : index
    %873 = vector.load %arg11[%872, %c0_232, %c0_233] : memref<8x8x512xf32, #tpu.memory_space<vmem>>, vector<1x8x512xf32>
    %874 = vector.shape_cast %873 : vector<1x8x512xf32> to vector<8x512xf32>
    %875 = arith.truncf %843 : vector<8x128xf32> to vector<8x128xbf16>
    %cst_234 = arith.constant dense<0.000000e+00> : vector<8x512xf32>
    %876 = tpu.matmul %875, %537, %cst_234 {dimension_numbers = #tpu.dot_dimension_numbers<[1], [0], [0], [1], [0, 0, 1, 1], [], []>} : vector<8x128xbf16>, vector<128x512xbf16>, vector<8x512xf32> -> vector<8x512xf32>
    %877 = arith.addf %874, %876 : vector<8x512xf32>
    %878 = vector.extract_strided_slice %877 {offsets = [0, 0], sizes = [8, 256], strides = [1, 1]} : vector<8x512xf32> to vector<8x256xf32>
    %879 = arith.negf %878 : vector<8x256xf32>
    %880 = math.exp %879 : vector<8x256xf32>
    %cst_235 = arith.constant 1.000000e+00 : f32
    %881 = vector.broadcast %cst_235 : f32 to vector<8x256xf32>
    %882 = arith.addf %881, %880 : vector<8x256xf32>
    %883 = arith.divf %881, %882 : vector<8x256xf32>
    %884 = vector.extract_strided_slice %883 {offsets = [0, 0], sizes = [8, 128], strides = [1, 1]} : vector<8x256xf32> to vector<8x128xf32>
    %885 = vector.extract_strided_slice %883 {offsets = [0, 128], sizes = [8, 128], strides = [1, 1]} : vector<8x256xf32> to vector<8x128xf32>
    %886 = vector.extract_strided_slice %877 {offsets = [0, 256], sizes = [8, 128], strides = [1, 1]} : vector<8x512xf32> to vector<8x128xf32>
    %887 = math.tanh %886 : vector<8x128xf32>
    %888 = vector.extract_strided_slice %877 {offsets = [0, 384], sizes = [8, 128], strides = [1, 1]} : vector<8x512xf32> to vector<8x128xf32>
    %889 = arith.negf %888 : vector<8x128xf32>
    %890 = math.exp %889 : vector<8x128xf32>
    %cst_236 = arith.constant 1.000000e+00 : f32
    %891 = vector.broadcast %cst_236 : f32 to vector<8x128xf32>
    %892 = arith.addf %891, %890 : vector<8x128xf32>
    %893 = arith.divf %891, %892 : vector<8x128xf32>
    %894 = arith.mulf %885, %841 : vector<8x128xf32>
    %895 = arith.mulf %884, %887 : vector<8x128xf32>
    %896 = arith.addf %894, %895 : vector<8x128xf32>
    %897 = math.tanh %896 : vector<8x128xf32>
    %898 = arith.mulf %893, %897 : vector<8x128xf32>
    %899 = arith.index_cast %871 : i32 to index
    %c0_237 = arith.constant 0 : index
    %c0_238 = arith.constant 0 : index
    %900 = vector.load %arg12[%899, %c0_237, %c0_238] : memref<8x8x512xf32, #tpu.memory_space<vmem>>, vector<1x8x512xf32>
    %901 = vector.shape_cast %900 : vector<1x8x512xf32> to vector<8x512xf32>
    %902 = arith.truncf %870 : vector<8x128xf32> to vector<8x128xbf16>
    %cst_239 = arith.constant dense<0.000000e+00> : vector<8x512xf32>
    %903 = tpu.matmul %902, %539, %cst_239 {dimension_numbers = #tpu.dot_dimension_numbers<[1], [0], [0], [1], [0, 0, 1, 1], [], []>} : vector<8x128xbf16>, vector<128x512xbf16>, vector<8x512xf32> -> vector<8x512xf32>
    %904 = arith.addf %901, %903 : vector<8x512xf32>
    %905 = vector.extract_strided_slice %904 {offsets = [0, 0], sizes = [8, 256], strides = [1, 1]} : vector<8x512xf32> to vector<8x256xf32>
    %906 = arith.negf %905 : vector<8x256xf32>
    %907 = math.exp %906 : vector<8x256xf32>
    %cst_240 = arith.constant 1.000000e+00 : f32
    %908 = vector.broadcast %cst_240 : f32 to vector<8x256xf32>
    %909 = arith.addf %908, %907 : vector<8x256xf32>
    %910 = arith.divf %908, %909 : vector<8x256xf32>
    %911 = vector.extract_strided_slice %910 {offsets = [0, 0], sizes = [8, 128], strides = [1, 1]} : vector<8x256xf32> to vector<8x128xf32>
    %912 = vector.extract_strided_slice %910 {offsets = [0, 128], sizes = [8, 128], strides = [1, 1]} : vector<8x256xf32> to vector<8x128xf32>
    %913 = vector.extract_strided_slice %904 {offsets = [0, 256], sizes = [8, 128], strides = [1, 1]} : vector<8x512xf32> to vector<8x128xf32>
    %914 = math.tanh %913 : vector<8x128xf32>
    %915 = vector.extract_strided_slice %904 {offsets = [0, 384], sizes = [8, 128], strides = [1, 1]} : vector<8x512xf32> to vector<8x128xf32>
    %916 = arith.negf %915 : vector<8x128xf32>
    %917 = math.exp %916 : vector<8x128xf32>
    %cst_241 = arith.constant 1.000000e+00 : f32
    %918 = vector.broadcast %cst_241 : f32 to vector<8x128xf32>
    %919 = arith.addf %918, %917 : vector<8x128xf32>
    %920 = arith.divf %918, %919 : vector<8x128xf32>
    %921 = arith.mulf %912, %868 : vector<8x128xf32>
    %922 = arith.mulf %911, %914 : vector<8x128xf32>
    %923 = arith.addf %921, %922 : vector<8x128xf32>
    %924 = math.tanh %923 : vector<8x128xf32>
    %925 = arith.mulf %920, %924 : vector<8x128xf32>
    %c7_i32_242 = arith.constant 7 : i32
    %c7_i32_243 = arith.constant 7 : i32
    %926 = arith.subi %c7_i32_243, %c7_i32_242 : i32
    %927 = arith.index_cast %c7_i32_242 : i32 to index
    %c0_244 = arith.constant 0 : index
    %c0_245 = arith.constant 0 : index
    %928 = vector.load %arg11[%927, %c0_244, %c0_245] : memref<8x8x512xf32, #tpu.memory_space<vmem>>, vector<1x8x512xf32>
    %929 = vector.shape_cast %928 : vector<1x8x512xf32> to vector<8x512xf32>
    %930 = arith.truncf %898 : vector<8x128xf32> to vector<8x128xbf16>
    %cst_246 = arith.constant dense<0.000000e+00> : vector<8x512xf32>
    %931 = tpu.matmul %930, %537, %cst_246 {dimension_numbers = #tpu.dot_dimension_numbers<[1], [0], [0], [1], [0, 0, 1, 1], [], []>} : vector<8x128xbf16>, vector<128x512xbf16>, vector<8x512xf32> -> vector<8x512xf32>
    %932 = arith.addf %929, %931 : vector<8x512xf32>
    %933 = vector.extract_strided_slice %932 {offsets = [0, 0], sizes = [8, 256], strides = [1, 1]} : vector<8x512xf32> to vector<8x256xf32>
    %934 = arith.negf %933 : vector<8x256xf32>
    %935 = math.exp %934 : vector<8x256xf32>
    %cst_247 = arith.constant 1.000000e+00 : f32
    %936 = vector.broadcast %cst_247 : f32 to vector<8x256xf32>
    %937 = arith.addf %936, %935 : vector<8x256xf32>
    %938 = arith.divf %936, %937 : vector<8x256xf32>
    %939 = vector.extract_strided_slice %938 {offsets = [0, 0], sizes = [8, 128], strides = [1, 1]} : vector<8x256xf32> to vector<8x128xf32>
    %940 = vector.extract_strided_slice %938 {offsets = [0, 128], sizes = [8, 128], strides = [1, 1]} : vector<8x256xf32> to vector<8x128xf32>
    %941 = vector.extract_strided_slice %932 {offsets = [0, 256], sizes = [8, 128], strides = [1, 1]} : vector<8x512xf32> to vector<8x128xf32>
    %942 = math.tanh %941 : vector<8x128xf32>
    %943 = vector.extract_strided_slice %932 {offsets = [0, 384], sizes = [8, 128], strides = [1, 1]} : vector<8x512xf32> to vector<8x128xf32>
    %944 = arith.negf %943 : vector<8x128xf32>
    %945 = math.exp %944 : vector<8x128xf32>
    %cst_248 = arith.constant 1.000000e+00 : f32
    %946 = vector.broadcast %cst_248 : f32 to vector<8x128xf32>
    %947 = arith.addf %946, %945 : vector<8x128xf32>
    %948 = arith.divf %946, %947 : vector<8x128xf32>
    %949 = arith.mulf %940, %896 : vector<8x128xf32>
    %950 = arith.mulf %939, %942 : vector<8x128xf32>
    %951 = arith.addf %949, %950 : vector<8x128xf32>
    %952 = math.tanh %951 : vector<8x128xf32>
    %953 = arith.mulf %948, %952 : vector<8x128xf32>
    %954 = arith.index_cast %926 : i32 to index
    %c0_249 = arith.constant 0 : index
    %c0_250 = arith.constant 0 : index
    %955 = vector.load %arg12[%954, %c0_249, %c0_250] : memref<8x8x512xf32, #tpu.memory_space<vmem>>, vector<1x8x512xf32>
    %956 = vector.shape_cast %955 : vector<1x8x512xf32> to vector<8x512xf32>
    %957 = arith.truncf %925 : vector<8x128xf32> to vector<8x128xbf16>
    %cst_251 = arith.constant dense<0.000000e+00> : vector<8x512xf32>
    %958 = tpu.matmul %957, %539, %cst_251 {dimension_numbers = #tpu.dot_dimension_numbers<[1], [0], [0], [1], [0, 0, 1, 1], [], []>} : vector<8x128xbf16>, vector<128x512xbf16>, vector<8x512xf32> -> vector<8x512xf32>
    %959 = arith.addf %956, %958 : vector<8x512xf32>
    %960 = vector.extract_strided_slice %959 {offsets = [0, 0], sizes = [8, 256], strides = [1, 1]} : vector<8x512xf32> to vector<8x256xf32>
    %961 = arith.negf %960 : vector<8x256xf32>
    %962 = math.exp %961 : vector<8x256xf32>
    %cst_252 = arith.constant 1.000000e+00 : f32
    %963 = vector.broadcast %cst_252 : f32 to vector<8x256xf32>
    %964 = arith.addf %963, %962 : vector<8x256xf32>
    %965 = arith.divf %963, %964 : vector<8x256xf32>
    %966 = vector.extract_strided_slice %965 {offsets = [0, 0], sizes = [8, 128], strides = [1, 1]} : vector<8x256xf32> to vector<8x128xf32>
    %967 = vector.extract_strided_slice %965 {offsets = [0, 128], sizes = [8, 128], strides = [1, 1]} : vector<8x256xf32> to vector<8x128xf32>
    %968 = vector.extract_strided_slice %959 {offsets = [0, 256], sizes = [8, 128], strides = [1, 1]} : vector<8x512xf32> to vector<8x128xf32>
    %969 = math.tanh %968 : vector<8x128xf32>
    %970 = vector.extract_strided_slice %959 {offsets = [0, 384], sizes = [8, 128], strides = [1, 1]} : vector<8x512xf32> to vector<8x128xf32>
    %971 = arith.negf %970 : vector<8x128xf32>
    %972 = math.exp %971 : vector<8x128xf32>
    %cst_253 = arith.constant 1.000000e+00 : f32
    %973 = vector.broadcast %cst_253 : f32 to vector<8x128xf32>
    %974 = arith.addf %973, %972 : vector<8x128xf32>
    %975 = arith.divf %973, %974 : vector<8x128xf32>
    %976 = arith.mulf %967, %923 : vector<8x128xf32>
    %977 = arith.mulf %966, %969 : vector<8x128xf32>
    %978 = arith.addf %976, %977 : vector<8x128xf32>
    %979 = math.tanh %978 : vector<8x128xf32>
    %980 = arith.mulf %975, %979 : vector<8x128xf32>
    %c8_i32_254 = arith.constant 8 : i32
    %cst_255 = arith.constant 0.000000e+00 : f32
    %981 = vector.broadcast %cst_255 : f32 to vector<8x128xf32>
    %982 = arith.addf %981, %486 : vector<8x128xf32>
    %983 = arith.addf %982, %953 : vector<8x128xf32>
    %984 = math.tanh %983 : vector<8x128xf32>
    %cst_256 = arith.constant 0.000000e+00 : f32
    %985 = vector.broadcast %cst_256 : f32 to vector<8x128xf32>
    %986 = arith.addf %985, %513 : vector<8x128xf32>
    %987 = arith.addf %986, %980 : vector<8x128xf32>
    %988 = math.tanh %987 : vector<8x128xf32>
    %989 = tpu.concatenate %984, %988 in 1 : vector<8x128xf32>, vector<8x128xf32> -> vector<8x256xf32>
    %c0_257 = arith.constant 0 : index
    %c0_258 = arith.constant 0 : index
    %990 = vector.load %arg7[%c0_257, %c0_258] : memref<256x1xf32, #tpu.memory_space<vmem>>, vector<256x1xf32>
    %cst_259 = arith.constant dense<0.000000e+00> : vector<8x1xf32>
    %991 = tpu.matmul %989, %990, %cst_259 {dimension_numbers = #tpu.dot_dimension_numbers<[1], [0], [0], [1], [0, 0, 1, 1], [], []>} : vector<8x256xf32>, vector<256x1xf32>, vector<8x1xf32> -> vector<8x1xf32>
    %c0_260 = arith.constant 0 : index
    %c0_261 = arith.constant 0 : index
    %992 = vector.load %arg8[%c0_260, %c0_261] : memref<1x1xf32, #tpu.memory_space<vmem>>, vector<1x1xf32>
    %993 = vector.broadcast %992 : vector<1x1xf32> to vector<8x1xf32>
    %994 = arith.addf %991, %993 : vector<8x1xf32>
    %c0_262 = arith.constant 0 : index
    %c0_263 = arith.constant 0 : index
    %995 = vector.load %arg9[%c0_262, %c0_263] : memref<8x1xf32, #tpu.memory_space<vmem>>, vector<8x1xf32>
    tpu.vector_store %arg9[%c0_262, %c0_263], %994 {strides = array<i32>} : memref<8x1xf32, #tpu.memory_space<vmem>>, vector<8x1xf32>,
    return
  }
}

</mosaic_0001>

<bundles_post_ra>
// kernel: bilstm_forward.1
= control target key start
LH: loop header
LB: loop body
LE: loop exit
PB: predicated region body
PF: predicated region fallthrough
CT: control target
= control target key end

     0   :  { %s11131_s0 = inlined_call_operand.vmem [shape: bf16[8,8,128], index: 0, kind: input, shape index: {}]   ;;  %s11132_s1 = inlined_call_operand.vmem [shape: bf16[128,1024], index: 1, kind: input, shape index: {}]   ;;  %s11133_s2 = inlined_call_operand.hbm [shape: bf16[2,128,512], index: 2, kind: input, shape index: {}]   ;;  %s11134_s3 = inlined_call_operand.vmem [shape: f32[1,1024], index: 3, kind: input, shape index: {}]   ;;  %s11135_s4 = inlined_call_operand.hbm [shape: bf16[256,1024], index: 4, kind: input, shape index: {}]   ;;  %s11136_s5 = inlined_call_operand.hbm [shape: bf16[2,128,512], index: 5, kind: input, shape index: {}]   ;;  %s11137_s6 = inlined_call_operand.vmem [shape: f32[1,1024], index: 6, kind: input, shape index: {}]   ;;  %s11138_s7 = inlined_call_operand.vmem [shape: f32[256,1], index: 7, kind: input, shape index: {}]   ;;  %s11139_s8 = inlined_call_operand.<no memory space> [shape: f32[1,1], index: 8, kind: input, shape index: {}]   ;;  %s11140_s9 = inlined_call_operand.vmem [shape: f32[8,1], index: 9, kind: output, shape index: {}]  }
   0x1   :  { %v14_v0 = vstv %s11139_s8 }
   0x2   :  { %15 = vst [vmem:[#allocation5] sm:$0x1] %v14_v0 }
   0x3   :  { %16 = vsyncpa [#allocation7], 0 }
   0x4   :  { %17 = vsyncpa [#allocation9], 0  ;;  %s8348_s11 = smov [#allocation8]   ;;  %s8278_s15 = scalar_lea.hbm %s11135_s4, 16384 }
   0x5   :  { %s41_s12 = sshll.u32 %s8348_s11, 4  ;;  %p8279_p0 = scmp.ne.s32.totalorder %s11135_s4, %s8278_s15  ;;  %s42_s12 = int_to_ptr.vmem [resolvable:$true] %s41_s12 }
   0x6   :  { %p8282_p1 = scmp.lt.u32.totalorder %s8278_s15, %s11135_s4 }
   0x8   :  { %p8284_p2 = pnand %p8282_p1, %p8279_p0 }
   0xa   :  { %8287 = shalt.err (!%p8284_p2)
}
   0xb   :  { %s8288_s8 = scalar_lea.vmem %s42_s12, 16384  ;;  %p8293_p4 = scmp.lt.s32.totalorder %s42_s12, %s42_s12 }
   0xc   :  { %p8289_p3 = scmp.ne.s32.totalorder %s42_s12, %s8288_s8  ;;  %p8294_p5 = scmp.lt.s32.totalorder %s8288_s8, %s8288_s8 }
   0xe   :  { %p8295_p6 = por %p8294_p5, %p8293_p4 }
  0x10   :  { %p8296_p7 = pnand %p8295_p6, %p8289_p3 }
  0x12   :  { %8299 = shalt.err (!%p8296_p7)
}
  0x13   :  { %s8349_s20 = smov 512   ;;  %s8350_s21 = smov 32  }
  0x14   :  { %47 = dma.hbm_to_vmem [thread:$0]  %s11135_s4, 16384, %s42_s12, [#allocation9], %s8349_s20, %s8349_s20, %s8350_s21  }
  0x15   :  { %s8351_s24 = smov [#allocation6]   ;;  %s8300_s28 = scalar_lea.hbm %s11133_s2, 8192 }
  0x16   :  { %s27_s25 = sshll.u32 %s8351_s24, 4  ;;  %p8301_p8 = scmp.ne.s32.totalorder %s11133_s2, %s8300_s28  ;;  %s28_s25 = int_to_ptr.vmem [resolvable:$true] %s27_s25 }
  0x17   :  { %p8304_p9 = scmp.lt.u32.totalorder %s8300_s28, %s11133_s2 }
  0x19   :  { %p8306_p10 = pnand %p8304_p9, %p8301_p8 }
  0x1b   :  { %8309 = shalt.err (!%p8306_p10)
}
  0x1c   :  { %s8310_s13 = scalar_lea.vmem %s28_s25, 8192  ;;  %p8315_p12 = scmp.lt.s32.totalorder %s28_s25, %s28_s25 }
  0x1d   :  { %p8311_p11 = scmp.ne.s32.totalorder %s28_s25, %s8310_s13  ;;  %p8316_p13 = scmp.lt.s32.totalorder %s8310_s13, %s8310_s13 }
  0x1f   :  { %p8317_p0 = por %p8316_p13, %p8315_p12 }
  0x21   :  { %p8318_p1 = pnand %p8317_p0, %p8311_p11 }
  0x23   :  { %8321 = shalt.err (!%p8318_p1)
}
  0x24   :  { %s8352_s4 = smov 256   ;;  %s8353_s12 = smov 16  }
  0x25   :  { %33 = dma.hbm_to_vmem [thread:$0]  %s11133_s2, 8192, %s28_s25, [#allocation7], %s8352_s4, %s8352_s4, %s8353_s12  }
  0x26   :  { %s8354_s16 = smov [#allocation10]   ;;  %s8322_s8 = scalar_lea.hbm %s11136_s5, 8192 }
  0x27   :  { %s53_s17 = sshll.u32 %s8354_s16, 4  ;;  %p8323_p2 = scmp.ne.s32.totalorder %s11136_s5, %s8322_s8  ;;  %s54_s17 = int_to_ptr.vmem [resolvable:$true] %s53_s17 }
  0x28   :  { %p8326_p3 = scmp.lt.u32.totalorder %s8322_s8, %s11136_s5 }
  0x2a   :  { %p8328_p4 = pnand %p8326_p3, %p8323_p2 }
  0x2c   :  { %8331 = shalt.err (!%p8328_p4)
}
  0x2d   :  { %s8332_s24 = scalar_lea.vmem %s54_s17, 8192  ;;  %p8337_p6 = scmp.lt.s32.totalorder %s54_s17, %s54_s17 }
  0x2e   :  { %p8333_p5 = scmp.ne.s32.totalorder %s54_s17, %s8332_s24  ;;  %p8338_p7 = scmp.lt.s32.totalorder %s8332_s24, %s8332_s24 }
  0x30   :  { %p8339_p8 = por %p8338_p7, %p8337_p6 }
  0x32   :  { %p8340_p9 = pnand %p8339_p8, %p8333_p5 }
  0x34   :  { %8343 = shalt.err (!%p8340_p9)
}
  0x35   :  { %59 = dma.hbm_to_vmem [thread:$0]  %s11136_s5, 8192, %s54_s17, [#allocation9], %s8352_s4, %s8352_s4, %s8353_s12  }
  0x36   :  { %8344 = dma.done.wait [#allocation7], 8192  }
  0x37   :  { %8345 = vsyncadd [#allocation7], 4294959104 }
  0x38   :  { %8346 = dma.done.wait [#allocation9], 24576  }
  0x39   :  { %8347 = vsyncadd [#allocation9], 4294942720  ;;  %v11141_v1 = vmov 0   ;;  %v85_v2 = vld [vmem:[%s11132_s1] sm:$0xff]  ;;  %v86_v4 = vld [vmem:[%s11132_s1 + $0x8] sm:$0xff]  ;;  %vm6806_vm0 = vcmask 7168  }
  0x3a   :  { %525 = vmatprep.mubr.bf16.mxu0 %v11141_v1  ;;  %598 = vmatprep.mubr.bf16.mxu1 %v11141_v1  ;;  %v89_v3 = vld [vmem:[%s11132_s1 + $0x20] sm:$0xff]  ;;  %v90_v6 = vld [vmem:[%s11132_s1 + $0x28] sm:$0xff]  ;;  %v87_v63 = vld [vmem:[%s11132_s1 + $0x10] sm:$0xff] }
  0x3b   :  { %v6819_v5 = vcombine.high %v85_v2, %v89_v3  ;;  %v6818_v7 = vcombine.low %v85_v2, %v89_v3  ;;  %v93_v8 = vld [vmem:[%s11132_s1 + $0x40] sm:$0xff]  ;;  %v6821_v10 = vcombine.high %v86_v4, %v90_v6  ;;  %v6820_v11 = vcombine.low %v86_v4, %v90_v6  ;;  %v94_v13 = vld [vmem:[%s11132_s1 + $0x48] sm:$0xff]  ;;  %v91_v2 = vld [vmem:[%s11132_s1 + $0x30] sm:$0xff] }
  0x3c   :  { %v97_v9 = vld [vmem:[%s11132_s1 + $0x60] sm:$0xff]  ;;  %v98_v14 = vld [vmem:[%s11132_s1 + $0x68] sm:$0xff]  ;;  %v88_v3 = vld [vmem:[%s11132_s1 + $0x18] sm:$0xff] }
  0x3d   :  { %v6827_v12 = vcombine.high %v93_v8, %v97_v9  ;;  %v101_v15 = vld [vmem:[%s11132_s1 + $0x80] sm:$0xff]  ;;  %493 = vmatprep.subr.bf16.mxu0 %v6819_v5  ;;  %v6829_v16 = vcombine.high %v94_v13, %v98_v14  ;;  %v102_v18 = vld [vmem:[%s11132_s1 + $0x88] sm:$0xff]  ;;  %566 = vmatprep.subr.bf16.mxu1 %v6821_v10  ;;  %v6826_v20 = vcombine.low %v93_v8, %v97_v9  ;;  %v92_v4 = vld [vmem:[%s11132_s1 + $0x38] sm:$0xff] }
  0x3e   :  { %v105_v17 = vld [vmem:[%s11132_s1 + $0xa0] sm:$0xff]  ;;  %v106_v19 = vld [vmem:[%s11132_s1 + $0xa8] sm:$0xff]  ;;  %494 = vmatpush1.bf16.msra.mxu0 %v6818_v7  ;;  %567 = vmatpush1.bf16.msra.mxu1 %v6820_v11  ;;  %v6828_v21 = vcombine.low %v94_v13, %v98_v14  ;;  %v6823_v8 = vcombine.high %v87_v63, %v91_v2  ;;  %v95_v9 = vld [vmem:[%s11132_s1 + $0x50] sm:$0xff]  ;;  %v6825_v10 = vcombine.high %v88_v3, %v92_v4 }
  0x3f   :  { %495 = vmatprep.subr.bf16.mxu0 %v6827_v12  ;;  %v6835_v22 = vcombine.high %v101_v15, %v105_v17  ;;  %568 = vmatprep.subr.bf16.mxu1 %v6829_v16  ;;  %v6837_v23 = vcombine.high %v102_v18, %v106_v19  ;;  %v109_v24 = vld [vmem:[%s11132_s1 + $0xc0] sm:$0xff]  ;;  %v110_v26 = vld [vmem:[%s11132_s1 + $0xc8] sm:$0xff]  ;;  %v6834_v28 = vcombine.low %v101_v15, %v105_v17  ;;  %v99_v11 = vld [vmem:[%s11132_s1 + $0x70] sm:$0xff] }
  0x40   :  { %v113_v25 = vld [vmem:[%s11132_s1 + $0xe0] sm:$0xff]  ;;  %v114_v27 = vld [vmem:[%s11132_s1 + $0xe8] sm:$0xff]  ;;  %v6836_v29 = vcombine.low %v102_v18, %v106_v19  ;;  %v96_v12 = vld [vmem:[%s11132_s1 + $0x58] sm:$0xff]  ;;  %v6822_v14 = vcombine.low %v87_v63, %v91_v2  ;;  %v6824_v15 = vcombine.low %v88_v3, %v92_v4  ;;  %v6831_v16 = vcombine.high %v95_v9, %v99_v11 }
  0x41   :  { %v6843_v30 = vcombine.high %v109_v24, %v113_v25  ;;  %v6845_v31 = vcombine.high %v110_v26, %v114_v27  ;;  %v117_v32 = vld [vmem:[%s11132_s1 + $0x100] sm:$0xff]  ;;  %v118_v34 = vld [vmem:[%s11132_s1 + $0x108] sm:$0xff]  ;;  %v6842_v36 = vcombine.low %v109_v24, %v113_v25  ;;  %v6844_v37 = vcombine.low %v110_v26, %v114_v27  ;;  %v100_v13 = vld [vmem:[%s11132_s1 + $0x78] sm:$0xff] }
  0x42   :  { %496 = vmatpush1.bf16.msra.mxu0 %v6826_v20  ;;  %569 = vmatpush1.bf16.msra.mxu1 %v6828_v21  ;;  %v121_v33 = vld [vmem:[%s11132_s1 + $0x120] sm:$0xff]  ;;  %v122_v35 = vld [vmem:[%s11132_s1 + $0x128] sm:$0xff]  ;;  %v103_v17 = vld [vmem:[%s11132_s1 + $0x90] sm:$0xff]  ;;  %v6833_v18 = vcombine.high %v96_v12, %v100_v13 }
  0x43   :  { %497 = vmatprep.subr.bf16.mxu0 %v6835_v22  ;;  %570 = vmatprep.subr.bf16.mxu1 %v6837_v23  ;;  %v6851_v38 = vcombine.high %v117_v32, %v121_v33  ;;  %v125_v39 = vld [vmem:[%s11132_s1 + $0x140] sm:$0xff]  ;;  %v6853_v40 = vcombine.high %v118_v34, %v122_v35  ;;  %v126_v42 = vld [vmem:[%s11132_s1 + $0x148] sm:$0xff]  ;;  %v6850_v44 = vcombine.low %v117_v32, %v121_v33  ;;  %v107_v19 = vld [vmem:[%s11132_s1 + $0xb0] sm:$0xff] }
  0x44   :  { %v129_v41 = vld [vmem:[%s11132_s1 + $0x160] sm:$0xff]  ;;  %v130_v43 = vld [vmem:[%s11132_s1 + $0x168] sm:$0xff]  ;;  %v6852_v45 = vcombine.low %v118_v34, %v122_v35  ;;  %v104_v20 = vld [vmem:[%s11132_s1 + $0x98] sm:$0xff]  ;;  %v6830_v22 = vcombine.low %v95_v9, %v99_v11  ;;  %v6832_v23 = vcombine.low %v96_v12, %v100_v13  ;;  %v6839_v25 = vcombine.high %v103_v17, %v107_v19 }
  0x45   :  { %v6859_v46 = vcombine.high %v125_v39, %v129_v41  ;;  %v133_v47 = vld [vmem:[%s11132_s1 + $0x180] sm:$0xff]  ;;  %v6861_v48 = vcombine.high %v126_v42, %v130_v43  ;;  %v134_v50 = vld [vmem:[%s11132_s1 + $0x188] sm:$0xff]  ;;  %v6858_v52 = vcombine.low %v125_v39, %v129_v41  ;;  %v6860_v53 = vcombine.low %v126_v42, %v130_v43  ;;  %v108_v21 = vld [vmem:[%s11132_s1 + $0xb8] sm:$0xff] }
  0x46   :  { %498 = vmatpush1.bf16.msra.mxu0 %v6834_v28  ;;  %571 = vmatpush1.bf16.msra.mxu1 %v6836_v29  ;;  %v137_v49 = vld [vmem:[%s11132_s1 + $0x1a0] sm:$0xff]  ;;  %v138_v51 = vld [vmem:[%s11132_s1 + $0x1a8] sm:$0xff]  ;;  %v111_v26 = vld [vmem:[%s11132_s1 + $0xd0] sm:$0xff]  ;;  %v6841_v27 = vcombine.high %v104_v20, %v108_v21  ;;  %v6840_v32 = vcombine.low %v104_v20, %v108_v21 }
  0x47   :  { %499 = vmatprep.subr.bf16.mxu0 %v6843_v30  ;;  %572 = vmatprep.subr.bf16.mxu1 %v6845_v31  ;;  %v6867_v54 = vcombine.high %v133_v47, %v137_v49  ;;  %v6869_v55 = vcombine.high %v134_v50, %v138_v51  ;;  %v141_v56 = vld [vmem:[%s11132_s1 + $0x1c0] sm:$0xff]  ;;  %v142_v58 = vld [vmem:[%s11132_s1 + $0x1c8] sm:$0xff]  ;;  %v6866_v60 = vcombine.low %v133_v47, %v137_v49  ;;  %v115_v28 = vld [vmem:[%s11132_s1 + $0xf0] sm:$0xff] }
  0x48   :  { %v145_v57 = vld [vmem:[%s11132_s1 + $0x1e0] sm:$0xff]  ;;  %v146_v59 = vld [vmem:[%s11132_s1 + $0x1e8] sm:$0xff]  ;;  %v6868_v61 = vcombine.low %v134_v50, %v138_v51  ;;  %v112_v29 = vld [vmem:[%s11132_s1 + $0xd8] sm:$0xff]  ;;  %v6838_v31 = vcombine.low %v103_v17, %v107_v19  ;;  %v6847_v33 = vcombine.high %v111_v26, %v115_v28  ;;  %v6846_v39 = vcombine.low %v111_v26, %v115_v28 }
  0x49   :  { %v6875_v62 = vcombine.high %v141_v56, %v145_v57  ;;  %v6877_v0 = vcombine.high %v142_v58, %v146_v59  ;;  %v6874_v5 = vcombine.low %v141_v56, %v145_v57  ;;  %v6876_v6 = vcombine.low %v142_v58, %v146_v59  ;;  %v8558_v7 = vld [vmem:[%s11131_s0] sm:$0xff]   ;;  %v8589_v24 = vld [vmem:[%s11131_s0 + $0x8] sm:$0xff]   ;;  %v116_v30 = vld [vmem:[%s11132_s1 + $0xf8] sm:$0xff] }
  0x4a   :  { %500 = vmatpush1.bf16.msra.mxu0 %v6842_v36  ;;  %573 = vmatpush1.bf16.msra.mxu1 %v6844_v37  ;;  %v119_v34 = vld [vmem:[%s11132_s1 + $0x110] sm:$0xff]  ;;  %v6849_v35 = vcombine.high %v112_v29, %v116_v30  ;;  %v120_v37 = vld [vmem:[%s11132_s1 + $0x118] sm:$0xff] }
  0x4b   :  { %501 = vmatprep.subr.bf16.mxu0 %v6851_v38  ;;  %574 = vmatprep.subr.bf16.mxu1 %v6853_v40  ;;  %v123_v36 = vld [vmem:[%s11132_s1 + $0x130] sm:$0xff]  ;;  %v124_v38 = vld [vmem:[%s11132_s1 + $0x138] sm:$0xff]  ;;  %v6848_v40 = vcombine.low %v112_v29, %v116_v30 }
  0x4c   :  { %v8622_v41 = vld [vmem:[%s11131_s0 + $0x10] sm:$0xff]   ;;  %v6855_v42 = vcombine.high %v119_v34, %v123_v36  ;;  %v132_v47 = vld [vmem:[%s11132_s1 + $0x178] sm:$0xff]  ;;  %v6856_v49 = vcombine.low %v120_v37, %v124_v38 }
  0x4d   :  { %v127_v43 = vld [vmem:[%s11132_s1 + $0x150] sm:$0xff]  ;;  %v8655_v58 = vld [vmem:[%s11131_s0 + $0x18] sm:$0xff]  }
  0x4e   :  { %502 = vmatpush1.bf16.msra.mxu0 %v6850_v44  ;;  %575 = vmatpush1.bf16.msra.mxu1 %v6852_v45  ;;  %v6857_v44 = vcombine.high %v120_v37, %v124_v38  ;;  %v131_v45 = vld [vmem:[%s11132_s1 + $0x170] sm:$0xff]  ;;  %v144_v63 = vld [vmem:[%s11132_s1 + $0x1d8] sm:$0xff] }
  0x4f   :  { %503 = vmatprep.subr.bf16.mxu0 %v6859_v46  ;;  %576 = vmatprep.subr.bf16.mxu1 %v6861_v48  ;;  %v128_v46 = vld [vmem:[%s11132_s1 + $0x158] sm:$0xff]  ;;  %v6854_v48 = vcombine.low %v119_v34, %v123_v36  ;;  %v6863_v50 = vcombine.high %v127_v43, %v131_v45  ;;  %v135_v51 = vld [vmem:[%s11132_s1 + $0x190] sm:$0xff]  ;;  %v6862_v56 = vcombine.low %v127_v43, %v131_v45 }
  0x50   :  { %v6864_v57 = vcombine.low %v128_v46, %v132_v47  ;;  %v8673_v9 = vld [vmem:[#allocation6 + $0x4] ss:$16 sps:$4 sm:$0xff]   ;;  %v8679_v11 = vld [vmem:[#allocation6] ss:$16 sps:$4 sm:$0xff]   ;;  %v8681_v12 = vld [vmem:[#allocation6 + $0x8] ss:$16 sps:$4 sm:$0xff]  }
  0x51   :  { %v8684_v13 = vld [vmem:[#allocation6 + $0x24] ss:$16 sps:$4 sm:$0xff]   ;;  %v8704_v19 = vld [vmem:[#allocation6 + $0x40] ss:$16 sps:$4 sm:$0xff]   ;;  %v8707_v20 = vld [vmem:[#allocation6 + $0x48] ss:$16 sps:$4 sm:$0xff]  }
  0x52   :  { %504 = vmatpush1.bf16.msra.mxu0 %v6858_v52  ;;  %577 = vmatpush1.bf16.msra.mxu1 %v6860_v53  ;;  %v6865_v52 = vcombine.high %v128_v46, %v132_v47  ;;  %v139_v53 = vld [vmem:[%s11132_s1 + $0x1b0] sm:$0xff]  ;;  %11328 = vst [vmem:[#allocation16_spill] sm:$0xff] %v8704_v19  ;;  %11329 = vst [vmem:[#allocation17_spill] sm:$0xff] %v8707_v20  ;;  %v8735_v28 = vld [vmem:[#allocation6 + $0x88] ss:$16 sps:$4 sm:$0xff]  }
  0x53   :  { %505 = vmatprep.subr.bf16.mxu0 %v6867_v54  ;;  %578 = vmatprep.subr.bf16.mxu1 %v6869_v55  ;;  %v136_v54 = vld [vmem:[%s11132_s1 + $0x198] sm:$0xff]  ;;  %v6871_v59 = vcombine.high %v135_v51, %v139_v53  ;;  %v6870_v2 = vcombine.low %v135_v51, %v139_v53  ;;  %11337 = vst [vmem:[#allocation25_spill] sm:$0xff] %v8735_v28  ;;  %v8745_v30 = vld [vmem:[#allocation6 + $0xa0] ss:$16 sps:$4 sm:$0xff]  }
  0x54   :  { %v140_v55 = vld [vmem:[%s11132_s1 + $0x1b8] sm:$0xff]  ;;  %11340 = vst [vmem:[#allocation28_spill] sm:$0xff] %v8745_v30  ;;  %v8760_v34 = vld [vmem:[#allocation6 + $0xc0] ss:$16 sps:$4 sm:$0xff]  }
  0x55   :  { %v6872_v3 = vcombine.low %v136_v54, %v140_v55  ;;  %v8694_v17 = vld [vmem:[#allocation6 + $0x44] ss:$16 sps:$4 sm:$0xff]   ;;  %v8726_v26 = vld [vmem:[#allocation6 + $0x8c] ss:$16 sps:$4 sm:$0xff]   ;;  %11344 = vst [vmem:[#allocation32_spill] sm:$0xff] %v8760_v34 }
  0x56   :  { %506 = vmatpush1.bf16.msra.mxu0 %v6866_v60  ;;  %579 = vmatpush1.bf16.msra.mxu1 %v6868_v61  ;;  %v143_v60 = vld [vmem:[%s11132_s1 + $0x1d0] sm:$0xff]  ;;  %v6873_v61 = vcombine.high %v136_v54, %v140_v55  ;;  %11326 = vst [vmem:[#allocation14_spill] sm:$0xff] %v8694_v17  ;;  %11335 = vst [vmem:[#allocation23_spill] sm:$0xff] %v8726_v26  ;;  %v8794_v43 = vld [vmem:[#allocation6 + $0x108] ss:$16 sps:$4 sm:$0xff]  }
  0x57   :  { %507 = vmatprep.subr.bf16.mxu0 %v6875_v62  ;;  %580 = vmatprep.subr.bf16.mxu1 %v6877_v0  ;;  %v147_v62 = vld [vmem:[%s11132_s1 + $0x1f0] sm:$0xff]  ;;  %v148_v0 = vld [vmem:[%s11132_s1 + $0x1f8] sm:$0xff] }
  0x58   :  { %v6879_v4 = vcombine.high %v143_v60, %v147_v62  ;;  %v8709_v21 = vld [vmem:[#allocation6 + $0x64] ss:$16 sps:$4 sm:$0xff]   ;;  %v8771_v37 = vld [vmem:[#allocation6 + $0xec] ss:$16 sps:$4 sm:$0xff]   ;;  %v8776_v38 = vld [vmem:[#allocation6 + $0xe0] ss:$16 sps:$4 sm:$0xff]  }
  0x59   :  { %11330 = vst [vmem:[#allocation18_spill] sm:$0xff] %v8709_v21  ;;  %v8737_v29 = vld [vmem:[#allocation6 + $0xa4] ss:$16 sps:$4 sm:$0xff]   ;;  %11347 = vst [vmem:[#allocation35_spill] sm:$0xff] %v8771_v37  ;;  %v8799_v45 = vld [vmem:[#allocation6 + $0x12c] ss:$16 sps:$4 sm:$0xff]  }
  0x5a   :  { %508 = vmatpush1.bf16.msra.mxu0 %v6874_v5  ;;  %581 = vmatpush1.bf16.msra.mxu1 %v6876_v6  ;;  %v6881_v5 = vcombine.high %v144_v63, %v148_v0  ;;  %v6878_v6 = vcombine.low %v143_v60, %v147_v62  ;;  %11338 = vst [vmem:[#allocation26_spill] sm:$0xff] %v8737_v29  ;;  %v8768_v36 = vld [vmem:[#allocation6 + $0xe4] ss:$16 sps:$4 sm:$0xff]   ;;  %11348 = vst [vmem:[#allocation36_spill] sm:$0xff] %v8776_v38  ;;  %v8804_v46 = vld [vmem:[#allocation6 + $0x120] ss:$16 sps:$4 sm:$0xff]  }
  0x5b   :  { %639 = vmatprep.subr.bf16.mxu0 %v6823_v8  ;;  %712 = vmatprep.subr.bf16.mxu1 %v6825_v10  ;;  %v6880_v8 = vcombine.low %v144_v63, %v148_v0  ;;  %v8676_v10 = vld [vmem:[#allocation6 + $0xc] ss:$16 sps:$4 sm:$0xff]   ;;  %11346 = vst [vmem:[#allocation34_spill] sm:$0xff] %v8768_v36  ;;  %v8808_v47 = vld [vmem:[#allocation6 + $0x128] ss:$16 sps:$4 sm:$0xff]  }
  0x5c   :  { %v8822_v51 = vld [vmem:[#allocation6 + $0x148] ss:$16 sps:$4 sm:$0xff]   ;;  %v8827_v53 = vld [vmem:[#allocation6 + $0x16c] ss:$16 sps:$4 sm:$0xff]   ;;  %v8830_v54 = vld [vmem:[#allocation6 + $0x160] ss:$16 sps:$4 sm:$0xff]  }
  0x5d   :  { %526 = vmatmul.mubr.bf16.vlgmr.msra.gmra.mrb[0].mxu0 %v8558_v7  ;;  %599 = vmatmul.mubr.bf16.vlgmr.msra.gmra.mrb[0].mxu1 %v8558_v7  ;;  %v8834_v55 = vld [vmem:[#allocation6 + $0x168] ss:$16 sps:$4 sm:$0xff]   ;;  %v8848_v60 = vld [vmem:[#allocation6 + $0x1a4] ss:$16 sps:$4 sm:$0xff]   ;;  %v8854_v62 = vld [vmem:[#allocation6 + $0x1a0] ss:$16 sps:$4 sm:$0xff]  }
  0x5e   :  { %640 = vmatpush1.bf16.msra.mxu0 %v6822_v14  ;;  %713 = vmatpush1.bf16.msra.mxu1 %v6824_v15  ;;  %v8687_v14 = vld [vmem:[#allocation6 + $0x2c] ss:$16 sps:$4 sm:$0xff]   ;;  %v8690_v15 = vld [vmem:[#allocation6 + $0x20] ss:$16 sps:$4 sm:$0xff]   ;;  %v8858_v63 = vld [vmem:[#allocation6 + $0x1a8] ss:$16 sps:$4 sm:$0xff]  }
  0x5f   :  { %641 = vmatprep.subr.bf16.mxu0 %v6831_v16  ;;  %714 = vmatprep.subr.bf16.mxu1 %v6833_v18  ;;  %v8692_v16 = vld [vmem:[#allocation6 + $0x28] ss:$16 sps:$4 sm:$0xff]   ;;  %v8698_v18 = vld [vmem:[#allocation6 + $0x4c] ss:$16 sps:$4 sm:$0xff]   ;;  %v8860_v0 = vld [vmem:[#allocation6 + $0x1c4] ss:$16 sps:$4 sm:$0xff]  }
  0x60   :  { %535 = vmatprep.mubr.bf16.mxu0 %v11141_v1  ;;  %608 = vmatprep.mubr.bf16.mxu1 %v11141_v1  ;;  %11325 = vst [vmem:[#allocation13_spill] sm:$0xff] %v8692_v16  ;;  %11327 = vst [vmem:[#allocation15_spill] sm:$0xff] %v8698_v18 }
  0x62   :  { %642 = vmatpush1.bf16.msra.mxu0 %v6830_v22  ;;  %715 = vmatpush1.bf16.msra.mxu1 %v6832_v23  ;;  %v8717_v22 = vld [vmem:[#allocation6 + $0x60] ss:$16 sps:$4 sm:$0xff]   ;;  %v8720_v23 = vld [vmem:[#allocation6 + $0x68] ss:$16 sps:$4 sm:$0xff]  }
  0x63   :  { %643 = vmatprep.subr.bf16.mxu0 %v6839_v25  ;;  %716 = vmatprep.subr.bf16.mxu1 %v6841_v27  ;;  %11332 = vst [vmem:[#allocation20_spill] sm:$0xff] %v8717_v22  ;;  %11333 = vst [vmem:[#allocation21_spill] sm:$0xff] %v8720_v23  ;;  %v8722_v25 = vld [vmem:[#allocation6 + $0x84] ss:$16 sps:$4 sm:$0xff]   ;;  %v8732_v27 = vld [vmem:[#allocation6 + $0x80] ss:$16 sps:$4 sm:$0xff]  }
  0x64   :  { %11334 = vst [vmem:[#allocation22_spill] sm:$0xff] %v8722_v25  ;;  %11336 = vst [vmem:[#allocation24_spill] sm:$0xff] %v8732_v27 }
  0x65   :  { %536 = vmatmul.mubr.bf16.gmra.mrb[4].mxu0 %v8589_v24  ;;  %609 = vmatmul.mubr.bf16.gmra.mrb[4].mxu1 %v8589_v24 }
  0x66   :  { %644 = vmatpush1.bf16.msra.mxu0 %v6838_v31  ;;  %717 = vmatpush1.bf16.msra.mxu1 %v6840_v32  ;;  %v8748_v31 = vld [vmem:[#allocation6 + $0xa8] ss:$16 sps:$4 sm:$0xff]   ;;  %v8750_v32 = vld [vmem:[#allocation6 + $0xc4] ss:$16 sps:$4 sm:$0xff]  }
  0x67   :  { %645 = vmatprep.subr.bf16.mxu0 %v6847_v33  ;;  %718 = vmatprep.subr.bf16.mxu1 %v6849_v35  ;;  %11341 = vst [vmem:[#allocation29_spill] sm:$0xff] %v8748_v31  ;;  %11342 = vst [vmem:[#allocation30_spill] sm:$0xff] %v8750_v32  ;;  %v8754_v33 = vld [vmem:[#allocation6 + $0xcc] ss:$16 sps:$4 sm:$0xff]   ;;  %v8763_v35 = vld [vmem:[#allocation6 + $0xc8] ss:$16 sps:$4 sm:$0xff]  }
  0x68   :  { %545 = vmatprep.mubr.bf16.mxu0 %v11141_v1  ;;  %618 = vmatprep.mubr.bf16.mxu1 %v11141_v1  ;;  %11343 = vst [vmem:[#allocation31_spill] sm:$0xff] %v8754_v33  ;;  %11345 = vst [vmem:[#allocation33_spill] sm:$0xff] %v8763_v35 }
  0x6a   :  { %646 = vmatpush1.bf16.msra.mxu0 %v6846_v39  ;;  %719 = vmatpush1.bf16.msra.mxu1 %v6848_v40  ;;  %v8780_v39 = vld [vmem:[#allocation6 + $0xe8] ss:$16 sps:$4 sm:$0xff]   ;;  %v8782_v40 = vld [vmem:[#allocation6 + $0x104] ss:$16 sps:$4 sm:$0xff]  }
  0x6b   :  { %647 = vmatprep.subr.bf16.mxu0 %v6855_v42  ;;  %720 = vmatprep.subr.bf16.mxu1 %v6857_v44  ;;  %11349 = vst [vmem:[#allocation37_spill] sm:$0xff] %v8780_v39  ;;  %11350 = vst [vmem:[#allocation38_spill] sm:$0xff] %v8782_v40  ;;  %v8790_v42 = vld [vmem:[#allocation6 + $0x100] ss:$16 sps:$4 sm:$0xff]   ;;  %v8796_v44 = vld [vmem:[#allocation6 + $0x124] ss:$16 sps:$4 sm:$0xff]  }
  0x6d   :  { %546 = vmatmul.mubr.bf16.gmra.mrb[8].mxu0 %v8622_v41  ;;  %619 = vmatmul.mubr.bf16.gmra.mrb[8].mxu1 %v8622_v41 }
  0x6e   :  { %648 = vmatpush1.bf16.msra.mxu0 %v6854_v48  ;;  %721 = vmatpush1.bf16.msra.mxu1 %v6856_v49  ;;  %v8810_v48 = vld [vmem:[#allocation6 + $0x144] ss:$16 sps:$4 sm:$0xff]   ;;  %v8813_v49 = vld [vmem:[#allocation6 + $0x14c] ss:$16 sps:$4 sm:$0xff]  }
  0x6f   :  { %649 = vmatprep.subr.bf16.mxu0 %v6863_v50  ;;  %722 = vmatprep.subr.bf16.mxu1 %v6865_v52  ;;  %v8818_v50 = vld [vmem:[#allocation6 + $0x140] ss:$16 sps:$4 sm:$0xff]   ;;  %v8824_v52 = vld [vmem:[#allocation6 + $0x164] ss:$16 sps:$4 sm:$0xff]  }
  0x70   :  { %555 = vmatprep.mubr.bf16.mxu0 %v11141_v1  ;;  %628 = vmatprep.mubr.bf16.mxu1 %v11141_v1 }
  0x72   :  { %650 = vmatpush1.bf16.msra.mxu0 %v6862_v56  ;;  %723 = vmatpush1.bf16.msra.mxu1 %v6864_v57  ;;  %v8836_v56 = vld [vmem:[#allocation6 + $0x184] ss:$16 sps:$4 sm:$0xff]   ;;  %v8839_v57 = vld [vmem:[#allocation6 + $0x18c] ss:$16 sps:$4 sm:$0xff]  }
  0x73   :  { %651 = vmatprep.subr.bf16.mxu0 %v6871_v59  ;;  %724 = vmatprep.subr.bf16.mxu1 %v6873_v61  ;;  %v8846_v59 = vld [vmem:[#allocation6 + $0x188] ss:$16 sps:$4 sm:$0xff]   ;;  %v8851_v61 = vld [vmem:[#allocation6 + $0x1ac] ss:$16 sps:$4 sm:$0xff]  }
  0x75   :  { %556 = vmatmul.mubr.bf16.gmra.mrb[12].mxu0 %v8655_v58  ;;  %629 = vmatmul.mubr.bf16.gmra.mrb[12].mxu1 %v8655_v58 }
  0x76   :  { %652 = vmatpush1.bf16.msra.mxu0 %v6870_v2  ;;  %725 = vmatpush1.bf16.msra.mxu1 %v6872_v3  ;;  %v8863_v2 = vld [vmem:[#allocation6 + $0x1cc] ss:$16 sps:$4 sm:$0xff]   ;;  %v8866_v3 = vld [vmem:[#allocation6 + $0x1c0] ss:$16 sps:$4 sm:$0xff]  }
  0x77   :  { %653 = vmatprep.subr.bf16.mxu0 %v6879_v4  ;;  %726 = vmatprep.subr.bf16.mxu1 %v6881_v5  ;;  %11352 = vst [vmem:[#allocation40_spill] sm:$0xff] %v8863_v2  ;;  %v8870_v4 = vld [vmem:[#allocation6 + $0x1c8] ss:$16 sps:$4 sm:$0xff]   ;;  %v8872_v5 = vld [vmem:[#allocation6 + $0x1e4] ss:$16 sps:$4 sm:$0xff]  }
  0x78   :  { %671 = vmatprep.mubr.bf16.mxu0 %v11141_v1  ;;  %744 = vmatprep.mubr.bf16.mxu1 %v11141_v1 }
  0x7a   :  { %654 = vmatpush1.bf16.msra.mxu0 %v6878_v6  ;;  %727 = vmatpush1.bf16.msra.mxu1 %v6880_v8  ;;  %v8875_v6 = vld [vmem:[#allocation6 + $0x1ec] ss:$16 sps:$4 sm:$0xff]   ;;  %v8878_v8 = vld [vmem:[#allocation6 + $0x1e0] ss:$16 sps:$4 sm:$0xff]  }
  0x7b   :  { %1183 = vmatprep.subr.bf16.mxu0 %v8673_v9  ;;  %1224 = vmatprep.subr.bf16.mxu1 %v8676_v10 }
  0x7d   :  { %672 = vmatmul.mubr.bf16.vlgmr.msra.gmra.mrb[16].mxu0 %v8558_v7  ;;  %745 = vmatmul.mubr.bf16.vlgmr.msra.gmra.mrb[16].mxu1 %v8558_v7  ;;  %v8712_v7 = vld [vmem:[#allocation6 + $0x6c] ss:$16 sps:$4 sm:$0xff]  }
  0x7e   :  { %1184 = vmatpush1.bf16.msra.mxu0 %v8679_v11  ;;  %1225 = vmatpush1.bf16.msra.mxu1 %v8681_v12  ;;  %11331 = vst [vmem:[#allocation19_spill] sm:$0xff] %v8712_v7 }
  0x7f   :  { %1185 = vmatprep.subr.bf16.mxu0 %v8684_v13  ;;  %1226 = vmatprep.subr.bf16.mxu1 %v8687_v14 }
  0x80   :  { %681 = vmatprep.mubr.bf16.mxu0 %v11141_v1  ;;  %754 = vmatprep.mubr.bf16.mxu1 %v11141_v1 }
  0x82   :  { %1186 = vmatpush1.bf16.msra.mxu0 %v8690_v15  ;;  %1227 = vmatpush1.bf16.msra.mxu1 %v8692_v16 }
  0x83   :  { %1187 = vmatprep.subr.bf16.mxu0 %v8694_v17  ;;  %1228 = vmatprep.subr.bf16.mxu1 %v8698_v18 }
  0x85   :  { %682 = vmatmul.mubr.bf16.gmra.mrb[20].mxu0 %v8589_v24  ;;  %755 = vmatmul.mubr.bf16.gmra.mrb[20].mxu1 %v8589_v24  ;;  %v8740_v24 = vld [vmem:[#allocation6 + $0xac] ss:$16 sps:$4 sm:$0xff]  }
  0x86   :  { %1188 = vmatpush1.bf16.msra.mxu0 %v8704_v19  ;;  %1229 = vmatpush1.bf16.msra.mxu1 %v8707_v20  ;;  %11339 = vst [vmem:[#allocation27_spill] sm:$0xff] %v8740_v24 }
  0x87   :  { %1189 = vmatprep.subr.bf16.mxu0 %v8709_v21  ;;  %1230 = vmatprep.subr.bf16.mxu1 %v8712_v7 }
  0x88   :  { %691 = vmatprep.mubr.bf16.mxu0 %v11141_v1  ;;  %764 = vmatprep.mubr.bf16.mxu1 %v11141_v1 }
  0x8a   :  { %1190 = vmatpush1.bf16.msra.mxu0 %v8717_v22  ;;  %1231 = vmatpush1.bf16.msra.mxu1 %v8720_v23 }
  0x8b   :  { %1191 = vmatprep.subr.bf16.mxu0 %v8722_v25  ;;  %1232 = vmatprep.subr.bf16.mxu1 %v8726_v26 }
  0x8d   :  { %692 = vmatmul.mubr.bf16.gmra.mrb[24].mxu0 %v8622_v41  ;;  %765 = vmatmul.mubr.bf16.gmra.mrb[24].mxu1 %v8622_v41  ;;  %v8786_v41 = vld [vmem:[#allocation6 + $0x10c] ss:$16 sps:$4 sm:$0xff]  }
  0x8e   :  { %1192 = vmatpush1.bf16.msra.mxu0 %v8732_v27  ;;  %1233 = vmatpush1.bf16.msra.mxu1 %v8735_v28  ;;  %11351 = vst [vmem:[#allocation39_spill] sm:$0xff] %v8786_v41 }
  0x8f   :  { %1193 = vmatprep.subr.bf16.mxu0 %v8737_v29  ;;  %1234 = vmatprep.subr.bf16.mxu1 %v8740_v24 }
  0x90   :  { %701 = vmatprep.mubr.bf16.mxu0 %v11141_v1  ;;  %774 = vmatprep.mubr.bf16.mxu1 %v11141_v1 }
  0x92   :  { %1194 = vmatpush1.bf16.msra.mxu0 %v8745_v30  ;;  %1235 = vmatpush1.bf16.msra.mxu1 %v8748_v31 }
  0x93   :  { %1195 = vmatprep.subr.bf16.mxu0 %v8750_v32  ;;  %1236 = vmatprep.subr.bf16.mxu1 %v8754_v33 }
  0x95   :  { %702 = vmatmul.mubr.bf16.gmra.mrb[28].mxu0 %v8655_v58  ;;  %775 = vmatmul.mubr.bf16.gmra.mrb[28].mxu1 %v8655_v58  ;;  %v8842_v58 = vld [vmem:[#allocation6 + $0x180] ss:$16 sps:$4 sm:$0xff]  }
  0x96   :  { %1196 = vmatpush1.bf16.msra.mxu0 %v8760_v34  ;;  %1237 = vmatpush1.bf16.msra.mxu1 %v8763_v35 }
  0x97   :  { %1197 = vmatprep.subr.bf16.mxu0 %v8768_v36  ;;  %1238 = vmatprep.subr.bf16.mxu1 %v8771_v37 }
  0x98   :  { %1215 = vmatprep.mubr.bf16.mxu0 %v11141_v1  ;;  %1256 = vmatprep.mubr.bf16.mxu1 %v11141_v1 }
  0x9a   :  { %1198 = vmatpush1.bf16.msra.mxu0 %v8776_v38  ;;  %1239 = vmatpush1.bf16.msra.mxu1 %v8780_v39 }
  0x9b   :  { %1458 = vmatprep.subr.bf16.mxu0 %v8782_v40  ;;  %1499 = vmatprep.subr.bf16.mxu1 %v8786_v41 }
  0x9d   :  { %1216 = vmatmul.mubr.bf16.vlgmr.msra.gmra.mrb[32].mxu0 %v11141_v1  ;;  %1257 = vmatmul.mubr.bf16.vlgmr.msra.gmra.mrb[32].mxu1 %v11141_v1 }
  0x9e   :  { %1459 = vmatpush1.bf16.msra.mxu0 %v8790_v42  ;;  %1500 = vmatpush1.bf16.msra.mxu1 %v8794_v43 }
  0x9f   :  { %1460 = vmatprep.subr.bf16.mxu0 %v8796_v44  ;;  %1501 = vmatprep.subr.bf16.mxu1 %v8799_v45 }
  0xa0   :  { %1490 = vmatprep.mubr.bf16.mxu0 %v11141_v1  ;;  %1531 = vmatprep.mubr.bf16.mxu1 %v11141_v1  ;;  %v8882_v1 = vld [vmem:[#allocation6 + $0x1e8] ss:$16 sps:$4 sm:$0xff]  }
  0xa2   :  { %1461 = vmatpush1.bf16.msra.mxu0 %v8804_v46  ;;  %1502 = vmatpush1.bf16.msra.mxu1 %v8808_v47 }
  0xa3   :  { %1462 = vmatprep.subr.bf16.mxu0 %v8810_v48  ;;  %1503 = vmatprep.subr.bf16.mxu1 %v8813_v49 }
  0xa6   :  { %1463 = vmatpush1.bf16.msra.mxu0 %v8818_v50  ;;  %1504 = vmatpush1.bf16.msra.mxu1 %v8822_v51 }
  0xa7   :  { %1464 = vmatprep.subr.bf16.mxu0 %v8824_v52  ;;  %1505 = vmatprep.subr.bf16.mxu1 %v8827_v53 }
  0xaa   :  { %1465 = vmatpush1.bf16.msra.mxu0 %v8830_v54  ;;  %1506 = vmatpush1.bf16.msra.mxu1 %v8834_v55 }
  0xab   :  { %1466 = vmatprep.subr.bf16.mxu0 %v8836_v56  ;;  %1507 = vmatprep.subr.bf16.mxu1 %v8839_v57 }
  0xae   :  { %1467 = vmatpush1.bf16.msra.mxu0 %v8842_v58  ;;  %1508 = vmatpush1.bf16.msra.mxu1 %v8846_v59 }
  0xaf   :  { %1468 = vmatprep.subr.bf16.mxu0 %v8848_v60  ;;  %1509 = vmatprep.subr.bf16.mxu1 %v8851_v61 }
  0xb2   :  { %1469 = vmatpush1.bf16.msra.mxu0 %v8854_v62  ;;  %1510 = vmatpush1.bf16.msra.mxu1 %v8858_v63 }
  0xb3   :  { %1470 = vmatprep.subr.bf16.mxu0 %v8860_v0  ;;  %1511 = vmatprep.subr.bf16.mxu1 %v8863_v2  ;;  %v11353_v2 = vmov 0  }
  0xb6   :  { %1471 = vmatpush1.bf16.msra.mxu0 %v8866_v3  ;;  %1512 = vmatpush1.bf16.msra.mxu1 %v8870_v4 }
  0xb7   :  { %1472 = vmatprep.subr.bf16.mxu0 %v8872_v5  ;;  %1513 = vmatprep.subr.bf16.mxu1 %v8875_v6 }
  0xba   :  { %1473 = vmatpush1.bf16.msra.mxu0 %v8878_v8  ;;  %1514 = vmatpush1.bf16.msra.mxu1 %v8882_v1 }
  0xbb   :  { %1577 = vmatprep.subr.bf16.mxu0 %v8673_v9  ;;  %1618 = vmatprep.subr.bf16.mxu1 %v8676_v10  ;;  %v786_v9 = vlaneseq }
  0xbd   :  { %1491 = vmatmul.mubr.bf16.vlgmr.msra.gmra.mrb[36].mxu0 %v11353_v2  ;;  %1532 = vmatmul.mubr.bf16.vlgmr.msra.gmra.mrb[36].mxu1 %v11353_v2  ;;  %v8925_v10 = vshrl.u32 %v786_v9, 7 }
  0xbe   :  { %1578 = vmatpush1.bf16.msra.mxu0 %v8679_v11  ;;  %1619 = vmatpush1.bf16.msra.mxu1 %v8681_v12  ;;  %v8931_v12 = vld [vmem:[%s11134_s3] sm:$0xff] }
  0xbf   :  { %1579 = vmatprep.subr.bf16.mxu0 %v8684_v13  ;;  %1620 = vmatprep.subr.bf16.mxu1 %v8687_v14  ;;  %11354 = vst [vmem:[#allocation41_spill] sm:$0xff] %v8925_v10  ;;  %v11152_v11 = vsub.s32 0, %v8925_v10  ;;  %v11155_v13 = vsub.s32 2, %v8925_v10 }
  0xc0   :  { %1609 = vmatprep.mubr.bf16.mxu0 %v11353_v2  ;;  %1650 = vmatprep.mubr.bf16.mxu1 %v11353_v2 }
  0xc2   :  { %1580 = vmatpush1.bf16.msra.mxu0 %v8690_v15  ;;  %1621 = vmatpush1.bf16.msra.mxu1 %v8692_v16 }
  0xc3   :  { %1581 = vmatprep.subr.bf16.mxu0 %v8694_v17  ;;  %1622 = vmatprep.subr.bf16.mxu1 %v8698_v18 }
  0xc6   :  { %1582 = vmatpush1.bf16.msra.mxu0 %v8704_v19  ;;  %1623 = vmatpush1.bf16.msra.mxu1 %v8707_v20 }
  0xc7   :  { %1583 = vmatprep.subr.bf16.mxu0 %v8709_v21  ;;  %1624 = vmatprep.subr.bf16.mxu1 %v8712_v7 }
  0xca   :  { %1584 = vmatpush1.bf16.msra.mxu0 %v8717_v22  ;;  %1625 = vmatpush1.bf16.msra.mxu1 %v8720_v23 }
  0xcb   :  { %1585 = vmatprep.subr.bf16.mxu0 %v8722_v25  ;;  %1626 = vmatprep.subr.bf16.mxu1 %v8726_v26 }
  0xce   :  { %1586 = vmatpush1.bf16.msra.mxu0 %v8732_v27  ;;  %1627 = vmatpush1.bf16.msra.mxu1 %v8735_v28 }
  0xcf   :  { %1587 = vmatprep.subr.bf16.mxu0 %v8737_v29  ;;  %1628 = vmatprep.subr.bf16.mxu1 %v8740_v24 }
  0xd2   :  { %1588 = vmatpush1.bf16.msra.mxu0 %v8745_v30  ;;  %1629 = vmatpush1.bf16.msra.mxu1 %v8748_v31 }
  0xd3   :  { %1589 = vmatprep.subr.bf16.mxu0 %v8750_v32  ;;  %1630 = vmatprep.subr.bf16.mxu1 %v8754_v33 }
  0xd6   :  { %1590 = vmatpush1.bf16.msra.mxu0 %v8760_v34  ;;  %1631 = vmatpush1.bf16.msra.mxu1 %v8763_v35  ;;  %v11355_v35 = vsub.s32 1, %v8925_v10 }
  0xd7   :  { %1591 = vmatprep.subr.bf16.mxu0 %v8768_v36  ;;  %1632 = vmatprep.subr.bf16.mxu1 %v8771_v37 }
  0xda   :  { %1592 = vmatpush1.bf16.msra.mxu0 %v8776_v38  ;;  %1633 = vmatpush1.bf16.msra.mxu1 %v8780_v39  ;;  %v11160_v38 = vsub.s32 3, %v8925_v10 }
  0xdb   :  { %1693 = vmatprep.subr.bf16.mxu0 %v8782_v40  ;;  %1734 = vmatprep.subr.bf16.mxu1 %v8786_v41  ;;  %v8939_v41 = vrot.slane %v8931_v12, %v11152_v11  ;;  %v8946_v40 = vrot.slane %v8931_v12, %v11155_v13  ;;  %v8960_v11 = vrot.slane %v8931_v12, %v11355_v35 }
  0xdc   :  { %v8955_v39 = vrot.slane %v8931_v12, %v11160_v38 }
 0x130   :  { %v8941_v9 = vpop.f32.mrb[0].mxu0  ;;  %v8950_v36 = vpop.f32.mrb[0].mxu1 }
 0x131   :  { %v8948_v37 = vpop.f32.mrb[1].mxu0  ;;  %v8962_v33 = vpop.f32.mrb[1].mxu1 }
 0x132   :  { %v531_v34 = vpop.f32.mrb[2].mxu0  ;;  %v604_v31 = vpop.f32.mrb[2].mxu1 }
 0x133   :  { %v8965_v13 = vadd.f32 %v8939_v41, %v531_v34  ;;  %v533_v32 = vpop.f32.mrb[3].mxu0  ;;  %v8971_v24 = vadd.f32 %v8946_v40, %v604_v31  ;;  %v606_v38 = vpop.f32.mrb[3].mxu1 }
 0x134   :  { %v8968_v30 = vadd.f32 %v8960_v11, %v533_v32  ;;  %v8974_v29 = vadd.f32 %v8955_v39, %v606_v38 }
 0x135   :  { %11356 = vst [vmem:[#allocation42_spill] sm:$0xff] %v8965_v13  ;;  %11358 = vst [vmem:[#allocation44_spill] sm:$0xff] %v8971_v24 }
 0x136   :  { %11357 = vst [vmem:[#allocation43_spill] sm:$0xff] %v8968_v30  ;;  %11359 = vst [vmem:[#allocation45_spill] sm:$0xff] %v8974_v29 }
 0x138   :  { %v537_v35 = vpop.f32.mrb[4].mxu0  ;;  %v610_v26 = vpop.f32.mrb[4].mxu1 }
 0x139   :  { %v8977_v28 = vadd.f32 %v8939_v41, %v537_v35  ;;  %v539_v27 = vpop.f32.mrb[5].mxu0  ;;  %v8983_v32 = vadd.f32 %v8946_v40, %v610_v26  ;;  %v612_v30 = vpop.f32.mrb[5].mxu1 }
 0x13a   :  { %v8980_v34 = vadd.f32 %v8960_v11, %v539_v27  ;;  %v541_v13 = vpop.f32.mrb[6].mxu0  ;;  %v8989_v38 = vadd.f32 %v8955_v39, %v612_v30  ;;  %v614_v29 = vpop.f32.mrb[6].mxu1 }
 0x13b   :  { %11360 = vst [vmem:[#allocation46_spill] sm:$0xff] %v8977_v28  ;;  %11362 = vst [vmem:[#allocation48_spill] sm:$0xff] %v8983_v32  ;;  %v8986_v31 = vadd.f32 %v8939_v41, %v541_v13  ;;  %v543_v24 = vpop.f32.mrb[7].mxu0  ;;  %v8995_v28 = vadd.f32 %v8946_v40, %v614_v29  ;;  %v616_v27 = vpop.f32.mrb[7].mxu1 }
 0x13c   :  { %11361 = vst [vmem:[#allocation47_spill] sm:$0xff] %v8980_v34  ;;  %11364 = vst [vmem:[#allocation50_spill] sm:$0xff] %v8989_v38  ;;  %v8992_v35 = vadd.f32 %v8960_v11, %v543_v24  ;;  %v8998_v34 = vadd.f32 %v8955_v39, %v616_v27 }
 0x13d   :  { %11363 = vst [vmem:[#allocation49_spill] sm:$0xff] %v8986_v31  ;;  %11366 = vst [vmem:[#allocation52_spill] sm:$0xff] %v8995_v28 }
 0x13e   :  { %11365 = vst [vmem:[#allocation51_spill] sm:$0xff] %v8992_v35  ;;  %11367 = vst [vmem:[#allocation53_spill] sm:$0xff] %v8998_v34 }
 0x140   :  { %v547_v26 = vpop.f32.mrb[8].mxu0  ;;  %v620_v31 = vpop.f32.mrb[8].mxu1 }
 0x141   :  { %v9001_v32 = vadd.f32 %v8939_v41, %v547_v26  ;;  %v549_v13 = vpop.f32.mrb[9].mxu0  ;;  %v9007_v24 = vadd.f32 %v8946_v40, %v620_v31  ;;  %v622_v35 = vpop.f32.mrb[9].mxu1 }
 0x142   :  { %v9004_v30 = vadd.f32 %v8960_v11, %v549_v13  ;;  %v551_v38 = vpop.f32.mrb[10].mxu0  ;;  %v9013_v27 = vadd.f32 %v8955_v39, %v622_v35  ;;  %v624_v34 = vpop.f32.mrb[10].mxu1 }
 0x143   :  { %11368 = vst [vmem:[#allocation54_spill] sm:$0xff] %v9001_v32  ;;  %11370 = vst [vmem:[#allocation56_spill] sm:$0xff] %v9007_v24  ;;  %v9010_v29 = vadd.f32 %v8939_v41, %v551_v38  ;;  %v553_v28 = vpop.f32.mrb[11].mxu0  ;;  %v9019_v32 = vadd.f32 %v8946_v40, %v624_v34  ;;  %v626_v13 = vpop.f32.mrb[11].mxu1 }
 0x144   :  { %11369 = vst [vmem:[#allocation55_spill] sm:$0xff] %v9004_v30  ;;  %11372 = vst [vmem:[#allocation58_spill] sm:$0xff] %v9013_v27  ;;  %v9016_v26 = vadd.f32 %v8960_v11, %v553_v28  ;;  %v9022_v30 = vadd.f32 %v8955_v39, %v626_v13 }
 0x145   :  { %11371 = vst [vmem:[#allocation57_spill] sm:$0xff] %v9010_v29  ;;  %11374 = vst [vmem:[#allocation60_spill] sm:$0xff] %v9019_v32 }
 0x146   :  { %11373 = vst [vmem:[#allocation59_spill] sm:$0xff] %v9016_v26  ;;  %11375 = vst [vmem:[#allocation61_spill] sm:$0xff] %v9022_v30 }
 0x148   :  { %v557_v31 = vpop.f32.mrb[12].mxu0  ;;  %v630_v35 = vpop.f32.mrb[12].mxu1 }
 0x149   :  { %v9025_v24 = vadd.f32 %v8939_v41, %v557_v31  ;;  %v559_v38 = vpop.f32.mrb[13].mxu0  ;;  %v9033_v34 = vadd.f32 %v8946_v40, %v630_v35  ;;  %v632_v32 = vpop.f32.mrb[13].mxu1 }
 0x14a   :  { %v9029_v27 = vadd.f32 %v8960_v11, %v559_v38  ;;  %v561_v28 = vpop.f32.mrb[14].mxu0  ;;  %v634_v29 = vpop.f32.mrb[14].mxu1 }
 0x14b   :  { %11376 = vst [vmem:[#allocation62_spill] sm:$0xff] %v9025_v24  ;;  %11378 = vst [vmem:[#allocation64_spill] sm:$0xff] %v9033_v34  ;;  %v9037_v30 = vadd.f32 %v8939_v41, %v561_v28  ;;  %v563_v31 = vpop.f32.mrb[15].mxu0  ;;  %v9040_v24 = vadd.f32 %v8955_v39, %v632_v32  ;;  %v9047_v26 = vadd.f32 %v8946_v40, %v634_v29  ;;  %v636_v35 = vpop.f32.mrb[15].mxu1  ;;  %v11383_v34 = vsub.s32 4, %v8925_v10 }
 0x14c   :  { %11377 = vst [vmem:[#allocation63_spill] sm:$0xff] %v9029_v27  ;;  %v9044_v27 = vadd.f32 %v8960_v11, %v563_v31  ;;  %v9055_v28 = vadd.f32 %v8955_v39, %v636_v35  ;;  %v11385_v32 = vsub.s32 5, %v8925_v10  ;;  %v11386_v31 = vsub.s32 6, %v8925_v10 }
 0x14d   :  { %11379 = vst [vmem:[#allocation65_spill] sm:$0xff] %v9037_v30  ;;  %11380 = vst [vmem:[#allocation66_spill] sm:$0xff] %v9040_v24  ;;  %v9052_v13 = vrot.slane %v8931_v12, %v11383_v34  ;;  %v11387_v29 = vsub.s32 7, %v8925_v10 }
 0x14e   :  { %11381 = vst [vmem:[#allocation67_spill] sm:$0xff] %v9044_v27  ;;  %11382 = vst [vmem:[#allocation68_spill] sm:$0xff] %v9047_v26  ;;  %v9060_v30 = vrot.slane %v8931_v12, %v11385_v32  ;;  %v9065_v38 = vrot.slane %v8931_v12, %v11386_v31 }
 0x14f   :  { %11384 = vst [vmem:[#allocation69_spill] sm:$0xff] %v9055_v28  ;;  %v9070_v27 = vrot.slane %v8931_v12, %v11387_v29 }
 0x150   :  { %v673_v34 = vpop.f32.mrb[16].mxu0  ;;  %v746_v28 = vpop.f32.mrb[16].mxu1 }
 0x151   :  { %v9073_v26 = vadd.f32 %v9052_v13, %v673_v34  ;;  %v675_v35 = vpop.f32.mrb[17].mxu0  ;;  %v9079_v25 = vadd.f32 %v9065_v38, %v746_v28  ;;  %v748_v31 = vpop.f32.mrb[17].mxu1 }
 0x152   :  { %v9076_v24 = vadd.f32 %v9060_v30, %v675_v35  ;;  %v677_v32 = vpop.f32.mrb[18].mxu0  ;;  %v9085_v12 = vadd.f32 %v9070_v27, %v748_v31  ;;  %v750_v29 = vpop.f32.mrb[18].mxu1 }
 0x153   :  { %11388 = vst [vmem:[#allocation70_spill] sm:$0xff] %v9073_v26  ;;  %11390 = vst [vmem:[#allocation72_spill] sm:$0xff] %v9079_v25  ;;  %v9082_v23 = vadd.f32 %v9052_v13, %v677_v32  ;;  %v679_v10 = vpop.f32.mrb[19].mxu0  ;;  %v9091_v26 = vadd.f32 %v9065_v38, %v750_v29  ;;  %v752_v35 = vpop.f32.mrb[19].mxu1 }
 0x154   :  { %11389 = vst [vmem:[#allocation71_spill] sm:$0xff] %v9076_v24  ;;  %11392 = vst [vmem:[#allocation74_spill] sm:$0xff] %v9085_v12  ;;  %v9088_v34 = vadd.f32 %v9060_v30, %v679_v10  ;;  %v9094_v24 = vadd.f32 %v9070_v27, %v752_v35 }
 0x155   :  { %11391 = vst [vmem:[#allocation73_spill] sm:$0xff] %v9082_v23  ;;  %11394 = vst [vmem:[#allocation76_spill] sm:$0xff] %v9091_v26 }
 0x156   :  { %11393 = vst [vmem:[#allocation75_spill] sm:$0xff] %v9088_v34  ;;  %11395 = vst [vmem:[#allocation77_spill] sm:$0xff] %v9094_v24 }
 0x158   :  { %v683_v28 = vpop.f32.mrb[20].mxu0  ;;  %v756_v23 = vpop.f32.mrb[20].mxu1 }
 0x159   :  { %v9097_v25 = vadd.f32 %v9052_v13, %v683_v28  ;;  %v685_v32 = vpop.f32.mrb[21].mxu0  ;;  %v9103_v10 = vadd.f32 %v9065_v38, %v756_v23  ;;  %v758_v34 = vpop.f32.mrb[21].mxu1 }
 0x15a   :  { %v9100_v31 = vadd.f32 %v9060_v30, %v685_v32  ;;  %v687_v12 = vpop.f32.mrb[22].mxu0  ;;  %v9109_v35 = vadd.f32 %v9070_v27, %v758_v34  ;;  %v760_v24 = vpop.f32.mrb[22].mxu1 }
 0x15b   :  { %11396 = vst [vmem:[#allocation78_spill] sm:$0xff] %v9097_v25  ;;  %11398 = vst [vmem:[#allocation80_spill] sm:$0xff] %v9103_v10  ;;  %v9106_v29 = vadd.f32 %v9052_v13, %v687_v12  ;;  %v689_v26 = vpop.f32.mrb[23].mxu0  ;;  %v9115_v25 = vadd.f32 %v9065_v38, %v760_v24  ;;  %v762_v32 = vpop.f32.mrb[23].mxu1 }
 0x15c   :  { %11397 = vst [vmem:[#allocation79_spill] sm:$0xff] %v9100_v31  ;;  %11400 = vst [vmem:[#allocation82_spill] sm:$0xff] %v9109_v35  ;;  %v9112_v28 = vadd.f32 %v9060_v30, %v689_v26  ;;  %v9118_v31 = vadd.f32 %v9070_v27, %v762_v32 }
 0x15d   :  { %11399 = vst [vmem:[#allocation81_spill] sm:$0xff] %v9106_v29  ;;  %11402 = vst [vmem:[#allocation84_spill] sm:$0xff] %v9115_v25 }
 0x15e   :  { %11401 = vst [vmem:[#allocation83_spill] sm:$0xff] %v9112_v28  ;;  %11403 = vst [vmem:[#allocation85_spill] sm:$0xff] %v9118_v31 }
 0x160   :  { %v693_v23 = vpop.f32.mrb[24].mxu0  ;;  %v766_v29 = vpop.f32.mrb[24].mxu1 }
 0x161   :  { %v9121_v10 = vadd.f32 %v9052_v13, %v693_v23  ;;  %v695_v12 = vpop.f32.mrb[25].mxu0  ;;  %v9127_v26 = vadd.f32 %v9065_v38, %v766_v29  ;;  %v768_v28 = vpop.f32.mrb[25].mxu1 }
 0x162   :  { %v9124_v34 = vadd.f32 %v9060_v30, %v695_v12  ;;  %v697_v35 = vpop.f32.mrb[26].mxu0  ;;  %v9133_v32 = vadd.f32 %v9070_v27, %v768_v28  ;;  %v770_v31 = vpop.f32.mrb[26].mxu1 }
 0x163   :  { %11404 = vst [vmem:[#allocation86_spill] sm:$0xff] %v9121_v10  ;;  %11406 = vst [vmem:[#allocation88_spill] sm:$0xff] %v9127_v26  ;;  %v9130_v24 = vadd.f32 %v9052_v13, %v697_v35  ;;  %v699_v25 = vpop.f32.mrb[27].mxu0  ;;  %v9139_v10 = vadd.f32 %v9065_v38, %v770_v31  ;;  %v772_v12 = vpop.f32.mrb[27].mxu1 }
 0x164   :  { %11405 = vst [vmem:[#allocation87_spill] sm:$0xff] %v9124_v34  ;;  %11408 = vst [vmem:[#allocation90_spill] sm:$0xff] %v9133_v32  ;;  %v9136_v23 = vadd.f32 %v9060_v30, %v699_v25  ;;  %v9142_v34 = vadd.f32 %v9070_v27, %v772_v12 }
 0x165   :  { %11407 = vst [vmem:[#allocation89_spill] sm:$0xff] %v9130_v24  ;;  %11410 = vst [vmem:[#allocation92_spill] sm:$0xff] %v9139_v10 }
 0x166   :  { %11409 = vst [vmem:[#allocation91_spill] sm:$0xff] %v9136_v23  ;;  %11411 = vst [vmem:[#allocation93_spill] sm:$0xff] %v9142_v34 }
 0x168   :  { %v703_v29 = vpop.f32.mrb[28].mxu0  ;;  %v776_v24 = vpop.f32.mrb[28].mxu1 }
 0x169   :  { %v9145_v26 = vadd.f32 %v9052_v13, %v703_v29  ;;  %v705_v35 = vpop.f32.mrb[29].mxu0  ;;  %v9151_v25 = vadd.f32 %v9065_v38, %v776_v24  ;;  %v778_v23 = vpop.f32.mrb[29].mxu1  ;;  %v826_v29 = vadd.f32 %v8939_v41, %v8941_v9  ;;  %v829_v24 = vadd.f32 %v8955_v39, %v8962_v33 }
 0x16a   :  { %v9148_v28 = vadd.f32 %v9060_v30, %v705_v35  ;;  %v707_v32 = vpop.f32.mrb[30].mxu0  ;;  %v9154_v10 = vadd.f32 %v9070_v27, %v778_v23  ;;  %v780_v12 = vpop.f32.mrb[30].mxu1  ;;  %v828_v35 = vadd.f32 %v8946_v40, %v8950_v36 }
 0x16b   :  { %11412 = vst [vmem:[#allocation94_spill] sm:$0xff] %v9145_v26  ;;  %11414 = vst [vmem:[#allocation96_spill] sm:$0xff] %v9151_v25  ;;  %v709_v31 = vpop.f32.mrb[31].mxu0  ;;  %v782_v34 = vpop.f32.mrb[31].mxu1  ;;  %v827_v26 = vadd.f32 %v8960_v11, %v8948_v37 }
 0x16c   :  { %11413 = vst [vmem:[#allocation95_spill] sm:$0xff] %v9148_v28  ;;  %11415 = vst [vmem:[#allocation97_spill] sm:$0xff] %v9154_v10 }
 0x170   :  { %v1217_v28 = vpop.f32.mrb[32].mxu0  ;;  %v1258_v22 = vpop.f32.mrb[32].mxu1 }
 0x171   :  { %v1265_v25 = vadd.f32 %v1217_v28, %v826_v29  ;;  %v1219_v7 = vpop.f32.mrb[33].mxu0  ;;  %v1267_v23 = vadd.f32 %v1258_v22, %v828_v35  ;;  %v1260_v21 = vpop.f32.mrb[33].mxu1  ;;  %v889_v29 = vadd.f32 %v9070_v27, %v782_v34 }
 0x172   :  { %v1266_v10 = vadd.f32 %v1219_v7, %v827_v26  ;;  %v1221_v20 = vpop.f32.mrb[34].mxu0  ;;  %v1268_v18 = vadd.f32 %v1260_v21, %v829_v24  ;;  %v1262_v9 = vpop.f32.mrb[34].mxu1 }
 0x173   :  { %v6914_v19 = vmul.f32 -1.442695, %v1265_v25  ;;  %v1222_v41 = vpop.f32.mrb[35].mxu0  ;;  %v1263_v37 = vpop.f32.mrb[35].mxu1 }
 0x174   :  { %v6915_v17 = vmul.f32 -1.442695, %v1266_v10  ;;  %v6916_v36 = vmul.f32 -1.442695, %v1268_v18  ;;  %v886_v10 = vadd.f32 %v9052_v13, %v707_v32  ;;  %v888_v18 = vadd.f32 %v9065_v38, %v780_v12 }
 0x175   :  { %7506 = vpow2.f32 %v6914_v19 }
 0x176   :  { %7508 = vpow2.f32 %v6915_v17  ;;  %v887_v17 = vadd.f32 %v9060_v30, %v709_v31 }
 0x177   :  { %7510 = vpow2.f32 %v6916_v36 }
 0x178   :  { %7512 = vtanh.f32 %v1267_v23 }
 0x17f   :  { %v7507_v40 = vpop.eup %7506 }
 0x180   :  { %v7509_v11 = vpop.eup %7508  ;;  %v1275_v16 = vadd.f32 1.0, %v7507_v40 }
 0x181   :  { %v1276_v33 = vadd.f32 1.0, %v7509_v11  ;;  %v7511_v7 = vpop.eup %7510 }
 0x182   :  { %7514 = vrcp.f32 %v1275_v16  ;;  %v7513_v22 = vpop.eup %7512  ;;  %v1285_v26 = vadd.f32 1.0, %v7511_v7 }
 0x183   :  { %7516 = vrcp.f32 %v1276_v33 }
 0x184   :  { %7518 = vrcp.f32 %v1285_v26 }
 0x18c   :  { %v7515_v20 = vpop.eup %7514 }
 0x18d   :  { %v7517_v39 = vpop.eup %7516  ;;  %v1289_v21 = vmul.f32 %v7515_v20, %v7513_v22 }
 0x18e   :  { %v1288_v28 = vmul.f32 0.0, %v7517_v39  ;;  %v7519_v36 = vpop.eup %7518 }
 0x190   :  { %v9167_v19 = vadd.f32 %v1289_v21, %v1288_v28  ;;  %v1492_v25 = vpop.f32.mrb[36].mxu0  ;;  %v1533_v35 = vpop.f32.mrb[36].mxu1 }
 0x191   :  { %v1540_v16 = vadd.f32 %v1492_v25, %v886_v10  ;;  %v1494_v24 = vpop.f32.mrb[37].mxu0  ;;  %v1542_v23 = vadd.f32 %v1533_v35, %v888_v18  ;;  %v1535_v9 = vpop.f32.mrb[37].mxu1 }
 0x192   :  { %7520 = vtanh.f32 %v9167_v19  ;;  %v1541_v41 = vadd.f32 %v1494_v24, %v887_v17  ;;  %v1496_v37 = vpop.f32.mrb[38].mxu0  ;;  %v1543_v32 = vadd.f32 %v1535_v9, %v889_v29  ;;  %v1537_v31 = vpop.f32.mrb[38].mxu1  ;;  %v11417_v29 = vld [vmem:[#allocation40_spill] sm:$0xff] }
 0x193   :  { %v6949_v13 = vmul.f32 -1.442695, %v1540_v16  ;;  %v1497_v30 = vpop.f32.mrb[39].mxu0  ;;  %v1538_v12 = vpop.f32.mrb[39].mxu1  ;;  %v9217_v9 = vld [vmem:[#allocation6 + $0xc] ss:$16 sps:$4 sm:$0xff]  }
 0x194   :  { %v6950_v38 = vmul.f32 -1.442695, %v1541_v41  ;;  %v6951_v34 = vmul.f32 -1.442695, %v1543_v32  ;;  %v9214_v41 = vld [vmem:[#allocation6 + $0x4] ss:$16 sps:$4 sm:$0xff]  }
 0x195   :  { %7522 = vpow2.f32 %v6949_v13  ;;  %v9220_v37 = vld [vmem:[#allocation6] ss:$16 sps:$4 sm:$0xff]   ;;  %v9223_v13 = vld [vmem:[#allocation6 + $0x8] ss:$16 sps:$4 sm:$0xff]   ;;  %v9226_v32 = vld [vmem:[#allocation6 + $0x24] ss:$16 sps:$4 sm:$0xff]  }
 0x196   :  { %7524 = vpow2.f32 %v6950_v38  ;;  %v11419_v30 = vld [vmem:[#allocation13_spill] sm:$0xff]  ;;  %v11420_v31 = vld [vmem:[#allocation14_spill] sm:$0xff]  ;;  %v11421_v38 = vld [vmem:[#allocation15_spill] sm:$0xff] }
 0x197   :  { %7526 = vpow2.f32 %v6951_v34  ;;  %v11422_v12 = vld [vmem:[#allocation16_spill] sm:$0xff]  ;;  %v11425_v34 = vld [vmem:[#allocation19_spill] sm:$0xff] }
 0x198   :  { %7528 = vtanh.f32 %v1542_v23 }
 0x19c   :  { %v7521_v27 = vpop.eup %7520 }
 0x19d   :  { %v9171_v40 = vmul.f32 %v7521_v27, %v7519_v36  ;;  %v11423_v36 = vld [vmem:[#allocation17_spill] sm:$0xff]  ;;  %v11424_v27 = vld [vmem:[#allocation18_spill] sm:$0xff] }
 0x19f   :  { %11416 = vst [vmem:[#allocation98_spill] sm:$0xff] %v9171_v40  ;;  %v7523_v11 = vpop.eup %7522  ;;  %v1576_v33 = vpack.c.bf16 %v9171_v40, %v9171_v40 }
 0x1a0   :  { %v7525_v7 = vpop.eup %7524  ;;  %v1550_v22 = vadd.f32 1.0, %v7523_v11  ;;  %v11427_v11 = vld [vmem:[#allocation21_spill] sm:$0xff] }
 0x1a1   :  { %v1551_v20 = vadd.f32 1.0, %v7525_v7  ;;  %1610 = vmatmul.mubr.bf16.vlgmr.msra.gmra.mrb[40].mxu0 %v1576_v33  ;;  %1651 = vmatmul.mubr.bf16.vlgmr.msra.gmra.mrb[40].mxu1 %v1576_v33  ;;  %v7527_v39 = vpop.eup %7526  ;;  %v11428_v33 = vld [vmem:[#allocation22_spill] sm:$0xff]  ;;  %v11430_v7 = vld [vmem:[#allocation24_spill] sm:$0xff] }
 0x1a2   :  { %7530 = vrcp.f32 %v1550_v22  ;;  %1694 = vmatpush1.bf16.msra.mxu0 %v8790_v42  ;;  %1735 = vmatpush1.bf16.msra.mxu1 %v8794_v43  ;;  %v7529_v21 = vpop.eup %7528  ;;  %v1560_v17 = vadd.f32 1.0, %v7527_v39  ;;  %v11431_v22 = vld [vmem:[#allocation25_spill] sm:$0xff]  ;;  %v11433_v39 = vld [vmem:[#allocation27_spill] sm:$0xff] }
 0x1a3   :  { %7532 = vrcp.f32 %v1551_v20  ;;  %1695 = vmatprep.subr.bf16.mxu0 %v8796_v44  ;;  %1736 = vmatprep.subr.bf16.mxu1 %v8799_v45  ;;  %v11432_v20 = vld [vmem:[#allocation26_spill] sm:$0xff] }
 0x1a4   :  { %1725 = vmatprep.mubr.bf16.mxu0 %v11353_v2  ;;  %1766 = vmatprep.mubr.bf16.mxu1 %v11353_v2  ;;  %7534 = vrcp.f32 %v1560_v17  ;;  %v11438_v17 = vld [vmem:[#allocation32_spill] sm:$0xff] }
 0x1a6   :  { %1696 = vmatpush1.bf16.msra.mxu0 %v8804_v46  ;;  %1737 = vmatpush1.bf16.msra.mxu1 %v8808_v47 }
 0x1a7   :  { %1697 = vmatprep.subr.bf16.mxu0 %v8810_v48  ;;  %1738 = vmatprep.subr.bf16.mxu1 %v8813_v49 }
 0x1aa   :  { %1698 = vmatpush1.bf16.msra.mxu0 %v8818_v50  ;;  %1739 = vmatpush1.bf16.msra.mxu1 %v8822_v51 }
 0x1ab   :  { %1699 = vmatprep.subr.bf16.mxu0 %v8824_v52  ;;  %1740 = vmatprep.subr.bf16.mxu1 %v8827_v53 }
 0x1ac   :  { %v7531_v26 = vpop.eup %7530 }
 0x1ad   :  { %v7533_v28 = vpop.eup %7532  ;;  %v1564_v10 = vmul.f32 %v7531_v26, %v7529_v21  ;;  %v11434_v21 = vld [vmem:[#allocation28_spill] sm:$0xff]  ;;  %v11435_v26 = vld [vmem:[#allocation29_spill] sm:$0xff] }
 0x1ae   :  { %v1563_v18 = vmul.f32 0.0, %v7533_v28  ;;  %1700 = vmatpush1.bf16.msra.mxu0 %v8830_v54  ;;  %1741 = vmatpush1.bf16.msra.mxu1 %v8834_v55  ;;  %v7535_v16 = vpop.eup %7534  ;;  %v11436_v28 = vld [vmem:[#allocation30_spill] sm:$0xff] }
 0x1af   :  { %1701 = vmatprep.subr.bf16.mxu0 %v8836_v56  ;;  %1742 = vmatprep.subr.bf16.mxu1 %v8839_v57 }
 0x1b0   :  { %v9193_v25 = vadd.f32 %v1564_v10, %v1563_v18  ;;  %v11437_v10 = vld [vmem:[#allocation31_spill] sm:$0xff]  ;;  %v11439_v18 = vld [vmem:[#allocation33_spill] sm:$0xff] }
 0x1b2   :  { %7536 = vtanh.f32 %v9193_v25  ;;  %1702 = vmatpush1.bf16.msra.mxu0 %v8842_v58  ;;  %1743 = vmatpush1.bf16.msra.mxu1 %v8846_v59 }
 0x1b3   :  { %1703 = vmatprep.subr.bf16.mxu0 %v8848_v60  ;;  %1744 = vmatprep.subr.bf16.mxu1 %v8851_v61 }
 0x1b6   :  { %1704 = vmatpush1.bf16.msra.mxu0 %v8854_v62  ;;  %1745 = vmatpush1.bf16.msra.mxu1 %v8858_v63 }
 0x1b7   :  { %1705 = vmatprep.subr.bf16.mxu0 %v8860_v0  ;;  %1746 = vmatprep.subr.bf16.mxu1 %v11417_v29 }
 0x1ba   :  { %1706 = vmatpush1.bf16.msra.mxu0 %v8866_v3  ;;  %1747 = vmatpush1.bf16.msra.mxu1 %v8870_v4 }
 0x1bb   :  { %1707 = vmatprep.subr.bf16.mxu0 %v8872_v5  ;;  %1748 = vmatprep.subr.bf16.mxu1 %v8875_v6 }
 0x1bc   :  { %v7537_v35 = vpop.eup %7536 }
 0x1bd   :  { %v9208_v24 = vmul.f32 %v7537_v35, %v7535_v16  ;;  %v11440_v16 = vld [vmem:[#allocation34_spill] sm:$0xff]  ;;  %v11441_v35 = vld [vmem:[#allocation35_spill] sm:$0xff] }
 0x1be   :  { %1708 = vmatpush1.bf16.msra.mxu0 %v8878_v8  ;;  %1749 = vmatpush1.bf16.msra.mxu1 %v8882_v1 }
 0x1bf   :  { %11418 = vst [vmem:[#allocation40_spill] sm:$0xff] %v9208_v24  ;;  %v1692_v23 = vpack.c.bf16 %v9208_v24, %v9208_v24  ;;  %1813 = vmatprep.subr.bf16.mxu0 %v9214_v41  ;;  %1854 = vmatprep.subr.bf16.mxu1 %v9217_v9  ;;  %v9474_v24 = vld [vmem:[#allocation6 + $0x18c] ss:$16 sps:$4 sm:$0xff]  }
 0x1c1   :  { %1726 = vmatmul.mubr.bf16.vlgmr.msra.gmra.mrb[44].mxu0 %v1692_v23  ;;  %1767 = vmatmul.mubr.bf16.vlgmr.msra.gmra.mrb[44].mxu1 %v1692_v23  ;;  %v11442_v23 = vld [vmem:[#allocation36_spill] sm:$0xff] }
 0x1c2   :  { %1814 = vmatpush1.bf16.msra.mxu0 %v9220_v37  ;;  %1855 = vmatpush1.bf16.msra.mxu1 %v9223_v13 }
 0x1c3   :  { %1815 = vmatprep.subr.bf16.mxu0 %v9226_v32  ;;  %1856 = vmatprep.subr.bf16.mxu1 %v8687_v14  ;;  %v11426_v14 = vld [vmem:[#allocation20_spill] sm:$0xff] }
 0x1c4   :  { %1845 = vmatprep.mubr.bf16.mxu0 %v11353_v2  ;;  %1886 = vmatprep.mubr.bf16.mxu1 %v11353_v2 }
 0x1c6   :  { %1816 = vmatpush1.bf16.msra.mxu0 %v8690_v15  ;;  %1857 = vmatpush1.bf16.msra.mxu1 %v11419_v30  ;;  %v11429_v15 = vld [vmem:[#allocation23_spill] sm:$0xff]  ;;  %v11443_v30 = vld [vmem:[#allocation37_spill] sm:$0xff] }
 0x1c7   :  { %1817 = vmatprep.subr.bf16.mxu0 %v11420_v31  ;;  %1858 = vmatprep.subr.bf16.mxu1 %v11421_v38  ;;  %v11444_v31 = vld [vmem:[#allocation38_spill] sm:$0xff]  ;;  %v11445_v38 = vld [vmem:[#allocation39_spill] sm:$0xff] }
 0x1ca   :  { %1818 = vmatpush1.bf16.msra.mxu0 %v11422_v12  ;;  %1859 = vmatpush1.bf16.msra.mxu1 %v11423_v36 }
 0x1cb   :  { %1819 = vmatprep.subr.bf16.mxu0 %v11424_v27  ;;  %1860 = vmatprep.subr.bf16.mxu1 %v11425_v34  ;;  %v11446_v27 = vld [vmem:[#allocation42_spill] sm:$0xff] }
 0x1ce   :  { %1820 = vmatpush1.bf16.msra.mxu0 %v11426_v14  ;;  %1861 = vmatpush1.bf16.msra.mxu1 %v11427_v11  ;;  %v11447_v14 = vld [vmem:[#allocation44_spill] sm:$0xff] }
 0x1cf   :  { %1821 = vmatprep.subr.bf16.mxu0 %v11428_v33  ;;  %1862 = vmatprep.subr.bf16.mxu1 %v11429_v15 }
 0x1d2   :  { %1822 = vmatpush1.bf16.msra.mxu0 %v11430_v7  ;;  %1863 = vmatpush1.bf16.msra.mxu1 %v11431_v22  ;;  %v11448_v7 = vld [vmem:[#allocation43_spill] sm:$0xff] }
 0x1d3   :  { %1823 = vmatprep.subr.bf16.mxu0 %v11432_v20  ;;  %1864 = vmatprep.subr.bf16.mxu1 %v11433_v39  ;;  %v11449_v20 = vld [vmem:[#allocation45_spill] sm:$0xff] }
 0x1d6   :  { %1824 = vmatpush1.bf16.msra.mxu0 %v11434_v21  ;;  %1865 = vmatpush1.bf16.msra.mxu1 %v11435_v26 }
 0x1d7   :  { %1825 = vmatprep.subr.bf16.mxu0 %v11436_v28  ;;  %1866 = vmatprep.subr.bf16.mxu1 %v11437_v10 }
 0x1da   :  { %1826 = vmatpush1.bf16.msra.mxu0 %v11438_v17  ;;  %1867 = vmatpush1.bf16.msra.mxu1 %v11439_v18 }
 0x1db   :  { %1827 = vmatprep.subr.bf16.mxu0 %v11440_v16  ;;  %1868 = vmatprep.subr.bf16.mxu1 %v11441_v35 }
 0x1de   :  { %1828 = vmatpush1.bf16.msra.mxu0 %v11442_v23  ;;  %1869 = vmatpush1.bf16.msra.mxu1 %v11443_v30 }
 0x1df   :  { %1929 = vmatprep.subr.bf16.mxu0 %v11444_v31  ;;  %1970 = vmatprep.subr.bf16.mxu1 %v11445_v38 }
 0x274   :  { %v1611_v12 = vpop.f32.mrb[40].mxu0  ;;  %v1652_v36 = vpop.f32.mrb[40].mxu1 }
 0x275   :  { %v1659_v34 = vadd.f32 %v1611_v12, %v11446_v27  ;;  %v1661_v11 = vadd.f32 %v1652_v36, %v11447_v14  ;;  %v1613_v33 = vpop.f32.mrb[41].mxu0  ;;  %v1654_v15 = vpop.f32.mrb[41].mxu1 }
 0x276   :  { %v1660_v22 = vadd.f32 %v1613_v33, %v11448_v7  ;;  %v1662_v39 = vadd.f32 %v1654_v15, %v11449_v20  ;;  %v1615_v21 = vpop.f32.mrb[42].mxu0  ;;  %v1656_v26 = vpop.f32.mrb[42].mxu1  ;;  %v11450_v20 = vld [vmem:[#allocation94_spill] sm:$0xff] }
 0x277   :  { %v6952_v28 = vmul.f32 -1.442695, %v1659_v34  ;;  %v1616_v10 = vpop.f32.mrb[43].mxu0  ;;  %v1657_v17 = vpop.f32.mrb[43].mxu1  ;;  %v11451_v21 = vld [vmem:[#allocation96_spill] sm:$0xff] }
 0x278   :  { %v6953_v18 = vmul.f32 -1.442695, %v1660_v22  ;;  %v6954_v16 = vmul.f32 -1.442695, %v1662_v39  ;;  %v11452_v10 = vld [vmem:[#allocation95_spill] sm:$0xff] }
 0x279   :  { %7538 = vpow2.f32 %v6952_v28 }
 0x27a   :  { %7540 = vpow2.f32 %v6953_v18  ;;  %v11453_v18 = vld [vmem:[#allocation97_spill] sm:$0xff] }
 0x27b   :  { %7542 = vpow2.f32 %v6954_v16 }
 0x27c   :  { %7544 = vtanh.f32 %v1661_v11 }
 0x283   :  { %v7539_v35 = vpop.eup %7538 }
 0x284   :  { %v7541_v23 = vpop.eup %7540  ;;  %v1669_v30 = vadd.f32 1.0, %v7539_v35 }
 0x285   :  { %v1670_v31 = vadd.f32 1.0, %v7541_v23  ;;  %v7543_v38 = vpop.eup %7542 }
 0x286   :  { %7546 = vrcp.f32 %v1669_v30  ;;  %v7545_v12 = vpop.eup %7544  ;;  %v1679_v34 = vadd.f32 1.0, %v7543_v38 }
 0x287   :  { %7548 = vrcp.f32 %v1670_v31 }
 0x288   :  { %7550 = vrcp.f32 %v1679_v34 }
 0x290   :  { %v7547_v36 = vpop.eup %7546 }
 0x291   :  { %v7549_v27 = vpop.eup %7548  ;;  %v1683_v14 = vmul.f32 %v7547_v36, %v7545_v12 }
 0x292   :  { %v1682_v33 = vmul.f32 %v7549_v27, %v9167_v19  ;;  %v7551_v12 = vpop.eup %7550 }
 0x294   :  { %v9265_v15 = vadd.f32 %v1683_v14, %v1682_v33  ;;  %v1727_v7 = vpop.f32.mrb[44].mxu0  ;;  %v1768_v22 = vpop.f32.mrb[44].mxu1 }
 0x295   :  { %v1775_v39 = vadd.f32 %v1727_v7, %v11450_v20  ;;  %v1777_v11 = vadd.f32 %v1768_v22, %v11451_v21  ;;  %v1729_v26 = vpop.f32.mrb[45].mxu0  ;;  %v1770_v28 = vpop.f32.mrb[45].mxu1  ;;  %v9383_v21 = vld [vmem:[#allocation6 + $0xcc] ss:$16 sps:$4 sm:$0xff]  }
 0x296   :  { %7552 = vtanh.f32 %v9265_v15  ;;  %v1776_v17 = vadd.f32 %v1729_v26, %v11452_v10  ;;  %v1778_v16 = vadd.f32 %v1770_v28, %v11453_v18  ;;  %v1731_v35 = vpop.f32.mrb[46].mxu0  ;;  %v1772_v23 = vpop.f32.mrb[46].mxu1  ;;  %11466 = vst [vmem:[#allocation25_spill] sm:$0xff] %v9383_v21  ;;  %v9389_v26 = vld [vmem:[#allocation6 + $0xc8] ss:$16 sps:$4 sm:$0xff]  }
 0x297   :  { %v6955_v19 = vmul.f32 -1.442695, %v1775_v39  ;;  %v1732_v30 = vpop.f32.mrb[47].mxu0  ;;  %v1773_v31 = vpop.f32.mrb[47].mxu1  ;;  %11468 = vst [vmem:[#allocation27_spill] sm:$0xff] %v9389_v26 }
 0x298   :  { %v6956_v38 = vmul.f32 -1.442695, %v1776_v17  ;;  %v6957_v27 = vmul.f32 -1.442695, %v1778_v16  ;;  %v9392_v28 = vld [vmem:[#allocation6 + $0xe4] ss:$16 sps:$4 sm:$0xff]  }
 0x299   :  { %7554 = vpow2.f32 %v6955_v19  ;;  %11469 = vst [vmem:[#allocation28_spill] sm:$0xff] %v9392_v28  ;;  %v9395_v10 = vld [vmem:[#allocation6 + $0xec] ss:$16 sps:$4 sm:$0xff]   ;;  %v9398_v17 = vld [vmem:[#allocation6 + $0xe0] ss:$16 sps:$4 sm:$0xff]  }
 0x29a   :  { %7556 = vpow2.f32 %v6956_v38  ;;  %11470 = vst [vmem:[#allocation29_spill] sm:$0xff] %v9395_v10  ;;  %11471 = vst [vmem:[#allocation30_spill] sm:$0xff] %v9398_v17  ;;  %v9401_v18 = vld [vmem:[#allocation6 + $0xe8] ss:$16 sps:$4 sm:$0xff]   ;;  %v9404_v16 = vld [vmem:[#allocation6 + $0x104] ss:$16 sps:$4 sm:$0xff]  }
 0x29b   :  { %7558 = vpow2.f32 %v6957_v27  ;;  %11472 = vst [vmem:[#allocation31_spill] sm:$0xff] %v9401_v18  ;;  %11473 = vst [vmem:[#allocation32_spill] sm:$0xff] %v9404_v16  ;;  %v9407_v35 = vld [vmem:[#allocation6 + $0x10c] ss:$16 sps:$4 sm:$0xff]  }
 0x29c   :  { %7560 = vtanh.f32 %v1777_v11  ;;  %v9386_v11 = vld [vmem:[#allocation6 + $0xc0] ss:$16 sps:$4 sm:$0xff]   ;;  %11474 = vst [vmem:[#allocation33_spill] sm:$0xff] %v9407_v35  ;;  %v11475_v30 = vld [vmem:[#allocation46_spill] sm:$0xff]  ;;  %v11476_v38 = vld [vmem:[#allocation48_spill] sm:$0xff] }
 0x29d   :  { %11467 = vst [vmem:[#allocation26_spill] sm:$0xff] %v9386_v11 }
 0x2a0   :  { %v7553_v36 = vpop.eup %7552 }
 0x2a1   :  { %v9272_v14 = vmul.f32 %v7553_v36, %v7551_v12 }
 0x2a3   :  { %11454 = vst [vmem:[#allocation13_spill] sm:$0xff] %v9272_v14  ;;  %v7555_v34 = vpop.eup %7554  ;;  %v1812_v33 = vpack.c.bf16 %v9272_v14, %v9272_v14  ;;  %v9507_v14 = vld [vmem:[#allocation6 + $0x1c8] ss:$16 sps:$4 sm:$0xff]  }
 0x2a4   :  { %v7557_v7 = vpop.eup %7556  ;;  %v1785_v22 = vadd.f32 1.0, %v7555_v34  ;;  %v11477_v34 = vld [vmem:[#allocation47_spill] sm:$0xff]  ;;  %11490 = vst [vmem:[#allocation44_spill] sm:$0xff] %v9507_v14 }
 0x2a5   :  { %v1786_v20 = vadd.f32 1.0, %v7557_v7  ;;  %1846 = vmatmul.mubr.bf16.vlgmr.msra.gmra.mrb[48].mxu0 %v1812_v33  ;;  %1887 = vmatmul.mubr.bf16.vlgmr.msra.gmra.mrb[48].mxu1 %v1812_v33  ;;  %v11478_v7 = vld [vmem:[#allocation50_spill] sm:$0xff] }
 0x2a6   :  { %7562 = vrcp.f32 %v1785_v22  ;;  %1930 = vmatpush1.bf16.msra.mxu0 %v8790_v42  ;;  %1971 = vmatpush1.bf16.msra.mxu1 %v8794_v43  ;;  %v7559_v42 = vpop.eup %7558 }
 0x2a7   :  { %7564 = vrcp.f32 %v1786_v20  ;;  %1931 = vmatprep.subr.bf16.mxu0 %v8796_v44  ;;  %1972 = vmatprep.subr.bf16.mxu1 %v8799_v45  ;;  %v7561_v43 = vpop.eup %7560 }
 0x2a8   :  { %1961 = vmatprep.mubr.bf16.mxu0 %v11353_v2  ;;  %2002 = vmatprep.mubr.bf16.mxu1 %v11353_v2 }
 0x2aa   :  { %1932 = vmatpush1.bf16.msra.mxu0 %v8804_v46  ;;  %1973 = vmatpush1.bf16.msra.mxu1 %v8808_v47  ;;  %v1795_v46 = vadd.f32 1.0, %v7559_v42 }
 0x2ab   :  { %1933 = vmatprep.subr.bf16.mxu0 %v8810_v48  ;;  %1974 = vmatprep.subr.bf16.mxu1 %v8813_v49 }
 0x2ac   :  { %7566 = vrcp.f32 %v1795_v46 }
 0x2ae   :  { %1934 = vmatpush1.bf16.msra.mxu0 %v8818_v50  ;;  %1975 = vmatpush1.bf16.msra.mxu1 %v8822_v51 }
 0x2af   :  { %1935 = vmatprep.subr.bf16.mxu0 %v8824_v52  ;;  %1976 = vmatprep.subr.bf16.mxu1 %v8827_v53  ;;  %v9321_v53 = vld [vmem:[#allocation6 + $0x2c] ss:$16 sps:$4 sm:$0xff]  }
 0x2b0   :  { %v7563_v44 = vpop.eup %7562 }
 0x2b1   :  { %v7565_v45 = vpop.eup %7564  ;;  %v1799_v39 = vmul.f32 %v7563_v44, %v7561_v43 }
 0x2b2   :  { %v1798_v47 = vmul.f32 %v7565_v45, %v9193_v25  ;;  %1936 = vmatpush1.bf16.msra.mxu0 %v8830_v54  ;;  %1977 = vmatpush1.bf16.msra.mxu1 %v8834_v55  ;;  %v9329_v54 = vld [vmem:[#allocation6 + $0x28] ss:$16 sps:$4 sm:$0xff]   ;;  %v9332_v55 = vld [vmem:[#allocation6 + $0x44] ss:$16 sps:$4 sm:$0xff]  }
 0x2b3   :  { %1937 = vmatprep.subr.bf16.mxu0 %v8836_v56  ;;  %1978 = vmatprep.subr.bf16.mxu1 %v8839_v57  ;;  %v9335_v56 = vld [vmem:[#allocation6 + $0x4c] ss:$16 sps:$4 sm:$0xff]   ;;  %v9338_v57 = vld [vmem:[#allocation6 + $0x40] ss:$16 sps:$4 sm:$0xff]   ;;  %v9377_v25 = vld [vmem:[#allocation6 + $0xa8] ss:$16 sps:$4 sm:$0xff]  }
 0x2b4   :  { %v9295_v48 = vadd.f32 %v1799_v39, %v1798_v47  ;;  %11464 = vst [vmem:[#allocation23_spill] sm:$0xff] %v9377_v25 }
 0x2b6   :  { %7568 = vtanh.f32 %v9295_v48  ;;  %1938 = vmatpush1.bf16.msra.mxu0 %v8842_v58  ;;  %1979 = vmatpush1.bf16.msra.mxu1 %v8846_v59  ;;  %v7567_v49 = vpop.eup %7566  ;;  %v9341_v58 = vld [vmem:[#allocation6 + $0x48] ss:$16 sps:$4 sm:$0xff]   ;;  %v9344_v59 = vld [vmem:[#allocation6 + $0x64] ss:$16 sps:$4 sm:$0xff]  }
 0x2b7   :  { %1939 = vmatprep.subr.bf16.mxu0 %v8848_v60  ;;  %1980 = vmatprep.subr.bf16.mxu1 %v8851_v61  ;;  %v9347_v60 = vld [vmem:[#allocation6 + $0x6c] ss:$16 sps:$4 sm:$0xff]   ;;  %v9350_v61 = vld [vmem:[#allocation6 + $0x60] ss:$16 sps:$4 sm:$0xff]  }
 0x2ba   :  { %1940 = vmatpush1.bf16.msra.mxu0 %v8854_v62  ;;  %1981 = vmatpush1.bf16.msra.mxu1 %v8858_v63  ;;  %v9353_v62 = vld [vmem:[#allocation6 + $0x68] ss:$16 sps:$4 sm:$0xff]   ;;  %v9356_v63 = vld [vmem:[#allocation6 + $0x84] ss:$16 sps:$4 sm:$0xff]  }
 0x2bb   :  { %1941 = vmatprep.subr.bf16.mxu0 %v8860_v0  ;;  %1982 = vmatprep.subr.bf16.mxu1 %v11417_v29  ;;  %11456 = vst [vmem:[#allocation15_spill] sm:$0xff] %v9353_v62  ;;  %11457 = vst [vmem:[#allocation16_spill] sm:$0xff] %v9356_v63  ;;  %v9359_v0 = vld [vmem:[#allocation6 + $0x8c] ss:$16 sps:$4 sm:$0xff]   ;;  %v9380_v29 = vld [vmem:[#allocation6 + $0xc4] ss:$16 sps:$4 sm:$0xff]  }
 0x2bc   :  { %11458 = vst [vmem:[#allocation17_spill] sm:$0xff] %v9359_v0  ;;  %11465 = vst [vmem:[#allocation24_spill] sm:$0xff] %v9380_v29 }
 0x2be   :  { %1942 = vmatpush1.bf16.msra.mxu0 %v8866_v3  ;;  %1983 = vmatpush1.bf16.msra.mxu1 %v8870_v4  ;;  %v9362_v3 = vld [vmem:[#allocation6 + $0x80] ss:$16 sps:$4 sm:$0xff]   ;;  %v9365_v4 = vld [vmem:[#allocation6 + $0x88] ss:$16 sps:$4 sm:$0xff]  }
 0x2bf   :  { %1943 = vmatprep.subr.bf16.mxu0 %v8872_v5  ;;  %1984 = vmatprep.subr.bf16.mxu1 %v8875_v6  ;;  %11459 = vst [vmem:[#allocation18_spill] sm:$0xff] %v9362_v3  ;;  %11460 = vst [vmem:[#allocation19_spill] sm:$0xff] %v9365_v4  ;;  %v9368_v5 = vld [vmem:[#allocation6 + $0xa4] ss:$16 sps:$4 sm:$0xff]   ;;  %v9371_v6 = vld [vmem:[#allocation6 + $0xac] ss:$16 sps:$4 sm:$0xff]  }
 0x2c0   :  { %v7569_v50 = vpop.eup %7568  ;;  %11461 = vst [vmem:[#allocation20_spill] sm:$0xff] %v9368_v5  ;;  %11462 = vst [vmem:[#allocation21_spill] sm:$0xff] %v9371_v6 }
 0x2c1   :  { %v9310_v51 = vmul.f32 %v7569_v50, %v7567_v49 }
 0x2c2   :  { %1944 = vmatpush1.bf16.msra.mxu0 %v8878_v8  ;;  %1985 = vmatpush1.bf16.msra.mxu1 %v8882_v1  ;;  %v9326_v1 = vld [vmem:[#allocation6 + $0x20] ss:$16 sps:$4 sm:$0xff]  }
 0x2c3   :  { %11455 = vst [vmem:[#allocation14_spill] sm:$0xff] %v9310_v51  ;;  %v1928_v52 = vpack.c.bf16 %v9310_v51, %v9310_v51  ;;  %2049 = vmatprep.subr.bf16.mxu0 %v9214_v41  ;;  %2090 = vmatprep.subr.bf16.mxu1 %v9217_v9  ;;  %v9374_v8 = vld [vmem:[#allocation6 + $0xa0] ss:$16 sps:$4 sm:$0xff]   ;;  %v9501_v51 = vld [vmem:[#allocation6 + $0x1cc] ss:$16 sps:$4 sm:$0xff]  }
 0x2c4   :  { %11463 = vst [vmem:[#allocation22_spill] sm:$0xff] %v9374_v8  ;;  %11488 = vst [vmem:[#allocation39_spill] sm:$0xff] %v9501_v51 }
 0x2c5   :  { %1962 = vmatmul.mubr.bf16.vlgmr.msra.gmra.mrb[52].mxu0 %v1928_v52  ;;  %2003 = vmatmul.mubr.bf16.vlgmr.msra.gmra.mrb[52].mxu1 %v1928_v52 }
 0x2c6   :  { %2050 = vmatpush1.bf16.msra.mxu0 %v9220_v37  ;;  %2091 = vmatpush1.bf16.msra.mxu1 %v9223_v13 }
 0x2c7   :  { %2051 = vmatprep.subr.bf16.mxu0 %v9226_v32  ;;  %2092 = vmatprep.subr.bf16.mxu1 %v9321_v53 }
 0x2c8   :  { %2081 = vmatprep.mubr.bf16.mxu0 %v11353_v2  ;;  %2122 = vmatprep.mubr.bf16.mxu1 %v11353_v2 }
 0x2ca   :  { %2052 = vmatpush1.bf16.msra.mxu0 %v9326_v1  ;;  %2093 = vmatpush1.bf16.msra.mxu1 %v9329_v54 }
 0x2cb   :  { %2053 = vmatprep.subr.bf16.mxu0 %v9332_v55  ;;  %2094 = vmatprep.subr.bf16.mxu1 %v9335_v56 }
 0x2ce   :  { %2054 = vmatpush1.bf16.msra.mxu0 %v9338_v57  ;;  %2095 = vmatpush1.bf16.msra.mxu1 %v9341_v58 }
 0x2cf   :  { %2055 = vmatprep.subr.bf16.mxu0 %v9344_v59  ;;  %2096 = vmatprep.subr.bf16.mxu1 %v9347_v60 }
 0x2d2   :  { %2056 = vmatpush1.bf16.msra.mxu0 %v9350_v61  ;;  %2097 = vmatpush1.bf16.msra.mxu1 %v9353_v62 }
 0x2d3   :  { %2057 = vmatprep.subr.bf16.mxu0 %v9356_v63  ;;  %2098 = vmatprep.subr.bf16.mxu1 %v9359_v0 }
 0x2d6   :  { %2058 = vmatpush1.bf16.msra.mxu0 %v9362_v3  ;;  %2099 = vmatpush1.bf16.msra.mxu1 %v9365_v4 }
 0x2d7   :  { %2059 = vmatprep.subr.bf16.mxu0 %v9368_v5  ;;  %2100 = vmatprep.subr.bf16.mxu1 %v9371_v6 }
 0x2da   :  { %2060 = vmatpush1.bf16.msra.mxu0 %v9374_v8  ;;  %2101 = vmatpush1.bf16.msra.mxu1 %v9377_v25 }
 0x2db   :  { %2061 = vmatprep.subr.bf16.mxu0 %v9380_v29  ;;  %2102 = vmatprep.subr.bf16.mxu1 %v9383_v21 }
 0x2de   :  { %2062 = vmatpush1.bf16.msra.mxu0 %v9386_v11  ;;  %2103 = vmatpush1.bf16.msra.mxu1 %v9389_v26 }
 0x2df   :  { %2063 = vmatprep.subr.bf16.mxu0 %v9392_v28  ;;  %2104 = vmatprep.subr.bf16.mxu1 %v9395_v10 }
 0x2e2   :  { %2064 = vmatpush1.bf16.msra.mxu0 %v9398_v17  ;;  %2105 = vmatpush1.bf16.msra.mxu1 %v9401_v18 }
 0x2e3   :  { %2165 = vmatprep.subr.bf16.mxu0 %v9404_v16  ;;  %2206 = vmatprep.subr.bf16.mxu1 %v9407_v35 }
 0x378   :  { %v1847_v23 = vpop.f32.mrb[48].mxu0  ;;  %v1888_v19 = vpop.f32.mrb[48].mxu1 }
 0x379   :  { %v1895_v31 = vadd.f32 %v1847_v23, %v11475_v30  ;;  %v1897_v12 = vadd.f32 %v1888_v19, %v11476_v38  ;;  %v1849_v36 = vpop.f32.mrb[49].mxu0  ;;  %v1890_v27 = vpop.f32.mrb[49].mxu1 }
 0x37a   :  { %v1896_v33 = vadd.f32 %v1849_v36, %v11477_v34  ;;  %v1898_v22 = vadd.f32 %v1890_v27, %v11478_v7  ;;  %v1851_v20 = vpop.f32.mrb[50].mxu0  ;;  %v1892_v42 = vpop.f32.mrb[50].mxu1 }
 0x37b   :  { %v6958_v43 = vmul.f32 -1.442695, %v1895_v31  ;;  %v1852_v44 = vpop.f32.mrb[51].mxu0  ;;  %v1893_v45 = vpop.f32.mrb[51].mxu1  ;;  %v11480_v42 = vld [vmem:[#allocation92_spill] sm:$0xff] }
 0x37c   :  { %v6959_v39 = vmul.f32 -1.442695, %v1896_v33  ;;  %v6960_v46 = vmul.f32 -1.442695, %v1898_v22  ;;  %v11479_v22 = vld [vmem:[#allocation89_spill] sm:$0xff]  ;;  %v11481_v45 = vld [vmem:[#allocation91_spill] sm:$0xff] }
 0x37d   :  { %7570 = vpow2.f32 %v6958_v43 }
 0x37e   :  { %7572 = vpow2.f32 %v6959_v39 }
 0x37f   :  { %7574 = vpow2.f32 %v6960_v46  ;;  %v11482_v46 = vld [vmem:[#allocation93_spill] sm:$0xff] }
 0x380   :  { %7576 = vtanh.f32 %v1897_v12 }
 0x387   :  { %v7571_v47 = vpop.eup %7570 }
 0x388   :  { %v7573_v49 = vpop.eup %7572  ;;  %v1905_v50 = vadd.f32 1.0, %v7571_v47 }
 0x389   :  { %v1906_v52 = vadd.f32 1.0, %v7573_v49  ;;  %v7575_v23 = vpop.eup %7574 }
 0x38a   :  { %7578 = vrcp.f32 %v1905_v50  ;;  %v7577_v19 = vpop.eup %7576  ;;  %v1915_v31 = vadd.f32 1.0, %v7575_v23 }
 0x38b   :  { %7580 = vrcp.f32 %v1906_v52 }
 0x38c   :  { %7582 = vrcp.f32 %v1915_v31 }
 0x394   :  { %v7579_v30 = vpop.eup %7578 }
 0x395   :  { %v7581_v38 = vpop.eup %7580  ;;  %v1919_v36 = vmul.f32 %v7579_v30, %v7577_v19 }
 0x396   :  { %v1918_v27 = vmul.f32 %v7581_v38, %v9265_v15  ;;  %v7583_v30 = vpop.eup %7582 }
 0x398   :  { %v9415_v34 = vadd.f32 %v1919_v36, %v1918_v27  ;;  %v1963_v33 = vpop.f32.mrb[52].mxu0  ;;  %v2004_v7 = vpop.f32.mrb[52].mxu1 }
 0x399   :  { %v2011_v20 = vadd.f32 %v1963_v33, %v11479_v22  ;;  %v2013_v12 = vadd.f32 %v2004_v7, %v11480_v42  ;;  %v1965_v43 = vpop.f32.mrb[53].mxu0  ;;  %v2006_v44 = vpop.f32.mrb[53].mxu1 }
 0x39a   :  { %7584 = vtanh.f32 %v9415_v34  ;;  %v2012_v39 = vadd.f32 %v1965_v43, %v11481_v45  ;;  %v2014_v47 = vadd.f32 %v2006_v44, %v11482_v46  ;;  %v1967_v49 = vpop.f32.mrb[54].mxu0  ;;  %v2008_v50 = vpop.f32.mrb[54].mxu1  ;;  %v9429_v43 = vld [vmem:[#allocation6 + $0x108] ss:$16 sps:$4 sm:$0xff]   ;;  %v9432_v44 = vld [vmem:[#allocation6 + $0x124] ss:$16 sps:$4 sm:$0xff]  }
 0x39b   :  { %v6961_v15 = vmul.f32 -1.442695, %v2011_v20  ;;  %v1968_v52 = vpop.f32.mrb[55].mxu0  ;;  %v2009_v23 = vpop.f32.mrb[55].mxu1  ;;  %v9426_v20 = vld [vmem:[#allocation6 + $0x100] ss:$16 sps:$4 sm:$0xff]  }
 0x39c   :  { %v6962_v19 = vmul.f32 -1.442695, %v2012_v39  ;;  %v6963_v36 = vmul.f32 -1.442695, %v2014_v47  ;;  %v9435_v45 = vld [vmem:[#allocation6 + $0x12c] ss:$16 sps:$4 sm:$0xff]  }
 0x39d   :  { %7586 = vpow2.f32 %v6961_v15  ;;  %v9443_v39 = vld [vmem:[#allocation6 + $0x128] ss:$16 sps:$4 sm:$0xff]   ;;  %v9446_v46 = vld [vmem:[#allocation6 + $0x144] ss:$16 sps:$4 sm:$0xff]   ;;  %v9449_v47 = vld [vmem:[#allocation6 + $0x14c] ss:$16 sps:$4 sm:$0xff]  }
 0x39e   :  { %7588 = vpow2.f32 %v6962_v19  ;;  %v9452_v50 = vld [vmem:[#allocation6 + $0x140] ss:$16 sps:$4 sm:$0xff]   ;;  %v9455_v15 = vld [vmem:[#allocation6 + $0x148] ss:$16 sps:$4 sm:$0xff]   ;;  %v9458_v23 = vld [vmem:[#allocation6 + $0x164] ss:$16 sps:$4 sm:$0xff]  }
 0x39f   :  { %7590 = vpow2.f32 %v6963_v36  ;;  %v9461_v19 = vld [vmem:[#allocation6 + $0x16c] ss:$16 sps:$4 sm:$0xff]  }
 0x3a0   :  { %7592 = vtanh.f32 %v2013_v12  ;;  %v9440_v12 = vld [vmem:[#allocation6 + $0x120] ss:$16 sps:$4 sm:$0xff]  }
 0x3a4   :  { %v7585_v38 = vpop.eup %7584 }
 0x3a5   :  { %v9422_v31 = vmul.f32 %v7585_v38, %v7583_v30 }
 0x3a7   :  { %11483 = vst [vmem:[#allocation34_spill] sm:$0xff] %v9422_v31  ;;  %v7587_v27 = vpop.eup %7586  ;;  %v2048_v33 = vpack.c.bf16 %v9422_v31, %v9422_v31  ;;  %v9504_v31 = vld [vmem:[#allocation6 + $0x1c0] ss:$16 sps:$4 sm:$0xff]  }
 0x3a8   :  { %v7589_v7 = vpop.eup %7588  ;;  %v2021_v22 = vadd.f32 1.0, %v7587_v27  ;;  %11489 = vst [vmem:[#allocation42_spill] sm:$0xff] %v9504_v31 }
 0x3a9   :  { %v2022_v42 = vadd.f32 1.0, %v7589_v7  ;;  %2082 = vmatmul.mubr.bf16.vlgmr.msra.gmra.mrb[56].mxu0 %v2048_v33  ;;  %2123 = vmatmul.mubr.bf16.vlgmr.msra.gmra.mrb[56].mxu1 %v2048_v33  ;;  %v7591_v49 = vpop.eup %7590  ;;  %v9465_v7 = vld [vmem:[#allocation6 + $0x160] ss:$16 sps:$4 sm:$0xff]  }
 0x3aa   :  { %7594 = vrcp.f32 %v2021_v22  ;;  %2166 = vmatpush1.bf16.msra.mxu0 %v9426_v20  ;;  %2207 = vmatpush1.bf16.msra.mxu1 %v9429_v43  ;;  %v7593_v52 = vpop.eup %7592  ;;  %v2031_v27 = vadd.f32 1.0, %v7591_v49  ;;  %v9468_v22 = vld [vmem:[#allocation6 + $0x168] ss:$16 sps:$4 sm:$0xff]  }
 0x3ab   :  { %7596 = vrcp.f32 %v2022_v42  ;;  %2167 = vmatprep.subr.bf16.mxu0 %v9432_v44  ;;  %2208 = vmatprep.subr.bf16.mxu1 %v9435_v45  ;;  %v9471_v42 = vld [vmem:[#allocation6 + $0x184] ss:$16 sps:$4 sm:$0xff]   ;;  %v9483_v49 = vld [vmem:[#allocation6 + $0x188] ss:$16 sps:$4 sm:$0xff]  }
 0x3ac   :  { %2197 = vmatprep.mubr.bf16.mxu0 %v11353_v2  ;;  %2238 = vmatprep.mubr.bf16.mxu1 %v11353_v2  ;;  %7598 = vrcp.f32 %v2031_v27  ;;  %v9495_v27 = vld [vmem:[#allocation6 + $0x1a8] ss:$16 sps:$4 sm:$0xff]  }
 0x3ad   :  { %11486 = vst [vmem:[#allocation37_spill] sm:$0xff] %v9495_v27 }
 0x3ae   :  { %2168 = vmatpush1.bf16.msra.mxu0 %v9440_v12  ;;  %2209 = vmatpush1.bf16.msra.mxu1 %v9443_v39 }
 0x3af   :  { %2169 = vmatprep.subr.bf16.mxu0 %v9446_v46  ;;  %2210 = vmatprep.subr.bf16.mxu1 %v9449_v47 }
 0x3b2   :  { %2170 = vmatpush1.bf16.msra.mxu0 %v9452_v50  ;;  %2211 = vmatpush1.bf16.msra.mxu1 %v9455_v15 }
 0x3b3   :  { %2171 = vmatprep.subr.bf16.mxu0 %v9458_v23  ;;  %2212 = vmatprep.subr.bf16.mxu1 %v9461_v19 }
 0x3b4   :  { %v7595_v30 = vpop.eup %7594 }
 0x3b5   :  { %v7597_v38 = vpop.eup %7596  ;;  %v2035_v36 = vmul.f32 %v7595_v30, %v7593_v52  ;;  %v9486_v30 = vld [vmem:[#allocation6 + $0x1a4] ss:$16 sps:$4 sm:$0xff]  }
 0x3b6   :  { %v2034_v33 = vmul.f32 %v7597_v38, %v9295_v48  ;;  %2172 = vmatpush1.bf16.msra.mxu0 %v9465_v7  ;;  %2213 = vmatpush1.bf16.msra.mxu1 %v9468_v22  ;;  %v9480_v48 = vld [vmem:[#allocation6 + $0x180] ss:$16 sps:$4 sm:$0xff]   ;;  %v9489_v38 = vld [vmem:[#allocation6 + $0x1ac] ss:$16 sps:$4 sm:$0xff]   ;;  %v7599_v40 = vpop.eup %7598 }
 0x3b7   :  { %2173 = vmatprep.subr.bf16.mxu0 %v9471_v42  ;;  %2214 = vmatprep.subr.bf16.mxu1 %v9474_v24  ;;  %11484 = vst [vmem:[#allocation35_spill] sm:$0xff] %v9489_v38 }
 0x3b8   :  { %v9477_v52 = vadd.f32 %v2035_v36, %v2034_v33  ;;  %v9492_v36 = vld [vmem:[#allocation6 + $0x1a0] ss:$16 sps:$4 sm:$0xff]   ;;  %v9498_v33 = vld [vmem:[#allocation6 + $0x1c4] ss:$16 sps:$4 sm:$0xff]  }
 0x3b9   :  { %11485 = vst [vmem:[#allocation36_spill] sm:$0xff] %v9492_v36  ;;  %11487 = vst [vmem:[#allocation38_spill] sm:$0xff] %v9498_v33 }
 0x3ba   :  { %7600 = vtanh.f32 %v9477_v52  ;;  %2174 = vmatpush1.bf16.msra.mxu0 %v9480_v48  ;;  %2215 = vmatpush1.bf16.msra.mxu1 %v9483_v49 }
 0x3bb   :  { %2175 = vmatprep.subr.bf16.mxu0 %v9486_v30  ;;  %2216 = vmatprep.subr.bf16.mxu1 %v9489_v38 }
 0x3be   :  { %2176 = vmatpush1.bf16.msra.mxu0 %v9492_v36  ;;  %2217 = vmatpush1.bf16.msra.mxu1 %v9495_v27  ;;  %v9510_v36 = vld [vmem:[#allocation6 + $0x1e4] ss:$16 sps:$4 sm:$0xff]   ;;  %v9513_v27 = vld [vmem:[#allocation6 + $0x1ec] ss:$16 sps:$4 sm:$0xff]  }
 0x3bf   :  { %2177 = vmatprep.subr.bf16.mxu0 %v9498_v33  ;;  %2218 = vmatprep.subr.bf16.mxu1 %v9501_v51  ;;  %v9518_v51 = vld [vmem:[#allocation6 + $0x1e0] ss:$16 sps:$4 sm:$0xff]  }
 0x3c2   :  { %2178 = vmatpush1.bf16.msra.mxu0 %v9504_v31  ;;  %2219 = vmatpush1.bf16.msra.mxu1 %v9507_v14  ;;  %v9521_v31 = vld [vmem:[#allocation6 + $0x1e8] ss:$16 sps:$4 sm:$0xff]  }
 0x3c3   :  { %2179 = vmatprep.subr.bf16.mxu0 %v9510_v36  ;;  %2220 = vmatprep.subr.bf16.mxu1 %v9513_v27 }
 0x3c4   :  { %v7601_v33 = vpop.eup %7600 }
 0x3c5   :  { %v9516_v38 = vmul.f32 %v7601_v33, %v7599_v40  ;;  %v11492_v33 = vld [vmem:[#allocation49_spill] sm:$0xff] }
 0x3c6   :  { %2180 = vmatpush1.bf16.msra.mxu0 %v9518_v51  ;;  %2221 = vmatpush1.bf16.msra.mxu1 %v9521_v31 }
 0x3c7   :  { %11491 = vst [vmem:[#allocation43_spill] sm:$0xff] %v9516_v38  ;;  %v2164_v14 = vpack.c.bf16 %v9516_v38, %v9516_v38  ;;  %2285 = vmatprep.subr.bf16.mxu0 %v9214_v41  ;;  %2326 = vmatprep.subr.bf16.mxu1 %v9217_v9 }
 0x3c9   :  { %2198 = vmatmul.mubr.bf16.vlgmr.msra.gmra.mrb[60].mxu0 %v2164_v14  ;;  %2239 = vmatmul.mubr.bf16.vlgmr.msra.gmra.mrb[60].mxu1 %v2164_v14 }
 0x3ca   :  { %2286 = vmatpush1.bf16.msra.mxu0 %v9220_v37  ;;  %2327 = vmatpush1.bf16.msra.mxu1 %v9223_v13 }
 0x3cb   :  { %2287 = vmatprep.subr.bf16.mxu0 %v9226_v32  ;;  %2328 = vmatprep.subr.bf16.mxu1 %v9321_v53 }
 0x3cc   :  { %2317 = vmatprep.mubr.bf16.mxu0 %v11353_v2  ;;  %2358 = vmatprep.mubr.bf16.mxu1 %v11353_v2 }
 0x3ce   :  { %2288 = vmatpush1.bf16.msra.mxu0 %v9326_v1  ;;  %2329 = vmatpush1.bf16.msra.mxu1 %v9329_v54 }
 0x3cf   :  { %2289 = vmatprep.subr.bf16.mxu0 %v9332_v55  ;;  %2330 = vmatprep.subr.bf16.mxu1 %v9335_v56 }
 0x3d2   :  { %2290 = vmatpush1.bf16.msra.mxu0 %v9338_v57  ;;  %2331 = vmatpush1.bf16.msra.mxu1 %v9341_v58 }
 0x3d3   :  { %2291 = vmatprep.subr.bf16.mxu0 %v9344_v59  ;;  %2332 = vmatprep.subr.bf16.mxu1 %v9347_v60 }
 0x3d6   :  { %2292 = vmatpush1.bf16.msra.mxu0 %v9350_v61  ;;  %2333 = vmatpush1.bf16.msra.mxu1 %v9353_v62 }
 0x3d7   :  { %2293 = vmatprep.subr.bf16.mxu0 %v9356_v63  ;;  %2334 = vmatprep.subr.bf16.mxu1 %v9359_v0 }
 0x3da   :  { %2294 = vmatpush1.bf16.msra.mxu0 %v9362_v3  ;;  %2335 = vmatpush1.bf16.msra.mxu1 %v9365_v4 }
 0x3db   :  { %2295 = vmatprep.subr.bf16.mxu0 %v9368_v5  ;;  %2336 = vmatprep.subr.bf16.mxu1 %v9371_v6 }
 0x3de   :  { %2296 = vmatpush1.bf16.msra.mxu0 %v9374_v8  ;;  %2337 = vmatpush1.bf16.msra.mxu1 %v9377_v25  ;;  %v11494_v25 = vld [vmem:[#allocation51_spill] sm:$0xff]  ;;  %v11495_v8 = vld [vmem:[#allocation53_spill] sm:$0xff] }
 0x3df   :  { %2297 = vmatprep.subr.bf16.mxu0 %v9380_v29  ;;  %2338 = vmatprep.subr.bf16.mxu1 %v9383_v21  ;;  %v11493_v21 = vld [vmem:[#allocation52_spill] sm:$0xff] }
 0x3e2   :  { %2298 = vmatpush1.bf16.msra.mxu0 %v9386_v11  ;;  %2339 = vmatpush1.bf16.msra.mxu1 %v9389_v26 }
 0x3e3   :  { %2299 = vmatprep.subr.bf16.mxu0 %v9392_v28  ;;  %2340 = vmatprep.subr.bf16.mxu1 %v9395_v10 }
 0x3e6   :  { %2300 = vmatpush1.bf16.msra.mxu0 %v9398_v17  ;;  %2341 = vmatpush1.bf16.msra.mxu1 %v9401_v18 }
 0x3e7   :  { %2401 = vmatprep.subr.bf16.mxu0 %v9404_v16  ;;  %2442 = vmatprep.subr.bf16.mxu1 %v9407_v35 }
 0x47c   :  { %v2083_v40 = vpop.f32.mrb[56].mxu0  ;;  %v2124_v14 = vpop.f32.mrb[56].mxu1 }
 0x47d   :  { %v2131_v38 = vadd.f32 %v2083_v40, %v11492_v33  ;;  %v2133_v11 = vadd.f32 %v2124_v14, %v11493_v21  ;;  %v2085_v29 = vpop.f32.mrb[57].mxu0  ;;  %v2126_v26 = vpop.f32.mrb[57].mxu1  ;;  %v11499_v33 = vld [vmem:[#allocation90_spill] sm:$0xff] }
 0x47e   :  { %v2132_v28 = vadd.f32 %v2085_v29, %v11494_v25  ;;  %v2134_v10 = vadd.f32 %v2126_v26, %v11495_v8  ;;  %v2087_v6 = vpop.f32.mrb[58].mxu0  ;;  %v2128_v17 = vpop.f32.mrb[58].mxu1 }
 0x47f   :  { %v6964_v5 = vmul.f32 -1.442695, %v2131_v38  ;;  %v2088_v18 = vpop.f32.mrb[59].mxu0  ;;  %v2129_v4 = vpop.f32.mrb[59].mxu1  ;;  %v11498_v38 = vld [vmem:[#allocation87_spill] sm:$0xff] }
 0x480   :  { %v6965_v16 = vmul.f32 -1.442695, %v2132_v28  ;;  %v6966_v35 = vmul.f32 -1.442695, %v2134_v10  ;;  %v11496_v18 = vld [vmem:[#allocation86_spill] sm:$0xff] }
 0x481   :  { %7602 = vpow2.f32 %v6964_v5 }
 0x482   :  { %7604 = vpow2.f32 %v6965_v16  ;;  %v11497_v16 = vld [vmem:[#allocation88_spill] sm:$0xff] }
 0x483   :  { %7606 = vpow2.f32 %v6966_v35 }
 0x484   :  { %7608 = vtanh.f32 %v2133_v11 }
 0x48b   :  { %v7603_v3 = vpop.eup %7602 }
 0x48c   :  { %v7605_v0 = vpop.eup %7604  ;;  %v2141_v40 = vadd.f32 1.0, %v7603_v3 }
 0x48d   :  { %v2142_v21 = vadd.f32 1.0, %v7605_v0  ;;  %v7607_v25 = vpop.eup %7606 }
 0x48e   :  { %7610 = vrcp.f32 %v2141_v40  ;;  %v7609_v29 = vpop.eup %7608  ;;  %v2151_v17 = vadd.f32 1.0, %v7607_v25 }
 0x48f   :  { %7612 = vrcp.f32 %v2142_v21 }
 0x490   :  { %7614 = vrcp.f32 %v2151_v17 }
 0x498   :  { %v7611_v8 = vpop.eup %7610 }
 0x499   :  { %v7613_v6 = vpop.eup %7612  ;;  %v2155_v26 = vmul.f32 %v7611_v8, %v7609_v29 }
 0x49a   :  { %v2154_v4 = vmul.f32 %v7613_v6, %v9415_v34 }
 0x49c   :  { %v9567_v28 = vadd.f32 %v2155_v26, %v2154_v4  ;;  %v2199_v5 = vpop.f32.mrb[60].mxu0  ;;  %v2240_v10 = vpop.f32.mrb[60].mxu1 }
 0x49d   :  { %v2247_v3 = vadd.f32 %v2199_v5, %v11496_v18  ;;  %v2249_v11 = vadd.f32 %v2240_v10, %v11497_v16  ;;  %v2201_v0 = vpop.f32.mrb[61].mxu0  ;;  %v2242_v35 = vpop.f32.mrb[61].mxu1 }
 0x49e   :  { %7616 = vtanh.f32 %v9567_v28  ;;  %v2248_v14 = vadd.f32 %v2201_v0, %v11498_v38  ;;  %v2250_v40 = vadd.f32 %v2242_v35, %v11499_v33  ;;  %v2203_v21 = vpop.f32.mrb[62].mxu0  ;;  %v2244_v25 = vpop.f32.mrb[62].mxu1 }
 0x49f   :  { %v6967_v34 = vmul.f32 -1.442695, %v2247_v3  ;;  %v2204_v29 = vpop.f32.mrb[63].mxu0  ;;  %v2245_v8 = vpop.f32.mrb[63].mxu1 }
 0x4a0   :  { %v6968_v6 = vmul.f32 -1.442695, %v2248_v14  ;;  %v7615_v26 = vpop.eup %7614  ;;  %v6969_v4 = vmul.f32 -1.442695, %v2250_v40  ;;  %v11503_v29 = vld [vmem:[#allocation37_spill] sm:$0xff]  ;;  %v11504_v8 = vld [vmem:[#allocation38_spill] sm:$0xff] }
 0x4a1   :  { %7618 = vpow2.f32 %v6967_v34  ;;  %v11502_v34 = vld [vmem:[#allocation36_spill] sm:$0xff] }
 0x4a2   :  { %7620 = vpow2.f32 %v6968_v6  ;;  %v11505_v6 = vld [vmem:[#allocation39_spill] sm:$0xff] }
 0x4a3   :  { %7622 = vpow2.f32 %v6969_v4 }
 0x4a4   :  { %7624 = vtanh.f32 %v2249_v11 }
 0x4a8   :  { %v7617_v17 = vpop.eup %7616 }
 0x4a9   :  { %v9574_v5 = vmul.f32 %v7617_v17, %v7615_v26  ;;  %v11506_v26 = vld [vmem:[#allocation42_spill] sm:$0xff]  ;;  %v11507_v17 = vld [vmem:[#allocation44_spill] sm:$0xff] }
 0x4ab   :  { %11500 = vst [vmem:[#allocation45_spill] sm:$0xff] %v9574_v5  ;;  %v7619_v10 = vpop.eup %7618  ;;  %v2284_v18 = vpack.c.bf16 %v9574_v5, %v9574_v5 }
 0x4ac   :  { %v7621_v16 = vpop.eup %7620  ;;  %v2257_v0 = vadd.f32 1.0, %v7619_v10 }
 0x4ad   :  { %v2258_v35 = vadd.f32 1.0, %v7621_v16  ;;  %2318 = vmatmul.mubr.bf16.vlgmr.msra.gmra.mrb[64].mxu0 %v2284_v18  ;;  %2359 = vmatmul.mubr.bf16.vlgmr.msra.gmra.mrb[64].mxu1 %v2284_v18  ;;  %v7623_v3 = vpop.eup %7622 }
 0x4ae   :  { %7626 = vrcp.f32 %v2257_v0  ;;  %2402 = vmatpush1.bf16.msra.mxu0 %v9426_v20  ;;  %2443 = vmatpush1.bf16.msra.mxu1 %v9429_v43  ;;  %v7625_v11 = vpop.eup %7624  ;;  %v2267_v40 = vadd.f32 1.0, %v7623_v3  ;;  %v11514_v0 = vld [vmem:[#allocation22_spill] sm:$0xff]  ;;  %v11516_v3 = vld [vmem:[#allocation24_spill] sm:$0xff] }
 0x4af   :  { %7628 = vrcp.f32 %v2258_v35  ;;  %2403 = vmatprep.subr.bf16.mxu0 %v9432_v44  ;;  %2444 = vmatprep.subr.bf16.mxu1 %v9435_v45  ;;  %v11515_v35 = vld [vmem:[#allocation23_spill] sm:$0xff] }
 0x4b0   :  { %2433 = vmatprep.mubr.bf16.mxu0 %v11353_v2  ;;  %2474 = vmatprep.mubr.bf16.mxu1 %v11353_v2  ;;  %7630 = vrcp.f32 %v2267_v40  ;;  %v11521_v40 = vld [vmem:[#allocation29_spill] sm:$0xff] }
 0x4b2   :  { %2404 = vmatpush1.bf16.msra.mxu0 %v9440_v12  ;;  %2445 = vmatpush1.bf16.msra.mxu1 %v9443_v39 }
 0x4b3   :  { %2405 = vmatprep.subr.bf16.mxu0 %v9446_v46  ;;  %2446 = vmatprep.subr.bf16.mxu1 %v9449_v47 }
 0x4b6   :  { %2406 = vmatpush1.bf16.msra.mxu0 %v9452_v50  ;;  %2447 = vmatpush1.bf16.msra.mxu1 %v9455_v15 }
 0x4b7   :  { %2407 = vmatprep.subr.bf16.mxu0 %v9458_v23  ;;  %2448 = vmatprep.subr.bf16.mxu1 %v9461_v19 }
 0x4b8   :  { %v7627_v38 = vpop.eup %7626 }
 0x4b9   :  { %v7629_v14 = vpop.eup %7628  ;;  %v2271_v33 = vmul.f32 %v7627_v38, %v7625_v11  ;;  %v11517_v11 = vld [vmem:[#allocation25_spill] sm:$0xff]  ;;  %v11518_v38 = vld [vmem:[#allocation26_spill] sm:$0xff] }
 0x4ba   :  { %v2270_v21 = vmul.f32 %v7629_v14, %v9477_v52  ;;  %2408 = vmatpush1.bf16.msra.mxu0 %v9465_v7  ;;  %2449 = vmatpush1.bf16.msra.mxu1 %v9468_v22  ;;  %v11501_v52 = vld [vmem:[#allocation35_spill] sm:$0xff]  ;;  %v7631_v4 = vpop.eup %7630 }
 0x4bb   :  { %2409 = vmatprep.subr.bf16.mxu0 %v9471_v42  ;;  %2450 = vmatprep.subr.bf16.mxu1 %v9474_v24  ;;  %v11519_v14 = vld [vmem:[#allocation27_spill] sm:$0xff] }
 0x4bc   :  { %v9597_v25 = vadd.f32 %v2271_v33, %v2270_v21  ;;  %v11520_v33 = vld [vmem:[#allocation28_spill] sm:$0xff]  ;;  %v11522_v21 = vld [vmem:[#allocation30_spill] sm:$0xff] }
 0x4be   :  { %7632 = vtanh.f32 %v9597_v25  ;;  %2410 = vmatpush1.bf16.msra.mxu0 %v9480_v48  ;;  %2451 = vmatpush1.bf16.msra.mxu1 %v9483_v49 }
 0x4bf   :  { %2411 = vmatprep.subr.bf16.mxu0 %v9486_v30  ;;  %2452 = vmatprep.subr.bf16.mxu1 %v11501_v52 }
 0x4c2   :  { %2412 = vmatpush1.bf16.msra.mxu0 %v11502_v34  ;;  %2453 = vmatpush1.bf16.msra.mxu1 %v11503_v29 }
 0x4c3   :  { %2413 = vmatprep.subr.bf16.mxu0 %v11504_v8  ;;  %2454 = vmatprep.subr.bf16.mxu1 %v11505_v6 }
 0x4c6   :  { %2414 = vmatpush1.bf16.msra.mxu0 %v11506_v26  ;;  %2455 = vmatpush1.bf16.msra.mxu1 %v11507_v17 }
 0x4c7   :  { %2415 = vmatprep.subr.bf16.mxu0 %v9510_v36  ;;  %2456 = vmatprep.subr.bf16.mxu1 %v9513_v27 }
 0x4c8   :  { %v7633_v10 = vpop.eup %7632 }
 0x4c9   :  { %v9612_v18 = vmul.f32 %v7633_v10, %v7631_v4  ;;  %v11523_v4 = vld [vmem:[#allocation31_spill] sm:$0xff]  ;;  %v11524_v10 = vld [vmem:[#allocation32_spill] sm:$0xff] }
 0x4ca   :  { %2416 = vmatpush1.bf16.msra.mxu0 %v9518_v51  ;;  %2457 = vmatpush1.bf16.msra.mxu1 %v9521_v31 }
 0x4cb   :  { %11508 = vst [vmem:[#allocation94_spill] sm:$0xff] %v9612_v18  ;;  %v2400_v16 = vpack.c.bf16 %v9612_v18, %v9612_v18  ;;  %2519 = vmatprep.subr.bf16.mxu0 %v9214_v41  ;;  %2560 = vmatprep.subr.bf16.mxu1 %v9217_v9  ;;  %v11509_v41 = vld [vmem:[#allocation17_spill] sm:$0xff]  ;;  %v11510_v9 = vld [vmem:[#allocation18_spill] sm:$0xff] }
 0x4cd   :  { %2434 = vmatmul.mubr.bf16.vlgmr.msra.gmra.mrb[68].mxu0 %v2400_v16  ;;  %2475 = vmatmul.mubr.bf16.vlgmr.msra.gmra.mrb[68].mxu1 %v2400_v16  ;;  %v11525_v16 = vld [vmem:[#allocation33_spill] sm:$0xff] }
 0x4ce   :  { %2520 = vmatpush1.bf16.msra.mxu0 %v9220_v37  ;;  %2561 = vmatpush1.bf16.msra.mxu1 %v9223_v13  ;;  %v11511_v37 = vld [vmem:[#allocation19_spill] sm:$0xff]  ;;  %v11512_v13 = vld [vmem:[#allocation20_spill] sm:$0xff] }
 0x4cf   :  { %2521 = vmatprep.subr.bf16.mxu0 %v9226_v32  ;;  %2562 = vmatprep.subr.bf16.mxu1 %v9321_v53  ;;  %v11513_v32 = vld [vmem:[#allocation21_spill] sm:$0xff] }
 0x4d0   :  { %2551 = vmatprep.mubr.bf16.mxu0 %v11353_v2  ;;  %2592 = vmatprep.mubr.bf16.mxu1 %v11353_v2 }
 0x4d2   :  { %2522 = vmatpush1.bf16.msra.mxu0 %v9326_v1  ;;  %2563 = vmatpush1.bf16.msra.mxu1 %v9329_v54 }
 0x4d3   :  { %2523 = vmatprep.subr.bf16.mxu0 %v9332_v55  ;;  %2564 = vmatprep.subr.bf16.mxu1 %v9335_v56 }
 0x4d6   :  { %2524 = vmatpush1.bf16.msra.mxu0 %v9338_v57  ;;  %2565 = vmatpush1.bf16.msra.mxu1 %v9341_v58 }
 0x4d7   :  { %2525 = vmatprep.subr.bf16.mxu0 %v9344_v59  ;;  %2566 = vmatprep.subr.bf16.mxu1 %v9347_v60 }
 0x4da   :  { %2526 = vmatpush1.bf16.msra.mxu0 %v9350_v61  ;;  %2567 = vmatpush1.bf16.msra.mxu1 %v9353_v62 }
 0x4db   :  { %2527 = vmatprep.subr.bf16.mxu0 %v9356_v63  ;;  %2568 = vmatprep.subr.bf16.mxu1 %v11509_v41 }
 0x4de   :  { %2528 = vmatpush1.bf16.msra.mxu0 %v11510_v9  ;;  %2569 = vmatpush1.bf16.msra.mxu1 %v11511_v37 }
 0x4df   :  { %2529 = vmatprep.subr.bf16.mxu0 %v11512_v13  ;;  %2570 = vmatprep.subr.bf16.mxu1 %v11513_v32  ;;  %v11528_v32 = vld [vmem:[#allocation55_spill] sm:$0xff]  ;;  %v11529_v13 = vld [vmem:[#allocation58_spill] sm:$0xff] }
 0x4e2   :  { %2530 = vmatpush1.bf16.msra.mxu0 %v11514_v0  ;;  %2571 = vmatpush1.bf16.msra.mxu1 %v11515_v35  ;;  %v11527_v35 = vld [vmem:[#allocation56_spill] sm:$0xff] }
 0x4e3   :  { %2531 = vmatprep.subr.bf16.mxu0 %v11516_v3  ;;  %2572 = vmatprep.subr.bf16.mxu1 %v11517_v11  ;;  %v11526_v3 = vld [vmem:[#allocation54_spill] sm:$0xff] }
 0x4e6   :  { %2532 = vmatpush1.bf16.msra.mxu0 %v11518_v38  ;;  %2573 = vmatpush1.bf16.msra.mxu1 %v11519_v14 }
 0x4e7   :  { %2533 = vmatprep.subr.bf16.mxu0 %v11520_v33  ;;  %2574 = vmatprep.subr.bf16.mxu1 %v11521_v40 }
 0x4ea   :  { %2534 = vmatpush1.bf16.msra.mxu0 %v11522_v21  ;;  %2575 = vmatpush1.bf16.msra.mxu1 %v11523_v4 }
 0x4eb   :  { %2635 = vmatprep.subr.bf16.mxu0 %v11524_v10  ;;  %2676 = vmatprep.subr.bf16.mxu1 %v11525_v16 }
 0x580   :  { %v2319_v18 = vpop.f32.mrb[64].mxu0  ;;  %v2360_v5 = vpop.f32.mrb[64].mxu1 }
 0x581   :  { %v2367_v11 = vadd.f32 %v2319_v18, %v11526_v3  ;;  %v2369_v38 = vadd.f32 %v2360_v5, %v11527_v35  ;;  %v2321_v0 = vpop.f32.mrb[65].mxu0  ;;  %v2362_v14 = vpop.f32.mrb[65].mxu1 }
 0x582   :  { %v2368_v33 = vadd.f32 %v2321_v0, %v11528_v32  ;;  %v2370_v40 = vadd.f32 %v2362_v14, %v11529_v13  ;;  %v2323_v37 = vpop.f32.mrb[66].mxu0  ;;  %v2364_v21 = vpop.f32.mrb[66].mxu1 }
 0x583   :  { %v6970_v9 = vmul.f32 -1.442695, %v2367_v11  ;;  %v2324_v4 = vpop.f32.mrb[67].mxu0  ;;  %v2365_v41 = vpop.f32.mrb[67].mxu1 }
 0x584   :  { %v6971_v10 = vmul.f32 -1.442695, %v2368_v33  ;;  %v6972_v16 = vmul.f32 -1.442695, %v2370_v40  ;;  %v11530_v33 = vld [vmem:[#allocation81_spill] sm:$0xff]  ;;  %v11531_v40 = vld [vmem:[#allocation84_spill] sm:$0xff] }
 0x585   :  { %7634 = vpow2.f32 %v6970_v9  ;;  %v11532_v4 = vld [vmem:[#allocation83_spill] sm:$0xff] }
 0x586   :  { %7636 = vpow2.f32 %v6971_v10 }
 0x587   :  { %7638 = vpow2.f32 %v6972_v16  ;;  %v11533_v16 = vld [vmem:[#allocation85_spill] sm:$0xff] }
 0x588   :  { %7640 = vtanh.f32 %v2369_v38 }
 0x58f   :  { %v7635_v63 = vpop.eup %7634 }
 0x590   :  { %v7637_v62 = vpop.eup %7636  ;;  %v2377_v18 = vadd.f32 1.0, %v7635_v63 }
 0x591   :  { %v2378_v5 = vadd.f32 1.0, %v7637_v62  ;;  %v7639_v32 = vpop.eup %7638 }
 0x592   :  { %7642 = vrcp.f32 %v2377_v18  ;;  %v7641_v0 = vpop.eup %7640  ;;  %v2387_v3 = vadd.f32 1.0, %v7639_v32 }
 0x593   :  { %7644 = vrcp.f32 %v2378_v5 }
 0x594   :  { %7646 = vrcp.f32 %v2387_v3 }
 0x59c   :  { %v7643_v13 = vpop.eup %7642 }
 0x59d   :  { %v7645_v37 = vpop.eup %7644  ;;  %v2391_v35 = vmul.f32 %v7643_v13, %v7641_v0 }
 0x59e   :  { %v2390_v41 = vmul.f32 %v7645_v37, %v9567_v28 }
 0x5a0   :  { %v9659_v11 = vadd.f32 %v2391_v35, %v2390_v41  ;;  %v2435_v9 = vpop.f32.mrb[68].mxu0  ;;  %v2476_v14 = vpop.f32.mrb[68].mxu1 }
 0x5a1   :  { %v2483_v63 = vadd.f32 %v2435_v9, %v11530_v33  ;;  %v2485_v38 = vadd.f32 %v2476_v14, %v11531_v40  ;;  %v2437_v62 = vpop.f32.mrb[69].mxu0  ;;  %v2478_v21 = vpop.f32.mrb[69].mxu1 }
 0x5a2   :  { %7648 = vtanh.f32 %v9659_v11  ;;  %v2484_v10 = vadd.f32 %v2437_v62, %v11532_v4  ;;  %v2486_v18 = vadd.f32 %v2478_v21, %v11533_v16  ;;  %v2439_v5 = vpop.f32.mrb[70].mxu0  ;;  %v2480_v32 = vpop.f32.mrb[70].mxu1 }
 0x5a3   :  { %v6973_v28 = vmul.f32 -1.442695, %v2483_v63  ;;  %v2440_v0 = vpop.f32.mrb[71].mxu0  ;;  %v2481_v13 = vpop.f32.mrb[71].mxu1 }
 0x5a4   :  { %v6974_v37 = vmul.f32 -1.442695, %v2484_v10  ;;  %v7647_v35 = vpop.eup %7646  ;;  %v6975_v41 = vmul.f32 -1.442695, %v2486_v18 }
 0x5a5   :  { %7650 = vpow2.f32 %v6973_v28 }
 0x5a6   :  { %7652 = vpow2.f32 %v6974_v37  ;;  %v9710_v37 = vld [vmem:[#allocation6 + $0x4] ss:$16 sps:$4 sm:$0xff]  }
 0x5a7   :  { %7654 = vpow2.f32 %v6975_v41  ;;  %v9719_v41 = vld [vmem:[#allocation6 + $0x8] ss:$16 sps:$4 sm:$0xff]  }
 0x5a8   :  { %7656 = vtanh.f32 %v2485_v38 }
 0x5ac   :  { %v7649_v3 = vpop.eup %7648 }
 0x5ad   :  { %v9666_v9 = vmul.f32 %v7649_v3, %v7647_v35  ;;  %v9713_v35 = vld [vmem:[#allocation6 + $0xc] ss:$16 sps:$4 sm:$0xff]   ;;  %v9716_v3 = vld [vmem:[#allocation6] ss:$16 sps:$4 sm:$0xff]  }
 0x5af   :  { %v7651_v14 = vpop.eup %7650  ;;  %v2518_v33 = vpack.c.bf16 %v9666_v9, %v9666_v9 }
 0x5b0   :  { %v7653_v40 = vpop.eup %7652  ;;  %v2493_v62 = vadd.f32 1.0, %v7651_v14  ;;  %v9722_v14 = vld [vmem:[#allocation6 + $0x24] ss:$16 sps:$4 sm:$0xff]  }
 0x5b1   :  { %v2494_v21 = vadd.f32 1.0, %v7653_v40  ;;  %2552 = vmatmul.mubr.bf16.vlgmr.msra.gmra.mrb[72].mxu0 %v2518_v33  ;;  %2593 = vmatmul.mubr.bf16.vlgmr.msra.gmra.mrb[72].mxu1 %v2518_v33  ;;  %v7655_v63 = vpop.eup %7654  ;;  %v11535_v33 = vld [vmem:[#allocation16_spill] sm:$0xff]  ;;  %v11545_v40 = vld [vmem:[#allocation26_spill] sm:$0xff] }
 0x5b2   :  { %7658 = vrcp.f32 %v2493_v62  ;;  %2636 = vmatpush1.bf16.msra.mxu0 %v9426_v20  ;;  %2677 = vmatpush1.bf16.msra.mxu1 %v9429_v43  ;;  %v7657_v38 = vpop.eup %7656  ;;  %v2503_v18 = vadd.f32 1.0, %v7655_v63  ;;  %v11546_v62 = vld [vmem:[#allocation27_spill] sm:$0xff]  ;;  %v11548_v63 = vld [vmem:[#allocation29_spill] sm:$0xff] }
 0x5b3   :  { %7660 = vrcp.f32 %v2494_v21  ;;  %2637 = vmatprep.subr.bf16.mxu0 %v9432_v44  ;;  %2678 = vmatprep.subr.bf16.mxu1 %v9435_v45  ;;  %v11547_v21 = vld [vmem:[#allocation28_spill] sm:$0xff] }
 0x5b4   :  { %2667 = vmatprep.mubr.bf16.mxu0 %v11353_v2  ;;  %2708 = vmatprep.mubr.bf16.mxu1 %v11353_v2  ;;  %7662 = vrcp.f32 %v2503_v18 }
 0x5b6   :  { %2638 = vmatpush1.bf16.msra.mxu0 %v9440_v12  ;;  %2679 = vmatpush1.bf16.msra.mxu1 %v9443_v39 }
 0x5b7   :  { %2639 = vmatprep.subr.bf16.mxu0 %v9446_v46  ;;  %2680 = vmatprep.subr.bf16.mxu1 %v9449_v47 }
 0x5ba   :  { %2640 = vmatpush1.bf16.msra.mxu0 %v9452_v50  ;;  %2681 = vmatpush1.bf16.msra.mxu1 %v9455_v15 }
 0x5bb   :  { %2641 = vmatprep.subr.bf16.mxu0 %v9458_v23  ;;  %2682 = vmatprep.subr.bf16.mxu1 %v9461_v19 }
 0x5bc   :  { %v7659_v4 = vpop.eup %7658 }
 0x5bd   :  { %v7661_v10 = vpop.eup %7660  ;;  %v2507_v16 = vmul.f32 %v7659_v4, %v7657_v38  ;;  %v11549_v38 = vld [vmem:[#allocation30_spill] sm:$0xff]  ;;  %v11550_v4 = vld [vmem:[#allocation31_spill] sm:$0xff] }
 0x5be   :  { %v2506_v5 = vmul.f32 %v7661_v10, %v9597_v25  ;;  %2642 = vmatpush1.bf16.msra.mxu0 %v9465_v7  ;;  %2683 = vmatpush1.bf16.msra.mxu1 %v9468_v22  ;;  %v7663_v25 = vpop.eup %7662  ;;  %v11551_v10 = vld [vmem:[#allocation32_spill] sm:$0xff] }
 0x5bf   :  { %2643 = vmatprep.subr.bf16.mxu0 %v9471_v42  ;;  %2684 = vmatprep.subr.bf16.mxu1 %v9474_v24 }
 0x5c0   :  { %v9689_v32 = vadd.f32 %v2507_v16, %v2506_v5  ;;  %v11552_v16 = vld [vmem:[#allocation33_spill] sm:$0xff] }
 0x5c2   :  { %7664 = vtanh.f32 %v9689_v32  ;;  %2644 = vmatpush1.bf16.msra.mxu0 %v9480_v48  ;;  %2685 = vmatpush1.bf16.msra.mxu1 %v9483_v49 }
 0x5c3   :  { %2645 = vmatprep.subr.bf16.mxu0 %v9486_v30  ;;  %2686 = vmatprep.subr.bf16.mxu1 %v11501_v52 }
 0x5c6   :  { %2646 = vmatpush1.bf16.msra.mxu0 %v11502_v34  ;;  %2687 = vmatpush1.bf16.msra.mxu1 %v11503_v29 }
 0x5c7   :  { %2647 = vmatprep.subr.bf16.mxu0 %v11504_v8  ;;  %2688 = vmatprep.subr.bf16.mxu1 %v11505_v6 }
 0x5ca   :  { %2648 = vmatpush1.bf16.msra.mxu0 %v11506_v26  ;;  %2689 = vmatpush1.bf16.msra.mxu1 %v11507_v17 }
 0x5cb   :  { %2649 = vmatprep.subr.bf16.mxu0 %v9510_v36  ;;  %2690 = vmatprep.subr.bf16.mxu1 %v9513_v27 }
 0x5cc   :  { %v7665_v28 = vpop.eup %7664 }
 0x5cd   :  { %v9704_v0 = vmul.f32 %v7665_v28, %v7663_v25  ;;  %v11553_v25 = vld [vmem:[#allocation57_spill] sm:$0xff] }
 0x5ce   :  { %2650 = vmatpush1.bf16.msra.mxu0 %v9518_v51  ;;  %2691 = vmatpush1.bf16.msra.mxu1 %v9521_v31 }
 0x5cf   :  { %v2634_v13 = vpack.c.bf16 %v9704_v0, %v9704_v0  ;;  %2753 = vmatprep.subr.bf16.mxu0 %v9710_v37  ;;  %2794 = vmatprep.subr.bf16.mxu1 %v9713_v35 }
 0x5d1   :  { %2668 = vmatmul.mubr.bf16.vlgmr.msra.gmra.mrb[76].mxu0 %v2634_v13  ;;  %2709 = vmatmul.mubr.bf16.vlgmr.msra.gmra.mrb[76].mxu1 %v2634_v13  ;;  %v11554_v13 = vld [vmem:[#allocation60_spill] sm:$0xff] }
 0x5d2   :  { %2754 = vmatpush1.bf16.msra.mxu0 %v9716_v3  ;;  %2795 = vmatpush1.bf16.msra.mxu1 %v9719_v41 }
 0x5d3   :  { %2755 = vmatprep.subr.bf16.mxu0 %v9722_v14  ;;  %2796 = vmatprep.subr.bf16.mxu1 %v9321_v53  ;;  %v11534_v53 = vld [vmem:[#allocation15_spill] sm:$0xff] }
 0x5d4   :  { %2785 = vmatprep.mubr.bf16.mxu0 %v11353_v2  ;;  %2826 = vmatprep.mubr.bf16.mxu1 %v11353_v2 }
 0x5d6   :  { %2756 = vmatpush1.bf16.msra.mxu0 %v9326_v1  ;;  %2797 = vmatpush1.bf16.msra.mxu1 %v9329_v54  ;;  %v11536_v1 = vld [vmem:[#allocation17_spill] sm:$0xff]  ;;  %v11537_v54 = vld [vmem:[#allocation18_spill] sm:$0xff] }
 0x5d7   :  { %2757 = vmatprep.subr.bf16.mxu0 %v9332_v55  ;;  %2798 = vmatprep.subr.bf16.mxu1 %v9335_v56  ;;  %v11538_v55 = vld [vmem:[#allocation19_spill] sm:$0xff]  ;;  %v11539_v56 = vld [vmem:[#allocation20_spill] sm:$0xff] }
 0x5da   :  { %2758 = vmatpush1.bf16.msra.mxu0 %v9338_v57  ;;  %2799 = vmatpush1.bf16.msra.mxu1 %v9341_v58  ;;  %v11540_v57 = vld [vmem:[#allocation21_spill] sm:$0xff]  ;;  %v11541_v58 = vld [vmem:[#allocation22_spill] sm:$0xff] }
 0x5db   :  { %2759 = vmatprep.subr.bf16.mxu0 %v9344_v59  ;;  %2800 = vmatprep.subr.bf16.mxu1 %v9347_v60  ;;  %v11542_v59 = vld [vmem:[#allocation23_spill] sm:$0xff]  ;;  %v11543_v60 = vld [vmem:[#allocation24_spill] sm:$0xff] }
 0x5de   :  { %2760 = vmatpush1.bf16.msra.mxu0 %v9350_v61  ;;  %2801 = vmatpush1.bf16.msra.mxu1 %v11534_v53  ;;  %v11544_v61 = vld [vmem:[#allocation25_spill] sm:$0xff] }
 0x5df   :  { %2761 = vmatprep.subr.bf16.mxu0 %v11535_v33  ;;  %2802 = vmatprep.subr.bf16.mxu1 %v11536_v1 }
 0x5e2   :  { %2762 = vmatpush1.bf16.msra.mxu0 %v11537_v54  ;;  %2803 = vmatpush1.bf16.msra.mxu1 %v11538_v55  ;;  %v11555_v54 = vld [vmem:[#allocation59_spill] sm:$0xff] }
 0x5e3   :  { %2763 = vmatprep.subr.bf16.mxu0 %v11539_v56  ;;  %2804 = vmatprep.subr.bf16.mxu1 %v11540_v57  ;;  %v11556_v56 = vld [vmem:[#allocation61_spill] sm:$0xff] }
 0x5e6   :  { %2764 = vmatpush1.bf16.msra.mxu0 %v11541_v58  ;;  %2805 = vmatpush1.bf16.msra.mxu1 %v11542_v59 }
 0x5e7   :  { %2765 = vmatprep.subr.bf16.mxu0 %v11543_v60  ;;  %2806 = vmatprep.subr.bf16.mxu1 %v11544_v61 }
 0x5ea   :  { %2766 = vmatpush1.bf16.msra.mxu0 %v11545_v40  ;;  %2807 = vmatpush1.bf16.msra.mxu1 %v11546_v62 }
 0x5eb   :  { %2767 = vmatprep.subr.bf16.mxu0 %v11547_v21  ;;  %2808 = vmatprep.subr.bf16.mxu1 %v11548_v63 }
 0x5ee   :  { %2768 = vmatpush1.bf16.msra.mxu0 %v11549_v38  ;;  %2809 = vmatpush1.bf16.msra.mxu1 %v11550_v4 }
 0x5ef   :  { %2869 = vmatprep.subr.bf16.mxu0 %v11551_v10  ;;  %2910 = vmatprep.subr.bf16.mxu1 %v11552_v16 }
 0x684   :  { %v2553_v18 = vpop.f32.mrb[72].mxu0  ;;  %v2594_v5 = vpop.f32.mrb[72].mxu1 }
 0x685   :  { %v2601_v28 = vadd.f32 %v2553_v18, %v11553_v25  ;;  %v2603_v53 = vadd.f32 %v2594_v5, %v11554_v13  ;;  %v2555_v33 = vpop.f32.mrb[73].mxu0  ;;  %v2596_v1 = vpop.f32.mrb[73].mxu1 }
 0x686   :  { %v2602_v55 = vadd.f32 %v2555_v33, %v11555_v54  ;;  %v2604_v57 = vadd.f32 %v2596_v1, %v11556_v56  ;;  %v2557_v58 = vpop.f32.mrb[74].mxu0  ;;  %v2598_v59 = vpop.f32.mrb[74].mxu1  ;;  %v11557_v56 = vld [vmem:[#allocation78_spill] sm:$0xff] }
 0x687   :  { %v6976_v60 = vmul.f32 -1.442695, %v2601_v28  ;;  %v2558_v61 = vpop.f32.mrb[75].mxu0  ;;  %v2599_v40 = vpop.f32.mrb[75].mxu1  ;;  %v11558_v58 = vld [vmem:[#allocation80_spill] sm:$0xff] }
 0x688   :  { %v6977_v62 = vmul.f32 -1.442695, %v2602_v55  ;;  %v6978_v21 = vmul.f32 -1.442695, %v2604_v57  ;;  %v11559_v61 = vld [vmem:[#allocation79_spill] sm:$0xff] }
 0x689   :  { %7666 = vpow2.f32 %v6976_v60 }
 0x68a   :  { %7668 = vpow2.f32 %v6977_v62  ;;  %v11560_v62 = vld [vmem:[#allocation82_spill] sm:$0xff] }
 0x68b   :  { %7670 = vpow2.f32 %v6978_v21 }
 0x68c   :  { %7672 = vtanh.f32 %v2603_v53 }
 0x693   :  { %v7667_v63 = vpop.eup %7666 }
 0x694   :  { %v7669_v38 = vpop.eup %7668  ;;  %v2611_v4 = vadd.f32 1.0, %v7667_v63 }
 0x695   :  { %v2612_v10 = vadd.f32 1.0, %v7669_v38  ;;  %v7671_v16 = vpop.eup %7670 }
 0x696   :  { %7674 = vrcp.f32 %v2611_v4  ;;  %v7673_v18 = vpop.eup %7672  ;;  %v2621_v28 = vadd.f32 1.0, %v7671_v16 }
 0x697   :  { %7676 = vrcp.f32 %v2612_v10 }
 0x698   :  { %7678 = vrcp.f32 %v2621_v28 }
 0x6a0   :  { %v7675_v5 = vpop.eup %7674 }
 0x6a1   :  { %v7677_v25 = vpop.eup %7676  ;;  %v2625_v13 = vmul.f32 %v7675_v5, %v7673_v18 }
 0x6a2   :  { %v2624_v33 = vmul.f32 %v7677_v25, %v9659_v11  ;;  %v7679_v18 = vpop.eup %7678 }
 0x6a4   :  { %v9761_v1 = vadd.f32 %v2625_v13, %v2624_v33  ;;  %v2669_v54 = vpop.f32.mrb[76].mxu0  ;;  %v2710_v55 = vpop.f32.mrb[76].mxu1 }
 0x6a5   :  { %v2717_v57 = vadd.f32 %v2669_v54, %v11557_v56  ;;  %v2719_v53 = vadd.f32 %v2710_v55, %v11558_v58  ;;  %v2671_v59 = vpop.f32.mrb[77].mxu0  ;;  %v2712_v60 = vpop.f32.mrb[77].mxu1  ;;  %v8116_v58 = vld [vmem:[#allocation6 + $0xe0] ss:$16 sps:$4 sm:$0xff]  }
 0x6a6   :  { %7680 = vtanh.f32 %v9761_v1  ;;  %v2718_v40 = vadd.f32 %v2671_v59, %v11559_v61  ;;  %v2720_v21 = vadd.f32 %v2712_v60, %v11560_v62  ;;  %v2673_v63 = vpop.f32.mrb[78].mxu0  ;;  %v2714_v38 = vpop.f32.mrb[78].mxu1  ;;  %v8118_v59 = vld [vmem:[#allocation6 + $0x104] ss:$16 sps:$4 sm:$0xff]   ;;  %v8119_v60 = vld [vmem:[#allocation6 + $0x10c] ss:$16 sps:$4 sm:$0xff]  }
 0x6a7   :  { %v6979_v11 = vmul.f32 -1.442695, %v2717_v57  ;;  %v2674_v4 = vpop.f32.mrb[79].mxu0  ;;  %v2715_v10 = vpop.f32.mrb[79].mxu1  ;;  %v11561_v62 = vld [vmem:[#allocation62_spill] sm:$0xff]  ;;  %v11562_v63 = vld [vmem:[#allocation64_spill] sm:$0xff] }
 0x6a8   :  { %v6980_v16 = vmul.f32 -1.442695, %v2718_v40  ;;  %v6981_v25 = vmul.f32 -1.442695, %v2720_v21  ;;  %v11563_v10 = vld [vmem:[#allocation63_spill] sm:$0xff] }
 0x6a9   :  { %7682 = vpow2.f32 %v6979_v11 }
 0x6aa   :  { %7684 = vpow2.f32 %v6980_v16 }
 0x6ab   :  { %7686 = vpow2.f32 %v6981_v25 }
 0x6ac   :  { %7688 = vtanh.f32 %v2719_v53  ;;  %v8117_v53 = vld [vmem:[#allocation6 + $0xe8] ss:$16 sps:$4 sm:$0xff]  }
 0x6b0   :  { %v7681_v5 = vpop.eup %7680 }
 0x6b1   :  { %v9768_v13 = vmul.f32 %v7681_v5, %v7679_v18  ;;  %v11564_v18 = vld [vmem:[#allocation66_spill] sm:$0xff] }
 0x6b3   :  { %v7683_v28 = vpop.eup %7682  ;;  %v2752_v33 = vpack.c.bf16 %v9768_v13, %v9768_v13 }
 0x6b4   :  { %v7685_v54 = vpop.eup %7684  ;;  %v2727_v55 = vadd.f32 1.0, %v7683_v28 }
 0x6b5   :  { %v2728_v56 = vadd.f32 1.0, %v7685_v54  ;;  %2786 = vmatmul.mubr.bf16.vlgmr.msra.gmra.mrb[80].mxu0 %v2752_v33  ;;  %2827 = vmatmul.mubr.bf16.vlgmr.msra.gmra.mrb[80].mxu1 %v2752_v33 }
 0x6b6   :  { %7690 = vrcp.f32 %v2727_v55  ;;  %2870 = vmatpush1.bf16.msra.mxu0 %v9426_v20  ;;  %2911 = vmatpush1.bf16.msra.mxu1 %v9429_v43  ;;  %v7687_v20 = vpop.eup %7686 }
 0x6b7   :  { %7692 = vrcp.f32 %v2728_v56  ;;  %2871 = vmatprep.subr.bf16.mxu0 %v9432_v44  ;;  %2912 = vmatprep.subr.bf16.mxu1 %v9435_v45  ;;  %v7689_v43 = vpop.eup %7688 }
 0x6b8   :  { %2901 = vmatprep.mubr.bf16.mxu0 %v11353_v2  ;;  %2942 = vmatprep.mubr.bf16.mxu1 %v11353_v2 }
 0x6ba   :  { %2872 = vmatpush1.bf16.msra.mxu0 %v9440_v12  ;;  %2913 = vmatpush1.bf16.msra.mxu1 %v9443_v39  ;;  %v2737_v12 = vadd.f32 1.0, %v7687_v20 }
 0x6bb   :  { %2873 = vmatprep.subr.bf16.mxu0 %v9446_v46  ;;  %2914 = vmatprep.subr.bf16.mxu1 %v9449_v47 }
 0x6bc   :  { %7694 = vrcp.f32 %v2737_v12 }
 0x6be   :  { %2874 = vmatpush1.bf16.msra.mxu0 %v9452_v50  ;;  %2915 = vmatpush1.bf16.msra.mxu1 %v9455_v15 }
 0x6bf   :  { %2875 = vmatprep.subr.bf16.mxu0 %v9458_v23  ;;  %2916 = vmatprep.subr.bf16.mxu1 %v9461_v19  ;;  %v8091_v23 = vld [vmem:[#allocation6 + $0x2c] ss:$16 sps:$4 sm:$0xff]   ;;  %v8094_v19 = vld [vmem:[#allocation6 + $0x44] ss:$16 sps:$4 sm:$0xff]  }
 0x6c0   :  { %v7691_v44 = vpop.eup %7690 }
 0x6c1   :  { %v7693_v45 = vpop.eup %7692  ;;  %v2741_v57 = vmul.f32 %v7691_v44, %v7689_v43 }
 0x6c2   :  { %v2740_v39 = vmul.f32 %v7693_v45, %v9689_v32  ;;  %2876 = vmatpush1.bf16.msra.mxu0 %v9465_v7  ;;  %2917 = vmatpush1.bf16.msra.mxu1 %v9468_v22  ;;  %v8095_v7 = vld [vmem:[#allocation6 + $0x4c] ss:$16 sps:$4 sm:$0xff]   ;;  %v8096_v22 = vld [vmem:[#allocation6 + $0x40] ss:$16 sps:$4 sm:$0xff]   ;;  %v8110_v32 = vld [vmem:[#allocation6 + $0xc4] ss:$16 sps:$4 sm:$0xff]  }
 0x6c3   :  { %2877 = vmatprep.subr.bf16.mxu0 %v9471_v42  ;;  %2918 = vmatprep.subr.bf16.mxu1 %v9474_v24  ;;  %v8097_v42 = vld [vmem:[#allocation6 + $0x48] ss:$16 sps:$4 sm:$0xff]  }
 0x6c4   :  { %v9791_v46 = vadd.f32 %v2741_v57, %v2740_v39 }
 0x6c6   :  { %7696 = vtanh.f32 %v9791_v46  ;;  %2878 = vmatpush1.bf16.msra.mxu0 %v9480_v48  ;;  %2919 = vmatpush1.bf16.msra.mxu1 %v9483_v49  ;;  %v7695_v24 = vpop.eup %7694  ;;  %v8098_v48 = vld [vmem:[#allocation6 + $0x64] ss:$16 sps:$4 sm:$0xff]   ;;  %v8099_v49 = vld [vmem:[#allocation6 + $0x6c] ss:$16 sps:$4 sm:$0xff]  }
 0x6c7   :  { %2879 = vmatprep.subr.bf16.mxu0 %v9486_v30  ;;  %2920 = vmatprep.subr.bf16.mxu1 %v11501_v52  ;;  %v8100_v30 = vld [vmem:[#allocation6 + $0x60] ss:$16 sps:$4 sm:$0xff]   ;;  %v8103_v52 = vld [vmem:[#allocation6 + $0x8c] ss:$16 sps:$4 sm:$0xff]  }
 0x6ca   :  { %2880 = vmatpush1.bf16.msra.mxu0 %v11502_v34  ;;  %2921 = vmatpush1.bf16.msra.mxu1 %v11503_v29  ;;  %v8104_v34 = vld [vmem:[#allocation6 + $0x80] ss:$16 sps:$4 sm:$0xff]   ;;  %v8105_v29 = vld [vmem:[#allocation6 + $0x88] ss:$16 sps:$4 sm:$0xff]  }
 0x6cb   :  { %2881 = vmatprep.subr.bf16.mxu0 %v11504_v8  ;;  %2922 = vmatprep.subr.bf16.mxu1 %v11505_v6  ;;  %v8106_v8 = vld [vmem:[#allocation6 + $0xa4] ss:$16 sps:$4 sm:$0xff]   ;;  %v8107_v6 = vld [vmem:[#allocation6 + $0xac] ss:$16 sps:$4 sm:$0xff]  }
 0x6ce   :  { %2882 = vmatpush1.bf16.msra.mxu0 %v11506_v26  ;;  %2923 = vmatpush1.bf16.msra.mxu1 %v11507_v17  ;;  %v8108_v26 = vld [vmem:[#allocation6 + $0xa0] ss:$16 sps:$4 sm:$0xff]   ;;  %v8109_v17 = vld [vmem:[#allocation6 + $0xa8] ss:$16 sps:$4 sm:$0xff]  }
 0x6cf   :  { %2883 = vmatprep.subr.bf16.mxu0 %v9510_v36  ;;  %2924 = vmatprep.subr.bf16.mxu1 %v9513_v27  ;;  %v8101_v36 = vld [vmem:[#allocation6 + $0x68] ss:$16 sps:$4 sm:$0xff]   ;;  %v8102_v27 = vld [vmem:[#allocation6 + $0x84] ss:$16 sps:$4 sm:$0xff]  }
 0x6d0   :  { %v7697_v47 = vpop.eup %7696 }
 0x6d1   :  { %v9806_v50 = vmul.f32 %v7697_v47, %v7695_v24 }
 0x6d2   :  { %2884 = vmatpush1.bf16.msra.mxu0 %v9518_v51  ;;  %2925 = vmatpush1.bf16.msra.mxu1 %v9521_v31  ;;  %v8092_v51 = vld [vmem:[#allocation6 + $0x20] ss:$16 sps:$4 sm:$0xff]   ;;  %v8093_v31 = vld [vmem:[#allocation6 + $0x28] ss:$16 sps:$4 sm:$0xff]  }
 0x6d3   :  { %v2868_v15 = vpack.c.bf16 %v9806_v50, %v9806_v50  ;;  %2987 = vmatprep.subr.bf16.mxu0 %v9710_v37  ;;  %3028 = vmatprep.subr.bf16.mxu1 %v9713_v35  ;;  %v8111_v37 = vld [vmem:[#allocation6 + $0xcc] ss:$16 sps:$4 sm:$0xff]   ;;  %v8112_v35 = vld [vmem:[#allocation6 + $0xc0] ss:$16 sps:$4 sm:$0xff]  }
 0x6d5   :  { %2902 = vmatmul.mubr.bf16.vlgmr.msra.gmra.mrb[84].mxu0 %v2868_v15  ;;  %2943 = vmatmul.mubr.bf16.vlgmr.msra.gmra.mrb[84].mxu1 %v2868_v15 }
 0x6d6   :  { %2988 = vmatpush1.bf16.msra.mxu0 %v9716_v3  ;;  %3029 = vmatpush1.bf16.msra.mxu1 %v9719_v41  ;;  %v8113_v3 = vld [vmem:[#allocation6 + $0xc8] ss:$16 sps:$4 sm:$0xff]   ;;  %v8114_v41 = vld [vmem:[#allocation6 + $0xe4] ss:$16 sps:$4 sm:$0xff]  }
 0x6d7   :  { %2989 = vmatprep.subr.bf16.mxu0 %v9722_v14  ;;  %3030 = vmatprep.subr.bf16.mxu1 %v8091_v23  ;;  %v8115_v14 = vld [vmem:[#allocation6 + $0xec] ss:$16 sps:$4 sm:$0xff]  }
 0x6d8   :  { %3019 = vmatprep.mubr.bf16.mxu0 %v11353_v2  ;;  %3060 = vmatprep.mubr.bf16.mxu1 %v11353_v2 }
 0x6da   :  { %2990 = vmatpush1.bf16.msra.mxu0 %v8092_v51  ;;  %3031 = vmatpush1.bf16.msra.mxu1 %v8093_v31 }
 0x6db   :  { %2991 = vmatprep.subr.bf16.mxu0 %v8094_v19  ;;  %3032 = vmatprep.subr.bf16.mxu1 %v8095_v7 }
 0x6de   :  { %2992 = vmatpush1.bf16.msra.mxu0 %v8096_v22  ;;  %3033 = vmatpush1.bf16.msra.mxu1 %v8097_v42  ;;  %v11565_v22 = vld [vmem:[#allocation73_spill] sm:$0xff] }
 0x6df   :  { %2993 = vmatprep.subr.bf16.mxu0 %v8098_v48  ;;  %3034 = vmatprep.subr.bf16.mxu1 %v8099_v49  ;;  %v11566_v48 = vld [vmem:[#allocation76_spill] sm:$0xff] }
 0x6e2   :  { %2994 = vmatpush1.bf16.msra.mxu0 %v8100_v30  ;;  %3035 = vmatpush1.bf16.msra.mxu1 %v8101_v36 }
 0x6e3   :  { %2995 = vmatprep.subr.bf16.mxu0 %v8102_v27  ;;  %3036 = vmatprep.subr.bf16.mxu1 %v8103_v52  ;;  %v11567_v27 = vld [vmem:[#allocation75_spill] sm:$0xff] }
 0x6e6   :  { %2996 = vmatpush1.bf16.msra.mxu0 %v8104_v34  ;;  %3037 = vmatpush1.bf16.msra.mxu1 %v8105_v29  ;;  %v11568_v34 = vld [vmem:[#allocation77_spill] sm:$0xff] }
 0x6e7   :  { %2997 = vmatprep.subr.bf16.mxu0 %v8106_v8  ;;  %3038 = vmatprep.subr.bf16.mxu1 %v8107_v6 }
 0x6ea   :  { %2998 = vmatpush1.bf16.msra.mxu0 %v8108_v26  ;;  %3039 = vmatpush1.bf16.msra.mxu1 %v8109_v17 }
 0x6eb   :  { %2999 = vmatprep.subr.bf16.mxu0 %v8110_v32  ;;  %3040 = vmatprep.subr.bf16.mxu1 %v8111_v37 }
 0x6ee   :  { %3000 = vmatpush1.bf16.msra.mxu0 %v8112_v35  ;;  %3041 = vmatpush1.bf16.msra.mxu1 %v8113_v3 }
 0x6ef   :  { %3001 = vmatprep.subr.bf16.mxu0 %v8114_v41  ;;  %3042 = vmatprep.subr.bf16.mxu1 %v8115_v14 }
 0x6f2   :  { %3002 = vmatpush1.bf16.msra.mxu0 %v8116_v58  ;;  %3043 = vmatpush1.bf16.msra.mxu1 %v8117_v53 }
 0x6f3   :  { %3102 = vmatprep.subr.bf16.mxu0 %v8118_v59  ;;  %3143 = vmatprep.subr.bf16.mxu1 %v8119_v60 }
 0x788   :  { %v2787_v61 = vpop.f32.mrb[80].mxu0  ;;  %v2828_v40 = vpop.f32.mrb[80].mxu1 }
 0x789   :  { %v2835_v21 = vadd.f32 %v2787_v61, %v11561_v62  ;;  %v2837_v38 = vadd.f32 %v2828_v40, %v11562_v63  ;;  %v2789_v11 = vpop.f32.mrb[81].mxu0  ;;  %v2830_v4 = vpop.f32.mrb[81].mxu1  ;;  %v8120_v61 = vld [vmem:[#allocation6 + $0x100] ss:$16 sps:$4 sm:$0xff]   ;;  %v8121_v40 = vld [vmem:[#allocation6 + $0x108] ss:$16 sps:$4 sm:$0xff]  }
 0x78a   :  { %v2836_v16 = vadd.f32 %v2789_v11, %v11563_v10  ;;  %v2838_v5 = vadd.f32 %v2830_v4, %v11564_v18  ;;  %v2791_v25 = vpop.f32.mrb[82].mxu0  ;;  %v2832_v28 = vpop.f32.mrb[82].mxu1  ;;  %v8122_v62 = vld [vmem:[#allocation6 + $0x124] ss:$16 sps:$4 sm:$0xff]   ;;  %v8124_v63 = vld [vmem:[#allocation6 + $0x120] ss:$16 sps:$4 sm:$0xff]  }
 0x78b   :  { %v6982_v33 = vmul.f32 -1.442695, %v2835_v21  ;;  %v2792_v54 = vpop.f32.mrb[83].mxu0  ;;  %v2833_v55 = vpop.f32.mrb[83].mxu1  ;;  %v8123_v21 = vld [vmem:[#allocation6 + $0x12c] ss:$16 sps:$4 sm:$0xff]  }
 0x78c   :  { %v6983_v56 = vmul.f32 -1.442695, %v2836_v16  ;;  %v6984_v20 = vmul.f32 -1.442695, %v2838_v5  ;;  %v8126_v11 = vld [vmem:[#allocation6 + $0x144] ss:$16 sps:$4 sm:$0xff]  }
 0x78d   :  { %7698 = vpow2.f32 %v6982_v33  ;;  %v8127_v4 = vld [vmem:[#allocation6 + $0x14c] ss:$16 sps:$4 sm:$0xff]   ;;  %v8128_v16 = vld [vmem:[#allocation6 + $0x140] ss:$16 sps:$4 sm:$0xff]   ;;  %v8129_v18 = vld [vmem:[#allocation6 + $0x148] ss:$16 sps:$4 sm:$0xff]  }
 0x78e   :  { %7700 = vpow2.f32 %v6983_v56  ;;  %v8130_v25 = vld [vmem:[#allocation6 + $0x164] ss:$16 sps:$4 sm:$0xff]   ;;  %v8131_v28 = vld [vmem:[#allocation6 + $0x16c] ss:$16 sps:$4 sm:$0xff]  }
 0x78f   :  { %7702 = vpow2.f32 %v6984_v20 }
 0x790   :  { %7704 = vtanh.f32 %v2837_v38  ;;  %v8125_v38 = vld [vmem:[#allocation6 + $0x128] ss:$16 sps:$4 sm:$0xff]  }
 0x797   :  { %v7699_v43 = vpop.eup %7698 }
 0x798   :  { %v7701_v44 = vpop.eup %7700  ;;  %v2845_v45 = vadd.f32 1.0, %v7699_v43  ;;  %v8132_v43 = vld [vmem:[#allocation6 + $0x160] ss:$16 sps:$4 sm:$0xff]  }
 0x799   :  { %v2846_v57 = vadd.f32 1.0, %v7701_v44  ;;  %v7703_v12 = vpop.eup %7702  ;;  %v8133_v44 = vld [vmem:[#allocation6 + $0x168] ss:$16 sps:$4 sm:$0xff]  }
 0x79a   :  { %7706 = vrcp.f32 %v2845_v45  ;;  %v7705_v39 = vpop.eup %7704  ;;  %v2855_v23 = vadd.f32 1.0, %v7703_v12  ;;  %v8134_v45 = vld [vmem:[#allocation6 + $0x184] ss:$16 sps:$4 sm:$0xff]  }
 0x79b   :  { %7708 = vrcp.f32 %v2846_v57  ;;  %v8135_v57 = vld [vmem:[#allocation6 + $0x18c] ss:$16 sps:$4 sm:$0xff]  }
 0x79c   :  { %7710 = vrcp.f32 %v2855_v23  ;;  %v8141_v23 = vld [vmem:[#allocation6 + $0x1a8] ss:$16 sps:$4 sm:$0xff]  }
 0x7a4   :  { %v7707_v24 = vpop.eup %7706 }
 0x7a5   :  { %v7709_v47 = vpop.eup %7708  ;;  %v2859_v15 = vmul.f32 %v7707_v24, %v7705_v39  ;;  %v8136_v39 = vld [vmem:[#allocation6 + $0x180] ss:$16 sps:$4 sm:$0xff]   ;;  %v8137_v24 = vld [vmem:[#allocation6 + $0x188] ss:$16 sps:$4 sm:$0xff]  }
 0x7a6   :  { %v2858_v51 = vmul.f32 %v7709_v47, %v9761_v1  ;;  %v7711_v37 = vpop.eup %7710  ;;  %v8138_v47 = vld [vmem:[#allocation6 + $0x1a4] ss:$16 sps:$4 sm:$0xff]  }
 0x7a8   :  { %v9824_v31 = vadd.f32 %v2859_v15, %v2858_v51  ;;  %v2903_v19 = vpop.f32.mrb[84].mxu0  ;;  %v2944_v7 = vpop.f32.mrb[84].mxu1  ;;  %v8140_v15 = vld [vmem:[#allocation6 + $0x1a0] ss:$16 sps:$4 sm:$0xff]   ;;  %v8142_v51 = vld [vmem:[#allocation6 + $0x1c4] ss:$16 sps:$4 sm:$0xff]  }
 0x7a9   :  { %v2951_v42 = vadd.f32 %v2903_v19, %v11565_v22  ;;  %v2953_v49 = vadd.f32 %v2944_v7, %v11566_v48  ;;  %v2905_v30 = vpop.f32.mrb[85].mxu0  ;;  %v2946_v36 = vpop.f32.mrb[85].mxu1  ;;  %v8143_v19 = vld [vmem:[#allocation6 + $0x1cc] ss:$16 sps:$4 sm:$0xff]   ;;  %v8144_v7 = vld [vmem:[#allocation6 + $0x1c0] ss:$16 sps:$4 sm:$0xff]  }
 0x7aa   :  { %7712 = vtanh.f32 %v9824_v31  ;;  %v2952_v52 = vadd.f32 %v2905_v30, %v11567_v27  ;;  %v2954_v29 = vadd.f32 %v2946_v36, %v11568_v34  ;;  %v2907_v8 = vpop.f32.mrb[86].mxu0  ;;  %v2948_v6 = vpop.f32.mrb[86].mxu1  ;;  %v8145_v22 = vld [vmem:[#allocation6 + $0x1c8] ss:$16 sps:$4 sm:$0xff]   ;;  %v8146_v48 = vld [vmem:[#allocation6 + $0x1e4] ss:$16 sps:$4 sm:$0xff]  }
 0x7ab   :  { %v6985_v1 = vmul.f32 -1.442695, %v2951_v42  ;;  %v2908_v26 = vpop.f32.mrb[87].mxu0  ;;  %v2949_v17 = vpop.f32.mrb[87].mxu1  ;;  %v8148_v27 = vld [vmem:[#allocation6 + $0x1e0] ss:$16 sps:$4 sm:$0xff]  }
 0x7ac   :  { %v6986_v32 = vmul.f32 -1.442695, %v2952_v52  ;;  %v6987_v3 = vmul.f32 -1.442695, %v2954_v29  ;;  %v8149_v52 = vld [vmem:[#allocation6 + $0x1e8] ss:$16 sps:$4 sm:$0xff]  }
 0x7ad   :  { %7714 = vpow2.f32 %v6985_v1  ;;  %v3239_v29 = vld [vmem:[#allocation8] sm:$0xff]  ;;  %v3240_v6 = vld [vmem:[#allocation8 + $0x8] sm:$0xff] }
 0x7ae   :  { %7716 = vpow2.f32 %v6986_v32  ;;  %v3243_v8 = vld [vmem:[#allocation8 + $0x20] sm:$0xff]  ;;  %v3244_v26 = vld [vmem:[#allocation8 + $0x28] sm:$0xff] }
 0x7af   :  { %7718 = vpow2.f32 %v6987_v3  ;;  %v6995_v1 = vcombine.high %v3239_v29, %v3243_v8  ;;  %v6994_v17 = vcombine.low %v3239_v29, %v3243_v8  ;;  %v6996_v32 = vcombine.low %v3240_v6, %v3244_v26  ;;  %v3251_v3 = vld [vmem:[#allocation8 + $0x60] sm:$0xff] }
 0x7b0   :  { %7720 = vtanh.f32 %v2953_v49  ;;  %v8147_v49 = vld [vmem:[#allocation6 + $0x1ec] ss:$16 sps:$4 sm:$0xff]   ;;  %v3295_v8 = vld [vmem:[#allocation8 + $0x1c0] sm:$0xff] }
 0x7b4   :  { %v7713_v35 = vpop.eup %7712 }
 0x7b5   :  { %v9831_v41 = vmul.f32 %v7713_v35, %v7711_v37  ;;  %v6997_v37 = vcombine.high %v3240_v6, %v3244_v26  ;;  %v3247_v35 = vld [vmem:[#allocation8 + $0x40] sm:$0xff] }
 0x7b6   :  { %v3299_v6 = vld [vmem:[#allocation8 + $0x1e0] sm:$0xff] }
 0x7b7   :  { %v7715_v14 = vpop.eup %7714  ;;  %v2986_v58 = vpack.c.bf16 %v9831_v41, %v9831_v41  ;;  %v7051_v26 = vcombine.high %v3295_v8, %v3299_v6 }
 0x7b8   :  { %v7717_v53 = vpop.eup %7716  ;;  %v2961_v59 = vadd.f32 1.0, %v7715_v14  ;;  %v3248_v14 = vld [vmem:[#allocation8 + $0x48] sm:$0xff] }
 0x7b9   :  { %v2962_v60 = vadd.f32 1.0, %v7717_v53  ;;  %3020 = vmatmul.mubr.bf16.vlgmr.msra.gmra.mrb[88].mxu0 %v2986_v58  ;;  %3061 = vmatmul.mubr.bf16.vlgmr.msra.gmra.mrb[88].mxu1 %v2986_v58  ;;  %v7719_v10 = vpop.eup %7718  ;;  %v7003_v58 = vcombine.high %v3247_v35, %v3251_v3  ;;  %v3252_v53 = vld [vmem:[#allocation8 + $0x68] sm:$0xff] }
 0x7ba   :  { %7722 = vrcp.f32 %v2961_v59  ;;  %3103 = vmatpush1.bf16.msra.mxu0 %v8120_v61  ;;  %3144 = vmatpush1.bf16.msra.mxu1 %v8121_v40  ;;  %v7721_v5 = vpop.eup %7720  ;;  %v2971_v56 = vadd.f32 1.0, %v7719_v10  ;;  %v7002_v59 = vcombine.low %v3247_v35, %v3251_v3  ;;  %v7005_v61 = vcombine.high %v3248_v14, %v3252_v53  ;;  %v3255_v40 = vld [vmem:[#allocation8 + $0x80] sm:$0xff] }
 0x7bb   :  { %7724 = vrcp.f32 %v2962_v60  ;;  %3104 = vmatprep.subr.bf16.mxu0 %v8122_v62  ;;  %3145 = vmatprep.subr.bf16.mxu1 %v8123_v21  ;;  %v7004_v60 = vcombine.low %v3248_v14, %v3252_v53  ;;  %v3259_v62 = vld [vmem:[#allocation8 + $0xa0] sm:$0xff]  ;;  %v3256_v21 = vld [vmem:[#allocation8 + $0x88] sm:$0xff] }
 0x7bc   :  { %3134 = vmatprep.mubr.bf16.mxu0 %v11353_v2  ;;  %3175 = vmatprep.mubr.bf16.mxu1 %v11353_v2  ;;  %7726 = vrcp.f32 %v2971_v56  ;;  %v3271_v56 = vld [vmem:[#allocation8 + $0x100] sm:$0xff] }
 0x7bd   :  { %v3303_v3 = vld [vmem:[#allocation8 + $0x200] sm:$0xff] }
 0x7be   :  { %3105 = vmatpush1.bf16.msra.mxu0 %v8124_v63  ;;  %3146 = vmatpush1.bf16.msra.mxu1 %v8125_v38  ;;  %v7011_v63 = vcombine.high %v3255_v40, %v3259_v62  ;;  %v3260_v38 = vld [vmem:[#allocation8 + $0xa8] sm:$0xff]  ;;  %v3307_v14 = vld [vmem:[#allocation8 + $0x220] sm:$0xff] }
 0x7bf   :  { %3106 = vmatprep.subr.bf16.mxu0 %v8126_v11  ;;  %3147 = vmatprep.subr.bf16.mxu1 %v8127_v4  ;;  %v7010_v11 = vcombine.low %v3255_v40, %v3259_v62  ;;  %v7012_v4 = vcombine.low %v3256_v21, %v3260_v38  ;;  %v7013_v10 = vcombine.high %v3256_v21, %v3260_v38  ;;  %v3311_v62 = vld [vmem:[#allocation8 + $0x240] sm:$0xff] }
 0x7c0   :  { %v7059_v53 = vcombine.high %v3303_v3, %v3307_v14  ;;  %v3315_v21 = vld [vmem:[#allocation8 + $0x260] sm:$0xff] }
 0x7c1   :  { %v7067_v38 = vcombine.high %v3311_v62, %v3315_v21 }
 0x7c2   :  { %3107 = vmatpush1.bf16.msra.mxu0 %v8128_v16  ;;  %3148 = vmatpush1.bf16.msra.mxu1 %v8129_v18  ;;  %v3263_v16 = vld [vmem:[#allocation8 + $0xc0] sm:$0xff] }
 0x7c3   :  { %3108 = vmatprep.subr.bf16.mxu0 %v8130_v25  ;;  %3149 = vmatprep.subr.bf16.mxu1 %v8131_v28  ;;  %v3267_v18 = vld [vmem:[#allocation8 + $0xe0] sm:$0xff]  ;;  %v3268_v28 = vld [vmem:[#allocation8 + $0xe8] sm:$0xff] }
 0x7c4   :  { %v7723_v33 = vpop.eup %7722  ;;  %v7019_v25 = vcombine.high %v3263_v16, %v3267_v18 }
 0x7c5   :  { %v7725_v54 = vpop.eup %7724  ;;  %v2975_v55 = vmul.f32 %v7723_v33, %v7721_v5  ;;  %v3264_v5 = vld [vmem:[#allocation8 + $0xc8] sm:$0xff]  ;;  %v7018_v33 = vcombine.low %v3263_v16, %v3267_v18  ;;  %v3319_v18 = vld [vmem:[#allocation8 + $0x280] sm:$0xff] }
 0x7c6   :  { %v2974_v20 = vmul.f32 %v7725_v54, %v9791_v46  ;;  %3109 = vmatpush1.bf16.msra.mxu0 %v8132_v43  ;;  %3150 = vmatpush1.bf16.msra.mxu1 %v8133_v44  ;;  %v8139_v46 = vld [vmem:[#allocation6 + $0x1ac] ss:$16 sps:$4 sm:$0xff]   ;;  %v7727_v42 = vpop.eup %7726  ;;  %v7020_v54 = vcombine.low %v3264_v5, %v3268_v28 }
 0x7c7   :  { %3110 = vmatprep.subr.bf16.mxu0 %v8134_v45  ;;  %3151 = vmatprep.subr.bf16.mxu1 %v8135_v57  ;;  %v3272_v43 = vld [vmem:[#allocation8 + $0x108] sm:$0xff] }
 0x7c8   :  { %v9838_v12 = vadd.f32 %v2975_v55, %v2974_v20  ;;  %v7021_v55 = vcombine.high %v3264_v5, %v3268_v28  ;;  %v3275_v20 = vld [vmem:[#allocation8 + $0x120] sm:$0xff]  ;;  %v3276_v45 = vld [vmem:[#allocation8 + $0x128] sm:$0xff] }
 0x7c9   :  { %v7027_v44 = vcombine.high %v3271_v56, %v3275_v20  ;;  %v7026_v57 = vcombine.low %v3271_v56, %v3275_v20  ;;  %v3323_v5 = vld [vmem:[#allocation8 + $0x2a0] sm:$0xff] }
 0x7ca   :  { %7728 = vtanh.f32 %v9838_v12  ;;  %3111 = vmatpush1.bf16.msra.mxu0 %v8136_v39  ;;  %3152 = vmatpush1.bf16.msra.mxu1 %v8137_v24  ;;  %v7028_v39 = vcombine.low %v3272_v43, %v3276_v45  ;;  %v7029_v24 = vcombine.high %v3272_v43, %v3276_v45  ;;  %v7075_v28 = vcombine.high %v3319_v18, %v3323_v5  ;;  %v3327_v20 = vld [vmem:[#allocation8 + $0x2c0] sm:$0xff] }
 0x7cb   :  { %3112 = vmatprep.subr.bf16.mxu0 %v8138_v47  ;;  %3153 = vmatprep.subr.bf16.mxu1 %v8139_v46  ;;  %v3279_v47 = vld [vmem:[#allocation8 + $0x140] sm:$0xff] }
 0x7cc   :  { %v3283_v46 = vld [vmem:[#allocation8 + $0x160] sm:$0xff] }
 0x7cd   :  { %v3331_v43 = vld [vmem:[#allocation8 + $0x2e0] sm:$0xff] }
 0x7ce   :  { %3113 = vmatpush1.bf16.msra.mxu0 %v8140_v15  ;;  %3154 = vmatpush1.bf16.msra.mxu1 %v8141_v23  ;;  %v3280_v15 = vld [vmem:[#allocation8 + $0x148] sm:$0xff]  ;;  %v7035_v23 = vcombine.high %v3279_v47, %v3283_v46  ;;  %v7083_v45 = vcombine.high %v3327_v20, %v3331_v43 }
 0x7cf   :  { %3114 = vmatprep.subr.bf16.mxu0 %v8142_v51  ;;  %3155 = vmatprep.subr.bf16.mxu1 %v8143_v19  ;;  %v3284_v51 = vld [vmem:[#allocation8 + $0x168] sm:$0xff]  ;;  %v7034_v19 = vcombine.low %v3279_v47, %v3283_v46  ;;  %v3335_v46 = vld [vmem:[#allocation8 + $0x300] sm:$0xff] }
 0x7d2   :  { %3115 = vmatpush1.bf16.msra.mxu0 %v8144_v7  ;;  %3156 = vmatpush1.bf16.msra.mxu1 %v8145_v22  ;;  %v7036_v7 = vcombine.low %v3280_v15, %v3284_v51  ;;  %v7037_v22 = vcombine.high %v3280_v15, %v3284_v51  ;;  %v3339_v15 = vld [vmem:[#allocation8 + $0x320] sm:$0xff] }
 0x7d3   :  { %3116 = vmatprep.subr.bf16.mxu0 %v8146_v48  ;;  %3157 = vmatprep.subr.bf16.mxu1 %v8147_v49  ;;  %v3291_v48 = vld [vmem:[#allocation8 + $0x1a0] sm:$0xff]  ;;  %v3288_v49 = vld [vmem:[#allocation8 + $0x188] sm:$0xff]  ;;  %v7091_v51 = vcombine.high %v3335_v46, %v3339_v15 }
 0x7d4   :  { %v7729_v30 = vpop.eup %7728 }
 0x7d5   :  { %v9841_v36 = vmul.f32 %v7729_v30, %v7727_v42  ;;  %v3287_v42 = vld [vmem:[#allocation8 + $0x180] sm:$0xff] }
 0x7d6   :  { %3117 = vmatpush1.bf16.msra.mxu0 %v8148_v27  ;;  %3158 = vmatpush1.bf16.msra.mxu1 %v8149_v52  ;;  %v7043_v30 = vcombine.high %v3287_v42, %v3291_v48  ;;  %v3292_v27 = vld [vmem:[#allocation8 + $0x1a8] sm:$0xff]  ;;  %v7042_v52 = vcombine.low %v3287_v42, %v3291_v48  ;;  %v3343_v48 = vld [vmem:[#allocation8 + $0x340] sm:$0xff] }
 0x7d7   :  { %v3101_v34 = vpack.c.bf16 %v9841_v36, %v9841_v36  ;;  %4007 = vmatprep.subr.bf16.mxu0 %v6995_v1  ;;  %4080 = vmatprep.subr.bf16.mxu1 %v6997_v37  ;;  %v7045_v29 = vcombine.high %v3288_v49, %v3292_v27  ;;  %v3296_v1 = vld [vmem:[#allocation8 + $0x1c8] sm:$0xff] }
 0x7d9   :  { %3135 = vmatmul.mubr.bf16.vlgmr.msra.gmra.mrb[92].mxu0 %v3101_v34  ;;  %3176 = vmatmul.mubr.bf16.vlgmr.msra.gmra.mrb[92].mxu1 %v3101_v34  ;;  %v7044_v34 = vcombine.low %v3288_v49, %v3292_v27  ;;  %v3347_v49 = vld [vmem:[#allocation8 + $0x360] sm:$0xff] }
 0x7da   :  { %4008 = vmatpush1.bf16.msra.mxu0 %v6994_v17  ;;  %4081 = vmatpush1.bf16.msra.mxu1 %v6996_v32  ;;  %v3300_v17 = vld [vmem:[#allocation8 + $0x1e8] sm:$0xff]  ;;  %v7050_v32 = vcombine.low %v3295_v8, %v3299_v6  ;;  %v7098_v27 = vcombine.low %v3343_v48, %v3347_v49  ;;  %v3355_v8 = vld [vmem:[#allocation8 + $0x3a0] sm:$0xff] }
 0x7db   :  { %4009 = vmatprep.subr.bf16.mxu0 %v7003_v58  ;;  %4082 = vmatprep.subr.bf16.mxu1 %v7005_v61  ;;  %v7052_v37 = vcombine.low %v3296_v1, %v3300_v17  ;;  %v7053_v35 = vcombine.high %v3296_v1, %v3300_v17  ;;  %v3304_v58 = vld [vmem:[#allocation8 + $0x208] sm:$0xff] }
 0x7dc   :  { %v3352_v17 = vld [vmem:[#allocation8 + $0x388] sm:$0xff] }
 0x7de   :  { %4010 = vmatpush1.bf16.msra.mxu0 %v7002_v59  ;;  %4083 = vmatpush1.bf16.msra.mxu1 %v7004_v60  ;;  %v3308_v59 = vld [vmem:[#allocation8 + $0x228] sm:$0xff]  ;;  %v7058_v60 = vcombine.low %v3303_v3, %v3307_v14  ;;  %v3363_v3 = vld [vmem:[#allocation8 + $0x3e0] sm:$0xff] }
 0x7df   :  { %4011 = vmatprep.subr.bf16.mxu0 %v7011_v63  ;;  %4084 = vmatprep.subr.bf16.mxu1 %v7013_v10  ;;  %v7060_v61 = vcombine.low %v3304_v58, %v3308_v59  ;;  %v7061_v40 = vcombine.high %v3304_v58, %v3308_v59  ;;  %v3312_v63 = vld [vmem:[#allocation8 + $0x248] sm:$0xff] }
 0x7e0   :  { %v3360_v14 = vld [vmem:[#allocation8 + $0x3c8] sm:$0xff] }
 0x7e1   :  { %v3364_v58 = vld [vmem:[#allocation8 + $0x3e8] sm:$0xff] }
 0x7e2   :  { %4012 = vmatpush1.bf16.msra.mxu0 %v7010_v11  ;;  %4085 = vmatpush1.bf16.msra.mxu1 %v7012_v4  ;;  %v3316_v11 = vld [vmem:[#allocation8 + $0x268] sm:$0xff]  ;;  %v7066_v4 = vcombine.low %v3311_v62, %v3315_v21  ;;  %v7116_v62 = vcombine.low %v3360_v14, %v3364_v58  ;;  %v9845_v21 = vld [vmem:[#allocation8 + $0x10] sm:$0xff] }
 0x7e3   :  { %4013 = vmatprep.subr.bf16.mxu0 %v7019_v25  ;;  %4086 = vmatprep.subr.bf16.mxu1 %v7021_v55  ;;  %v7068_v10 = vcombine.low %v3312_v63, %v3316_v11  ;;  %v7069_v16 = vcombine.high %v3312_v63, %v3316_v11  ;;  %v3320_v25 = vld [vmem:[#allocation8 + $0x288] sm:$0xff]  ;;  %v9847_v63 = vld [vmem:[#allocation8 + $0x30] sm:$0xff] }
 0x7e4   :  { %v6999_v11 = vcombine.high %v9845_v21, %v9847_v63 }
 0x7e6   :  { %4014 = vmatpush1.bf16.msra.mxu0 %v7018_v33  ;;  %4087 = vmatpush1.bf16.msra.mxu1 %v7020_v54  ;;  %v3324_v33 = vld [vmem:[#allocation8 + $0x2a8] sm:$0xff]  ;;  %v7074_v54 = vcombine.low %v3319_v18, %v3323_v5 }
 0x7e7   :  { %4015 = vmatprep.subr.bf16.mxu0 %v7027_v44  ;;  %4088 = vmatprep.subr.bf16.mxu1 %v7029_v24  ;;  %v7076_v55 = vcombine.low %v3320_v25, %v3324_v33  ;;  %v7077_v56 = vcombine.high %v3320_v25, %v3324_v33  ;;  %v3328_v44 = vld [vmem:[#allocation8 + $0x2c8] sm:$0xff] }
 0x7ea   :  { %4016 = vmatpush1.bf16.msra.mxu0 %v7026_v57  ;;  %4089 = vmatpush1.bf16.msra.mxu1 %v7028_v39  ;;  %v3332_v57 = vld [vmem:[#allocation8 + $0x2e8] sm:$0xff]  ;;  %v7082_v39 = vcombine.low %v3327_v20, %v3331_v43  ;;  %v11571_v43 = vld [vmem:[#allocation67_spill] sm:$0xff] }
 0x7eb   :  { %4017 = vmatprep.subr.bf16.mxu0 %v7035_v23  ;;  %4090 = vmatprep.subr.bf16.mxu1 %v7037_v22  ;;  %v7084_v24 = vcombine.low %v3328_v44, %v3332_v57  ;;  %v7085_v47 = vcombine.high %v3328_v44, %v3332_v57  ;;  %v3336_v23 = vld [vmem:[#allocation8 + $0x308] sm:$0xff] }
 0x7ee   :  { %4018 = vmatpush1.bf16.msra.mxu0 %v7034_v19  ;;  %4091 = vmatpush1.bf16.msra.mxu1 %v7036_v7  ;;  %v3340_v19 = vld [vmem:[#allocation8 + $0x328] sm:$0xff]  ;;  %v7090_v7 = vcombine.low %v3335_v46, %v3339_v15 }
 0x7ef   :  { %4019 = vmatprep.subr.bf16.mxu0 %v7043_v30  ;;  %4092 = vmatprep.subr.bf16.mxu1 %v7045_v29  ;;  %v7092_v22 = vcombine.low %v3336_v23, %v3340_v19  ;;  %v7093_v42 = vcombine.high %v3336_v23, %v3340_v19  ;;  %v3344_v30 = vld [vmem:[#allocation8 + $0x348] sm:$0xff]  ;;  %v3351_v29 = vld [vmem:[#allocation8 + $0x380] sm:$0xff] }
 0x7f2   :  { %4020 = vmatpush1.bf16.msra.mxu0 %v7042_v52  ;;  %4093 = vmatpush1.bf16.msra.mxu1 %v7044_v34  ;;  %v7099_v52 = vcombine.high %v3343_v48, %v3347_v49  ;;  %v3348_v34 = vld [vmem:[#allocation8 + $0x368] sm:$0xff] }
 0x7f3   :  { %4021 = vmatprep.subr.bf16.mxu0 %v7051_v26  ;;  %4094 = vmatprep.subr.bf16.mxu1 %v7053_v35  ;;  %v7100_v6 = vcombine.low %v3344_v30, %v3348_v34  ;;  %v7101_v1 = vcombine.high %v3344_v30, %v3348_v34  ;;  %v7107_v26 = vcombine.high %v3351_v29, %v3355_v8  ;;  %v3359_v35 = vld [vmem:[#allocation8 + $0x3c0] sm:$0xff] }
 0x7f6   :  { %4022 = vmatpush1.bf16.msra.mxu0 %v7050_v32  ;;  %4095 = vmatpush1.bf16.msra.mxu1 %v7052_v37  ;;  %v3356_v32 = vld [vmem:[#allocation8 + $0x3a8] sm:$0xff] }
 0x7f7   :  { %4023 = vmatprep.subr.bf16.mxu0 %v7059_v53  ;;  %4096 = vmatprep.subr.bf16.mxu1 %v7061_v40  ;;  %v7109_v37 = vcombine.high %v3352_v17, %v3356_v32  ;;  %v7106_v53 = vcombine.low %v3351_v29, %v3355_v8  ;;  %v7108_v59 = vcombine.low %v3352_v17, %v3356_v32  ;;  %v11574_v32 = vld [vmem:[#allocation72_spill] sm:$0xff] }
 0x7f8   :  { %v7114_v40 = vcombine.low %v3359_v35, %v3363_v3 }
 0x7fa   :  { %4024 = vmatpush1.bf16.msra.mxu0 %v7058_v60  ;;  %4097 = vmatpush1.bf16.msra.mxu1 %v7060_v61  ;;  %v7115_v60 = vcombine.high %v3359_v35, %v3363_v3  ;;  %v7117_v61 = vcombine.high %v3360_v14, %v3364_v58  ;;  %v11575_v14 = vld [vmem:[#allocation71_spill] sm:$0xff] }
 0x7fb   :  { %4025 = vmatprep.subr.bf16.mxu0 %v7067_v38  ;;  %4098 = vmatprep.subr.bf16.mxu1 %v7069_v16  ;;  %v9849_v38 = vld [vmem:[#allocation8 + $0x18] sm:$0xff] }
 0x7fe   :  { %4026 = vmatpush1.bf16.msra.mxu0 %v7066_v4  ;;  %4099 = vmatpush1.bf16.msra.mxu1 %v7068_v10  ;;  %v9853_v4 = vld [vmem:[#allocation8 + $0x38] sm:$0xff]  ;;  %v6998_v10 = vcombine.low %v9845_v21, %v9847_v63 }
 0x7ff   :  { %4027 = vmatprep.subr.bf16.mxu0 %v7075_v28  ;;  %4100 = vmatprep.subr.bf16.mxu1 %v7077_v56  ;;  %v7000_v16 = vcombine.low %v9849_v38, %v9853_v4  ;;  %v7001_v18 = vcombine.high %v9849_v38, %v9853_v4  ;;  %v11569_v28 = vld [vmem:[#allocation65_spill] sm:$0xff]  ;;  %v11581_v38 = vld [vmem:[#allocation34_spill] sm:$0xff] }
 0x800   :  { %v11582_v4 = vld [vmem:[#allocation45_spill] sm:$0xff] }
 0x802   :  { %4028 = vmatpush1.bf16.msra.mxu0 %v7074_v54  ;;  %4101 = vmatpush1.bf16.msra.mxu1 %v7076_v55  ;;  %v11570_v54 = vld [vmem:[#allocation68_spill] sm:$0xff] }
 0x803   :  { %4029 = vmatprep.subr.bf16.mxu0 %v7083_v45  ;;  %4102 = vmatprep.subr.bf16.mxu1 %v7085_v47  ;;  %v11572_v45 = vld [vmem:[#allocation69_spill] sm:$0xff] }
 0x806   :  { %4030 = vmatpush1.bf16.msra.mxu0 %v7082_v39  ;;  %4103 = vmatpush1.bf16.msra.mxu1 %v7084_v24 }
 0x807   :  { %4031 = vmatprep.subr.bf16.mxu0 %v7091_v51  ;;  %4104 = vmatprep.subr.bf16.mxu1 %v7093_v42 }
 0x80a   :  { %4032 = vmatpush1.bf16.msra.mxu0 %v7090_v7  ;;  %4105 = vmatpush1.bf16.msra.mxu1 %v7092_v22 }
 0x80b   :  { %4033 = vmatprep.subr.bf16.mxu0 %v7099_v52  ;;  %4106 = vmatprep.subr.bf16.mxu1 %v7101_v1 }
 0x80e   :  { %4034 = vmatpush1.bf16.msra.mxu0 %v7098_v27  ;;  %4107 = vmatpush1.bf16.msra.mxu1 %v7100_v6 }
 0x80f   :  { %4035 = vmatprep.subr.bf16.mxu0 %v7107_v26  ;;  %4108 = vmatprep.subr.bf16.mxu1 %v7109_v37  ;;  %v11573_v26 = vld [vmem:[#allocation70_spill] sm:$0xff] }
 0x812   :  { %4036 = vmatpush1.bf16.msra.mxu0 %v7106_v53  ;;  %4109 = vmatpush1.bf16.msra.mxu1 %v7108_v59  ;;  %v11576_v53 = vld [vmem:[#allocation74_spill] sm:$0xff] }
 0x813   :  { %4037 = vmatprep.subr.bf16.mxu0 %v7115_v60  ;;  %4110 = vmatprep.subr.bf16.mxu1 %v7117_v61 }
 0x816   :  { %4038 = vmatpush1.bf16.msra.mxu0 %v7114_v40  ;;  %4111 = vmatpush1.bf16.msra.mxu1 %v7116_v62 }
 0x817   :  { %4153 = vmatprep.subr.bf16.mxu0 %v6999_v11  ;;  %4226 = vmatprep.subr.bf16.mxu1 %v7001_v18 }
 0x88c   :  { %v3021_v5 = vpop.f32.mrb[88].mxu0  ;;  %v3062_v25 = vpop.f32.mrb[88].mxu1 }
 0x88d   :  { %v3069_v33 = vadd.f32 %v3021_v5, %v11569_v28  ;;  %v3071_v55 = vadd.f32 %v3062_v25, %v11570_v54  ;;  %v3023_v56 = vpop.f32.mrb[89].mxu0  ;;  %v3064_v20 = vpop.f32.mrb[89].mxu1 }
 0x88e   :  { %v3070_v44 = vadd.f32 %v3023_v56, %v11571_v43  ;;  %v3072_v57 = vadd.f32 %v3064_v20, %v11572_v45  ;;  %v3025_v39 = vpop.f32.mrb[90].mxu0  ;;  %v3066_v24 = vpop.f32.mrb[90].mxu1 }
 0x88f   :  { %v6988_v47 = vmul.f32 -1.442695, %v3069_v33  ;;  %v3026_v46 = vpop.f32.mrb[91].mxu0  ;;  %v3067_v15 = vpop.f32.mrb[91].mxu1 }
 0x890   :  { %v6989_v23 = vmul.f32 -1.442695, %v3070_v44  ;;  %v6990_v51 = vmul.f32 -1.442695, %v3072_v57 }
 0x891   :  { %7730 = vpow2.f32 %v6988_v47 }
 0x892   :  { %7732 = vpow2.f32 %v6989_v23 }
 0x893   :  { %7734 = vpow2.f32 %v6990_v51  ;;  %v3249_v51 = vld [vmem:[#allocation8 + $0x50] sm:$0xff] }
 0x894   :  { %7736 = vtanh.f32 %v3071_v55 }
 0x89b   :  { %v7731_v19 = vpop.eup %7730 }
 0x89c   :  { %v7733_v7 = vpop.eup %7732  ;;  %v3079_v22 = vadd.f32 1.0, %v7731_v19  ;;  %v3253_v19 = vld [vmem:[#allocation8 + $0x70] sm:$0xff] }
 0x89d   :  { %v3080_v42 = vadd.f32 1.0, %v7733_v7  ;;  %v7735_v48 = vpop.eup %7734  ;;  %v3250_v7 = vld [vmem:[#allocation8 + $0x58] sm:$0xff] }
 0x89e   :  { %7738 = vrcp.f32 %v3079_v22  ;;  %v7737_v49 = vpop.eup %7736  ;;  %v3089_v34 = vadd.f32 1.0, %v7735_v48  ;;  %v3254_v22 = vld [vmem:[#allocation8 + $0x78] sm:$0xff]  ;;  %v11579_v48 = vld [vmem:[#allocation98_spill] sm:$0xff] }
 0x89f   :  { %7740 = vrcp.f32 %v3080_v42 }
 0x8a0   :  { %7742 = vrcp.f32 %v3089_v34  ;;  %v3261_v34 = vld [vmem:[#allocation8 + $0xb0] sm:$0xff] }
 0x8a8   :  { %v7739_v30 = vpop.eup %7738 }
 0x8a9   :  { %v7741_v27 = vpop.eup %7740  ;;  %v3093_v52 = vmul.f32 %v7739_v30, %v7737_v49  ;;  %v11580_v49 = vld [vmem:[#allocation13_spill] sm:$0xff] }
 0x8aa   :  { %v3092_v29 = vmul.f32 %v7741_v27, %v9824_v31  ;;  %v7743_v18 = vpop.eup %7742  ;;  %v9881_v30 = vpack.c.bf16 %v11580_v49, %v11579_v48  ;;  %v7007_v27 = vcombine.high %v3249_v51, %v3253_v19  ;;  %v3302_v48 = vld [vmem:[#allocation8 + $0x1f8] sm:$0xff] }
 0x8ac   :  { %v3094_v8 = vadd.f32 %v3093_v52, %v3092_v29  ;;  %v3136_v6 = vpop.f32.mrb[92].mxu0  ;;  %v3177_v1 = vpop.f32.mrb[92].mxu1  ;;  %v7009_v52 = vcombine.high %v3250_v7, %v3254_v22  ;;  %v3258_v29 = vld [vmem:[#allocation8 + $0x98] sm:$0xff] }
 0x8ad   :  { %v3184_v17 = vadd.f32 %v3136_v6, %v11573_v26  ;;  %v3186_v37 = vadd.f32 %v3177_v1, %v11574_v32  ;;  %v3138_v35 = vpop.f32.mrb[93].mxu0  ;;  %v3179_v3 = vpop.f32.mrb[93].mxu1  ;;  %v7006_v6 = vcombine.low %v3249_v51, %v3253_v19  ;;  %v7008_v1 = vcombine.low %v3250_v7, %v3254_v22  ;;  %v3266_v32 = vld [vmem:[#allocation8 + $0xd8] sm:$0xff]  ;;  %v3297_v19 = vld [vmem:[#allocation8 + $0x1d0] sm:$0xff] }
 0x8ae   :  { %7744 = vtanh.f32 %v3094_v8  ;;  %v3185_v58 = vadd.f32 %v3138_v35, %v11575_v14  ;;  %v3187_v59 = vadd.f32 %v3179_v3, %v11576_v53  ;;  %v3140_v60 = vpop.f32.mrb[94].mxu0  ;;  %v3181_v61 = vpop.f32.mrb[94].mxu1  ;;  %v3262_v8 = vld [vmem:[#allocation8 + $0xb8] sm:$0xff]  ;;  %v3277_v14 = vld [vmem:[#allocation8 + $0x130] sm:$0xff] }
 0x8af   :  { %v6991_v40 = vmul.f32 -1.442695, %v3184_v17  ;;  %v3141_v62 = vpop.f32.mrb[95].mxu0  ;;  %v3182_v31 = vpop.f32.mrb[95].mxu1  ;;  %v7017_v17 = vcombine.high %v3258_v29, %v3262_v8  ;;  %v7016_v63 = vcombine.low %v3258_v29, %v3262_v8  ;;  %v3278_v53 = vld [vmem:[#allocation8 + $0x138] sm:$0xff]  ;;  %v11584_v60 = vld [vmem:[#allocation43_spill] sm:$0xff] }
 0x8b0   :  { %v6992_v11 = vmul.f32 -1.442695, %v3185_v58  ;;  %v6993_v25 = vmul.f32 -1.442695, %v3187_v59  ;;  %v3274_v58 = vld [vmem:[#allocation8 + $0x118] sm:$0xff]  ;;  %v11583_v59 = vld [vmem:[#allocation94_spill] sm:$0xff] }
 0x8b1   :  { %7746 = vpow2.f32 %v6991_v40  ;;  %v9907_v61 = vpack.c.bf16 %v11584_v60, %v11583_v59  ;;  %v3301_v7 = vld [vmem:[#allocation8 + $0x1f0] sm:$0xff]  ;;  %v3298_v22 = vld [vmem:[#allocation8 + $0x1d8] sm:$0xff] }
 0x8b2   :  { %7748 = vpow2.f32 %v6992_v11  ;;  %v7033_v11 = vcombine.high %v3274_v58, %v3278_v53  ;;  %v7057_v29 = vcombine.high %v3298_v22, %v3302_v48  ;;  %v3309_v8 = vld [vmem:[#allocation8 + $0x230] sm:$0xff] }
 0x8b3   :  { %7750 = vpow2.f32 %v6993_v25  ;;  %v3282_v25 = vld [vmem:[#allocation8 + $0x158] sm:$0xff] }
 0x8b4   :  { %7752 = vtanh.f32 %v3186_v37  ;;  %v3270_v37 = vld [vmem:[#allocation8 + $0xf8] sm:$0xff] }
 0x8b5   :  { %v7025_v3 = vcombine.high %v3266_v32, %v3270_v37  ;;  %v7024_v62 = vcombine.low %v3266_v32, %v3270_v37  ;;  %v3317_v32 = vld [vmem:[#allocation8 + $0x270] sm:$0xff]  ;;  %v3314_v37 = vld [vmem:[#allocation8 + $0x258] sm:$0xff] }
 0x8b8   :  { %v7745_v5 = vpop.eup %7744 }
 0x8b9   :  { %v9870_v28 = vmul.f32 %v7745_v5, %v7743_v18  ;;  %v3281_v18 = vld [vmem:[#allocation8 + $0x150] sm:$0xff] }
 0x8ba   :  { %v3285_v5 = vld [vmem:[#allocation8 + $0x170] sm:$0xff] }
 0x8bb   :  { %11577 = vst [vmem:[#allocation96_spill] sm:$0xff] %v9870_v28  ;;  %v7747_v33 = vpop.eup %7746 }
 0x8bc   :  { %v7749_v54 = vpop.eup %7748  ;;  %v3194_v55 = vadd.f32 1.0, %v7747_v33  ;;  %v3286_v33 = vld [vmem:[#allocation8 + $0x178] sm:$0xff] }
 0x8bd   :  { %v3195_v56 = vadd.f32 1.0, %v7749_v54  ;;  %v7751_v20 = vpop.eup %7750  ;;  %v7040_v51 = vcombine.low %v3282_v25, %v3286_v33 }
 0x8be   :  { %7754 = vrcp.f32 %v3194_v55  ;;  %v7753_v43 = vpop.eup %7752  ;;  %v3204_v39 = vadd.f32 1.0, %v7751_v20  ;;  %v7032_v55 = vcombine.low %v3274_v58, %v3278_v53  ;;  %v3289_v20 = vld [vmem:[#allocation8 + $0x190] sm:$0xff] }
 0x8bf   :  { %7756 = vrcp.f32 %v3195_v56  ;;  %v9913_v56 = vpack.c.bf16 %v9768_v13, %v9666_v9 }
 0x8c0   :  { %7758 = vrcp.f32 %v3204_v39  ;;  %v3294_v39 = vld [vmem:[#allocation8 + $0x1b8] sm:$0xff] }
 0x8c8   :  { %v7755_v44 = vpop.eup %7754 }
 0x8c9   :  { %v7757_v45 = vpop.eup %7756  ;;  %v3208_v57 = vmul.f32 %v7755_v44, %v7753_v43  ;;  %v7039_v43 = vcombine.high %v3281_v18, %v3285_v5  ;;  %v7041_v44 = vcombine.high %v3282_v25, %v3286_v33 }
 0x8ca   :  { %v3207_v24 = vmul.f32 %v7757_v45, %v9838_v12  ;;  %v7759_v46 = vpop.eup %7758  ;;  %v3257_v12 = vld [vmem:[#allocation8 + $0x90] sm:$0xff] }
 0x8cb   :  { %v7015_v26 = vcombine.high %v3257_v12, %v3261_v34  ;;  %v7014_v21 = vcombine.low %v3257_v12, %v3261_v34  ;;  %v3293_v45 = vld [vmem:[#allocation8 + $0x1b0] sm:$0xff]  ;;  %v7055_v34 = vcombine.high %v3297_v19, %v3301_v7 }
 0x8cc   :  { %v3209_v47 = vadd.f32 %v3208_v57, %v3207_v24  ;;  %v3290_v57 = vld [vmem:[#allocation8 + $0x198] sm:$0xff]  ;;  %v11585_v24 = vld [vmem:[#allocation14_spill] sm:$0xff]  ;;  %v7047_v9 = vcombine.high %v3289_v20, %v3293_v45  ;;  %v7046_v49 = vcombine.low %v3289_v20, %v3293_v45 }
 0x8cd   :  { %v7049_v13 = vcombine.high %v3290_v57, %v3294_v39  ;;  %v7048_v12 = vcombine.low %v3290_v57, %v3294_v39  ;;  %v3338_v20 = vld [vmem:[#allocation8 + $0x318] sm:$0xff] }
 0x8ce   :  { %7760 = vtanh.f32 %v3209_v47  ;;  %v11586_v47 = vld [vmem:[#allocation40_spill] sm:$0xff] }
 0x8d8   :  { %v7761_v15 = vpop.eup %7760 }
 0x8d9   :  { %v9873_v23 = vmul.f32 %v7761_v15, %v7759_v46  ;;  %v9919_v46 = vpack.c.bf16 %v11586_v47, %v11585_v24  ;;  %v7038_v15 = vcombine.low %v3281_v18, %v3285_v5  ;;  %v3345_v24 = vld [vmem:[#allocation8 + $0x350] sm:$0xff] }
 0x8da   :  { %v3349_v47 = vld [vmem:[#allocation8 + $0x370] sm:$0xff] }
 0x8db   :  { %11578 = vst [vmem:[#allocation95_spill] sm:$0xff] %v9873_v23  ;;  %v9877_v42 = vpack.c.bf16 %v9841_v36, %v9873_v23  ;;  %v9889_v36 = vpack.c.bf16 %v9704_v0, %v9806_v50  ;;  %v3265_v0 = vld [vmem:[#allocation8 + $0xd0] sm:$0xff]  ;;  %v10131_v23 = vld [vmem:[#allocation10 + $0x1ec] ss:$16 sps:$4 sm:$0xff]  }
 0x8dc   :  { %v3269_v50 = vld [vmem:[#allocation8 + $0xf0] sm:$0xff] }
 0x8dd   :  { %4039 = vmatprep.mubr.bf16.mxu0 %v9877_v42  ;;  %4112 = vmatprep.mubr.bf16.mxu1 %v9877_v42  ;;  %v7023_v35 = vcombine.high %v3265_v0, %v3269_v50  ;;  %v7022_v40 = vcombine.low %v3265_v0, %v3269_v50  ;;  %v3313_v50 = vld [vmem:[#allocation8 + $0x250] sm:$0xff] }
 0x8de   :  { %4040 = vmatmul.mubr.bf16.vlgmr.msra.gmra.mrb[96].mxu0 %v9881_v30  ;;  %4113 = vmatmul.mubr.bf16.vlgmr.msra.gmra.mrb[96].mxu1 %v9881_v30  ;;  %v7070_v58 = vcombine.low %v3313_v50, %v3317_v32 }
 0x8df   :  { %4154 = vmatpush1.bf16.msra.mxu0 %v6998_v10  ;;  %4227 = vmatpush1.bf16.msra.mxu1 %v7000_v16  ;;  %v9901_v10 = vpack.c.bf16 %v11582_v4, %v11581_v38  ;;  %v3273_v16 = vld [vmem:[#allocation8 + $0x110] sm:$0xff]  ;;  %v7071_v4 = vcombine.high %v3313_v50, %v3317_v32 }
 0x8e0   :  { %4049 = vmatprep.mubr.bf16.mxu0 %v9889_v36  ;;  %4122 = vmatprep.mubr.bf16.mxu1 %v9889_v36  ;;  %v7031_v31 = vcombine.high %v3273_v16, %v3277_v14  ;;  %v7030_v54 = vcombine.low %v3273_v16, %v3277_v14  ;;  %v3322_v14 = vld [vmem:[#allocation8 + $0x298] sm:$0xff] }
 0x8e1   :  { %4155 = vmatprep.subr.bf16.mxu0 %v7007_v27  ;;  %4228 = vmatprep.subr.bf16.mxu1 %v7009_v52  ;;  %v9925_v27 = vpack.c.bf16 %v9870_v28, %v9831_v41  ;;  %v3305_v52 = vld [vmem:[#allocation8 + $0x210] sm:$0xff] }
 0x8e2   :  { %v7063_v41 = vcombine.high %v3305_v52, %v3309_v8  ;;  %v10135_v28 = vld [vmem:[#allocation10 + $0x1e0] ss:$16 sps:$4 sm:$0xff]  }
 0x8e3   :  { %4156 = vmatpush1.bf16.msra.mxu0 %v7006_v6  ;;  %4229 = vmatpush1.bf16.msra.mxu1 %v7008_v1  ;;  %v3306_v6 = vld [vmem:[#allocation8 + $0x218] sm:$0xff] }
 0x8e4   :  { %4157 = vmatprep.subr.bf16.mxu0 %v7015_v26  ;;  %4230 = vmatprep.subr.bf16.mxu1 %v7017_v17  ;;  %v3310_v1 = vld [vmem:[#allocation8 + $0x238] sm:$0xff]  ;;  %v7054_v26 = vcombine.low %v3297_v19, %v3301_v7  ;;  %v7056_v17 = vcombine.low %v3298_v22, %v3302_v48  ;;  %v7103_v19 = vcombine.high %v3345_v24, %v3349_v47  ;;  %v3353_v22 = vld [vmem:[#allocation8 + $0x390] sm:$0xff] }
 0x8e5   :  { %v7065_v0 = vcombine.high %v3306_v6, %v3310_v1  ;;  %v7064_v38 = vcombine.low %v3306_v6, %v3310_v1  ;;  %v3357_v48 = vld [vmem:[#allocation8 + $0x3b0] sm:$0xff] }
 0x8e6   :  { %4050 = vmatmul.mubr.bf16.gmra.mrb[100].mxu0 %v9901_v10  ;;  %4123 = vmatmul.mubr.bf16.gmra.mrb[100].mxu1 %v9901_v10  ;;  %v3361_v6 = vld [vmem:[#allocation8 + $0x3d0] sm:$0xff] }
 0x8e7   :  { %4158 = vmatpush1.bf16.msra.mxu0 %v7014_v21  ;;  %4231 = vmatpush1.bf16.msra.mxu1 %v7016_v63  ;;  %v3318_v21 = vld [vmem:[#allocation8 + $0x278] sm:$0xff]  ;;  %v7062_v63 = vcombine.low %v3305_v52, %v3309_v8  ;;  %v7102_v52 = vcombine.low %v3345_v24, %v3349_v47  ;;  %v3365_v1 = vld [vmem:[#allocation8 + $0x3f0] sm:$0xff] }
 0x8e8   :  { %4059 = vmatprep.mubr.bf16.mxu0 %v9907_v61  ;;  %4132 = vmatprep.mubr.bf16.mxu1 %v9907_v61  ;;  %v7073_v16 = vcombine.high %v3314_v37, %v3318_v21  ;;  %v7072_v53 = vcombine.low %v3314_v37, %v3318_v21  ;;  %v7119_v50 = vcombine.high %v3361_v6, %v3365_v1  ;;  %v10049_v24 = vld [vmem:[#allocation10 + $0x108] ss:$16 sps:$4 sm:$0xff]   ;;  %v10053_v47 = vld [vmem:[#allocation10 + $0x124] ss:$16 sps:$4 sm:$0xff]  }
 0x8e9   :  { %4159 = vmatprep.subr.bf16.mxu0 %v7023_v35  ;;  %4232 = vmatprep.subr.bf16.mxu1 %v7025_v3  ;;  %v3321_v35 = vld [vmem:[#allocation8 + $0x290] sm:$0xff]  ;;  %v7118_v37 = vcombine.low %v3361_v6, %v3365_v1  ;;  %v10101_v6 = vld [vmem:[#allocation10 + $0x188] ss:$16 sps:$4 sm:$0xff]  }
 0x8ea   :  { %v3325_v3 = vld [vmem:[#allocation8 + $0x2b0] sm:$0xff] }
 0x8eb   :  { %4160 = vmatpush1.bf16.msra.mxu0 %v7022_v40  ;;  %4233 = vmatpush1.bf16.msra.mxu1 %v7024_v62  ;;  %v7079_v59 = vcombine.high %v3321_v35, %v3325_v3  ;;  %v3329_v40 = vld [vmem:[#allocation8 + $0x2d0] sm:$0xff]  ;;  %v7078_v18 = vcombine.low %v3321_v35, %v3325_v3  ;;  %v9943_v3 = vld [vmem:[#allocation10 + $0x2c] ss:$16 sps:$4 sm:$0xff]  }
 0x8ec   :  { %4161 = vmatprep.subr.bf16.mxu0 %v7031_v31  ;;  %4234 = vmatprep.subr.bf16.mxu1 %v7033_v11  ;;  %v3333_v62 = vld [vmem:[#allocation8 + $0x2f0] sm:$0xff]  ;;  %v3330_v31 = vld [vmem:[#allocation8 + $0x2d8] sm:$0xff]  ;;  %11589 = vst [vmem:[#allocation48_spill] sm:$0xff] %v9943_v3 }
 0x8ed   :  { %v3334_v11 = vld [vmem:[#allocation8 + $0x2f8] sm:$0xff]  ;;  %v7087_v25 = vcombine.high %v3329_v40, %v3333_v62  ;;  %v9941_v35 = vld [vmem:[#allocation10 + $0x24] ss:$16 sps:$4 sm:$0xff]  }
 0x8ee   :  { %4060 = vmatmul.mubr.bf16.gmra.mrb[104].mxu0 %v9913_v56  ;;  %4133 = vmatmul.mubr.bf16.gmra.mrb[104].mxu1 %v9913_v56  ;;  %v7089_v33 = vcombine.high %v3330_v31, %v3334_v11  ;;  %v7088_v45 = vcombine.low %v3330_v31, %v3334_v11  ;;  %11588 = vst [vmem:[#allocation46_spill] sm:$0xff] %v9941_v35  ;;  %v9985_v31 = vld [vmem:[#allocation10 + $0x84] ss:$16 sps:$4 sm:$0xff]   ;;  %v9987_v11 = vld [vmem:[#allocation10 + $0x8c] ss:$16 sps:$4 sm:$0xff]  }
 0x8ef   :  { %4162 = vmatpush1.bf16.msra.mxu0 %v7030_v54  ;;  %4235 = vmatpush1.bf16.msra.mxu1 %v7032_v55  ;;  %v3337_v54 = vld [vmem:[#allocation8 + $0x310] sm:$0xff]  ;;  %11600 = vst [vmem:[#allocation86_spill] sm:$0xff] %v9985_v31  ;;  %11601 = vst [vmem:[#allocation88_spill] sm:$0xff] %v9987_v11 }
 0x8f0   :  { %4069 = vmatprep.mubr.bf16.mxu0 %v9919_v46  ;;  %4142 = vmatprep.mubr.bf16.mxu1 %v9919_v46  ;;  %v3341_v55 = vld [vmem:[#allocation8 + $0x330] sm:$0xff] }
 0x8f1   :  { %4163 = vmatprep.subr.bf16.mxu0 %v7039_v43  ;;  %4236 = vmatprep.subr.bf16.mxu1 %v7041_v44  ;;  %v3342_v43 = vld [vmem:[#allocation8 + $0x338] sm:$0xff]  ;;  %v7086_v44 = vcombine.low %v3329_v40, %v3333_v62  ;;  %v7095_v57 = vcombine.high %v3337_v54, %v3341_v55  ;;  %v9979_v40 = vld [vmem:[#allocation10 + $0x60] ss:$16 sps:$4 sm:$0xff]   ;;  %v10105_v1 = vld [vmem:[#allocation10 + $0x1a4] ss:$16 sps:$4 sm:$0xff]  }
 0x8f2   :  { %v7097_v39 = vcombine.high %v3338_v20, %v3342_v43  ;;  %11598 = vst [vmem:[#allocation51_spill] sm:$0xff] %v9979_v40  ;;  %v9981_v62 = vld [vmem:[#allocation10 + $0x68] ss:$16 sps:$4 sm:$0xff]  }
 0x8f3   :  { %4164 = vmatpush1.bf16.msra.mxu0 %v7038_v15  ;;  %4237 = vmatpush1.bf16.msra.mxu1 %v7040_v51  ;;  %v3346_v15 = vld [vmem:[#allocation8 + $0x358] sm:$0xff]  ;;  %11599 = vst [vmem:[#allocation53_spill] sm:$0xff] %v9981_v62 }
 0x8f4   :  { %4165 = vmatprep.subr.bf16.mxu0 %v7047_v9  ;;  %4238 = vmatprep.subr.bf16.mxu1 %v7049_v13  ;;  %v3350_v51 = vld [vmem:[#allocation8 + $0x378] sm:$0xff]  ;;  %v7094_v9 = vcombine.low %v3337_v54, %v3341_v55  ;;  %v7096_v13 = vcombine.low %v3338_v20, %v3342_v43  ;;  %v10013_v54 = vld [vmem:[#allocation10 + $0xc4] ss:$16 sps:$4 sm:$0xff]  }
 0x8f5   :  { %v7105_v7 = vcombine.high %v3346_v15, %v3350_v51  ;;  %11608 = vst [vmem:[#allocation39_spill] sm:$0xff] %v10013_v54  ;;  %v10015_v55 = vld [vmem:[#allocation10 + $0xcc] ss:$16 sps:$4 sm:$0xff]   ;;  %v10025_v20 = vld [vmem:[#allocation10 + $0xe4] ss:$16 sps:$4 sm:$0xff]  }
 0x8f6   :  { %4070 = vmatmul.mubr.bf16.gmra.mrb[108].mxu0 %v9925_v27  ;;  %4143 = vmatmul.mubr.bf16.gmra.mrb[108].mxu1 %v9925_v27  ;;  %11609 = vst [vmem:[#allocation42_spill] sm:$0xff] %v10015_v55  ;;  %11612 = vst [vmem:[#allocation56_spill] sm:$0xff] %v10025_v20  ;;  %v10027_v43 = vld [vmem:[#allocation10 + $0xec] ss:$16 sps:$4 sm:$0xff]  }
 0x8f7   :  { %4166 = vmatpush1.bf16.msra.mxu0 %v7046_v49  ;;  %4239 = vmatpush1.bf16.msra.mxu1 %v7048_v12  ;;  %v3354_v49 = vld [vmem:[#allocation8 + $0x398] sm:$0xff]  ;;  %11613 = vst [vmem:[#allocation55_spill] sm:$0xff] %v10027_v43 }
 0x8f8   :  { %4185 = vmatprep.mubr.bf16.mxu0 %v9877_v42  ;;  %4258 = vmatprep.mubr.bf16.mxu1 %v9877_v42  ;;  %v3326_v42 = vld [vmem:[#allocation8 + $0x2b8] sm:$0xff] }
 0x8f9   :  { %4167 = vmatprep.subr.bf16.mxu0 %v7055_v34  ;;  %4240 = vmatprep.subr.bf16.mxu1 %v7057_v29  ;;  %v7081_v60 = vcombine.high %v3322_v14, %v3326_v42  ;;  %v7080_v5 = vcombine.low %v3322_v14, %v3326_v42  ;;  %v3358_v12 = vld [vmem:[#allocation8 + $0x3b8] sm:$0xff]  ;;  %v7104_v34 = vcombine.low %v3346_v15, %v3350_v51  ;;  %v9951_v14 = vld [vmem:[#allocation10 + $0x20] ss:$16 sps:$4 sm:$0xff]  }
 0x8fa   :  { %v7111_v29 = vcombine.high %v3353_v22, %v3357_v48  ;;  %v7113_v8 = vcombine.high %v3354_v49, %v3358_v12  ;;  %11590 = vst [vmem:[#allocation47_spill] sm:$0xff] %v9951_v14  ;;  %v9953_v42 = vld [vmem:[#allocation10 + $0x28] ss:$16 sps:$4 sm:$0xff]   ;;  %v10055_v15 = vld [vmem:[#allocation10 + $0x12c] ss:$16 sps:$4 sm:$0xff]  }
 0x8fb   :  { %4168 = vmatpush1.bf16.msra.mxu0 %v7054_v26  ;;  %4241 = vmatpush1.bf16.msra.mxu1 %v7056_v17  ;;  %v3362_v26 = vld [vmem:[#allocation8 + $0x3d8] sm:$0xff]  ;;  %11591 = vst [vmem:[#allocation50_spill] sm:$0xff] %v9953_v42  ;;  %v10061_v51 = vld [vmem:[#allocation10 + $0x120] ss:$16 sps:$4 sm:$0xff]  }
 0x8fc   :  { %4169 = vmatprep.subr.bf16.mxu0 %v7063_v41  ;;  %4242 = vmatprep.subr.bf16.mxu1 %v7065_v0  ;;  %v3366_v17 = vld [vmem:[#allocation8 + $0x3f8] sm:$0xff]  ;;  %v7110_v41 = vcombine.low %v3353_v22, %v3357_v48  ;;  %v7112_v0 = vcombine.low %v3354_v49, %v3358_v12  ;;  %v10081_v48 = vld [vmem:[#allocation10 + $0x164] ss:$16 sps:$4 sm:$0xff]   ;;  %v10087_v12 = vld [vmem:[#allocation10 + $0x160] ss:$16 sps:$4 sm:$0xff]  }
 0x8fd   :  { %v7121_v32 = vcombine.high %v3362_v26, %v3366_v17  ;;  %v7120_v21 = vcombine.low %v3362_v26, %v3366_v17  ;;  %v10077_v22 = vld [vmem:[#allocation10 + $0x148] ss:$16 sps:$4 sm:$0xff]   ;;  %v10083_v49 = vld [vmem:[#allocation10 + $0x16c] ss:$16 sps:$4 sm:$0xff]   ;;  %v10111_v17 = vld [vmem:[#allocation10 + $0x1a0] ss:$16 sps:$4 sm:$0xff]  }
 0x8fe   :  { %v10107_v26 = vld [vmem:[#allocation10 + $0x1ac] ss:$16 sps:$4 sm:$0xff]   ;;  %11618 = vst [vmem:[#allocation85_spill] sm:$0xff] %v10111_v17 }
 0x8ff   :  { %4170 = vmatpush1.bf16.msra.mxu0 %v7062_v63  ;;  %4243 = vmatpush1.bf16.msra.mxu1 %v7064_v38  ;;  %v9931_v63 = vld [vmem:[#allocation10 + $0x4] ss:$16 sps:$4 sm:$0xff]   ;;  %v9933_v38 = vld [vmem:[#allocation10 + $0xc] ss:$16 sps:$4 sm:$0xff]  }
 0x900   :  { %4171 = vmatprep.subr.bf16.mxu0 %v7071_v4  ;;  %4244 = vmatprep.subr.bf16.mxu1 %v7073_v16  ;;  %v9937_v4 = vld [vmem:[#allocation10] ss:$16 sps:$4 sm:$0xff]   ;;  %v9939_v16 = vld [vmem:[#allocation10 + $0x8] ss:$16 sps:$4 sm:$0xff]  }
 0x901   :  { %11587 = vst [vmem:[#allocation97_spill] sm:$0xff] %v9939_v16 }
 0x903   :  { %4172 = vmatpush1.bf16.msra.mxu0 %v7070_v58  ;;  %4245 = vmatpush1.bf16.msra.mxu1 %v7072_v53  ;;  %v9957_v58 = vld [vmem:[#allocation10 + $0x44] ss:$16 sps:$4 sm:$0xff]   ;;  %v9959_v53 = vld [vmem:[#allocation10 + $0x4c] ss:$16 sps:$4 sm:$0xff]  }
 0x904   :  { %4173 = vmatprep.subr.bf16.mxu0 %v7079_v59  ;;  %4246 = vmatprep.subr.bf16.mxu1 %v7081_v60  ;;  %11592 = vst [vmem:[#allocation89_spill] sm:$0xff] %v9957_v58  ;;  %11593 = vst [vmem:[#allocation92_spill] sm:$0xff] %v9959_v53  ;;  %v9969_v59 = vld [vmem:[#allocation10 + $0x64] ss:$16 sps:$4 sm:$0xff]   ;;  %v9971_v60 = vld [vmem:[#allocation10 + $0x6c] ss:$16 sps:$4 sm:$0xff]  }
 0x905   :  { %11596 = vst [vmem:[#allocation49_spill] sm:$0xff] %v9969_v59  ;;  %11597 = vst [vmem:[#allocation52_spill] sm:$0xff] %v9971_v60 }
 0x907   :  { %4174 = vmatpush1.bf16.msra.mxu0 %v7078_v18  ;;  %4247 = vmatpush1.bf16.msra.mxu1 %v7080_v5  ;;  %v9997_v18 = vld [vmem:[#allocation10 + $0xa4] ss:$16 sps:$4 sm:$0xff]   ;;  %v9999_v5 = vld [vmem:[#allocation10 + $0xac] ss:$16 sps:$4 sm:$0xff]  }
 0x908   :  { %4175 = vmatprep.subr.bf16.mxu0 %v7087_v25  ;;  %4248 = vmatprep.subr.bf16.mxu1 %v7089_v33  ;;  %11604 = vst [vmem:[#allocation35_spill] sm:$0xff] %v9997_v18  ;;  %11605 = vst [vmem:[#allocation36_spill] sm:$0xff] %v9999_v5  ;;  %v10007_v25 = vld [vmem:[#allocation10 + $0xa0] ss:$16 sps:$4 sm:$0xff]   ;;  %v10009_v33 = vld [vmem:[#allocation10 + $0xa8] ss:$16 sps:$4 sm:$0xff]  }
 0x909   :  { %11606 = vst [vmem:[#allocation37_spill] sm:$0xff] %v10007_v25  ;;  %11607 = vst [vmem:[#allocation38_spill] sm:$0xff] %v10009_v33 }
 0x90b   :  { %4176 = vmatpush1.bf16.msra.mxu0 %v7086_v44  ;;  %4249 = vmatpush1.bf16.msra.mxu1 %v7088_v45  ;;  %v10035_v44 = vld [vmem:[#allocation10 + $0xe0] ss:$16 sps:$4 sm:$0xff]   ;;  %v10037_v45 = vld [vmem:[#allocation10 + $0xe8] ss:$16 sps:$4 sm:$0xff]  }
 0x90c   :  { %4177 = vmatprep.subr.bf16.mxu0 %v7095_v57  ;;  %4250 = vmatprep.subr.bf16.mxu1 %v7097_v39  ;;  %11614 = vst [vmem:[#allocation58_spill] sm:$0xff] %v10035_v44  ;;  %11615 = vst [vmem:[#allocation81_spill] sm:$0xff] %v10037_v45  ;;  %v10041_v57 = vld [vmem:[#allocation10 + $0x104] ss:$16 sps:$4 sm:$0xff]   ;;  %v10043_v39 = vld [vmem:[#allocation10 + $0x10c] ss:$16 sps:$4 sm:$0xff]  }
 0x90d   :  { %11616 = vst [vmem:[#allocation84_spill] sm:$0xff] %v10041_v57  ;;  %11617 = vst [vmem:[#allocation83_spill] sm:$0xff] %v10043_v39 }
 0x90f   :  { %4178 = vmatpush1.bf16.msra.mxu0 %v7094_v9  ;;  %4251 = vmatpush1.bf16.msra.mxu1 %v7096_v13  ;;  %v10063_v9 = vld [vmem:[#allocation10 + $0x128] ss:$16 sps:$4 sm:$0xff]   ;;  %v10067_v13 = vld [vmem:[#allocation10 + $0x144] ss:$16 sps:$4 sm:$0xff]  }
 0x910   :  { %4179 = vmatprep.subr.bf16.mxu0 %v7103_v19  ;;  %4252 = vmatprep.subr.bf16.mxu1 %v7105_v7  ;;  %v10069_v19 = vld [vmem:[#allocation10 + $0x14c] ss:$16 sps:$4 sm:$0xff]   ;;  %v10075_v7 = vld [vmem:[#allocation10 + $0x140] ss:$16 sps:$4 sm:$0xff]  }
 0x913   :  { %4180 = vmatpush1.bf16.msra.mxu0 %v7102_v52  ;;  %4253 = vmatpush1.bf16.msra.mxu1 %v7104_v34  ;;  %v10089_v52 = vld [vmem:[#allocation10 + $0x168] ss:$16 sps:$4 sm:$0xff]   ;;  %v10093_v34 = vld [vmem:[#allocation10 + $0x184] ss:$16 sps:$4 sm:$0xff]  }
 0x914   :  { %4181 = vmatprep.subr.bf16.mxu0 %v7111_v29  ;;  %4254 = vmatprep.subr.bf16.mxu1 %v7113_v8  ;;  %v10095_v29 = vld [vmem:[#allocation10 + $0x18c] ss:$16 sps:$4 sm:$0xff]   ;;  %v10099_v8 = vld [vmem:[#allocation10 + $0x180] ss:$16 sps:$4 sm:$0xff]  }
 0x917   :  { %4182 = vmatpush1.bf16.msra.mxu0 %v7110_v41  ;;  %4255 = vmatpush1.bf16.msra.mxu1 %v7112_v0  ;;  %v10113_v41 = vld [vmem:[#allocation10 + $0x1a8] ss:$16 sps:$4 sm:$0xff]   ;;  %v10117_v0 = vld [vmem:[#allocation10 + $0x1c4] ss:$16 sps:$4 sm:$0xff]  }
 0x918   :  { %4183 = vmatprep.subr.bf16.mxu0 %v7119_v50  ;;  %4256 = vmatprep.subr.bf16.mxu1 %v7121_v32  ;;  %v10119_v50 = vld [vmem:[#allocation10 + $0x1cc] ss:$16 sps:$4 sm:$0xff]   ;;  %v10123_v32 = vld [vmem:[#allocation10 + $0x1c0] ss:$16 sps:$4 sm:$0xff]  }
 0x91b   :  { %4184 = vmatpush1.bf16.msra.mxu0 %v7118_v37  ;;  %4257 = vmatpush1.bf16.msra.mxu1 %v7120_v21  ;;  %v10125_v37 = vld [vmem:[#allocation10 + $0x1c8] ss:$16 sps:$4 sm:$0xff]   ;;  %v10129_v21 = vld [vmem:[#allocation10 + $0x1e4] ss:$16 sps:$4 sm:$0xff]  }
 0x91c   :  { %4697 = vmatprep.subr.bf16.mxu0 %v9931_v63  ;;  %4738 = vmatprep.subr.bf16.mxu1 %v9933_v38 }
 0x91e   :  { %4186 = vmatmul.mubr.bf16.vlgmr.msra.gmra.mrb[112].mxu0 %v9881_v30  ;;  %4259 = vmatmul.mubr.bf16.vlgmr.msra.gmra.mrb[112].mxu1 %v9881_v30  ;;  %v9963_v30 = vld [vmem:[#allocation10 + $0x40] ss:$16 sps:$4 sm:$0xff]  }
 0x91f   :  { %4195 = vmatprep.mubr.bf16.mxu0 %v9889_v36  ;;  %4268 = vmatprep.mubr.bf16.mxu1 %v9889_v36  ;;  %11594 = vst [vmem:[#allocation91_spill] sm:$0xff] %v9963_v30  ;;  %v9965_v36 = vld [vmem:[#allocation10 + $0x48] ss:$16 sps:$4 sm:$0xff]  }
 0x920   :  { %4698 = vmatpush1.bf16.msra.mxu0 %v9937_v4  ;;  %4739 = vmatpush1.bf16.msra.mxu1 %v9939_v16  ;;  %11595 = vst [vmem:[#allocation93_spill] sm:$0xff] %v9965_v36 }
 0x921   :  { %4699 = vmatprep.subr.bf16.mxu0 %v9941_v35  ;;  %4740 = vmatprep.subr.bf16.mxu1 %v9943_v3 }
 0x924   :  { %4700 = vmatpush1.bf16.msra.mxu0 %v9951_v14  ;;  %4741 = vmatpush1.bf16.msra.mxu1 %v9953_v42 }
 0x925   :  { %4701 = vmatprep.subr.bf16.mxu0 %v9957_v58  ;;  %4742 = vmatprep.subr.bf16.mxu1 %v9959_v53 }
 0x926   :  { %4196 = vmatmul.mubr.bf16.gmra.mrb[116].mxu0 %v9901_v10  ;;  %4269 = vmatmul.mubr.bf16.gmra.mrb[116].mxu1 %v9901_v10  ;;  %v9991_v10 = vld [vmem:[#allocation10 + $0x80] ss:$16 sps:$4 sm:$0xff]  }
 0x927   :  { %4205 = vmatprep.mubr.bf16.mxu0 %v9907_v61  ;;  %4278 = vmatprep.mubr.bf16.mxu1 %v9907_v61  ;;  %11602 = vst [vmem:[#allocation87_spill] sm:$0xff] %v9991_v10  ;;  %v9993_v61 = vld [vmem:[#allocation10 + $0x88] ss:$16 sps:$4 sm:$0xff]  }
 0x928   :  { %4702 = vmatpush1.bf16.msra.mxu0 %v9963_v30  ;;  %4743 = vmatpush1.bf16.msra.mxu1 %v9965_v36  ;;  %11603 = vst [vmem:[#allocation90_spill] sm:$0xff] %v9993_v61 }
 0x929   :  { %4703 = vmatprep.subr.bf16.mxu0 %v9969_v59  ;;  %4744 = vmatprep.subr.bf16.mxu1 %v9971_v60 }
 0x92c   :  { %4704 = vmatpush1.bf16.msra.mxu0 %v9979_v40  ;;  %4745 = vmatpush1.bf16.msra.mxu1 %v9981_v62 }
 0x92d   :  { %4705 = vmatprep.subr.bf16.mxu0 %v9985_v31  ;;  %4746 = vmatprep.subr.bf16.mxu1 %v9987_v11 }
 0x92e   :  { %4206 = vmatmul.mubr.bf16.gmra.mrb[120].mxu0 %v9913_v56  ;;  %4279 = vmatmul.mubr.bf16.gmra.mrb[120].mxu1 %v9913_v56  ;;  %v10019_v56 = vld [vmem:[#allocation10 + $0xc0] ss:$16 sps:$4 sm:$0xff]  }
 0x92f   :  { %4215 = vmatprep.mubr.bf16.mxu0 %v9919_v46  ;;  %4288 = vmatprep.mubr.bf16.mxu1 %v9919_v46  ;;  %11610 = vst [vmem:[#allocation44_spill] sm:$0xff] %v10019_v56  ;;  %v10021_v46 = vld [vmem:[#allocation10 + $0xc8] ss:$16 sps:$4 sm:$0xff]  }
 0x930   :  { %4706 = vmatpush1.bf16.msra.mxu0 %v9991_v10  ;;  %4747 = vmatpush1.bf16.msra.mxu1 %v9993_v61  ;;  %11611 = vst [vmem:[#allocation54_spill] sm:$0xff] %v10021_v46 }
 0x931   :  { %4707 = vmatprep.subr.bf16.mxu0 %v9997_v18  ;;  %4748 = vmatprep.subr.bf16.mxu1 %v9999_v5 }
 0x934   :  { %4708 = vmatpush1.bf16.msra.mxu0 %v10007_v25  ;;  %4749 = vmatpush1.bf16.msra.mxu1 %v10009_v33 }
 0x935   :  { %4709 = vmatprep.subr.bf16.mxu0 %v10013_v54  ;;  %4750 = vmatprep.subr.bf16.mxu1 %v10015_v55 }
 0x936   :  { %4216 = vmatmul.mubr.bf16.gmra.mrb[124].mxu0 %v9925_v27  ;;  %4289 = vmatmul.mubr.bf16.gmra.mrb[124].mxu1 %v9925_v27  ;;  %v10047_v27 = vld [vmem:[#allocation10 + $0x100] ss:$16 sps:$4 sm:$0xff]  }
 0x937   :  { %4729 = vmatprep.mubr.bf16.mxu0 %v11353_v2  ;;  %4770 = vmatprep.mubr.bf16.mxu1 %v11353_v2 }
 0x938   :  { %4710 = vmatpush1.bf16.msra.mxu0 %v10019_v56  ;;  %4751 = vmatpush1.bf16.msra.mxu1 %v10021_v46 }
 0x939   :  { %4711 = vmatprep.subr.bf16.mxu0 %v10025_v20  ;;  %4752 = vmatprep.subr.bf16.mxu1 %v10027_v43 }
 0x93c   :  { %4712 = vmatpush1.bf16.msra.mxu0 %v10035_v44  ;;  %4753 = vmatpush1.bf16.msra.mxu1 %v10037_v45 }
 0x93d   :  { %4971 = vmatprep.subr.bf16.mxu0 %v10041_v57  ;;  %5012 = vmatprep.subr.bf16.mxu1 %v10043_v39 }
 0x93f   :  { %4730 = vmatmul.mubr.bf16.vlgmr.msra.gmra.mrb[128].mxu0 %v11353_v2  ;;  %4771 = vmatmul.mubr.bf16.vlgmr.msra.gmra.mrb[128].mxu1 %v11353_v2 }
 0x940   :  { %4972 = vmatpush1.bf16.msra.mxu0 %v10047_v27  ;;  %5013 = vmatpush1.bf16.msra.mxu1 %v10049_v24 }
 0x941   :  { %4973 = vmatprep.subr.bf16.mxu0 %v10053_v47  ;;  %5014 = vmatprep.subr.bf16.mxu1 %v10055_v15 }
 0x942   :  { %5003 = vmatprep.mubr.bf16.mxu0 %v11353_v2  ;;  %5044 = vmatprep.mubr.bf16.mxu1 %v11353_v2 }
 0x944   :  { %4974 = vmatpush1.bf16.msra.mxu0 %v10061_v51  ;;  %5015 = vmatpush1.bf16.msra.mxu1 %v10063_v9 }
 0x945   :  { %4975 = vmatprep.subr.bf16.mxu0 %v10067_v13  ;;  %5016 = vmatprep.subr.bf16.mxu1 %v10069_v19 }
 0x948   :  { %4976 = vmatpush1.bf16.msra.mxu0 %v10075_v7  ;;  %5017 = vmatpush1.bf16.msra.mxu1 %v10077_v22 }
 0x949   :  { %4977 = vmatprep.subr.bf16.mxu0 %v10081_v48  ;;  %5018 = vmatprep.subr.bf16.mxu1 %v10083_v49 }
 0x94c   :  { %4978 = vmatpush1.bf16.msra.mxu0 %v10087_v12  ;;  %5019 = vmatpush1.bf16.msra.mxu1 %v10089_v52 }
 0x94d   :  { %4979 = vmatprep.subr.bf16.mxu0 %v10093_v34  ;;  %5020 = vmatprep.subr.bf16.mxu1 %v10095_v29 }
 0x950   :  { %4980 = vmatpush1.bf16.msra.mxu0 %v10099_v8  ;;  %5021 = vmatpush1.bf16.msra.mxu1 %v10101_v6 }
 0x951   :  { %4981 = vmatprep.subr.bf16.mxu0 %v10105_v1  ;;  %5022 = vmatprep.subr.bf16.mxu1 %v10107_v26 }
 0x954   :  { %4982 = vmatpush1.bf16.msra.mxu0 %v10111_v17  ;;  %5023 = vmatpush1.bf16.msra.mxu1 %v10113_v41  ;;  %v10137_v17 = vld [vmem:[#allocation10 + $0x1e8] ss:$16 sps:$4 sm:$0xff]  }
 0x955   :  { %4983 = vmatprep.subr.bf16.mxu0 %v10117_v0  ;;  %5024 = vmatprep.subr.bf16.mxu1 %v10119_v50 }
 0x958   :  { %4984 = vmatpush1.bf16.msra.mxu0 %v10123_v32  ;;  %5025 = vmatpush1.bf16.msra.mxu1 %v10125_v37 }
 0x959   :  { %4985 = vmatprep.subr.bf16.mxu0 %v10129_v21  ;;  %5026 = vmatprep.subr.bf16.mxu1 %v10131_v23 }
 0x95c   :  { %4986 = vmatpush1.bf16.msra.mxu0 %v10135_v28  ;;  %5027 = vmatpush1.bf16.msra.mxu1 %v10137_v17 }
 0x95d   :  { %5086 = vmatprep.subr.bf16.mxu0 %v9931_v63  ;;  %5127 = vmatprep.subr.bf16.mxu1 %v9933_v38 }
 0x95f   :  { %5004 = vmatmul.mubr.bf16.vlgmr.msra.gmra.mrb[132].mxu0 %v11353_v2  ;;  %5045 = vmatmul.mubr.bf16.vlgmr.msra.gmra.mrb[132].mxu1 %v11353_v2 }
 0x960   :  { %5087 = vmatpush1.bf16.msra.mxu0 %v9937_v4  ;;  %5128 = vmatpush1.bf16.msra.mxu1 %v9939_v16 }
 0x961   :  { %5088 = vmatprep.subr.bf16.mxu0 %v9941_v35  ;;  %5129 = vmatprep.subr.bf16.mxu1 %v9943_v3 }
 0x962   :  { %5118 = vmatprep.mubr.bf16.mxu0 %v11353_v2  ;;  %5159 = vmatprep.mubr.bf16.mxu1 %v11353_v2 }
 0x964   :  { %5089 = vmatpush1.bf16.msra.mxu0 %v9951_v14  ;;  %5130 = vmatpush1.bf16.msra.mxu1 %v9953_v42 }
 0x965   :  { %5090 = vmatprep.subr.bf16.mxu0 %v9957_v58  ;;  %5131 = vmatprep.subr.bf16.mxu1 %v9959_v53 }
 0x968   :  { %5091 = vmatpush1.bf16.msra.mxu0 %v9963_v30  ;;  %5132 = vmatpush1.bf16.msra.mxu1 %v9965_v36 }
 0x969   :  { %5092 = vmatprep.subr.bf16.mxu0 %v9969_v59  ;;  %5133 = vmatprep.subr.bf16.mxu1 %v9971_v60 }
 0x96c   :  { %5093 = vmatpush1.bf16.msra.mxu0 %v9979_v40  ;;  %5134 = vmatpush1.bf16.msra.mxu1 %v9981_v62 }
 0x96d   :  { %5094 = vmatprep.subr.bf16.mxu0 %v9985_v31  ;;  %5135 = vmatprep.subr.bf16.mxu1 %v9987_v11 }
 0x970   :  { %5095 = vmatpush1.bf16.msra.mxu0 %v9991_v10  ;;  %5136 = vmatpush1.bf16.msra.mxu1 %v9993_v61 }
 0x971   :  { %5096 = vmatprep.subr.bf16.mxu0 %v9997_v18  ;;  %5137 = vmatprep.subr.bf16.mxu1 %v9999_v5 }
 0x974   :  { %5097 = vmatpush1.bf16.msra.mxu0 %v10007_v25  ;;  %5138 = vmatpush1.bf16.msra.mxu1 %v10009_v33 }
 0x975   :  { %5098 = vmatprep.subr.bf16.mxu0 %v10013_v54  ;;  %5139 = vmatprep.subr.bf16.mxu1 %v10015_v55  ;;  %v10184_v55 = vld [vmem:[%s11137_s6] sm:$0xff] }
 0x978   :  { %5099 = vmatpush1.bf16.msra.mxu0 %v10019_v56  ;;  %5140 = vmatpush1.bf16.msra.mxu1 %v10021_v46 }
 0x979   :  { %5100 = vmatprep.subr.bf16.mxu0 %v10025_v20  ;;  %5141 = vmatprep.subr.bf16.mxu1 %v10027_v43  ;;  %v11619_v20 = vld [vmem:[#allocation41_spill] sm:$0xff] }
 0x97a   :  { %v11620_v54 = vsub.s32 0, %v11619_v20  ;;  %v11622_v33 = vsub.s32 1, %v11619_v20  ;;  %v11623_v5 = vsub.s32 3, %v11619_v20 }
 0x97c   :  { %5101 = vmatpush1.bf16.msra.mxu0 %v10035_v44  ;;  %5142 = vmatpush1.bf16.msra.mxu1 %v10037_v45  ;;  %v10193_v43 = vrot.slane %v10184_v55, %v11620_v54  ;;  %v11621_v45 = vsub.s32 2, %v11619_v20  ;;  %v10207_v25 = vrot.slane %v10184_v55, %v11622_v33  ;;  %v10212_v18 = vrot.slane %v10184_v55, %v11623_v5 }
 0x97d   :  { %5201 = vmatprep.subr.bf16.mxu0 %v10041_v57  ;;  %5242 = vmatprep.subr.bf16.mxu1 %v10043_v39 }
 0x97e   :  { %v10198_v57 = vrot.slane %v10184_v55, %v11621_v45 }
 0x9b1   :  { %v10186_v56 = vpop.f32.mrb[96].mxu0  ;;  %v10188_v46 = vpop.f32.mrb[96].mxu1 }
 0x9b2   :  { %v10200_v39 = vpop.f32.mrb[97].mxu0  ;;  %v10202_v44 = vpop.f32.mrb[97].mxu1  ;;  %v4340_v53 = vadd.f32 %v10193_v43, %v10186_v56 }
 0x9b3   :  { %v4045_v54 = vpop.f32.mrb[98].mxu0  ;;  %v4118_v61 = vpop.f32.mrb[98].mxu1 }
 0x9b4   :  { %v10215_v10 = vadd.f32 %v10193_v43, %v4045_v54  ;;  %v10218_v45 = vadd.f32 %v10198_v57, %v4118_v61  ;;  %v4047_v11 = vpop.f32.mrb[99].mxu0  ;;  %v4120_v31 = vpop.f32.mrb[99].mxu1 }
 0x9b5   :  { %v10221_v62 = vadd.f32 %v10207_v25, %v4047_v11  ;;  %v10224_v33 = vadd.f32 %v10212_v18, %v4120_v31 }
 0x9b6   :  { %11624 = vst [vmem:[#allocation15_spill] sm:$0xff] %v10215_v10  ;;  %11625 = vst [vmem:[#allocation16_spill] sm:$0xff] %v10218_v45 }
 0x9b7   :  { %11626 = vst [vmem:[#allocation17_spill] sm:$0xff] %v10221_v62  ;;  %11627 = vst [vmem:[#allocation18_spill] sm:$0xff] %v10224_v33 }
 0x9b9   :  { %v4051_v40 = vpop.f32.mrb[100].mxu0  ;;  %v4124_v60 = vpop.f32.mrb[100].mxu1 }
 0x9ba   :  { %v10227_v5 = vadd.f32 %v10193_v43, %v4051_v40  ;;  %v10230_v59 = vadd.f32 %v10198_v57, %v4124_v60  ;;  %v4053_v54 = vpop.f32.mrb[101].mxu0  ;;  %v4126_v10 = vpop.f32.mrb[101].mxu1 }
 0x9bb   :  { %v10233_v61 = vadd.f32 %v10207_v25, %v4053_v54  ;;  %v10236_v45 = vadd.f32 %v10212_v18, %v4126_v10  ;;  %v4055_v11 = vpop.f32.mrb[102].mxu0  ;;  %v4128_v62 = vpop.f32.mrb[102].mxu1 }
 0x9bc   :  { %11628 = vst [vmem:[#allocation19_spill] sm:$0xff] %v10227_v5  ;;  %11629 = vst [vmem:[#allocation20_spill] sm:$0xff] %v10230_v59  ;;  %v10239_v31 = vadd.f32 %v10193_v43, %v4055_v11  ;;  %v10242_v33 = vadd.f32 %v10198_v57, %v4128_v62  ;;  %v4057_v40 = vpop.f32.mrb[103].mxu0  ;;  %v4130_v5 = vpop.f32.mrb[103].mxu1 }
 0x9bd   :  { %11630 = vst [vmem:[#allocation21_spill] sm:$0xff] %v10233_v61  ;;  %11631 = vst [vmem:[#allocation22_spill] sm:$0xff] %v10236_v45  ;;  %v10245_v60 = vadd.f32 %v10207_v25, %v4057_v40  ;;  %v10248_v59 = vadd.f32 %v10212_v18, %v4130_v5 }
 0x9be   :  { %11632 = vst [vmem:[#allocation23_spill] sm:$0xff] %v10239_v31  ;;  %11633 = vst [vmem:[#allocation24_spill] sm:$0xff] %v10242_v33 }
 0x9bf   :  { %11634 = vst [vmem:[#allocation25_spill] sm:$0xff] %v10245_v60  ;;  %11635 = vst [vmem:[#allocation26_spill] sm:$0xff] %v10248_v59 }
 0x9c1   :  { %v4061_v54 = vpop.f32.mrb[104].mxu0  ;;  %v4134_v61 = vpop.f32.mrb[104].mxu1 }
 0x9c2   :  { %v10251_v10 = vadd.f32 %v10193_v43, %v4061_v54  ;;  %v10254_v45 = vadd.f32 %v10198_v57, %v4134_v61  ;;  %v4063_v11 = vpop.f32.mrb[105].mxu0  ;;  %v4136_v31 = vpop.f32.mrb[105].mxu1 }
 0x9c3   :  { %v10257_v62 = vadd.f32 %v10207_v25, %v4063_v11  ;;  %v10260_v33 = vadd.f32 %v10212_v18, %v4136_v31  ;;  %v4065_v40 = vpop.f32.mrb[106].mxu0  ;;  %v4138_v60 = vpop.f32.mrb[106].mxu1 }
 0x9c4   :  { %11636 = vst [vmem:[#allocation27_spill] sm:$0xff] %v10251_v10  ;;  %11637 = vst [vmem:[#allocation28_spill] sm:$0xff] %v10254_v45  ;;  %v10263_v5 = vadd.f32 %v10193_v43, %v4065_v40  ;;  %v10266_v59 = vadd.f32 %v10198_v57, %v4138_v60  ;;  %v4067_v54 = vpop.f32.mrb[107].mxu0  ;;  %v4140_v10 = vpop.f32.mrb[107].mxu1 }
 0x9c5   :  { %11638 = vst [vmem:[#allocation29_spill] sm:$0xff] %v10257_v62  ;;  %11639 = vst [vmem:[#allocation30_spill] sm:$0xff] %v10260_v33  ;;  %v10269_v61 = vadd.f32 %v10207_v25, %v4067_v54  ;;  %v10272_v45 = vadd.f32 %v10212_v18, %v4140_v10 }
 0x9c6   :  { %11640 = vst [vmem:[#allocation31_spill] sm:$0xff] %v10263_v5  ;;  %11641 = vst [vmem:[#allocation32_spill] sm:$0xff] %v10266_v59 }
 0x9c7   :  { %11642 = vst [vmem:[#allocation33_spill] sm:$0xff] %v10269_v61  ;;  %11643 = vst [vmem:[#allocation57_spill] sm:$0xff] %v10272_v45 }
 0x9c9   :  { %v4071_v11 = vpop.f32.mrb[108].mxu0  ;;  %v4144_v62 = vpop.f32.mrb[108].mxu1 }
 0x9ca   :  { %v10275_v31 = vadd.f32 %v10193_v43, %v4071_v11  ;;  %v10278_v33 = vadd.f32 %v10198_v57, %v4144_v62  ;;  %v4073_v40 = vpop.f32.mrb[109].mxu0  ;;  %v4146_v5 = vpop.f32.mrb[109].mxu1 }
 0x9cb   :  { %v10281_v60 = vadd.f32 %v10207_v25, %v4073_v40  ;;  %v10284_v59 = vadd.f32 %v10212_v18, %v4146_v5  ;;  %v4075_v54 = vpop.f32.mrb[110].mxu0  ;;  %v4148_v61 = vpop.f32.mrb[110].mxu1  ;;  %v11652_v40 = vsub.s32 4, %v11619_v20 }
 0x9cc   :  { %11644 = vst [vmem:[#allocation60_spill] sm:$0xff] %v10275_v31  ;;  %11645 = vst [vmem:[#allocation59_spill] sm:$0xff] %v10278_v33  ;;  %v10287_v10 = vadd.f32 %v10193_v43, %v4075_v54  ;;  %v10290_v45 = vadd.f32 %v10198_v57, %v4148_v61  ;;  %v4077_v11 = vpop.f32.mrb[111].mxu0  ;;  %v4150_v31 = vpop.f32.mrb[111].mxu1  ;;  %v11654_v61 = vsub.s32 5, %v11619_v20 }
 0x9cd   :  { %11646 = vst [vmem:[#allocation61_spill] sm:$0xff] %v10281_v60  ;;  %11647 = vst [vmem:[#allocation78_spill] sm:$0xff] %v10284_v59  ;;  %v10293_v62 = vadd.f32 %v10207_v25, %v4077_v11  ;;  %v10296_v33 = vadd.f32 %v10212_v18, %v4150_v31  ;;  %v10301_v5 = vrot.slane %v10184_v55, %v11652_v40  ;;  %v11653_v59 = vsub.s32 6, %v11619_v20 }
 0x9ce   :  { %11648 = vst [vmem:[#allocation80_spill] sm:$0xff] %v10287_v10  ;;  %11649 = vst [vmem:[#allocation79_spill] sm:$0xff] %v10290_v45  ;;  %v10311_v45 = vrot.slane %v10184_v55, %v11654_v61  ;;  %v11655_v11 = vsub.s32 7, %v11619_v20 }
 0x9cf   :  { %11650 = vst [vmem:[#allocation82_spill] sm:$0xff] %v10293_v62  ;;  %11651 = vst [vmem:[#allocation62_spill] sm:$0xff] %v10296_v33  ;;  %v10306_v54 = vrot.slane %v10184_v55, %v11653_v59 }
 0x9d0   :  { %v10316_v31 = vrot.slane %v10184_v55, %v11655_v11 }
 0x9f1   :  { %v4187_v33 = vpop.f32.mrb[112].mxu0  ;;  %v4260_v62 = vpop.f32.mrb[112].mxu1 }
 0x9f2   :  { %v10319_v40 = vadd.f32 %v10301_v5, %v4187_v33  ;;  %v10322_v10 = vadd.f32 %v10306_v54, %v4260_v62  ;;  %v4189_v59 = vpop.f32.mrb[113].mxu0  ;;  %v4262_v60 = vpop.f32.mrb[113].mxu1 }
 0x9f3   :  { %v10325_v36 = vadd.f32 %v10311_v45, %v4189_v59  ;;  %v10328_v61 = vadd.f32 %v10316_v31, %v4262_v60  ;;  %v4191_v20 = vpop.f32.mrb[114].mxu0  ;;  %v4264_v30 = vpop.f32.mrb[114].mxu1 }
 0x9f4   :  { %11656 = vst [vmem:[#allocation64_spill] sm:$0xff] %v10319_v40  ;;  %11657 = vst [vmem:[#allocation63_spill] sm:$0xff] %v10322_v10  ;;  %v10331_v55 = vadd.f32 %v10301_v5, %v4191_v20  ;;  %v10334_v11 = vadd.f32 %v10306_v54, %v4264_v30  ;;  %v4193_v33 = vpop.f32.mrb[115].mxu0  ;;  %v4266_v40 = vpop.f32.mrb[115].mxu1 }
 0x9f5   :  { %11658 = vst [vmem:[#allocation66_spill] sm:$0xff] %v10325_v36  ;;  %11659 = vst [vmem:[#allocation73_spill] sm:$0xff] %v10328_v61  ;;  %v10337_v62 = vadd.f32 %v10311_v45, %v4193_v33  ;;  %v10340_v10 = vadd.f32 %v10316_v31, %v4266_v40 }
 0x9f6   :  { %11660 = vst [vmem:[#allocation76_spill] sm:$0xff] %v10331_v55  ;;  %11661 = vst [vmem:[#allocation75_spill] sm:$0xff] %v10334_v11 }
 0x9f7   :  { %11662 = vst [vmem:[#allocation77_spill] sm:$0xff] %v10337_v62  ;;  %11663 = vst [vmem:[#allocation65_spill] sm:$0xff] %v10340_v10 }
 0x9f9   :  { %v4197_v59 = vpop.f32.mrb[116].mxu0  ;;  %v4270_v36 = vpop.f32.mrb[116].mxu1 }
 0x9fa   :  { %v10343_v60 = vadd.f32 %v10301_v5, %v4197_v59  ;;  %v10346_v61 = vadd.f32 %v10306_v54, %v4270_v36  ;;  %v4199_v20 = vpop.f32.mrb[117].mxu0  ;;  %v4272_v55 = vpop.f32.mrb[117].mxu1 }
 0x9fb   :  { %v10349_v30 = vadd.f32 %v10311_v45, %v4199_v20  ;;  %v10352_v11 = vadd.f32 %v10316_v31, %v4272_v55  ;;  %v4201_v33 = vpop.f32.mrb[118].mxu0  ;;  %v4274_v62 = vpop.f32.mrb[118].mxu1 }
 0x9fc   :  { %11664 = vst [vmem:[#allocation68_spill] sm:$0xff] %v10343_v60  ;;  %11665 = vst [vmem:[#allocation67_spill] sm:$0xff] %v10346_v61  ;;  %v10355_v40 = vadd.f32 %v10301_v5, %v4201_v33  ;;  %v10358_v10 = vadd.f32 %v10306_v54, %v4274_v62  ;;  %v4203_v59 = vpop.f32.mrb[119].mxu0  ;;  %v4276_v60 = vpop.f32.mrb[119].mxu1 }
 0x9fd   :  { %11666 = vst [vmem:[#allocation69_spill] sm:$0xff] %v10349_v30  ;;  %11667 = vst [vmem:[#allocation70_spill] sm:$0xff] %v10352_v11  ;;  %v10361_v36 = vadd.f32 %v10311_v45, %v4203_v59  ;;  %v10364_v61 = vadd.f32 %v10316_v31, %v4276_v60 }
 0x9fe   :  { %11668 = vst [vmem:[#allocation72_spill] sm:$0xff] %v10355_v40  ;;  %11669 = vst [vmem:[#allocation71_spill] sm:$0xff] %v10358_v10 }
 0x9ff   :  { %11670 = vst [vmem:[#allocation74_spill] sm:$0xff] %v10361_v36  ;;  %11671 = vst [vmem:[#allocation98_spill] sm:$0xff] %v10364_v61 }
 0xa01   :  { %v4207_v20 = vpop.f32.mrb[120].mxu0  ;;  %v4280_v30 = vpop.f32.mrb[120].mxu1 }
 0xa02   :  { %v10367_v55 = vadd.f32 %v10301_v5, %v4207_v20  ;;  %v10370_v11 = vadd.f32 %v10306_v54, %v4280_v30  ;;  %v4209_v33 = vpop.f32.mrb[121].mxu0  ;;  %v4282_v40 = vpop.f32.mrb[121].mxu1 }
 0xa03   :  { %v10373_v62 = vadd.f32 %v10311_v45, %v4209_v33  ;;  %v10376_v10 = vadd.f32 %v10316_v31, %v4282_v40  ;;  %v4211_v59 = vpop.f32.mrb[122].mxu0  ;;  %v4284_v36 = vpop.f32.mrb[122].mxu1 }
 0xa04   :  { %11672 = vst [vmem:[#allocation13_spill] sm:$0xff] %v10367_v55  ;;  %11673 = vst [vmem:[#allocation34_spill] sm:$0xff] %v10370_v11  ;;  %v10379_v60 = vadd.f32 %v10301_v5, %v4211_v59  ;;  %v10382_v61 = vadd.f32 %v10306_v54, %v4284_v36  ;;  %v4213_v20 = vpop.f32.mrb[123].mxu0  ;;  %v4286_v55 = vpop.f32.mrb[123].mxu1 }
 0xa05   :  { %11674 = vst [vmem:[#allocation45_spill] sm:$0xff] %v10373_v62  ;;  %11675 = vst [vmem:[#allocation94_spill] sm:$0xff] %v10376_v10  ;;  %v10385_v30 = vadd.f32 %v10311_v45, %v4213_v20  ;;  %v10388_v11 = vadd.f32 %v10316_v31, %v4286_v55 }
 0xa06   :  { %11676 = vst [vmem:[#allocation43_spill] sm:$0xff] %v10379_v60  ;;  %11677 = vst [vmem:[#allocation14_spill] sm:$0xff] %v10382_v61 }
 0xa07   :  { %11678 = vst [vmem:[#allocation40_spill] sm:$0xff] %v10385_v30  ;;  %11679 = vst [vmem:[#allocation41_spill] sm:$0xff] %v10388_v11 }
 0xa09   :  { %v4217_v33 = vpop.f32.mrb[124].mxu0  ;;  %v4290_v62 = vpop.f32.mrb[124].mxu1 }
 0xa0a   :  { %v10391_v40 = vadd.f32 %v10301_v5, %v4217_v33  ;;  %v10394_v10 = vadd.f32 %v10306_v54, %v4290_v62  ;;  %v4219_v59 = vpop.f32.mrb[125].mxu0  ;;  %v4292_v60 = vpop.f32.mrb[125].mxu1  ;;  %v4342_v33 = vadd.f32 %v10198_v57, %v10188_v46  ;;  %v4341_v62 = vadd.f32 %v10207_v25, %v10200_v39 }
 0xa0b   :  { %v10397_v36 = vadd.f32 %v10311_v45, %v4219_v59  ;;  %v10400_v61 = vadd.f32 %v10316_v31, %v4292_v60  ;;  %v4221_v20 = vpop.f32.mrb[126].mxu0  ;;  %v4294_v30 = vpop.f32.mrb[126].mxu1  ;;  %v4343_v59 = vadd.f32 %v10212_v18, %v10202_v44 }
 0xa0c   :  { %11680 = vst [vmem:[#allocation99_spill] sm:$0xff] %v10391_v40  ;;  %11681 = vst [vmem:[#allocation100_spill] sm:$0xff] %v10394_v10  ;;  %v4223_v55 = vpop.f32.mrb[127].mxu0  ;;  %v4296_v11 = vpop.f32.mrb[127].mxu1 }
 0xa0d   :  { %11682 = vst [vmem:[#allocation101_spill] sm:$0xff] %v10397_v36  ;;  %11683 = vst [vmem:[#allocation102_spill] sm:$0xff] %v10400_v61 }
 0xa12   :  { %v4731_v36 = vpop.f32.mrb[128].mxu0  ;;  %v4772_v10 = vpop.f32.mrb[128].mxu1 }
 0xa13   :  { %v4779_v60 = vadd.f32 %v4731_v36, %v4340_v53  ;;  %v4781_v61 = vadd.f32 %v4772_v10, %v4342_v33  ;;  %v4733_v40 = vpop.f32.mrb[129].mxu0  ;;  %v4774_v58 = vpop.f32.mrb[129].mxu1  ;;  %v4403_v33 = vadd.f32 %v10316_v31, %v4296_v11 }
 0xa14   :  { %v4780_v42 = vadd.f32 %v4733_v40, %v4341_v62  ;;  %v4782_v14 = vadd.f32 %v4774_v58, %v4343_v59  ;;  %v4735_v3 = vpop.f32.mrb[130].mxu0  ;;  %v4776_v35 = vpop.f32.mrb[130].mxu1 }
 0xa15   :  { %v7154_v56 = vmul.f32 -1.442695, %v4779_v60  ;;  %v4736_v43 = vpop.f32.mrb[131].mxu0  ;;  %v4777_v16 = vpop.f32.mrb[131].mxu1 }
 0xa16   :  { %v7155_v46 = vmul.f32 -1.442695, %v4780_v42  ;;  %v7156_v25 = vmul.f32 -1.442695, %v4782_v14  ;;  %v4400_v16 = vadd.f32 %v10301_v5, %v4221_v20  ;;  %v4402_v42 = vadd.f32 %v10306_v54, %v4294_v30 }
 0xa17   :  { %7762 = vpow2.f32 %v7154_v56  ;;  %v4401_v14 = vadd.f32 %v10311_v45, %v4223_v55 }
 0xa18   :  { %7764 = vpow2.f32 %v7155_v46 }
 0xa19   :  { %7766 = vpow2.f32 %v7156_v25 }
 0xa1a   :  { %7768 = vtanh.f32 %v4781_v61 }
 0xa21   :  { %v7763_v57 = vpop.eup %7762 }
 0xa22   :  { %v7765_v39 = vpop.eup %7764  ;;  %v4789_v18 = vadd.f32 1.0, %v7763_v57 }
 0xa23   :  { %v4790_v53 = vadd.f32 1.0, %v7765_v39  ;;  %v7767_v44 = vpop.eup %7766 }
 0xa24   :  { %7770 = vrcp.f32 %v4789_v18  ;;  %v7769_v10 = vpop.eup %7768  ;;  %v4799_v40 = vadd.f32 1.0, %v7767_v44 }
 0xa25   :  { %7772 = vrcp.f32 %v4790_v53 }
 0xa26   :  { %7774 = vrcp.f32 %v4799_v40 }
 0xa2e   :  { %v7771_v58 = vpop.eup %7770 }
 0xa2f   :  { %v7773_v3 = vpop.eup %7772  ;;  %v4803_v35 = vmul.f32 %v7771_v58, %v7769_v10 }
 0xa30   :  { %v4802_v36 = vmul.f32 0.0, %v7773_v3  ;;  %v7775_v31 = vpop.eup %7774 }
 0xa32   :  { %v10414_v62 = vadd.f32 %v4803_v35, %v4802_v36  ;;  %v5005_v61 = vpop.f32.mrb[132].mxu0  ;;  %v5046_v59 = vpop.f32.mrb[132].mxu1 }
 0xa33   :  { %v5053_v60 = vadd.f32 %v5005_v61, %v4400_v16  ;;  %v5055_v56 = vadd.f32 %v5046_v59, %v4402_v42  ;;  %v5007_v43 = vpop.f32.mrb[133].mxu0  ;;  %v5048_v46 = vpop.f32.mrb[133].mxu1  ;;  %v11684_v59 = vld [vmem:[#allocation85_spill] sm:$0xff] }
 0xa34   :  { %7776 = vtanh.f32 %v10414_v62  ;;  %v5054_v25 = vadd.f32 %v5007_v43, %v4401_v14  ;;  %v5056_v57 = vadd.f32 %v5048_v46, %v4403_v33  ;;  %v5009_v5 = vpop.f32.mrb[134].mxu0  ;;  %v5050_v20 = vpop.f32.mrb[134].mxu1 }
 0xa35   :  { %v7189_v54 = vmul.f32 -1.442695, %v5053_v60  ;;  %v5010_v30 = vpop.f32.mrb[135].mxu0  ;;  %v5051_v45 = vpop.f32.mrb[135].mxu1  ;;  %v11687_v5 = vld [vmem:[#allocation48_spill] sm:$0xff]  ;;  %v11688_v20 = vld [vmem:[#allocation47_spill] sm:$0xff] }
 0xa36   :  { %v7190_v55 = vmul.f32 -1.442695, %v5054_v25  ;;  %v7191_v39 = vmul.f32 -1.442695, %v5056_v57  ;;  %v11685_v25 = vld [vmem:[#allocation97_spill] sm:$0xff]  ;;  %v11686_v57 = vld [vmem:[#allocation46_spill] sm:$0xff] }
 0xa37   :  { %7778 = vpow2.f32 %v7189_v54  ;;  %v11689_v54 = vld [vmem:[#allocation50_spill] sm:$0xff]  ;;  %v11692_v30 = vld [vmem:[#allocation91_spill] sm:$0xff]  ;;  %v11694_v45 = vld [vmem:[#allocation49_spill] sm:$0xff] }
 0xa38   :  { %7780 = vpow2.f32 %v7190_v55  ;;  %v11695_v55 = vld [vmem:[#allocation52_spill] sm:$0xff] }
 0xa39   :  { %7782 = vpow2.f32 %v7191_v39  ;;  %v11698_v39 = vld [vmem:[#allocation86_spill] sm:$0xff] }
 0xa3a   :  { %7784 = vtanh.f32 %v5055_v56 }
 0xa3e   :  { %v7777_v11 = vpop.eup %7776 }
 0xa3f   :  { %v4806_v18 = vmul.f32 %v7777_v11, %v7775_v31  ;;  %v11696_v31 = vld [vmem:[#allocation51_spill] sm:$0xff]  ;;  %v11697_v11 = vld [vmem:[#allocation53_spill] sm:$0xff] }
 0xa41   :  { %v7779_v53 = vpop.eup %7778  ;;  %v5085_v44 = vpack.c.bf16 %v4806_v18, %v4806_v18  ;;  %v11699_v18 = vld [vmem:[#allocation88_spill] sm:$0xff] }
 0xa42   :  { %v7781_v10 = vpop.eup %7780  ;;  %v5063_v58 = vadd.f32 1.0, %v7779_v53  ;;  %v11700_v53 = vld [vmem:[#allocation87_spill] sm:$0xff] }
 0xa43   :  { %v5064_v3 = vadd.f32 1.0, %v7781_v10  ;;  %5119 = vmatmul.mubr.bf16.vlgmr.msra.gmra.mrb[136].mxu0 %v5085_v44  ;;  %5160 = vmatmul.mubr.bf16.vlgmr.msra.gmra.mrb[136].mxu1 %v5085_v44  ;;  %v7783_v35 = vpop.eup %7782  ;;  %v11701_v44 = vld [vmem:[#allocation90_spill] sm:$0xff]  ;;  %v11702_v10 = vld [vmem:[#allocation35_spill] sm:$0xff] }
 0xa44   :  { %7786 = vrcp.f32 %v5063_v58  ;;  %5202 = vmatpush1.bf16.msra.mxu0 %v10047_v27  ;;  %5243 = vmatpush1.bf16.msra.mxu1 %v10049_v24  ;;  %v7785_v40 = vpop.eup %7784  ;;  %v5073_v14 = vadd.f32 1.0, %v7783_v35  ;;  %v11703_v58 = vld [vmem:[#allocation36_spill] sm:$0xff]  ;;  %v11705_v35 = vld [vmem:[#allocation38_spill] sm:$0xff] }
 0xa45   :  { %7788 = vrcp.f32 %v5064_v3  ;;  %5203 = vmatprep.subr.bf16.mxu0 %v10053_v47  ;;  %5244 = vmatprep.subr.bf16.mxu1 %v10055_v15  ;;  %v11704_v3 = vld [vmem:[#allocation37_spill] sm:$0xff] }
 0xa46   :  { %5233 = vmatprep.mubr.bf16.mxu0 %v11353_v2  ;;  %5274 = vmatprep.mubr.bf16.mxu1 %v11353_v2  ;;  %7790 = vrcp.f32 %v5073_v14  ;;  %v11710_v14 = vld [vmem:[#allocation56_spill] sm:$0xff] }
 0xa48   :  { %5204 = vmatpush1.bf16.msra.mxu0 %v10061_v51  ;;  %5245 = vmatpush1.bf16.msra.mxu1 %v10063_v9 }
 0xa49   :  { %5205 = vmatprep.subr.bf16.mxu0 %v10067_v13  ;;  %5246 = vmatprep.subr.bf16.mxu1 %v10069_v19 }
 0xa4c   :  { %5206 = vmatpush1.bf16.msra.mxu0 %v10075_v7  ;;  %5247 = vmatpush1.bf16.msra.mxu1 %v10077_v22 }
 0xa4d   :  { %5207 = vmatprep.subr.bf16.mxu0 %v10081_v48  ;;  %5248 = vmatprep.subr.bf16.mxu1 %v10083_v49 }
 0xa4e   :  { %v7787_v36 = vpop.eup %7786 }
 0xa4f   :  { %v7789_v16 = vpop.eup %7788  ;;  %v5077_v42 = vmul.f32 %v7787_v36, %v7785_v40  ;;  %v11706_v40 = vld [vmem:[#allocation39_spill] sm:$0xff]  ;;  %v11707_v36 = vld [vmem:[#allocation42_spill] sm:$0xff] }
 0xa50   :  { %v5076_v33 = vmul.f32 0.0, %v7789_v16  ;;  %5208 = vmatpush1.bf16.msra.mxu0 %v10087_v12  ;;  %5249 = vmatpush1.bf16.msra.mxu1 %v10089_v52  ;;  %v7791_v60 = vpop.eup %7790  ;;  %v11708_v16 = vld [vmem:[#allocation44_spill] sm:$0xff] }
 0xa51   :  { %5209 = vmatprep.subr.bf16.mxu0 %v10093_v34  ;;  %5250 = vmatprep.subr.bf16.mxu1 %v10095_v29 }
 0xa52   :  { %v10435_v61 = vadd.f32 %v5077_v42, %v5076_v33  ;;  %v11709_v42 = vld [vmem:[#allocation54_spill] sm:$0xff]  ;;  %v11711_v33 = vld [vmem:[#allocation55_spill] sm:$0xff] }
 0xa54   :  { %7792 = vtanh.f32 %v10435_v61  ;;  %5210 = vmatpush1.bf16.msra.mxu0 %v10099_v8  ;;  %5251 = vmatpush1.bf16.msra.mxu1 %v10101_v6 }
 0xa55   :  { %5211 = vmatprep.subr.bf16.mxu0 %v10105_v1  ;;  %5252 = vmatprep.subr.bf16.mxu1 %v10107_v26 }
 0xa58   :  { %5212 = vmatpush1.bf16.msra.mxu0 %v11684_v59  ;;  %5253 = vmatpush1.bf16.msra.mxu1 %v10113_v41 }
 0xa59   :  { %5213 = vmatprep.subr.bf16.mxu0 %v10117_v0  ;;  %5254 = vmatprep.subr.bf16.mxu1 %v10119_v50 }
 0xa5c   :  { %5214 = vmatpush1.bf16.msra.mxu0 %v10123_v32  ;;  %5255 = vmatpush1.bf16.msra.mxu1 %v10125_v37 }
 0xa5d   :  { %5215 = vmatprep.subr.bf16.mxu0 %v10129_v21  ;;  %5256 = vmatprep.subr.bf16.mxu1 %v10131_v23 }
 0xa5e   :  { %v7793_v56 = vpop.eup %7792 }
 0xa5f   :  { %v5080_v43 = vmul.f32 %v7793_v56, %v7791_v60  ;;  %v11712_v60 = vld [vmem:[#allocation58_spill] sm:$0xff]  ;;  %v11713_v56 = vld [vmem:[#allocation81_spill] sm:$0xff] }
 0xa60   :  { %5216 = vmatpush1.bf16.msra.mxu0 %v10135_v28  ;;  %5257 = vmatpush1.bf16.msra.mxu1 %v10137_v17 }
 0xa61   :  { %v5200_v46 = vpack.c.bf16 %v5080_v43, %v5080_v43  ;;  %5316 = vmatprep.subr.bf16.mxu0 %v9931_v63  ;;  %5357 = vmatprep.subr.bf16.mxu1 %v9933_v38  ;;  %v11690_v63 = vld [vmem:[#allocation89_spill] sm:$0xff]  ;;  %v11691_v38 = vld [vmem:[#allocation92_spill] sm:$0xff] }
 0xa62   :  { %v11714_v43 = vld [vmem:[#allocation84_spill] sm:$0xff] }
 0xa63   :  { %5234 = vmatmul.mubr.bf16.vlgmr.msra.gmra.mrb[140].mxu0 %v5200_v46  ;;  %5275 = vmatmul.mubr.bf16.vlgmr.msra.gmra.mrb[140].mxu1 %v5200_v46  ;;  %v11715_v46 = vld [vmem:[#allocation83_spill] sm:$0xff] }
 0xa64   :  { %5317 = vmatpush1.bf16.msra.mxu0 %v9937_v4  ;;  %5358 = vmatpush1.bf16.msra.mxu1 %v11685_v25  ;;  %v11693_v4 = vld [vmem:[#allocation93_spill] sm:$0xff] }
 0xa65   :  { %5318 = vmatprep.subr.bf16.mxu0 %v11686_v57  ;;  %5359 = vmatprep.subr.bf16.mxu1 %v11687_v5  ;;  %v11716_v5 = vld [vmem:[#allocation15_spill] sm:$0xff] }
 0xa66   :  { %5348 = vmatprep.mubr.bf16.mxu0 %v11353_v2  ;;  %5389 = vmatprep.mubr.bf16.mxu1 %v11353_v2 }
 0xa68   :  { %5319 = vmatpush1.bf16.msra.mxu0 %v11688_v20  ;;  %5360 = vmatpush1.bf16.msra.mxu1 %v11689_v54  ;;  %v11717_v54 = vld [vmem:[#allocation16_spill] sm:$0xff] }
 0xa69   :  { %5320 = vmatprep.subr.bf16.mxu0 %v11690_v63  ;;  %5361 = vmatprep.subr.bf16.mxu1 %v11691_v38 }
 0xa6c   :  { %5321 = vmatpush1.bf16.msra.mxu0 %v11692_v30  ;;  %5362 = vmatpush1.bf16.msra.mxu1 %v11693_v4  ;;  %v11718_v4 = vld [vmem:[#allocation17_spill] sm:$0xff] }
 0xa6d   :  { %5322 = vmatprep.subr.bf16.mxu0 %v11694_v45  ;;  %5363 = vmatprep.subr.bf16.mxu1 %v11695_v55  ;;  %v11719_v55 = vld [vmem:[#allocation18_spill] sm:$0xff] }
 0xa70   :  { %5323 = vmatpush1.bf16.msra.mxu0 %v11696_v31  ;;  %5364 = vmatpush1.bf16.msra.mxu1 %v11697_v11 }
 0xa71   :  { %5324 = vmatprep.subr.bf16.mxu0 %v11698_v39  ;;  %5365 = vmatprep.subr.bf16.mxu1 %v11699_v18 }
 0xa74   :  { %5325 = vmatpush1.bf16.msra.mxu0 %v11700_v53  ;;  %5366 = vmatpush1.bf16.msra.mxu1 %v11701_v44 }
 0xa75   :  { %5326 = vmatprep.subr.bf16.mxu0 %v11702_v10  ;;  %5367 = vmatprep.subr.bf16.mxu1 %v11703_v58 }
 0xa78   :  { %5327 = vmatpush1.bf16.msra.mxu0 %v11704_v3  ;;  %5368 = vmatpush1.bf16.msra.mxu1 %v11705_v35 }
 0xa79   :  { %5328 = vmatprep.subr.bf16.mxu0 %v11706_v40  ;;  %5369 = vmatprep.subr.bf16.mxu1 %v11707_v36 }
 0xa7c   :  { %5329 = vmatpush1.bf16.msra.mxu0 %v11708_v16  ;;  %5370 = vmatpush1.bf16.msra.mxu1 %v11709_v42 }
 0xa7d   :  { %5330 = vmatprep.subr.bf16.mxu0 %v11710_v14  ;;  %5371 = vmatprep.subr.bf16.mxu1 %v11711_v33 }
 0xa80   :  { %5331 = vmatpush1.bf16.msra.mxu0 %v11712_v60  ;;  %5372 = vmatpush1.bf16.msra.mxu1 %v11713_v56 }
 0xa81   :  { %5431 = vmatprep.subr.bf16.mxu0 %v11714_v43  ;;  %5472 = vmatprep.subr.bf16.mxu1 %v11715_v46 }
 0xb16   :  { %v5120_v25 = vpop.f32.mrb[136].mxu0  ;;  %v5161_v57 = vpop.f32.mrb[136].mxu1 }
 0xb17   :  { %v5168_v20 = vadd.f32 %v5120_v25, %v11716_v5  ;;  %v5170_v63 = vadd.f32 %v5161_v57, %v11717_v54  ;;  %v5122_v38 = vpop.f32.mrb[137].mxu0  ;;  %v5163_v30 = vpop.f32.mrb[137].mxu1  ;;  %v11720_v5 = vld [vmem:[#allocation99_spill] sm:$0xff]  ;;  %v11721_v54 = vld [vmem:[#allocation100_spill] sm:$0xff] }
 0xb18   :  { %v5169_v45 = vadd.f32 %v5122_v38, %v11718_v4  ;;  %v5171_v31 = vadd.f32 %v5163_v30, %v11719_v55  ;;  %v5124_v11 = vpop.f32.mrb[138].mxu0  ;;  %v5165_v39 = vpop.f32.mrb[138].mxu1  ;;  %v11722_v4 = vld [vmem:[#allocation101_spill] sm:$0xff]  ;;  %v11723_v55 = vld [vmem:[#allocation102_spill] sm:$0xff] }
 0xb19   :  { %v7192_v18 = vmul.f32 -1.442695, %v5168_v20  ;;  %v5125_v53 = vpop.f32.mrb[139].mxu0  ;;  %v5166_v44 = vpop.f32.mrb[139].mxu1 }
 0xb1a   :  { %v7193_v10 = vmul.f32 -1.442695, %v5169_v45  ;;  %v7194_v58 = vmul.f32 -1.442695, %v5171_v31 }
 0xb1b   :  { %7794 = vpow2.f32 %v7192_v18 }
 0xb1c   :  { %7796 = vpow2.f32 %v7193_v10 }
 0xb1d   :  { %7798 = vpow2.f32 %v7194_v58 }
 0xb1e   :  { %7800 = vtanh.f32 %v5170_v63 }
 0xb25   :  { %v7795_v3 = vpop.eup %7794 }
 0xb26   :  { %v7797_v35 = vpop.eup %7796  ;;  %v5178_v40 = vadd.f32 1.0, %v7795_v3 }
 0xb27   :  { %v5179_v36 = vadd.f32 1.0, %v7797_v35  ;;  %v7799_v16 = vpop.eup %7798 }
 0xb28   :  { %7802 = vrcp.f32 %v5178_v40  ;;  %v7801_v42 = vpop.eup %7800  ;;  %v5188_v56 = vadd.f32 1.0, %v7799_v16 }
 0xb29   :  { %7804 = vrcp.f32 %v5179_v36 }
 0xb2a   :  { %7806 = vrcp.f32 %v5188_v56  ;;  %v10601_v56 = vld [vmem:[#allocation10 + $0xac] ss:$16 sps:$4 sm:$0xff]  }
 0xb2b   :  { %11735 = vst [vmem:[#allocation52_spill] sm:$0xff] %v10601_v56 }
 0xb32   :  { %v7803_v14 = vpop.eup %7802 }
 0xb33   :  { %v7805_v33 = vpop.eup %7804  ;;  %v5192_v60 = vmul.f32 %v7803_v14, %v7801_v42 }
 0xb34   :  { %v5191_v43 = vmul.f32 %v7805_v33, %v10414_v62  ;;  %v7807_v10 = vpop.eup %7806 }
 0xb36   :  { %v10493_v46 = vadd.f32 %v5192_v60, %v5191_v43  ;;  %v5235_v25 = vpop.f32.mrb[140].mxu0  ;;  %v5276_v57 = vpop.f32.mrb[140].mxu1  ;;  %v10598_v60 = vld [vmem:[#allocation10 + $0xa4] ss:$16 sps:$4 sm:$0xff]   ;;  %v10604_v43 = vld [vmem:[#allocation10 + $0xa0] ss:$16 sps:$4 sm:$0xff]  }
 0xb37   :  { %v5283_v20 = vadd.f32 %v5235_v25, %v11720_v5  ;;  %v5285_v63 = vadd.f32 %v5276_v57, %v11721_v54  ;;  %v5237_v38 = vpop.f32.mrb[141].mxu0  ;;  %v5278_v30 = vpop.f32.mrb[141].mxu1  ;;  %11734 = vst [vmem:[#allocation49_spill] sm:$0xff] %v10598_v60  ;;  %11736 = vst [vmem:[#allocation51_spill] sm:$0xff] %v10604_v43  ;;  %v10607_v25 = vld [vmem:[#allocation10 + $0xa8] ss:$16 sps:$4 sm:$0xff]  }
 0xb38   :  { %v5284_v45 = vadd.f32 %v5237_v38, %v11722_v4  ;;  %v5286_v31 = vadd.f32 %v5278_v30, %v11723_v55  ;;  %v5239_v11 = vpop.f32.mrb[142].mxu0  ;;  %v5280_v39 = vpop.f32.mrb[142].mxu1  ;;  %7808 = vtanh.f32 %v10493_v46  ;;  %11737 = vst [vmem:[#allocation53_spill] sm:$0xff] %v10607_v25  ;;  %v10610_v57 = vld [vmem:[#allocation10 + $0xc4] ss:$16 sps:$4 sm:$0xff]  }
 0xb39   :  { %v7195_v62 = vmul.f32 -1.442695, %v5283_v20  ;;  %v5240_v18 = vpop.f32.mrb[143].mxu0  ;;  %v5281_v53 = vpop.f32.mrb[143].mxu1  ;;  %11738 = vst [vmem:[#allocation86_spill] sm:$0xff] %v10610_v57  ;;  %v11748_v39 = vld [vmem:[#allocation19_spill] sm:$0xff] }
 0xb3a   :  { %v7196_v44 = vmul.f32 -1.442695, %v5284_v45  ;;  %v7197_v3 = vmul.f32 -1.442695, %v5286_v31  ;;  %v10613_v5 = vld [vmem:[#allocation10 + $0xcc] ss:$16 sps:$4 sm:$0xff]  }
 0xb3b   :  { %7810 = vpow2.f32 %v7195_v62  ;;  %11739 = vst [vmem:[#allocation88_spill] sm:$0xff] %v10613_v5  ;;  %v10616_v20 = vld [vmem:[#allocation10 + $0xc0] ss:$16 sps:$4 sm:$0xff]   ;;  %v10619_v54 = vld [vmem:[#allocation10 + $0xc8] ss:$16 sps:$4 sm:$0xff]  }
 0xb3c   :  { %7812 = vpow2.f32 %v7196_v44  ;;  %11740 = vst [vmem:[#allocation87_spill] sm:$0xff] %v10616_v20  ;;  %11741 = vst [vmem:[#allocation90_spill] sm:$0xff] %v10619_v54  ;;  %v10625_v38 = vld [vmem:[#allocation10 + $0xec] ss:$16 sps:$4 sm:$0xff]   ;;  %v10628_v30 = vld [vmem:[#allocation10 + $0xe0] ss:$16 sps:$4 sm:$0xff]  }
 0xb3d   :  { %7814 = vpow2.f32 %v7197_v3  ;;  %11743 = vst [vmem:[#allocation36_spill] sm:$0xff] %v10625_v38  ;;  %11744 = vst [vmem:[#allocation37_spill] sm:$0xff] %v10628_v30  ;;  %v10631_v4 = vld [vmem:[#allocation10 + $0xe8] ss:$16 sps:$4 sm:$0xff]   ;;  %v10634_v45 = vld [vmem:[#allocation10 + $0x104] ss:$16 sps:$4 sm:$0xff]  }
 0xb3e   :  { %7816 = vtanh.f32 %v5285_v63  ;;  %v10622_v63 = vld [vmem:[#allocation10 + $0xe4] ss:$16 sps:$4 sm:$0xff]   ;;  %11745 = vst [vmem:[#allocation38_spill] sm:$0xff] %v10631_v4  ;;  %11746 = vst [vmem:[#allocation39_spill] sm:$0xff] %v10634_v45  ;;  %v10637_v55 = vld [vmem:[#allocation10 + $0x10c] ss:$16 sps:$4 sm:$0xff]  }
 0xb3f   :  { %11742 = vst [vmem:[#allocation35_spill] sm:$0xff] %v10622_v63  ;;  %11747 = vst [vmem:[#allocation42_spill] sm:$0xff] %v10637_v55  ;;  %v11749_v18 = vld [vmem:[#allocation20_spill] sm:$0xff] }
 0xb42   :  { %v7809_v58 = vpop.eup %7808 }
 0xb43   :  { %v5195_v35 = vmul.f32 %v7809_v58, %v7807_v10  ;;  %v11750_v58 = vld [vmem:[#allocation21_spill] sm:$0xff] }
 0xb45   :  { %v7811_v40 = vpop.eup %7810  ;;  %v5315_v36 = vpack.c.bf16 %v5195_v35, %v5195_v35  ;;  %v11751_v35 = vld [vmem:[#allocation22_spill] sm:$0xff] }
 0xb46   :  { %v7813_v16 = vpop.eup %7812  ;;  %v5293_v42 = vadd.f32 1.0, %v7811_v40 }
 0xb47   :  { %v5294_v14 = vadd.f32 1.0, %v7813_v16  ;;  %5349 = vmatmul.mubr.bf16.vlgmr.msra.gmra.mrb[144].mxu0 %v5315_v36  ;;  %5390 = vmatmul.mubr.bf16.vlgmr.msra.gmra.mrb[144].mxu1 %v5315_v36 }
 0xb48   :  { %7818 = vrcp.f32 %v5293_v42  ;;  %5432 = vmatpush1.bf16.msra.mxu0 %v10047_v27  ;;  %5473 = vmatpush1.bf16.msra.mxu1 %v10049_v24  ;;  %v7815_v27 = vpop.eup %7814 }
 0xb49   :  { %7820 = vrcp.f32 %v5294_v14  ;;  %5433 = vmatprep.subr.bf16.mxu0 %v10053_v47  ;;  %5474 = vmatprep.subr.bf16.mxu1 %v10055_v15  ;;  %v7817_v24 = vpop.eup %7816 }
 0xb4a   :  { %5463 = vmatprep.mubr.bf16.mxu0 %v11353_v2  ;;  %5504 = vmatprep.mubr.bf16.mxu1 %v11353_v2 }
 0xb4c   :  { %5434 = vmatpush1.bf16.msra.mxu0 %v10061_v51  ;;  %5475 = vmatpush1.bf16.msra.mxu1 %v10063_v9  ;;  %v5303_v51 = vadd.f32 1.0, %v7815_v27 }
 0xb4d   :  { %5435 = vmatprep.subr.bf16.mxu0 %v10067_v13  ;;  %5476 = vmatprep.subr.bf16.mxu1 %v10069_v19 }
 0xb4e   :  { %7822 = vrcp.f32 %v5303_v51 }
 0xb50   :  { %5436 = vmatpush1.bf16.msra.mxu0 %v10075_v7  ;;  %5477 = vmatpush1.bf16.msra.mxu1 %v10077_v22 }
 0xb51   :  { %5437 = vmatprep.subr.bf16.mxu0 %v10081_v48  ;;  %5478 = vmatprep.subr.bf16.mxu1 %v10083_v49  ;;  %v10536_v49 = vld [vmem:[#allocation10 + $0x4] ss:$16 sps:$4 sm:$0xff]  }
 0xb52   :  { %v7819_v47 = vpop.eup %7818 }
 0xb53   :  { %v7821_v15 = vpop.eup %7820  ;;  %v5307_v33 = vmul.f32 %v7819_v47, %v7817_v24 }
 0xb54   :  { %v5306_v9 = vmul.f32 %v7821_v15, %v10435_v61  ;;  %5438 = vmatpush1.bf16.msra.mxu0 %v10087_v12  ;;  %5479 = vmatpush1.bf16.msra.mxu1 %v10089_v52  ;;  %v10539_v12 = vld [vmem:[#allocation10 + $0xc] ss:$16 sps:$4 sm:$0xff]   ;;  %v10542_v52 = vld [vmem:[#allocation10] ss:$16 sps:$4 sm:$0xff]  }
 0xb55   :  { %5439 = vmatprep.subr.bf16.mxu0 %v10093_v34  ;;  %5480 = vmatprep.subr.bf16.mxu1 %v10095_v29  ;;  %v10551_v34 = vld [vmem:[#allocation10 + $0x2c] ss:$16 sps:$4 sm:$0xff]   ;;  %v10556_v29 = vld [vmem:[#allocation10 + $0x20] ss:$16 sps:$4 sm:$0xff]  }
 0xb56   :  { %v10519_v13 = vadd.f32 %v5307_v33, %v5306_v9  ;;  %v10592_v61 = vld [vmem:[#allocation10 + $0x80] ss:$16 sps:$4 sm:$0xff]  }
 0xb57   :  { %11732 = vst [vmem:[#allocation91_spill] sm:$0xff] %v10592_v61 }
 0xb58   :  { %5440 = vmatpush1.bf16.msra.mxu0 %v10099_v8  ;;  %5481 = vmatpush1.bf16.msra.mxu1 %v10101_v6  ;;  %7824 = vtanh.f32 %v10519_v13  ;;  %v7823_v19 = vpop.eup %7822  ;;  %v10559_v8 = vld [vmem:[#allocation10 + $0x28] ss:$16 sps:$4 sm:$0xff]   ;;  %v10562_v6 = vld [vmem:[#allocation10 + $0x44] ss:$16 sps:$4 sm:$0xff]  }
 0xb59   :  { %5441 = vmatprep.subr.bf16.mxu0 %v10105_v1  ;;  %5482 = vmatprep.subr.bf16.mxu1 %v10107_v26  ;;  %v10565_v1 = vld [vmem:[#allocation10 + $0x4c] ss:$16 sps:$4 sm:$0xff]   ;;  %v10568_v26 = vld [vmem:[#allocation10 + $0x40] ss:$16 sps:$4 sm:$0xff]  }
 0xb5a   :  { %11724 = vst [vmem:[#allocation85_spill] sm:$0xff] %v10568_v26 }
 0xb5c   :  { %5442 = vmatpush1.bf16.msra.mxu0 %v11684_v59  ;;  %5483 = vmatpush1.bf16.msra.mxu1 %v10113_v41  ;;  %v10574_v41 = vld [vmem:[#allocation10 + $0x64] ss:$16 sps:$4 sm:$0xff]   ;;  %v10595_v59 = vld [vmem:[#allocation10 + $0x88] ss:$16 sps:$4 sm:$0xff]  }
 0xb5d   :  { %5443 = vmatprep.subr.bf16.mxu0 %v10117_v0  ;;  %5484 = vmatprep.subr.bf16.mxu1 %v10119_v50  ;;  %11726 = vst [vmem:[#allocation46_spill] sm:$0xff] %v10574_v41  ;;  %v10577_v0 = vld [vmem:[#allocation10 + $0x6c] ss:$16 sps:$4 sm:$0xff]   ;;  %v10580_v50 = vld [vmem:[#allocation10 + $0x60] ss:$16 sps:$4 sm:$0xff]   ;;  %11733 = vst [vmem:[#allocation93_spill] sm:$0xff] %v10595_v59 }
 0xb5e   :  { %11727 = vst [vmem:[#allocation48_spill] sm:$0xff] %v10577_v0  ;;  %11728 = vst [vmem:[#allocation47_spill] sm:$0xff] %v10580_v50 }
 0xb60   :  { %5444 = vmatpush1.bf16.msra.mxu0 %v10123_v32  ;;  %5485 = vmatpush1.bf16.msra.mxu1 %v10125_v37  ;;  %v10583_v32 = vld [vmem:[#allocation10 + $0x68] ss:$16 sps:$4 sm:$0xff]   ;;  %v10586_v37 = vld [vmem:[#allocation10 + $0x84] ss:$16 sps:$4 sm:$0xff]  }
 0xb61   :  { %5445 = vmatprep.subr.bf16.mxu0 %v10129_v21  ;;  %5486 = vmatprep.subr.bf16.mxu1 %v10131_v23  ;;  %v10545_v23 = vld [vmem:[#allocation10 + $0x8] ss:$16 sps:$4 sm:$0xff]   ;;  %11729 = vst [vmem:[#allocation50_spill] sm:$0xff] %v10583_v32  ;;  %11730 = vst [vmem:[#allocation89_spill] sm:$0xff] %v10586_v37  ;;  %v10589_v21 = vld [vmem:[#allocation10 + $0x8c] ss:$16 sps:$4 sm:$0xff]  }
 0xb62   :  { %v7825_v7 = vpop.eup %7824  ;;  %11731 = vst [vmem:[#allocation92_spill] sm:$0xff] %v10589_v21 }
 0xb63   :  { %v5310_v22 = vmul.f32 %v7825_v7, %v7823_v19 }
 0xb64   :  { %5446 = vmatpush1.bf16.msra.mxu0 %v10135_v28  ;;  %5487 = vmatpush1.bf16.msra.mxu1 %v10137_v17  ;;  %v10548_v28 = vld [vmem:[#allocation10 + $0x24] ss:$16 sps:$4 sm:$0xff]   ;;  %v10571_v17 = vld [vmem:[#allocation10 + $0x48] ss:$16 sps:$4 sm:$0xff]  }
 0xb65   :  { %v5430_v48 = vpack.c.bf16 %v5310_v22, %v5310_v22  ;;  %5546 = vmatprep.subr.bf16.mxu0 %v10536_v49  ;;  %5587 = vmatprep.subr.bf16.mxu1 %v10539_v12  ;;  %11725 = vst [vmem:[#allocation97_spill] sm:$0xff] %v10571_v17 }
 0xb67   :  { %5464 = vmatmul.mubr.bf16.vlgmr.msra.gmra.mrb[148].mxu0 %v5430_v48  ;;  %5505 = vmatmul.mubr.bf16.vlgmr.msra.gmra.mrb[148].mxu1 %v5430_v48 }
 0xb68   :  { %5547 = vmatpush1.bf16.msra.mxu0 %v10542_v52  ;;  %5588 = vmatpush1.bf16.msra.mxu1 %v10545_v23 }
 0xb69   :  { %5548 = vmatprep.subr.bf16.mxu0 %v10548_v28  ;;  %5589 = vmatprep.subr.bf16.mxu1 %v10551_v34 }
 0xb6a   :  { %5578 = vmatprep.mubr.bf16.mxu0 %v11353_v2  ;;  %5619 = vmatprep.mubr.bf16.mxu1 %v11353_v2 }
 0xb6c   :  { %5549 = vmatpush1.bf16.msra.mxu0 %v10556_v29  ;;  %5590 = vmatpush1.bf16.msra.mxu1 %v10559_v8 }
 0xb6d   :  { %5550 = vmatprep.subr.bf16.mxu0 %v10562_v6  ;;  %5591 = vmatprep.subr.bf16.mxu1 %v10565_v1 }
 0xb70   :  { %5551 = vmatpush1.bf16.msra.mxu0 %v10568_v26  ;;  %5592 = vmatpush1.bf16.msra.mxu1 %v10571_v17 }
 0xb71   :  { %5552 = vmatprep.subr.bf16.mxu0 %v10574_v41  ;;  %5593 = vmatprep.subr.bf16.mxu1 %v10577_v0 }
 0xb74   :  { %5553 = vmatpush1.bf16.msra.mxu0 %v10580_v50  ;;  %5594 = vmatpush1.bf16.msra.mxu1 %v10583_v32 }
 0xb75   :  { %5554 = vmatprep.subr.bf16.mxu0 %v10586_v37  ;;  %5595 = vmatprep.subr.bf16.mxu1 %v10589_v21 }
 0xb78   :  { %5555 = vmatpush1.bf16.msra.mxu0 %v10592_v61  ;;  %5596 = vmatpush1.bf16.msra.mxu1 %v10595_v59 }
 0xb79   :  { %5556 = vmatprep.subr.bf16.mxu0 %v10598_v60  ;;  %5597 = vmatprep.subr.bf16.mxu1 %v10601_v56 }
 0xb7c   :  { %5557 = vmatpush1.bf16.msra.mxu0 %v10604_v43  ;;  %5598 = vmatpush1.bf16.msra.mxu1 %v10607_v25 }
 0xb7d   :  { %5558 = vmatprep.subr.bf16.mxu0 %v10610_v57  ;;  %5599 = vmatprep.subr.bf16.mxu1 %v10613_v5 }
 0xb80   :  { %5559 = vmatpush1.bf16.msra.mxu0 %v10616_v20  ;;  %5600 = vmatpush1.bf16.msra.mxu1 %v10619_v54 }
 0xb81   :  { %5560 = vmatprep.subr.bf16.mxu0 %v10622_v63  ;;  %5601 = vmatprep.subr.bf16.mxu1 %v10625_v38 }
 0xb84   :  { %5561 = vmatpush1.bf16.msra.mxu0 %v10628_v30  ;;  %5602 = vmatpush1.bf16.msra.mxu1 %v10631_v4 }
 0xb85   :  { %5661 = vmatprep.subr.bf16.mxu0 %v10634_v45  ;;  %5702 = vmatprep.subr.bf16.mxu1 %v10637_v55 }
 0xc1a   :  { %v5350_v31 = vpop.f32.mrb[144].mxu0  ;;  %v5391_v11 = vpop.f32.mrb[144].mxu1 }
 0xc1b   :  { %v5398_v62 = vadd.f32 %v5350_v31, %v11748_v39  ;;  %v5400_v53 = vadd.f32 %v5391_v11, %v11749_v18  ;;  %v5352_v44 = vpop.f32.mrb[145].mxu0  ;;  %v5393_v10 = vpop.f32.mrb[145].mxu1 }
 0xc1c   :  { %v5399_v3 = vadd.f32 %v5352_v44, %v11750_v58  ;;  %v5401_v40 = vadd.f32 %v5393_v10, %v11751_v35  ;;  %v5354_v36 = vpop.f32.mrb[146].mxu0  ;;  %v5395_v16 = vpop.f32.mrb[146].mxu1  ;;  %v11752_v10 = vld [vmem:[#allocation43_spill] sm:$0xff] }
 0xc1d   :  { %v7198_v42 = vmul.f32 -1.442695, %v5398_v62  ;;  %v5355_v14 = vpop.f32.mrb[147].mxu0  ;;  %v5396_v27 = vpop.f32.mrb[147].mxu1  ;;  %v11754_v36 = vld [vmem:[#allocation40_spill] sm:$0xff] }
 0xc1e   :  { %v7199_v24 = vmul.f32 -1.442695, %v5399_v3  ;;  %v7200_v47 = vmul.f32 -1.442695, %v5401_v40  ;;  %v11753_v3 = vld [vmem:[#allocation14_spill] sm:$0xff] }
 0xc1f   :  { %7826 = vpow2.f32 %v7198_v42  ;;  %v11755_v42 = vld [vmem:[#allocation41_spill] sm:$0xff] }
 0xc20   :  { %7828 = vpow2.f32 %v7199_v24 }
 0xc21   :  { %7830 = vpow2.f32 %v7200_v47 }
 0xc22   :  { %7832 = vtanh.f32 %v5400_v53 }
 0xc29   :  { %v7827_v15 = vpop.eup %7826 }
 0xc2a   :  { %v7829_v33 = vpop.eup %7828  ;;  %v5408_v51 = vadd.f32 1.0, %v7827_v15 }
 0xc2b   :  { %v5409_v9 = vadd.f32 1.0, %v7829_v33  ;;  %v7831_v19 = vpop.eup %7830 }
 0xc2c   :  { %7834 = vrcp.f32 %v5408_v51  ;;  %v7833_v7 = vpop.eup %7832  ;;  %v5418_v11 = vadd.f32 1.0, %v7831_v19 }
 0xc2d   :  { %7836 = vrcp.f32 %v5409_v9 }
 0xc2e   :  { %7838 = vrcp.f32 %v5418_v11 }
 0xc36   :  { %v7835_v22 = vpop.eup %7834 }
 0xc37   :  { %v7837_v48 = vpop.eup %7836  ;;  %v5422_v31 = vmul.f32 %v7835_v22, %v7833_v7 }
 0xc38   :  { %v5421_v39 = vmul.f32 %v7837_v48, %v10493_v46  ;;  %v7839_v51 = vpop.eup %7838 }
 0xc3a   :  { %v10645_v62 = vadd.f32 %v5422_v31, %v5421_v39  ;;  %v5465_v18 = vpop.f32.mrb[148].mxu0  ;;  %v5506_v44 = vpop.f32.mrb[148].mxu1 }
 0xc3b   :  { %v5513_v58 = vadd.f32 %v5465_v18, %v11752_v10  ;;  %v5515_v53 = vadd.f32 %v5506_v44, %v11753_v3  ;;  %v5467_v35 = vpop.f32.mrb[149].mxu0  ;;  %v5508_v40 = vpop.f32.mrb[149].mxu1  ;;  %v10652_v18 = vld [vmem:[#allocation10 + $0x100] ss:$16 sps:$4 sm:$0xff]   ;;  %v10655_v44 = vld [vmem:[#allocation10 + $0x108] ss:$16 sps:$4 sm:$0xff]  }
 0xc3c   :  { %v5514_v16 = vadd.f32 %v5467_v35, %v11754_v36  ;;  %v5516_v14 = vadd.f32 %v5508_v40, %v11755_v42  ;;  %v5469_v27 = vpop.f32.mrb[150].mxu0  ;;  %v5510_v24 = vpop.f32.mrb[150].mxu1  ;;  %7840 = vtanh.f32 %v10645_v62  ;;  %v10658_v10 = vld [vmem:[#allocation10 + $0x124] ss:$16 sps:$4 sm:$0xff]   ;;  %v10666_v3 = vld [vmem:[#allocation10 + $0x120] ss:$16 sps:$4 sm:$0xff]  }
 0xc3d   :  { %v7201_v46 = vmul.f32 -1.442695, %v5513_v58  ;;  %v5470_v47 = vpop.f32.mrb[151].mxu0  ;;  %v5511_v15 = vpop.f32.mrb[151].mxu1  ;;  %v10661_v58 = vld [vmem:[#allocation10 + $0x12c] ss:$16 sps:$4 sm:$0xff]  }
 0xc3e   :  { %v7202_v33 = vmul.f32 -1.442695, %v5514_v16  ;;  %v7203_v19 = vmul.f32 -1.442695, %v5516_v14  ;;  %v10672_v35 = vld [vmem:[#allocation10 + $0x144] ss:$16 sps:$4 sm:$0xff]  }
 0xc3f   :  { %7842 = vpow2.f32 %v7201_v46  ;;  %v10675_v40 = vld [vmem:[#allocation10 + $0x14c] ss:$16 sps:$4 sm:$0xff]   ;;  %v10678_v16 = vld [vmem:[#allocation10 + $0x140] ss:$16 sps:$4 sm:$0xff]   ;;  %v10681_v42 = vld [vmem:[#allocation10 + $0x148] ss:$16 sps:$4 sm:$0xff]  }
 0xc40   :  { %7844 = vpow2.f32 %v7202_v33  ;;  %v10684_v27 = vld [vmem:[#allocation10 + $0x164] ss:$16 sps:$4 sm:$0xff]   ;;  %v10687_v24 = vld [vmem:[#allocation10 + $0x16c] ss:$16 sps:$4 sm:$0xff]  }
 0xc41   :  { %7846 = vpow2.f32 %v7203_v19  ;;  %v10694_v19 = vld [vmem:[#allocation10 + $0x168] ss:$16 sps:$4 sm:$0xff]  }
 0xc42   :  { %7848 = vtanh.f32 %v5515_v53  ;;  %v10669_v53 = vld [vmem:[#allocation10 + $0x128] ss:$16 sps:$4 sm:$0xff]  }
 0xc46   :  { %v7841_v9 = vpop.eup %7840 }
 0xc47   :  { %v5425_v7 = vmul.f32 %v7841_v9, %v7839_v51  ;;  %v10691_v9 = vld [vmem:[#allocation10 + $0x160] ss:$16 sps:$4 sm:$0xff]  }
 0xc49   :  { %v7843_v22 = vpop.eup %7842  ;;  %v5545_v48 = vpack.c.bf16 %v5425_v7, %v5425_v7  ;;  %v10697_v7 = vld [vmem:[#allocation10 + $0x184] ss:$16 sps:$4 sm:$0xff]  }
 0xc4a   :  { %v7845_v31 = vpop.eup %7844  ;;  %v5523_v11 = vadd.f32 1.0, %v7843_v22  ;;  %v10700_v22 = vld [vmem:[#allocation10 + $0x18c] ss:$16 sps:$4 sm:$0xff]  }
 0xc4b   :  { %v5524_v39 = vadd.f32 1.0, %v7845_v31  ;;  %5579 = vmatmul.mubr.bf16.vlgmr.msra.gmra.mrb[152].mxu0 %v5545_v48  ;;  %5620 = vmatmul.mubr.bf16.vlgmr.msra.gmra.mrb[152].mxu1 %v5545_v48  ;;  %v7847_v36 = vpop.eup %7846  ;;  %v10708_v31 = vld [vmem:[#allocation10 + $0x188] ss:$16 sps:$4 sm:$0xff]  }
 0xc4c   :  { %7850 = vrcp.f32 %v5523_v11  ;;  %5662 = vmatpush1.bf16.msra.mxu0 %v10652_v18  ;;  %5703 = vmatpush1.bf16.msra.mxu1 %v10655_v44  ;;  %v7849_v14 = vpop.eup %7848  ;;  %v5533_v33 = vadd.f32 1.0, %v7847_v36  ;;  %v10712_v11 = vld [vmem:[#allocation10 + $0x1a4] ss:$16 sps:$4 sm:$0xff]   ;;  %v10718_v36 = vld [vmem:[#allocation10 + $0x1a0] ss:$16 sps:$4 sm:$0xff]  }
 0xc4d   :  { %7852 = vrcp.f32 %v5524_v39  ;;  %5663 = vmatprep.subr.bf16.mxu0 %v10658_v10  ;;  %5704 = vmatprep.subr.bf16.mxu1 %v10661_v58  ;;  %v10715_v39 = vld [vmem:[#allocation10 + $0x1ac] ss:$16 sps:$4 sm:$0xff]   ;;  %11757 = vst [vmem:[#allocation54_spill] sm:$0xff] %v10718_v36 }
 0xc4e   :  { %5693 = vmatprep.mubr.bf16.mxu0 %v11353_v2  ;;  %5734 = vmatprep.mubr.bf16.mxu1 %v11353_v2  ;;  %7854 = vrcp.f32 %v5533_v33  ;;  %11756 = vst [vmem:[#allocation44_spill] sm:$0xff] %v10715_v39  ;;  %v10733_v33 = vld [vmem:[#allocation10 + $0x1c8] ss:$16 sps:$4 sm:$0xff]  }
 0xc4f   :  { %11762 = vst [vmem:[#allocation84_spill] sm:$0xff] %v10733_v33 }
 0xc50   :  { %5664 = vmatpush1.bf16.msra.mxu0 %v10666_v3  ;;  %5705 = vmatpush1.bf16.msra.mxu1 %v10669_v53 }
 0xc51   :  { %5665 = vmatprep.subr.bf16.mxu0 %v10672_v35  ;;  %5706 = vmatprep.subr.bf16.mxu1 %v10675_v40 }
 0xc54   :  { %5666 = vmatpush1.bf16.msra.mxu0 %v10678_v16  ;;  %5707 = vmatpush1.bf16.msra.mxu1 %v10681_v42 }
 0xc55   :  { %5667 = vmatprep.subr.bf16.mxu0 %v10684_v27  ;;  %5708 = vmatprep.subr.bf16.mxu1 %v10687_v24 }
 0xc56   :  { %v7851_v46 = vpop.eup %7850 }
 0xc57   :  { %v7853_v47 = vpop.eup %7852  ;;  %v5537_v15 = vmul.f32 %v7851_v46, %v7849_v14  ;;  %v10721_v14 = vld [vmem:[#allocation10 + $0x1a8] ss:$16 sps:$4 sm:$0xff]   ;;  %v10724_v46 = vld [vmem:[#allocation10 + $0x1c4] ss:$16 sps:$4 sm:$0xff]  }
 0xc58   :  { %v5536_v51 = vmul.f32 %v7853_v47, %v10519_v13  ;;  %5668 = vmatpush1.bf16.msra.mxu0 %v10691_v9  ;;  %5709 = vmatpush1.bf16.msra.mxu1 %v10694_v19  ;;  %v10705_v13 = vld [vmem:[#allocation10 + $0x180] ss:$16 sps:$4 sm:$0xff]   ;;  %11758 = vst [vmem:[#allocation56_spill] sm:$0xff] %v10721_v14  ;;  %11759 = vst [vmem:[#allocation55_spill] sm:$0xff] %v10724_v46  ;;  %v10727_v47 = vld [vmem:[#allocation10 + $0x1cc] ss:$16 sps:$4 sm:$0xff]  }
 0xc59   :  { %5669 = vmatprep.subr.bf16.mxu0 %v10697_v7  ;;  %5710 = vmatprep.subr.bf16.mxu1 %v10700_v22  ;;  %11760 = vst [vmem:[#allocation58_spill] sm:$0xff] %v10727_v47 }
 0xc5a   :  { %v10703_v48 = vadd.f32 %v5537_v15, %v5536_v51  ;;  %v10730_v15 = vld [vmem:[#allocation10 + $0x1c0] ss:$16 sps:$4 sm:$0xff]   ;;  %v7855_v51 = vpop.eup %7854 }
 0xc5b   :  { %11761 = vst [vmem:[#allocation81_spill] sm:$0xff] %v10730_v15 }
 0xc5c   :  { %5670 = vmatpush1.bf16.msra.mxu0 %v10705_v13  ;;  %5711 = vmatpush1.bf16.msra.mxu1 %v10708_v31  ;;  %7856 = vtanh.f32 %v10703_v48 }
 0xc5d   :  { %5671 = vmatprep.subr.bf16.mxu0 %v10712_v11  ;;  %5712 = vmatprep.subr.bf16.mxu1 %v10715_v39 }
 0xc60   :  { %5672 = vmatpush1.bf16.msra.mxu0 %v10718_v36  ;;  %5713 = vmatpush1.bf16.msra.mxu1 %v10721_v14  ;;  %v10736_v36 = vld [vmem:[#allocation10 + $0x1e4] ss:$16 sps:$4 sm:$0xff]   ;;  %v10739_v14 = vld [vmem:[#allocation10 + $0x1ec] ss:$16 sps:$4 sm:$0xff]  }
 0xc61   :  { %5673 = vmatprep.subr.bf16.mxu0 %v10724_v46  ;;  %5714 = vmatprep.subr.bf16.mxu1 %v10727_v47  ;;  %v10742_v47 = vld [vmem:[#allocation10 + $0x1e0] ss:$16 sps:$4 sm:$0xff]  }
 0xc64   :  { %5674 = vmatpush1.bf16.msra.mxu0 %v10730_v15  ;;  %5715 = vmatpush1.bf16.msra.mxu1 %v10733_v33  ;;  %v10745_v15 = vld [vmem:[#allocation10 + $0x1e8] ss:$16 sps:$4 sm:$0xff]  }
 0xc65   :  { %5675 = vmatprep.subr.bf16.mxu0 %v10736_v36  ;;  %5716 = vmatprep.subr.bf16.mxu1 %v10739_v14 }
 0xc66   :  { %v7857_v46 = vpop.eup %7856 }
 0xc67   :  { %v5540_v39 = vmul.f32 %v7857_v46, %v7855_v51 }
 0xc68   :  { %5676 = vmatpush1.bf16.msra.mxu0 %v10742_v47  ;;  %5717 = vmatpush1.bf16.msra.mxu1 %v10745_v15 }
 0xc69   :  { %v5660_v33 = vpack.c.bf16 %v5540_v39, %v5540_v39  ;;  %5776 = vmatprep.subr.bf16.mxu0 %v10536_v49  ;;  %5817 = vmatprep.subr.bf16.mxu1 %v10539_v12 }
 0xc6b   :  { %5694 = vmatmul.mubr.bf16.vlgmr.msra.gmra.mrb[156].mxu0 %v5660_v33  ;;  %5735 = vmatmul.mubr.bf16.vlgmr.msra.gmra.mrb[156].mxu1 %v5660_v33  ;;  %v11763_v33 = vld [vmem:[#allocation23_spill] sm:$0xff] }
 0xc6c   :  { %5777 = vmatpush1.bf16.msra.mxu0 %v10542_v52  ;;  %5818 = vmatpush1.bf16.msra.mxu1 %v10545_v23 }
 0xc6d   :  { %5778 = vmatprep.subr.bf16.mxu0 %v10548_v28  ;;  %5819 = vmatprep.subr.bf16.mxu1 %v10551_v34 }
 0xc6e   :  { %5808 = vmatprep.mubr.bf16.mxu0 %v11353_v2  ;;  %5849 = vmatprep.mubr.bf16.mxu1 %v11353_v2 }
 0xc70   :  { %5779 = vmatpush1.bf16.msra.mxu0 %v10556_v29  ;;  %5820 = vmatpush1.bf16.msra.mxu1 %v10559_v8 }
 0xc71   :  { %5780 = vmatprep.subr.bf16.mxu0 %v10562_v6  ;;  %5821 = vmatprep.subr.bf16.mxu1 %v10565_v1 }
 0xc74   :  { %5781 = vmatpush1.bf16.msra.mxu0 %v10568_v26  ;;  %5822 = vmatpush1.bf16.msra.mxu1 %v10571_v17 }
 0xc75   :  { %5782 = vmatprep.subr.bf16.mxu0 %v10574_v41  ;;  %5823 = vmatprep.subr.bf16.mxu1 %v10577_v0 }
 0xc78   :  { %5783 = vmatpush1.bf16.msra.mxu0 %v10580_v50  ;;  %5824 = vmatpush1.bf16.msra.mxu1 %v10583_v32 }
 0xc79   :  { %5784 = vmatprep.subr.bf16.mxu0 %v10586_v37  ;;  %5825 = vmatprep.subr.bf16.mxu1 %v10589_v21 }
 0xc7c   :  { %5785 = vmatpush1.bf16.msra.mxu0 %v10592_v61  ;;  %5826 = vmatpush1.bf16.msra.mxu1 %v10595_v59 }
 0xc7d   :  { %5786 = vmatprep.subr.bf16.mxu0 %v10598_v60  ;;  %5827 = vmatprep.subr.bf16.mxu1 %v10601_v56 }
 0xc80   :  { %5787 = vmatpush1.bf16.msra.mxu0 %v10604_v43  ;;  %5828 = vmatpush1.bf16.msra.mxu1 %v10607_v25  ;;  %v11765_v25 = vld [vmem:[#allocation25_spill] sm:$0xff]  ;;  %v11766_v43 = vld [vmem:[#allocation26_spill] sm:$0xff] }
 0xc81   :  { %5788 = vmatprep.subr.bf16.mxu0 %v10610_v57  ;;  %5829 = vmatprep.subr.bf16.mxu1 %v10613_v5  ;;  %v11764_v5 = vld [vmem:[#allocation24_spill] sm:$0xff] }
 0xc84   :  { %5789 = vmatpush1.bf16.msra.mxu0 %v10616_v20  ;;  %5830 = vmatpush1.bf16.msra.mxu1 %v10619_v54 }
 0xc85   :  { %5790 = vmatprep.subr.bf16.mxu0 %v10622_v63  ;;  %5831 = vmatprep.subr.bf16.mxu1 %v10625_v38 }
 0xc88   :  { %5791 = vmatpush1.bf16.msra.mxu0 %v10628_v30  ;;  %5832 = vmatpush1.bf16.msra.mxu1 %v10631_v4 }
 0xc89   :  { %5891 = vmatprep.subr.bf16.mxu0 %v10634_v45  ;;  %5932 = vmatprep.subr.bf16.mxu1 %v10637_v55 }
 0xd1e   :  { %v5580_v39 = vpop.f32.mrb[152].mxu0  ;;  %v5621_v46 = vpop.f32.mrb[152].mxu1 }
 0xd1f   :  { %v5628_v51 = vadd.f32 %v5580_v39, %v11763_v33  ;;  %v5630_v20 = vadd.f32 %v5621_v46, %v11764_v5  ;;  %v5582_v57 = vpop.f32.mrb[153].mxu0  ;;  %v5623_v54 = vpop.f32.mrb[153].mxu1  ;;  %v11769_v46 = vld [vmem:[#allocation45_spill] sm:$0xff] }
 0xd20   :  { %v5629_v63 = vadd.f32 %v5582_v57, %v11765_v25  ;;  %v5631_v38 = vadd.f32 %v5623_v54, %v11766_v43  ;;  %v5584_v56 = vpop.f32.mrb[154].mxu0  ;;  %v5625_v30 = vpop.f32.mrb[154].mxu1 }
 0xd21   :  { %v7204_v60 = vmul.f32 -1.442695, %v5628_v51  ;;  %v5585_v4 = vpop.f32.mrb[155].mxu0  ;;  %v5626_v59 = vpop.f32.mrb[155].mxu1  ;;  %v11770_v51 = vld [vmem:[#allocation94_spill] sm:$0xff] }
 0xd22   :  { %v7205_v45 = vmul.f32 -1.442695, %v5629_v63  ;;  %v7206_v55 = vmul.f32 -1.442695, %v5631_v38  ;;  %v11767_v4 = vld [vmem:[#allocation13_spill] sm:$0xff] }
 0xd23   :  { %7858 = vpow2.f32 %v7204_v60 }
 0xd24   :  { %7860 = vpow2.f32 %v7205_v45  ;;  %v11768_v45 = vld [vmem:[#allocation34_spill] sm:$0xff] }
 0xd25   :  { %7862 = vpow2.f32 %v7206_v55 }
 0xd26   :  { %7864 = vtanh.f32 %v5630_v20 }
 0xd2d   :  { %v7859_v61 = vpop.eup %7858 }
 0xd2e   :  { %v7861_v21 = vpop.eup %7860  ;;  %v5638_v39 = vadd.f32 1.0, %v7859_v61 }
 0xd2f   :  { %v5639_v5 = vadd.f32 1.0, %v7861_v21  ;;  %v7863_v25 = vpop.eup %7862 }
 0xd30   :  { %7866 = vrcp.f32 %v5638_v39  ;;  %v7865_v57 = vpop.eup %7864  ;;  %v5648_v30 = vadd.f32 1.0, %v7863_v25 }
 0xd31   :  { %7868 = vrcp.f32 %v5639_v5 }
 0xd32   :  { %7870 = vrcp.f32 %v5648_v30 }
 0xd3a   :  { %v7867_v43 = vpop.eup %7866 }
 0xd3b   :  { %v7869_v56 = vpop.eup %7868  ;;  %v5652_v54 = vmul.f32 %v7867_v43, %v7865_v57 }
 0xd3c   :  { %v5651_v59 = vmul.f32 %v7869_v56, %v10645_v62 }
 0xd3e   :  { %v10789_v63 = vadd.f32 %v5652_v54, %v5651_v59  ;;  %v5695_v60 = vpop.f32.mrb[156].mxu0  ;;  %v5736_v38 = vpop.f32.mrb[156].mxu1 }
 0xd3f   :  { %v5743_v61 = vadd.f32 %v5695_v60, %v11767_v4  ;;  %v5745_v20 = vadd.f32 %v5736_v38, %v11768_v45  ;;  %v5697_v21 = vpop.f32.mrb[157].mxu0  ;;  %v5738_v55 = vpop.f32.mrb[157].mxu1 }
 0xd40   :  { %v5744_v33 = vadd.f32 %v5697_v21, %v11769_v46  ;;  %v5746_v39 = vadd.f32 %v5738_v55, %v11770_v51  ;;  %v5699_v5 = vpop.f32.mrb[158].mxu0  ;;  %v5740_v57 = vpop.f32.mrb[158].mxu1  ;;  %7872 = vtanh.f32 %v10789_v63 }
 0xd41   :  { %v7207_v62 = vmul.f32 -1.442695, %v5743_v61  ;;  %v5700_v25 = vpop.f32.mrb[159].mxu0  ;;  %v5741_v43 = vpop.f32.mrb[159].mxu1 }
 0xd42   :  { %v7208_v56 = vmul.f32 -1.442695, %v5744_v33  ;;  %v7871_v54 = vpop.eup %7870  ;;  %v7209_v59 = vmul.f32 -1.442695, %v5746_v39  ;;  %v11773_v25 = vld [vmem:[#allocation56_spill] sm:$0xff]  ;;  %v11774_v43 = vld [vmem:[#allocation55_spill] sm:$0xff] }
 0xd43   :  { %7874 = vpow2.f32 %v7207_v62  ;;  %v11772_v62 = vld [vmem:[#allocation54_spill] sm:$0xff] }
 0xd44   :  { %7876 = vpow2.f32 %v7208_v56  ;;  %v11775_v56 = vld [vmem:[#allocation58_spill] sm:$0xff] }
 0xd45   :  { %7878 = vpow2.f32 %v7209_v59 }
 0xd46   :  { %7880 = vtanh.f32 %v5745_v20 }
 0xd4a   :  { %v7873_v30 = vpop.eup %7872 }
 0xd4b   :  { %v5655_v60 = vmul.f32 %v7873_v30, %v7871_v54  ;;  %v11776_v54 = vld [vmem:[#allocation81_spill] sm:$0xff]  ;;  %v11777_v30 = vld [vmem:[#allocation84_spill] sm:$0xff] }
 0xd4d   :  { %v7875_v38 = vpop.eup %7874  ;;  %v5775_v4 = vpack.c.bf16 %v5655_v60, %v5655_v60 }
 0xd4e   :  { %v7877_v45 = vpop.eup %7876  ;;  %v5753_v21 = vadd.f32 1.0, %v7875_v38 }
 0xd4f   :  { %v5754_v55 = vadd.f32 1.0, %v7877_v45  ;;  %5809 = vmatmul.mubr.bf16.vlgmr.msra.gmra.mrb[160].mxu0 %v5775_v4  ;;  %5850 = vmatmul.mubr.bf16.vlgmr.msra.gmra.mrb[160].mxu1 %v5775_v4  ;;  %v7879_v61 = vpop.eup %7878  ;;  %v11778_v45 = vld [vmem:[#allocation92_spill] sm:$0xff] }
 0xd50   :  { %7882 = vrcp.f32 %v5753_v21  ;;  %5892 = vmatpush1.bf16.msra.mxu0 %v10652_v18  ;;  %5933 = vmatpush1.bf16.msra.mxu1 %v10655_v44  ;;  %v7881_v20 = vpop.eup %7880  ;;  %v5763_v39 = vadd.f32 1.0, %v7879_v61  ;;  %v11779_v21 = vld [vmem:[#allocation91_spill] sm:$0xff]  ;;  %v11781_v61 = vld [vmem:[#allocation49_spill] sm:$0xff] }
 0xd51   :  { %7884 = vrcp.f32 %v5754_v55  ;;  %5893 = vmatprep.subr.bf16.mxu0 %v10658_v10  ;;  %5934 = vmatprep.subr.bf16.mxu1 %v10661_v58  ;;  %v11780_v55 = vld [vmem:[#allocation93_spill] sm:$0xff] }
 0xd52   :  { %5923 = vmatprep.mubr.bf16.mxu0 %v11353_v2  ;;  %5964 = vmatprep.mubr.bf16.mxu1 %v11353_v2  ;;  %7886 = vrcp.f32 %v5763_v39  ;;  %v11786_v39 = vld [vmem:[#allocation88_spill] sm:$0xff] }
 0xd54   :  { %5894 = vmatpush1.bf16.msra.mxu0 %v10666_v3  ;;  %5935 = vmatpush1.bf16.msra.mxu1 %v10669_v53 }
 0xd55   :  { %5895 = vmatprep.subr.bf16.mxu0 %v10672_v35  ;;  %5936 = vmatprep.subr.bf16.mxu1 %v10675_v40 }
 0xd58   :  { %5896 = vmatpush1.bf16.msra.mxu0 %v10678_v16  ;;  %5937 = vmatpush1.bf16.msra.mxu1 %v10681_v42 }
 0xd59   :  { %5897 = vmatprep.subr.bf16.mxu0 %v10684_v27  ;;  %5938 = vmatprep.subr.bf16.mxu1 %v10687_v24 }
 0xd5a   :  { %v7883_v46 = vpop.eup %7882 }
 0xd5b   :  { %v7885_v33 = vpop.eup %7884  ;;  %v5767_v51 = vmul.f32 %v7883_v46, %v7881_v20  ;;  %v11782_v20 = vld [vmem:[#allocation52_spill] sm:$0xff]  ;;  %v11783_v46 = vld [vmem:[#allocation51_spill] sm:$0xff] }
 0xd5c   :  { %v5766_v5 = vmul.f32 %v7885_v33, %v10703_v48  ;;  %5898 = vmatpush1.bf16.msra.mxu0 %v10691_v9  ;;  %5939 = vmatpush1.bf16.msra.mxu1 %v10694_v19  ;;  %v11771_v48 = vld [vmem:[#allocation44_spill] sm:$0xff]  ;;  %v7887_v59 = vpop.eup %7886  ;;  %v11784_v33 = vld [vmem:[#allocation53_spill] sm:$0xff] }
 0xd5d   :  { %5899 = vmatprep.subr.bf16.mxu0 %v10697_v7  ;;  %5940 = vmatprep.subr.bf16.mxu1 %v10700_v22 }
 0xd5e   :  { %v10815_v57 = vadd.f32 %v5767_v51, %v5766_v5  ;;  %v11785_v51 = vld [vmem:[#allocation86_spill] sm:$0xff]  ;;  %v11787_v5 = vld [vmem:[#allocation87_spill] sm:$0xff] }
 0xd60   :  { %5900 = vmatpush1.bf16.msra.mxu0 %v10705_v13  ;;  %5941 = vmatpush1.bf16.msra.mxu1 %v10708_v31  ;;  %7888 = vtanh.f32 %v10815_v57 }
 0xd61   :  { %5901 = vmatprep.subr.bf16.mxu0 %v10712_v11  ;;  %5942 = vmatprep.subr.bf16.mxu1 %v11771_v48 }
 0xd64   :  { %5902 = vmatpush1.bf16.msra.mxu0 %v11772_v62  ;;  %5943 = vmatpush1.bf16.msra.mxu1 %v11773_v25 }
 0xd65   :  { %5903 = vmatprep.subr.bf16.mxu0 %v11774_v43  ;;  %5944 = vmatprep.subr.bf16.mxu1 %v11775_v56 }
 0xd68   :  { %5904 = vmatpush1.bf16.msra.mxu0 %v11776_v54  ;;  %5945 = vmatpush1.bf16.msra.mxu1 %v11777_v30 }
 0xd69   :  { %5905 = vmatprep.subr.bf16.mxu0 %v10736_v36  ;;  %5946 = vmatprep.subr.bf16.mxu1 %v10739_v14 }
 0xd6a   :  { %v7889_v60 = vpop.eup %7888 }
 0xd6b   :  { %v5770_v38 = vmul.f32 %v7889_v60, %v7887_v59  ;;  %v11788_v59 = vld [vmem:[#allocation90_spill] sm:$0xff]  ;;  %v11789_v60 = vld [vmem:[#allocation35_spill] sm:$0xff] }
 0xd6c   :  { %5906 = vmatpush1.bf16.msra.mxu0 %v10742_v47  ;;  %5947 = vmatpush1.bf16.msra.mxu1 %v10745_v15 }
 0xd6d   :  { %v5890_v4 = vpack.c.bf16 %v5770_v38, %v5770_v38  ;;  %6006 = vmatprep.subr.bf16.mxu0 %v10536_v49  ;;  %6047 = vmatprep.subr.bf16.mxu1 %v10539_v12  ;;  %v11790_v38 = vld [vmem:[#allocation36_spill] sm:$0xff] }
 0xd6f   :  { %5924 = vmatmul.mubr.bf16.vlgmr.msra.gmra.mrb[164].mxu0 %v5890_v4  ;;  %5965 = vmatmul.mubr.bf16.vlgmr.msra.gmra.mrb[164].mxu1 %v5890_v4  ;;  %v11791_v4 = vld [vmem:[#allocation37_spill] sm:$0xff] }
 0xd70   :  { %6007 = vmatpush1.bf16.msra.mxu0 %v10542_v52  ;;  %6048 = vmatpush1.bf16.msra.mxu1 %v10545_v23 }
 0xd71   :  { %6008 = vmatprep.subr.bf16.mxu0 %v10548_v28  ;;  %6049 = vmatprep.subr.bf16.mxu1 %v10551_v34 }
 0xd72   :  { %6038 = vmatprep.mubr.bf16.mxu0 %v11353_v2  ;;  %6079 = vmatprep.mubr.bf16.mxu1 %v11353_v2 }
 0xd74   :  { %6009 = vmatpush1.bf16.msra.mxu0 %v10556_v29  ;;  %6050 = vmatpush1.bf16.msra.mxu1 %v10559_v8 }
 0xd75   :  { %6010 = vmatprep.subr.bf16.mxu0 %v10562_v6  ;;  %6051 = vmatprep.subr.bf16.mxu1 %v10565_v1 }
 0xd78   :  { %6011 = vmatpush1.bf16.msra.mxu0 %v10568_v26  ;;  %6052 = vmatpush1.bf16.msra.mxu1 %v10571_v17 }
 0xd79   :  { %6012 = vmatprep.subr.bf16.mxu0 %v10574_v41  ;;  %6053 = vmatprep.subr.bf16.mxu1 %v10577_v0 }
 0xd7c   :  { %6013 = vmatpush1.bf16.msra.mxu0 %v10580_v50  ;;  %6054 = vmatpush1.bf16.msra.mxu1 %v10583_v32  ;;  %v11798_v32 = vld [vmem:[#allocation30_spill] sm:$0xff] }
 0xd7d   :  { %6014 = vmatprep.subr.bf16.mxu0 %v10586_v37  ;;  %6055 = vmatprep.subr.bf16.mxu1 %v11778_v45  ;;  %v11797_v37 = vld [vmem:[#allocation29_spill] sm:$0xff] }
 0xd80   :  { %6015 = vmatpush1.bf16.msra.mxu0 %v11779_v21  ;;  %6056 = vmatpush1.bf16.msra.mxu1 %v11780_v55  ;;  %v11795_v55 = vld [vmem:[#allocation27_spill] sm:$0xff]  ;;  %v11796_v21 = vld [vmem:[#allocation28_spill] sm:$0xff] }
 0xd81   :  { %6016 = vmatprep.subr.bf16.mxu0 %v11781_v61  ;;  %6057 = vmatprep.subr.bf16.mxu1 %v11782_v20  ;;  %v11792_v61 = vld [vmem:[#allocation38_spill] sm:$0xff]  ;;  %v11793_v20 = vld [vmem:[#allocation39_spill] sm:$0xff] }
 0xd84   :  { %6017 = vmatpush1.bf16.msra.mxu0 %v11783_v46  ;;  %6058 = vmatpush1.bf16.msra.mxu1 %v11784_v33  ;;  %v11794_v46 = vld [vmem:[#allocation42_spill] sm:$0xff] }
 0xd85   :  { %6018 = vmatprep.subr.bf16.mxu0 %v11785_v51  ;;  %6059 = vmatprep.subr.bf16.mxu1 %v11786_v39 }
 0xd88   :  { %6019 = vmatpush1.bf16.msra.mxu0 %v11787_v5  ;;  %6060 = vmatpush1.bf16.msra.mxu1 %v11788_v59 }
 0xd89   :  { %6020 = vmatprep.subr.bf16.mxu0 %v11789_v60  ;;  %6061 = vmatprep.subr.bf16.mxu1 %v11790_v38 }
 0xd8c   :  { %6021 = vmatpush1.bf16.msra.mxu0 %v11791_v4  ;;  %6062 = vmatpush1.bf16.msra.mxu1 %v11792_v61 }
 0xd8d   :  { %6121 = vmatprep.subr.bf16.mxu0 %v11793_v20  ;;  %6162 = vmatprep.subr.bf16.mxu1 %v11794_v46 }
 0xe22   :  { %v5810_v33 = vpop.f32.mrb[160].mxu0  ;;  %v5851_v51 = vpop.f32.mrb[160].mxu1 }
 0xe23   :  { %v5858_v39 = vadd.f32 %v5810_v33, %v11795_v55  ;;  %v5860_v5 = vadd.f32 %v5851_v51, %v11796_v21  ;;  %v5812_v45 = vpop.f32.mrb[161].mxu0  ;;  %v5853_v59 = vpop.f32.mrb[161].mxu1 }
 0xe24   :  { %v5859_v60 = vadd.f32 %v5812_v45, %v11797_v37  ;;  %v5861_v38 = vadd.f32 %v5853_v59, %v11798_v32  ;;  %v5814_v50 = vpop.f32.mrb[162].mxu0  ;;  %v5855_v4 = vpop.f32.mrb[162].mxu1 }
 0xe25   :  { %v7210_v0 = vmul.f32 -1.442695, %v5858_v39  ;;  %v5815_v61 = vpop.f32.mrb[163].mxu0  ;;  %v5856_v41 = vpop.f32.mrb[163].mxu1  ;;  %v11799_v39 = vld [vmem:[#allocation72_spill] sm:$0xff]  ;;  %v11802_v4 = vld [vmem:[#allocation98_spill] sm:$0xff] }
 0xe26   :  { %v7211_v20 = vmul.f32 -1.442695, %v5859_v60  ;;  %v7212_v46 = vmul.f32 -1.442695, %v5861_v38  ;;  %v11801_v60 = vld [vmem:[#allocation74_spill] sm:$0xff] }
 0xe27   :  { %7890 = vpow2.f32 %v7210_v0 }
 0xe28   :  { %7892 = vpow2.f32 %v7211_v20 }
 0xe29   :  { %7894 = vpow2.f32 %v7212_v46  ;;  %v11800_v46 = vld [vmem:[#allocation71_spill] sm:$0xff] }
 0xe2a   :  { %7896 = vtanh.f32 %v5860_v5 }
 0xe31   :  { %v7891_v17 = vpop.eup %7890 }
 0xe32   :  { %v7893_v26 = vpop.eup %7892  ;;  %v5868_v55 = vadd.f32 1.0, %v7891_v17 }
 0xe33   :  { %v5869_v21 = vadd.f32 1.0, %v7893_v26  ;;  %v7895_v37 = vpop.eup %7894 }
 0xe34   :  { %7898 = vrcp.f32 %v5868_v55  ;;  %v7897_v45 = vpop.eup %7896  ;;  %v5878_v51 = vadd.f32 1.0, %v7895_v37 }
 0xe35   :  { %7900 = vrcp.f32 %v5869_v21 }
 0xe36   :  { %7902 = vrcp.f32 %v5878_v51 }
 0xe3e   :  { %v7899_v32 = vpop.eup %7898 }
 0xe3f   :  { %v7901_v50 = vpop.eup %7900  ;;  %v5882_v33 = vmul.f32 %v7899_v32, %v7897_v45 }
 0xe40   :  { %v5881_v41 = vmul.f32 %v7901_v50, %v10789_v63 }
 0xe42   :  { %v10873_v61 = vadd.f32 %v5882_v33, %v5881_v41  ;;  %v5925_v0 = vpop.f32.mrb[164].mxu0  ;;  %v5966_v20 = vpop.f32.mrb[164].mxu1 }
 0xe43   :  { %v5973_v17 = vadd.f32 %v5925_v0, %v11799_v39  ;;  %v5975_v5 = vadd.f32 %v5966_v20, %v11800_v46  ;;  %v5927_v26 = vpop.f32.mrb[165].mxu0  ;;  %v5968_v59 = vpop.f32.mrb[165].mxu1 }
 0xe44   :  { %v5974_v38 = vadd.f32 %v5927_v26, %v11801_v60  ;;  %v5976_v55 = vadd.f32 %v5968_v59, %v11802_v4  ;;  %v5929_v21 = vpop.f32.mrb[166].mxu0  ;;  %v5970_v45 = vpop.f32.mrb[166].mxu1  ;;  %7904 = vtanh.f32 %v10873_v61 }
 0xe45   :  { %v7213_v63 = vmul.f32 -1.442695, %v5973_v17  ;;  %v5930_v37 = vpop.f32.mrb[167].mxu0  ;;  %v5971_v32 = vpop.f32.mrb[167].mxu1 }
 0xe46   :  { %v7214_v50 = vmul.f32 -1.442695, %v5974_v38  ;;  %v7903_v33 = vpop.eup %7902  ;;  %v7215_v41 = vmul.f32 -1.442695, %v5976_v55 }
 0xe47   :  { %7906 = vpow2.f32 %v7213_v63 }
 0xe48   :  { %7908 = vpow2.f32 %v7214_v50  ;;  %v11809_v50 = vld [vmem:[#allocation89_spill] sm:$0xff] }
 0xe49   :  { %7910 = vpow2.f32 %v7215_v41  ;;  %v11816_v41 = vld [vmem:[#allocation53_spill] sm:$0xff] }
 0xe4a   :  { %7912 = vtanh.f32 %v5975_v5 }
 0xe4e   :  { %v7905_v51 = vpop.eup %7904 }
 0xe4f   :  { %v5885_v0 = vmul.f32 %v7905_v51, %v7903_v33  ;;  %v11814_v33 = vld [vmem:[#allocation52_spill] sm:$0xff]  ;;  %v11815_v51 = vld [vmem:[#allocation51_spill] sm:$0xff] }
 0xe51   :  { %v7907_v20 = vpop.eup %7906  ;;  %v6005_v39 = vpack.c.bf16 %v5885_v0, %v5885_v0  ;;  %v11817_v0 = vld [vmem:[#allocation86_spill] sm:$0xff] }
 0xe52   :  { %v7909_v46 = vpop.eup %7908  ;;  %v5983_v26 = vadd.f32 1.0, %v7907_v20  ;;  %v11818_v20 = vld [vmem:[#allocation88_spill] sm:$0xff] }
 0xe53   :  { %v5984_v59 = vadd.f32 1.0, %v7909_v46  ;;  %6039 = vmatmul.mubr.bf16.vlgmr.msra.gmra.mrb[168].mxu0 %v6005_v39  ;;  %6080 = vmatmul.mubr.bf16.vlgmr.msra.gmra.mrb[168].mxu1 %v6005_v39  ;;  %v7911_v17 = vpop.eup %7910  ;;  %v11819_v39 = vld [vmem:[#allocation87_spill] sm:$0xff]  ;;  %v11820_v46 = vld [vmem:[#allocation90_spill] sm:$0xff] }
 0xe54   :  { %7914 = vrcp.f32 %v5983_v26  ;;  %6122 = vmatpush1.bf16.msra.mxu0 %v10652_v18  ;;  %6163 = vmatpush1.bf16.msra.mxu1 %v10655_v44  ;;  %v7913_v5 = vpop.eup %7912  ;;  %v5993_v55 = vadd.f32 1.0, %v7911_v17  ;;  %v11821_v26 = vld [vmem:[#allocation35_spill] sm:$0xff]  ;;  %v11823_v17 = vld [vmem:[#allocation37_spill] sm:$0xff] }
 0xe55   :  { %7916 = vrcp.f32 %v5984_v59  ;;  %6123 = vmatprep.subr.bf16.mxu0 %v10658_v10  ;;  %6164 = vmatprep.subr.bf16.mxu1 %v10661_v58  ;;  %v11822_v59 = vld [vmem:[#allocation36_spill] sm:$0xff] }
 0xe56   :  { %6153 = vmatprep.mubr.bf16.mxu0 %v11353_v2  ;;  %6194 = vmatprep.mubr.bf16.mxu1 %v11353_v2  ;;  %7918 = vrcp.f32 %v5993_v55 }
 0xe58   :  { %6124 = vmatpush1.bf16.msra.mxu0 %v10666_v3  ;;  %6165 = vmatpush1.bf16.msra.mxu1 %v10669_v53 }
 0xe59   :  { %6125 = vmatprep.subr.bf16.mxu0 %v10672_v35  ;;  %6166 = vmatprep.subr.bf16.mxu1 %v10675_v40 }
 0xe5c   :  { %6126 = vmatpush1.bf16.msra.mxu0 %v10678_v16  ;;  %6167 = vmatpush1.bf16.msra.mxu1 %v10681_v42 }
 0xe5d   :  { %6127 = vmatprep.subr.bf16.mxu0 %v10684_v27  ;;  %6168 = vmatprep.subr.bf16.mxu1 %v10687_v24 }
 0xe5e   :  { %v7915_v60 = vpop.eup %7914 }
 0xe5f   :  { %v7917_v38 = vpop.eup %7916  ;;  %v5997_v4 = vmul.f32 %v7915_v60, %v7913_v5  ;;  %v11824_v5 = vld [vmem:[#allocation38_spill] sm:$0xff]  ;;  %v11825_v60 = vld [vmem:[#allocation39_spill] sm:$0xff] }
 0xe60   :  { %v5996_v21 = vmul.f32 %v7917_v38, %v10815_v57  ;;  %6128 = vmatpush1.bf16.msra.mxu0 %v10691_v9  ;;  %6169 = vmatpush1.bf16.msra.mxu1 %v10694_v19  ;;  %v7919_v57 = vpop.eup %7918  ;;  %v11826_v38 = vld [vmem:[#allocation42_spill] sm:$0xff] }
 0xe61   :  { %6129 = vmatprep.subr.bf16.mxu0 %v10697_v7  ;;  %6170 = vmatprep.subr.bf16.mxu1 %v10700_v22 }
 0xe62   :  { %v10899_v45 = vadd.f32 %v5997_v4, %v5996_v21  ;;  %v11827_v21 = vld [vmem:[#allocation31_spill] sm:$0xff] }
 0xe64   :  { %6130 = vmatpush1.bf16.msra.mxu0 %v10705_v13  ;;  %6171 = vmatpush1.bf16.msra.mxu1 %v10708_v31  ;;  %7920 = vtanh.f32 %v10899_v45 }
 0xe65   :  { %6131 = vmatprep.subr.bf16.mxu0 %v10712_v11  ;;  %6172 = vmatprep.subr.bf16.mxu1 %v11771_v48 }
 0xe68   :  { %6132 = vmatpush1.bf16.msra.mxu0 %v11772_v62  ;;  %6173 = vmatpush1.bf16.msra.mxu1 %v11773_v25 }
 0xe69   :  { %6133 = vmatprep.subr.bf16.mxu0 %v11774_v43  ;;  %6174 = vmatprep.subr.bf16.mxu1 %v11775_v56 }
 0xe6c   :  { %6134 = vmatpush1.bf16.msra.mxu0 %v11776_v54  ;;  %6175 = vmatpush1.bf16.msra.mxu1 %v11777_v30 }
 0xe6d   :  { %6135 = vmatprep.subr.bf16.mxu0 %v10736_v36  ;;  %6176 = vmatprep.subr.bf16.mxu1 %v10739_v14 }
 0xe6e   :  { %v7921_v63 = vpop.eup %7920 }
 0xe6f   :  { %v6000_v37 = vmul.f32 %v7921_v63, %v7919_v57  ;;  %v11828_v63 = vld [vmem:[#allocation32_spill] sm:$0xff] }
 0xe70   :  { %6136 = vmatpush1.bf16.msra.mxu0 %v10742_v47  ;;  %6177 = vmatpush1.bf16.msra.mxu1 %v10745_v15 }
 0xe71   :  { %v6120_v32 = vpack.c.bf16 %v6000_v37, %v6000_v37  ;;  %6236 = vmatprep.subr.bf16.mxu0 %v10536_v49  ;;  %6277 = vmatprep.subr.bf16.mxu1 %v10539_v12  ;;  %v11803_v49 = vld [vmem:[#allocation85_spill] sm:$0xff] }
 0xe72   :  { %v11804_v12 = vld [vmem:[#allocation97_spill] sm:$0xff] }
 0xe73   :  { %6154 = vmatmul.mubr.bf16.vlgmr.msra.gmra.mrb[172].mxu0 %v6120_v32  ;;  %6195 = vmatmul.mubr.bf16.vlgmr.msra.gmra.mrb[172].mxu1 %v6120_v32 }
 0xe74   :  { %6237 = vmatpush1.bf16.msra.mxu0 %v10542_v52  ;;  %6278 = vmatpush1.bf16.msra.mxu1 %v10545_v23  ;;  %v11805_v52 = vld [vmem:[#allocation46_spill] sm:$0xff]  ;;  %v11806_v23 = vld [vmem:[#allocation48_spill] sm:$0xff] }
 0xe75   :  { %6238 = vmatprep.subr.bf16.mxu0 %v10548_v28  ;;  %6279 = vmatprep.subr.bf16.mxu1 %v10551_v34  ;;  %v11807_v28 = vld [vmem:[#allocation47_spill] sm:$0xff]  ;;  %v11808_v34 = vld [vmem:[#allocation50_spill] sm:$0xff] }
 0xe76   :  { %6268 = vmatprep.mubr.bf16.mxu0 %v11353_v2  ;;  %6309 = vmatprep.mubr.bf16.mxu1 %v11353_v2 }
 0xe78   :  { %6239 = vmatpush1.bf16.msra.mxu0 %v10556_v29  ;;  %6280 = vmatpush1.bf16.msra.mxu1 %v10559_v8  ;;  %v11810_v29 = vld [vmem:[#allocation92_spill] sm:$0xff]  ;;  %v11811_v8 = vld [vmem:[#allocation91_spill] sm:$0xff] }
 0xe79   :  { %6240 = vmatprep.subr.bf16.mxu0 %v10562_v6  ;;  %6281 = vmatprep.subr.bf16.mxu1 %v10565_v1  ;;  %v11812_v6 = vld [vmem:[#allocation93_spill] sm:$0xff] }
 0xe7a   :  { %v11813_v1 = vld [vmem:[#allocation49_spill] sm:$0xff] }
 0xe7c   :  { %6241 = vmatpush1.bf16.msra.mxu0 %v11803_v49  ;;  %6282 = vmatpush1.bf16.msra.mxu1 %v11804_v12  ;;  %v11829_v12 = vld [vmem:[#allocation33_spill] sm:$0xff] }
 0xe7d   :  { %6242 = vmatprep.subr.bf16.mxu0 %v11805_v52  ;;  %6283 = vmatprep.subr.bf16.mxu1 %v11806_v23  ;;  %v11830_v23 = vld [vmem:[#allocation57_spill] sm:$0xff] }
 0xe80   :  { %6243 = vmatpush1.bf16.msra.mxu0 %v11807_v28  ;;  %6284 = vmatpush1.bf16.msra.mxu1 %v11808_v34 }
 0xe81   :  { %6244 = vmatprep.subr.bf16.mxu0 %v11809_v50  ;;  %6285 = vmatprep.subr.bf16.mxu1 %v11810_v29 }
 0xe84   :  { %6245 = vmatpush1.bf16.msra.mxu0 %v11811_v8  ;;  %6286 = vmatpush1.bf16.msra.mxu1 %v11812_v6 }
 0xe85   :  { %6246 = vmatprep.subr.bf16.mxu0 %v11813_v1  ;;  %6287 = vmatprep.subr.bf16.mxu1 %v11814_v33 }
 0xe88   :  { %6247 = vmatpush1.bf16.msra.mxu0 %v11815_v51  ;;  %6288 = vmatpush1.bf16.msra.mxu1 %v11816_v41 }
 0xe89   :  { %6248 = vmatprep.subr.bf16.mxu0 %v11817_v0  ;;  %6289 = vmatprep.subr.bf16.mxu1 %v11818_v20 }
 0xe8c   :  { %6249 = vmatpush1.bf16.msra.mxu0 %v11819_v39  ;;  %6290 = vmatpush1.bf16.msra.mxu1 %v11820_v46 }
 0xe8d   :  { %6250 = vmatprep.subr.bf16.mxu0 %v11821_v26  ;;  %6291 = vmatprep.subr.bf16.mxu1 %v11822_v59 }
 0xe90   :  { %6251 = vmatpush1.bf16.msra.mxu0 %v11823_v17  ;;  %6292 = vmatpush1.bf16.msra.mxu1 %v11824_v5 }
 0xe91   :  { %6351 = vmatprep.subr.bf16.mxu0 %v11825_v60  ;;  %6392 = vmatprep.subr.bf16.mxu1 %v11826_v38 }
 0xf26   :  { %v6040_v4 = vpop.f32.mrb[168].mxu0  ;;  %v6081_v55 = vpop.f32.mrb[168].mxu1 }
 0xf27   :  { %v6088_v57 = vadd.f32 %v6040_v4, %v11827_v21  ;;  %v6090_v37 = vadd.f32 %v6081_v55, %v11828_v63  ;;  %v6042_v32 = vpop.f32.mrb[169].mxu0  ;;  %v6083_v49 = vpop.f32.mrb[169].mxu1  ;;  %v11831_v21 = vld [vmem:[#allocation68_spill] sm:$0xff]  ;;  %v11832_v63 = vld [vmem:[#allocation67_spill] sm:$0xff] }
 0xf28   :  { %v6089_v52 = vadd.f32 %v6042_v32, %v11829_v12  ;;  %v6091_v28 = vadd.f32 %v6083_v49, %v11830_v23  ;;  %v6044_v34 = vpop.f32.mrb[170].mxu0  ;;  %v6085_v50 = vpop.f32.mrb[170].mxu1  ;;  %v11833_v12 = vld [vmem:[#allocation69_spill] sm:$0xff]  ;;  %v11834_v23 = vld [vmem:[#allocation70_spill] sm:$0xff] }
 0xf29   :  { %v7216_v29 = vmul.f32 -1.442695, %v6088_v57  ;;  %v6045_v8 = vpop.f32.mrb[171].mxu0  ;;  %v6086_v6 = vpop.f32.mrb[171].mxu1 }
 0xf2a   :  { %v7217_v1 = vmul.f32 -1.442695, %v6089_v52  ;;  %v7218_v33 = vmul.f32 -1.442695, %v6091_v28 }
 0xf2b   :  { %7922 = vpow2.f32 %v7216_v29 }
 0xf2c   :  { %7924 = vpow2.f32 %v7217_v1 }
 0xf2d   :  { %7926 = vpow2.f32 %v7218_v33 }
 0xf2e   :  { %7928 = vtanh.f32 %v6090_v37 }
 0xf35   :  { %v7923_v51 = vpop.eup %7922 }
 0xf36   :  { %v7925_v41 = vpop.eup %7924  ;;  %v6098_v0 = vadd.f32 1.0, %v7923_v51 }
 0xf37   :  { %v6099_v20 = vadd.f32 1.0, %v7925_v41  ;;  %v7927_v39 = vpop.eup %7926 }
 0xf38   :  { %7930 = vrcp.f32 %v6098_v0  ;;  %v7929_v46 = vpop.eup %7928  ;;  %v6108_v5 = vadd.f32 1.0, %v7927_v39 }
 0xf39   :  { %7932 = vrcp.f32 %v6099_v20 }
 0xf3a   :  { %7934 = vrcp.f32 %v6108_v5  ;;  %v8235_v5 = vld [vmem:[#allocation10 + $0xac] ss:$16 sps:$4 sm:$0xff]  }
 0xf42   :  { %v7931_v26 = vpop.eup %7930 }
 0xf43   :  { %v7933_v59 = vpop.eup %7932  ;;  %v6112_v17 = vmul.f32 %v7931_v26, %v7929_v46 }
 0xf44   :  { %v6111_v60 = vmul.f32 %v7933_v59, %v10873_v61  ;;  %v7935_v1 = vpop.eup %7934 }
 0xf46   :  { %v10957_v38 = vadd.f32 %v6112_v17, %v6111_v60  ;;  %v6155_v4 = vpop.f32.mrb[172].mxu0  ;;  %v6196_v55 = vpop.f32.mrb[172].mxu1  ;;  %v8234_v17 = vld [vmem:[#allocation10 + $0xa4] ss:$16 sps:$4 sm:$0xff]   ;;  %v8236_v60 = vld [vmem:[#allocation10 + $0xa0] ss:$16 sps:$4 sm:$0xff]  }
 0xf47   :  { %v6203_v57 = vadd.f32 %v6155_v4, %v11831_v21  ;;  %v6205_v37 = vadd.f32 %v6196_v55, %v11832_v63  ;;  %v6157_v32 = vpop.f32.mrb[173].mxu0  ;;  %v6198_v49 = vpop.f32.mrb[173].mxu1  ;;  %v8237_v4 = vld [vmem:[#allocation10 + $0xa8] ss:$16 sps:$4 sm:$0xff]   ;;  %v8238_v55 = vld [vmem:[#allocation10 + $0xc4] ss:$16 sps:$4 sm:$0xff]  }
 0xf48   :  { %v6204_v52 = vadd.f32 %v6157_v32, %v11833_v12  ;;  %v6206_v28 = vadd.f32 %v6198_v49, %v11834_v23  ;;  %v6159_v34 = vpop.f32.mrb[174].mxu0  ;;  %v6200_v50 = vpop.f32.mrb[174].mxu1  ;;  %7936 = vtanh.f32 %v10957_v38  ;;  %v8239_v21 = vld [vmem:[#allocation10 + $0xcc] ss:$16 sps:$4 sm:$0xff]   ;;  %v8241_v63 = vld [vmem:[#allocation10 + $0xc8] ss:$16 sps:$4 sm:$0xff]  }
 0xf49   :  { %v7219_v61 = vmul.f32 -1.442695, %v6203_v57  ;;  %v6160_v29 = vpop.f32.mrb[175].mxu0  ;;  %v6201_v8 = vpop.f32.mrb[175].mxu1  ;;  %v8240_v57 = vld [vmem:[#allocation10 + $0xc0] ss:$16 sps:$4 sm:$0xff]  }
 0xf4a   :  { %v7220_v6 = vmul.f32 -1.442695, %v6204_v52  ;;  %v7221_v51 = vmul.f32 -1.442695, %v6206_v28  ;;  %v8243_v32 = vld [vmem:[#allocation10 + $0xec] ss:$16 sps:$4 sm:$0xff]  }
 0xf4b   :  { %7938 = vpow2.f32 %v7219_v61  ;;  %v8244_v49 = vld [vmem:[#allocation10 + $0xe0] ss:$16 sps:$4 sm:$0xff]   ;;  %v8245_v12 = vld [vmem:[#allocation10 + $0xe8] ss:$16 sps:$4 sm:$0xff]   ;;  %v8246_v52 = vld [vmem:[#allocation10 + $0x104] ss:$16 sps:$4 sm:$0xff]  }
 0xf4c   :  { %7940 = vpow2.f32 %v7220_v6  ;;  %v8247_v23 = vld [vmem:[#allocation10 + $0x10c] ss:$16 sps:$4 sm:$0xff]   ;;  %v11836_v29 = vld [vmem:[#allocation59_spill] sm:$0xff] }
 0xf4d   :  { %7942 = vpow2.f32 %v7221_v51  ;;  %v11835_v50 = vld [vmem:[#allocation60_spill] sm:$0xff] }
 0xf4e   :  { %7944 = vtanh.f32 %v6205_v37  ;;  %v8242_v37 = vld [vmem:[#allocation10 + $0xe4] ss:$16 sps:$4 sm:$0xff]  }
 0xf52   :  { %v7937_v33 = vpop.eup %7936 }
 0xf53   :  { %v6115_v41 = vmul.f32 %v7937_v33, %v7935_v1  ;;  %v11837_v33 = vld [vmem:[#allocation61_spill] sm:$0xff] }
 0xf55   :  { %v7939_v0 = vpop.eup %7938  ;;  %v6235_v20 = vpack.c.bf16 %v6115_v41, %v6115_v41  ;;  %v11838_v41 = vld [vmem:[#allocation78_spill] sm:$0xff] }
 0xf56   :  { %v7941_v39 = vpop.eup %7940  ;;  %v6213_v46 = vadd.f32 1.0, %v7939_v0 }
 0xf57   :  { %v6214_v26 = vadd.f32 1.0, %v7941_v39  ;;  %6269 = vmatmul.mubr.bf16.vlgmr.msra.gmra.mrb[176].mxu0 %v6235_v20  ;;  %6310 = vmatmul.mubr.bf16.vlgmr.msra.gmra.mrb[176].mxu1 %v6235_v20 }
 0xf58   :  { %7946 = vrcp.f32 %v6213_v46  ;;  %6352 = vmatpush1.bf16.msra.mxu0 %v10652_v18  ;;  %6393 = vmatpush1.bf16.msra.mxu1 %v10655_v44  ;;  %v7943_v18 = vpop.eup %7942 }
 0xf59   :  { %7948 = vrcp.f32 %v6214_v26  ;;  %6353 = vmatprep.subr.bf16.mxu0 %v10658_v10  ;;  %6394 = vmatprep.subr.bf16.mxu1 %v10661_v58  ;;  %v7945_v44 = vpop.eup %7944 }
 0xf5a   :  { %6383 = vmatprep.mubr.bf16.mxu0 %v11353_v2  ;;  %6424 = vmatprep.mubr.bf16.mxu1 %v11353_v2 }
 0xf5c   :  { %6354 = vmatpush1.bf16.msra.mxu0 %v10666_v3  ;;  %6395 = vmatpush1.bf16.msra.mxu1 %v10669_v53  ;;  %v6223_v3 = vadd.f32 1.0, %v7943_v18 }
 0xf5d   :  { %6355 = vmatprep.subr.bf16.mxu0 %v10672_v35  ;;  %6396 = vmatprep.subr.bf16.mxu1 %v10675_v40 }
 0xf5e   :  { %7950 = vrcp.f32 %v6223_v3 }
 0xf60   :  { %6356 = vmatpush1.bf16.msra.mxu0 %v10678_v16  ;;  %6397 = vmatpush1.bf16.msra.mxu1 %v10681_v42 }
 0xf61   :  { %6357 = vmatprep.subr.bf16.mxu0 %v10684_v27  ;;  %6398 = vmatprep.subr.bf16.mxu1 %v10687_v24  ;;  %v8214_v24 = vld [vmem:[#allocation10 + $0x4] ss:$16 sps:$4 sm:$0xff]  }
 0xf62   :  { %v7947_v10 = vpop.eup %7946 }
 0xf63   :  { %v7949_v58 = vpop.eup %7948  ;;  %v6227_v59 = vmul.f32 %v7947_v10, %v7945_v44 }
 0xf64   :  { %v6226_v53 = vmul.f32 %v7949_v58, %v10899_v45  ;;  %6358 = vmatpush1.bf16.msra.mxu0 %v10691_v9  ;;  %6399 = vmatpush1.bf16.msra.mxu1 %v10694_v19  ;;  %v8215_v9 = vld [vmem:[#allocation10 + $0xc] ss:$16 sps:$4 sm:$0xff]   ;;  %v8216_v19 = vld [vmem:[#allocation10] ss:$16 sps:$4 sm:$0xff]   ;;  %v8233_v45 = vld [vmem:[#allocation10 + $0x88] ss:$16 sps:$4 sm:$0xff]  }
 0xf65   :  { %6359 = vmatprep.subr.bf16.mxu0 %v10697_v7  ;;  %6400 = vmatprep.subr.bf16.mxu1 %v10700_v22  ;;  %v8217_v7 = vld [vmem:[#allocation10 + $0x8] ss:$16 sps:$4 sm:$0xff]   ;;  %v8218_v22 = vld [vmem:[#allocation10 + $0x24] ss:$16 sps:$4 sm:$0xff]  }
 0xf66   :  { %v10983_v35 = vadd.f32 %v6227_v59, %v6226_v53 }
 0xf68   :  { %6360 = vmatpush1.bf16.msra.mxu0 %v10705_v13  ;;  %6401 = vmatpush1.bf16.msra.mxu1 %v10708_v31  ;;  %7952 = vtanh.f32 %v10983_v35  ;;  %v7951_v40 = vpop.eup %7950  ;;  %v8219_v13 = vld [vmem:[#allocation10 + $0x2c] ss:$16 sps:$4 sm:$0xff]   ;;  %v8220_v31 = vld [vmem:[#allocation10 + $0x20] ss:$16 sps:$4 sm:$0xff]  }
 0xf69   :  { %6361 = vmatprep.subr.bf16.mxu0 %v10712_v11  ;;  %6402 = vmatprep.subr.bf16.mxu1 %v11771_v48  ;;  %v8221_v11 = vld [vmem:[#allocation10 + $0x28] ss:$16 sps:$4 sm:$0xff]   ;;  %v8226_v48 = vld [vmem:[#allocation10 + $0x64] ss:$16 sps:$4 sm:$0xff]  }
 0xf6c   :  { %6362 = vmatpush1.bf16.msra.mxu0 %v11772_v62  ;;  %6403 = vmatpush1.bf16.msra.mxu1 %v11773_v25  ;;  %v8227_v62 = vld [vmem:[#allocation10 + $0x6c] ss:$16 sps:$4 sm:$0xff]   ;;  %v8228_v25 = vld [vmem:[#allocation10 + $0x60] ss:$16 sps:$4 sm:$0xff]  }
 0xf6d   :  { %6363 = vmatprep.subr.bf16.mxu0 %v11774_v43  ;;  %6404 = vmatprep.subr.bf16.mxu1 %v11775_v56  ;;  %v8229_v43 = vld [vmem:[#allocation10 + $0x68] ss:$16 sps:$4 sm:$0xff]   ;;  %v8230_v56 = vld [vmem:[#allocation10 + $0x84] ss:$16 sps:$4 sm:$0xff]  }
 0xf70   :  { %6364 = vmatpush1.bf16.msra.mxu0 %v11776_v54  ;;  %6405 = vmatpush1.bf16.msra.mxu1 %v11777_v30  ;;  %v8231_v54 = vld [vmem:[#allocation10 + $0x8c] ss:$16 sps:$4 sm:$0xff]   ;;  %v8232_v30 = vld [vmem:[#allocation10 + $0x80] ss:$16 sps:$4 sm:$0xff]  }
 0xf71   :  { %6365 = vmatprep.subr.bf16.mxu0 %v10736_v36  ;;  %6406 = vmatprep.subr.bf16.mxu1 %v10739_v14  ;;  %v8222_v36 = vld [vmem:[#allocation10 + $0x44] ss:$16 sps:$4 sm:$0xff]   ;;  %v8223_v14 = vld [vmem:[#allocation10 + $0x4c] ss:$16 sps:$4 sm:$0xff]  }
 0xf72   :  { %v7953_v16 = vpop.eup %7952 }
 0xf73   :  { %v6230_v42 = vmul.f32 %v7953_v16, %v7951_v40 }
 0xf74   :  { %6366 = vmatpush1.bf16.msra.mxu0 %v10742_v47  ;;  %6407 = vmatpush1.bf16.msra.mxu1 %v10745_v15  ;;  %v8224_v47 = vld [vmem:[#allocation10 + $0x40] ss:$16 sps:$4 sm:$0xff]   ;;  %v8225_v15 = vld [vmem:[#allocation10 + $0x48] ss:$16 sps:$4 sm:$0xff]  }
 0xf75   :  { %v6350_v27 = vpack.c.bf16 %v6230_v42, %v6230_v42  ;;  %6466 = vmatprep.subr.bf16.mxu0 %v8214_v24  ;;  %6507 = vmatprep.subr.bf16.mxu1 %v8215_v9 }
 0xf77   :  { %6384 = vmatmul.mubr.bf16.vlgmr.msra.gmra.mrb[180].mxu0 %v6350_v27  ;;  %6425 = vmatmul.mubr.bf16.vlgmr.msra.gmra.mrb[180].mxu1 %v6350_v27 }
 0xf78   :  { %6467 = vmatpush1.bf16.msra.mxu0 %v8216_v19  ;;  %6508 = vmatpush1.bf16.msra.mxu1 %v8217_v7 }
 0xf79   :  { %6468 = vmatprep.subr.bf16.mxu0 %v8218_v22  ;;  %6509 = vmatprep.subr.bf16.mxu1 %v8219_v13 }
 0xf7a   :  { %6498 = vmatprep.mubr.bf16.mxu0 %v11353_v2  ;;  %6539 = vmatprep.mubr.bf16.mxu1 %v11353_v2 }
 0xf7c   :  { %6469 = vmatpush1.bf16.msra.mxu0 %v8220_v31  ;;  %6510 = vmatpush1.bf16.msra.mxu1 %v8221_v11  ;;  %v11839_v31 = vld [vmem:[#allocation76_spill] sm:$0xff] }
 0xf7d   :  { %6470 = vmatprep.subr.bf16.mxu0 %v8222_v36  ;;  %6511 = vmatprep.subr.bf16.mxu1 %v8223_v14  ;;  %v11840_v36 = vld [vmem:[#allocation75_spill] sm:$0xff] }
 0xf80   :  { %6471 = vmatpush1.bf16.msra.mxu0 %v8224_v47  ;;  %6512 = vmatpush1.bf16.msra.mxu1 %v8225_v15 }
 0xf81   :  { %6472 = vmatprep.subr.bf16.mxu0 %v8226_v48  ;;  %6513 = vmatprep.subr.bf16.mxu1 %v8227_v62  ;;  %v11841_v48 = vld [vmem:[#allocation77_spill] sm:$0xff] }
 0xf84   :  { %6473 = vmatpush1.bf16.msra.mxu0 %v8228_v25  ;;  %6514 = vmatpush1.bf16.msra.mxu1 %v8229_v43  ;;  %v11842_v25 = vld [vmem:[#allocation65_spill] sm:$0xff] }
 0xf85   :  { %6474 = vmatprep.subr.bf16.mxu0 %v8230_v56  ;;  %6515 = vmatprep.subr.bf16.mxu1 %v8231_v54 }
 0xf88   :  { %6475 = vmatpush1.bf16.msra.mxu0 %v8232_v30  ;;  %6516 = vmatpush1.bf16.msra.mxu1 %v8233_v45 }
 0xf89   :  { %6476 = vmatprep.subr.bf16.mxu0 %v8234_v17  ;;  %6517 = vmatprep.subr.bf16.mxu1 %v8235_v5 }
 0xf8c   :  { %6477 = vmatpush1.bf16.msra.mxu0 %v8236_v60  ;;  %6518 = vmatpush1.bf16.msra.mxu1 %v8237_v4 }
 0xf8d   :  { %6478 = vmatprep.subr.bf16.mxu0 %v8238_v55  ;;  %6519 = vmatprep.subr.bf16.mxu1 %v8239_v21 }
 0xf90   :  { %6479 = vmatpush1.bf16.msra.mxu0 %v8240_v57  ;;  %6520 = vmatpush1.bf16.msra.mxu1 %v8241_v63 }
 0xf91   :  { %6480 = vmatprep.subr.bf16.mxu0 %v8242_v37  ;;  %6521 = vmatprep.subr.bf16.mxu1 %v8243_v32 }
 0xf94   :  { %6481 = vmatpush1.bf16.msra.mxu0 %v8244_v49  ;;  %6522 = vmatpush1.bf16.msra.mxu1 %v8245_v12  ;;  %v8248_v49 = vld [vmem:[#allocation10 + $0x100] ss:$16 sps:$4 sm:$0xff]   ;;  %v8249_v12 = vld [vmem:[#allocation10 + $0x108] ss:$16 sps:$4 sm:$0xff]  }
 0xf95   :  { %6581 = vmatprep.subr.bf16.mxu0 %v8246_v52  ;;  %6622 = vmatprep.subr.bf16.mxu1 %v8247_v23  ;;  %v8250_v52 = vld [vmem:[#allocation10 + $0x124] ss:$16 sps:$4 sm:$0xff]   ;;  %v8251_v23 = vld [vmem:[#allocation10 + $0x12c] ss:$16 sps:$4 sm:$0xff]  }
0x102a   :  { %v6270_v28 = vpop.f32.mrb[176].mxu0  ;;  %v6311_v34 = vpop.f32.mrb[176].mxu1 }
0x102b   :  { %v6318_v61 = vadd.f32 %v6270_v28, %v11835_v50  ;;  %v6320_v8 = vadd.f32 %v6311_v34, %v11836_v29  ;;  %v6272_v6 = vpop.f32.mrb[177].mxu0  ;;  %v6313_v1 = vpop.f32.mrb[177].mxu1  ;;  %v8252_v28 = vld [vmem:[#allocation10 + $0x120] ss:$16 sps:$4 sm:$0xff]   ;;  %v8253_v34 = vld [vmem:[#allocation10 + $0x128] ss:$16 sps:$4 sm:$0xff]  }
0x102c   :  { %v6319_v51 = vadd.f32 %v6272_v6, %v11837_v33  ;;  %v6321_v0 = vadd.f32 %v6313_v1, %v11838_v41  ;;  %v6274_v20 = vpop.f32.mrb[178].mxu0  ;;  %v6315_v39 = vpop.f32.mrb[178].mxu1  ;;  %v8254_v50 = vld [vmem:[#allocation10 + $0x144] ss:$16 sps:$4 sm:$0xff]   ;;  %v8257_v6 = vld [vmem:[#allocation10 + $0x148] ss:$16 sps:$4 sm:$0xff]  }
0x102d   :  { %v7222_v46 = vmul.f32 -1.442695, %v6318_v61  ;;  %v6275_v26 = vpop.f32.mrb[179].mxu0  ;;  %v6316_v18 = vpop.f32.mrb[179].mxu1  ;;  %v8255_v61 = vld [vmem:[#allocation10 + $0x14c] ss:$16 sps:$4 sm:$0xff]  }
0x102e   :  { %v7223_v44 = vmul.f32 -1.442695, %v6319_v51  ;;  %v7224_v10 = vmul.f32 -1.442695, %v6321_v0  ;;  %v8258_v33 = vld [vmem:[#allocation10 + $0x164] ss:$16 sps:$4 sm:$0xff]  }
0x102f   :  { %7954 = vpow2.f32 %v7222_v46  ;;  %v8259_v51 = vld [vmem:[#allocation10 + $0x16c] ss:$16 sps:$4 sm:$0xff]   ;;  %v8260_v46 = vld [vmem:[#allocation10 + $0x160] ss:$16 sps:$4 sm:$0xff]   ;;  %v8261_v26 = vld [vmem:[#allocation10 + $0x168] ss:$16 sps:$4 sm:$0xff]  }
0x1030   :  { %7956 = vpow2.f32 %v7223_v44  ;;  %v8262_v18 = vld [vmem:[#allocation10 + $0x184] ss:$16 sps:$4 sm:$0xff]   ;;  %v8263_v44 = vld [vmem:[#allocation10 + $0x18c] ss:$16 sps:$4 sm:$0xff]  }
0x1031   :  { %7958 = vpow2.f32 %v7224_v10 }
0x1032   :  { %7960 = vtanh.f32 %v6320_v8  ;;  %v8256_v8 = vld [vmem:[#allocation10 + $0x140] ss:$16 sps:$4 sm:$0xff]  }
0x1039   :  { %v7955_v58 = vpop.eup %7954 }
0x103a   :  { %v7957_v59 = vpop.eup %7956  ;;  %v6328_v3 = vadd.f32 1.0, %v7955_v58  ;;  %v8264_v58 = vld [vmem:[#allocation10 + $0x180] ss:$16 sps:$4 sm:$0xff]  }
0x103b   :  { %v6329_v53 = vadd.f32 1.0, %v7957_v59  ;;  %v7959_v40 = vpop.eup %7958  ;;  %v8265_v59 = vld [vmem:[#allocation10 + $0x188] ss:$16 sps:$4 sm:$0xff]  }
0x103c   :  { %7962 = vrcp.f32 %v6328_v3  ;;  %v7961_v16 = vpop.eup %7960  ;;  %v6338_v9 = vadd.f32 1.0, %v7959_v40  ;;  %v8266_v3 = vld [vmem:[#allocation10 + $0x1a4] ss:$16 sps:$4 sm:$0xff]   ;;  %v8269_v40 = vld [vmem:[#allocation10 + $0x1a8] ss:$16 sps:$4 sm:$0xff]  }
0x103d   :  { %7964 = vrcp.f32 %v6329_v53  ;;  %v8268_v53 = vld [vmem:[#allocation10 + $0x1a0] ss:$16 sps:$4 sm:$0xff]  }
0x103e   :  { %7966 = vrcp.f32 %v6338_v9 }
0x1046   :  { %v7963_v42 = vpop.eup %7962 }
0x1047   :  { %v7965_v27 = vpop.eup %7964  ;;  %v6342_v24 = vmul.f32 %v7963_v42, %v7961_v16  ;;  %v8270_v16 = vld [vmem:[#allocation10 + $0x1c4] ss:$16 sps:$4 sm:$0xff]   ;;  %v8271_v42 = vld [vmem:[#allocation10 + $0x1cc] ss:$16 sps:$4 sm:$0xff]  }
0x1048   :  { %v6341_v19 = vmul.f32 %v7965_v27, %v10957_v38  ;;  %v7967_v5 = vpop.eup %7966  ;;  %v8272_v27 = vld [vmem:[#allocation10 + $0x1c0] ss:$16 sps:$4 sm:$0xff]  }
0x104a   :  { %v11007_v7 = vadd.f32 %v6342_v24, %v6341_v19  ;;  %v6385_v22 = vpop.f32.mrb[180].mxu0  ;;  %v6426_v13 = vpop.f32.mrb[180].mxu1  ;;  %v8273_v24 = vld [vmem:[#allocation10 + $0x1c8] ss:$16 sps:$4 sm:$0xff]   ;;  %v8274_v19 = vld [vmem:[#allocation10 + $0x1e4] ss:$16 sps:$4 sm:$0xff]  }
0x104b   :  { %v6433_v11 = vadd.f32 %v6385_v22, %v11839_v31  ;;  %v6435_v14 = vadd.f32 %v6426_v13, %v11840_v36  ;;  %v6387_v47 = vpop.f32.mrb[181].mxu0  ;;  %v6428_v15 = vpop.f32.mrb[181].mxu1  ;;  %v8275_v22 = vld [vmem:[#allocation10 + $0x1ec] ss:$16 sps:$4 sm:$0xff]   ;;  %v8277_v36 = vld [vmem:[#allocation10 + $0x1e8] ss:$16 sps:$4 sm:$0xff]  }
0x104c   :  { %v6434_v62 = vadd.f32 %v6387_v47, %v11841_v48  ;;  %v6436_v43 = vadd.f32 %v6428_v15, %v11842_v25  ;;  %v6389_v56 = vpop.f32.mrb[182].mxu0  ;;  %v6430_v54 = vpop.f32.mrb[182].mxu1  ;;  %7968 = vtanh.f32 %v11007_v7  ;;  %v6713_v47 = vld [vmem:[%s11138_s7 + $0x80] sm:$0xff]  ;;  %v6714_v15 = vld [vmem:[%s11138_s7 + $0x88] sm:$0xff] }
0x104d   :  { %v7225_v38 = vmul.f32 -1.442695, %v6433_v11  ;;  %v6390_v30 = vpop.f32.mrb[183].mxu0  ;;  %v6431_v45 = vpop.f32.mrb[183].mxu1  ;;  %v8276_v11 = vld [vmem:[#allocation10 + $0x1e0] ss:$16 sps:$4 sm:$0xff]   ;;  %v7270_v48 = vpack.c.bf16 %v6714_v15, %v6713_v47 }
0x104e   :  { %v7226_v17 = vmul.f32 -1.442695, %v6434_v62  ;;  %v7227_v4 = vmul.f32 -1.442695, %v6436_v43  ;;  %v6697_v62 = vld [vmem:[%s11138_s7] sm:$0xff]  ;;  %v6698_v25 = vld [vmem:[%s11138_s7 + $0x8] sm:$0xff] }
0x104f   :  { %7970 = vpow2.f32 %v7225_v38  ;;  %v7272_v43 = vpack.c.bf16 %v6698_v25, %v6697_v62  ;;  %v6715_v56 = vld [vmem:[%s11138_s7 + $0x90] sm:$0xff]  ;;  %v6716_v54 = vld [vmem:[%s11138_s7 + $0x98] sm:$0xff] }
0x1050   :  { %7972 = vpow2.f32 %v7226_v17  ;;  %v7274_v38 = vpack.c.bf16 %v6716_v54, %v6715_v56  ;;  %v6699_v30 = vld [vmem:[%s11138_s7 + $0x10] sm:$0xff]  ;;  %v6700_v45 = vld [vmem:[%s11138_s7 + $0x18] sm:$0xff] }
0x1051   :  { %7974 = vpow2.f32 %v7227_v4  ;;  %v7276_v17 = vpack.c.bf16 %v6700_v45, %v6699_v30 }
0x1052   :  { %7976 = vtanh.f32 %v6435_v14 }
0x1056   :  { %v7969_v60 = vpop.eup %7968 }
0x1057   :  { %v6345_v55 = vmul.f32 %v7969_v60, %v7967_v5  ;;  %v6717_v5 = vld [vmem:[%s11138_s7 + $0xa0] sm:$0xff]  ;;  %v6718_v60 = vld [vmem:[%s11138_s7 + $0xa8] sm:$0xff] }
0x1058   :  { %v7278_v4 = vpack.c.bf16 %v6718_v60, %v6717_v5 }
0x1059   :  { %v7971_v21 = vpop.eup %7970  ;;  %v6465_v57 = vpack.c.bf16 %v6345_v55, %v6345_v55  ;;  %v6701_v55 = vld [vmem:[%s11138_s7 + $0x20] sm:$0xff] }
0x105a   :  { %v7973_v63 = vpop.eup %7972  ;;  %v6443_v37 = vadd.f32 1.0, %v7971_v21  ;;  %v6702_v21 = vld [vmem:[%s11138_s7 + $0x28] sm:$0xff] }
0x105b   :  { %v6444_v32 = vadd.f32 1.0, %v7973_v63  ;;  %6499 = vmatmul.mubr.bf16.vlgmr.msra.gmra.mrb[184].mxu0 %v6465_v57  ;;  %6540 = vmatmul.mubr.bf16.vlgmr.msra.gmra.mrb[184].mxu1 %v6465_v57  ;;  %v7975_v29 = vpop.eup %7974  ;;  %v7280_v57 = vpack.c.bf16 %v6702_v21, %v6701_v55  ;;  %v6719_v63 = vld [vmem:[%s11138_s7 + $0xb0] sm:$0xff] }
0x105c   :  { %7978 = vrcp.f32 %v6443_v37  ;;  %6582 = vmatpush1.bf16.msra.mxu0 %v8248_v49  ;;  %6623 = vmatpush1.bf16.msra.mxu1 %v8249_v12  ;;  %v7977_v1 = vpop.eup %7976  ;;  %v6453_v20 = vadd.f32 1.0, %v7975_v29  ;;  %v6720_v37 = vld [vmem:[%s11138_s7 + $0xb8] sm:$0xff]  ;;  %v6703_v49 = vld [vmem:[%s11138_s7 + $0x30] sm:$0xff] }
0x105d   :  { %7980 = vrcp.f32 %v6444_v32  ;;  %6583 = vmatprep.subr.bf16.mxu0 %v8250_v52  ;;  %6624 = vmatprep.subr.bf16.mxu1 %v8251_v23  ;;  %v7282_v32 = vpack.c.bf16 %v6720_v37, %v6719_v63  ;;  %v6704_v12 = vld [vmem:[%s11138_s7 + $0x38] sm:$0xff]  ;;  %v6721_v23 = vld [vmem:[%s11138_s7 + $0xc0] sm:$0xff] }
0x105e   :  { %6613 = vmatprep.mubr.bf16.mxu0 %v11353_v2  ;;  %6654 = vmatprep.mubr.bf16.mxu1 %v11353_v2  ;;  %7982 = vrcp.f32 %v6453_v20  ;;  %v7284_v52 = vpack.c.bf16 %v6704_v12, %v6703_v49  ;;  %v6709_v20 = vld [vmem:[%s11138_s7 + $0x60] sm:$0xff]  ;;  %v11848_v49 = vld [vmem:[#allocation63_spill] sm:$0xff] }
0x105f   :  { %v11847_v37 = vld [vmem:[#allocation64_spill] sm:$0xff] }
0x1060   :  { %6584 = vmatpush1.bf16.msra.mxu0 %v8252_v28  ;;  %6625 = vmatpush1.bf16.msra.mxu1 %v8253_v34  ;;  %v6722_v28 = vld [vmem:[%s11138_s7 + $0xc8] sm:$0xff] }
0x1061   :  { %6585 = vmatprep.subr.bf16.mxu0 %v8254_v50  ;;  %6626 = vmatprep.subr.bf16.mxu1 %v8255_v61  ;;  %v7286_v34 = vpack.c.bf16 %v6722_v28, %v6721_v23  ;;  %v6705_v50 = vld [vmem:[%s11138_s7 + $0x40] sm:$0xff]  ;;  %v6706_v61 = vld [vmem:[%s11138_s7 + $0x48] sm:$0xff] }
0x1062   :  { %v7288_v29 = vpack.c.bf16 %v6706_v61, %v6705_v50  ;;  %v11849_v28 = vld [vmem:[#allocation66_spill] sm:$0xff]  ;;  %v11850_v50 = vld [vmem:[#allocation73_spill] sm:$0xff] }
0x1064   :  { %6586 = vmatpush1.bf16.msra.mxu0 %v8256_v8  ;;  %6627 = vmatpush1.bf16.msra.mxu1 %v8257_v6  ;;  %v6723_v8 = vld [vmem:[%s11138_s7 + $0xd0] sm:$0xff]  ;;  %v6724_v6 = vld [vmem:[%s11138_s7 + $0xd8] sm:$0xff] }
0x1065   :  { %6587 = vmatprep.subr.bf16.mxu0 %v8258_v33  ;;  %6628 = vmatprep.subr.bf16.mxu1 %v8259_v51  ;;  %v6707_v33 = vld [vmem:[%s11138_s7 + $0x50] sm:$0xff]  ;;  %v6708_v51 = vld [vmem:[%s11138_s7 + $0x58] sm:$0xff] }
0x1066   :  { %v7979_v41 = vpop.eup %7978 }
0x1067   :  { %v7981_v2 = vpop.eup %7980  ;;  %v6457_v0 = vmul.f32 %v7979_v41, %v7977_v1  ;;  %v7290_v1 = vpack.c.bf16 %v6724_v6, %v6723_v8  ;;  %v7292_v41 = vpack.c.bf16 %v6708_v51, %v6707_v33 }
0x1068   :  { %v6456_v39 = vmul.f32 %v7981_v2, %v10983_v35  ;;  %6588 = vmatpush1.bf16.msra.mxu0 %v8260_v46  ;;  %6629 = vmatpush1.bf16.msra.mxu1 %v8261_v26  ;;  %v8267_v35 = vld [vmem:[#allocation10 + $0x1ac] ss:$16 sps:$4 sm:$0xff]   ;;  %v7983_v9 = vpop.eup %7982 }
0x1069   :  { %6589 = vmatprep.subr.bf16.mxu0 %v8262_v18  ;;  %6630 = vmatprep.subr.bf16.mxu1 %v8263_v44  ;;  %v6725_v2 = vld [vmem:[%s11138_s7 + $0xe0] sm:$0xff]  ;;  %v6710_v46 = vld [vmem:[%s11138_s7 + $0x68] sm:$0xff]  ;;  %v6727_v26 = vld [vmem:[%s11138_s7 + $0xf0] sm:$0xff] }
0x106a   :  { %v11017_v10 = vadd.f32 %v6457_v0, %v6456_v39  ;;  %v6726_v0 = vld [vmem:[%s11138_s7 + $0xe8] sm:$0xff]  ;;  %v6728_v18 = vld [vmem:[%s11138_s7 + $0xf8] sm:$0xff]  ;;  %v7296_v44 = vpack.c.bf16 %v6710_v46, %v6709_v20 }
0x106b   :  { %v7294_v39 = vpack.c.bf16 %v6726_v0, %v6725_v2 }
0x106c   :  { %6590 = vmatpush1.bf16.msra.mxu0 %v8264_v58  ;;  %6631 = vmatpush1.bf16.msra.mxu1 %v8265_v59  ;;  %7984 = vtanh.f32 %v11017_v10  ;;  %v7298_v58 = vpack.c.bf16 %v6728_v18, %v6727_v26  ;;  %v6711_v59 = vld [vmem:[%s11138_s7 + $0x70] sm:$0xff] }
0x106d   :  { %6591 = vmatprep.subr.bf16.mxu0 %v8266_v3  ;;  %6632 = vmatprep.subr.bf16.mxu1 %v8267_v35  ;;  %v6712_v3 = vld [vmem:[%s11138_s7 + $0x78] sm:$0xff] }
0x106e   :  { %v7300_v35 = vpack.c.bf16 %v6712_v3, %v6711_v59 }
0x1070   :  { %6592 = vmatpush1.bf16.msra.mxu0 %v8268_v53  ;;  %6633 = vmatpush1.bf16.msra.mxu1 %v8269_v40 }
0x1071   :  { %6593 = vmatprep.subr.bf16.mxu0 %v8270_v16  ;;  %6634 = vmatprep.subr.bf16.mxu1 %v8271_v42  ;;  %v11843_v16 = vld [vmem:[#allocation80_spill] sm:$0xff] }
0x1074   :  { %6594 = vmatpush1.bf16.msra.mxu0 %v8272_v27  ;;  %6635 = vmatpush1.bf16.msra.mxu1 %v8273_v24  ;;  %v11844_v27 = vld [vmem:[#allocation79_spill] sm:$0xff] }
0x1075   :  { %6595 = vmatprep.subr.bf16.mxu0 %v8274_v19  ;;  %6636 = vmatprep.subr.bf16.mxu1 %v8275_v22  ;;  %v11845_v22 = vld [vmem:[#allocation82_spill] sm:$0xff] }
0x1076   :  { %v7985_v13 = vpop.eup %7984 }
0x1077   :  { %v6460_v31 = vmul.f32 %v7985_v13, %v7983_v9 }
0x1078   :  { %6596 = vmatpush1.bf16.msra.mxu0 %v8276_v11  ;;  %6637 = vmatpush1.bf16.msra.mxu1 %v8277_v36 }
0x1079   :  { %v6580_v14 = vpack.c.bf16 %v6460_v31, %v6460_v31  ;;  %7271 = vmatprep.subr.bf16.mxu0 %v7270_v48  ;;  %v11846_v31 = vld [vmem:[#allocation62_spill] sm:$0xff] }
0x107b   :  { %6614 = vmatmul.mubr.bf16.vlgmr.msra.gmra.mrb[188].mxu0 %v6580_v14  ;;  %6655 = vmatmul.mubr.bf16.vlgmr.msra.gmra.mrb[188].mxu1 %v6580_v14 }
0x107c   :  { %7273 = vmatpush3.bf16.msra.mxu0 %v7272_v43 }
0x107d   :  { %7275 = vmatprep.subr.bf16.mxu0 %v7274_v38 }
0x1080   :  { %7277 = vmatpush3.bf16.msra.mxu0 %v7276_v17 }
0x1081   :  { %7279 = vmatprep.subr.bf16.mxu0 %v7278_v4 }
0x1084   :  { %7281 = vmatpush3.bf16.msra.mxu0 %v7280_v57 }
0x1085   :  { %7283 = vmatprep.subr.bf16.mxu0 %v7282_v32 }
0x1088   :  { %7285 = vmatpush3.bf16.msra.mxu0 %v7284_v52 }
0x1089   :  { %7287 = vmatprep.subr.bf16.mxu0 %v7286_v34 }
0x108c   :  { %7289 = vmatpush3.bf16.msra.mxu0 %v7288_v29 }
0x108d   :  { %7291 = vmatprep.subr.bf16.mxu0 %v7290_v1 }
0x1090   :  { %7293 = vmatpush3.bf16.msra.mxu0 %v7292_v41 }
0x1091   :  { %7295 = vmatprep.subr.bf16.mxu0 %v7294_v39 }
0x1094   :  { %7297 = vmatpush3.bf16.msra.mxu0 %v7296_v44 }
0x1095   :  { %7299 = vmatprep.subr.bf16.mxu0 %v7298_v58 }
0x1098   :  { %7301 = vmatpush3.bf16.msra.mxu0 %v7300_v35 }
0x112e   :  { %v6500_v53 = vpop.f32.mrb[184].mxu0  ;;  %v6541_v40 = vpop.f32.mrb[184].mxu1 }
0x112f   :  { %v6548_v42 = vadd.f32 %v6500_v53, %v11843_v16  ;;  %v6550_v24 = vadd.f32 %v6541_v40, %v11844_v27  ;;  %v6502_v9 = vpop.f32.mrb[185].mxu0  ;;  %v6543_v19 = vpop.f32.mrb[185].mxu1 }
0x1130   :  { %v6549_v13 = vadd.f32 %v6502_v9, %v11845_v22  ;;  %v6551_v11 = vadd.f32 %v6543_v19, %v11846_v31  ;;  %v6504_v36 = vpop.f32.mrb[186].mxu0  ;;  %v6545_v14 = vpop.f32.mrb[186].mxu1  ;;  %v11852_v19 = vld [vmem:[#allocation95_spill] sm:$0xff] }
0x1131   :  { %v7228_v47 = vmul.f32 -1.442695, %v6548_v42  ;;  %v6505_v15 = vpop.f32.mrb[187].mxu0  ;;  %v6546_v48 = vpop.f32.mrb[187].mxu1  ;;  %v7234_v36 = vld [vmem:[#allocation5] ss:$0 sm:$0xff] }
0x1132   :  { %v7229_v62 = vmul.f32 -1.442695, %v6549_v13  ;;  %v7230_v25 = vmul.f32 -1.442695, %v6551_v11 }
0x1133   :  { %7986 = vpow2.f32 %v7228_v47 }
0x1134   :  { %7988 = vpow2.f32 %v7229_v62 }
0x1135   :  { %7990 = vpow2.f32 %v7230_v25 }
0x1136   :  { %7992 = vtanh.f32 %v6550_v24  ;;  %v11851_v24 = vld [vmem:[#allocation96_spill] sm:$0xff] }
0x113d   :  { %v7987_v43 = vpop.eup %7986 }
0x113e   :  { %v7989_v56 = vpop.eup %7988  ;;  %v6558_v54 = vadd.f32 1.0, %v7987_v43 }
0x113f   :  { %v6559_v38 = vadd.f32 1.0, %v7989_v56  ;;  %v7991_v30 = vpop.eup %7990 }
0x1140   :  { %7994 = vrcp.f32 %v6558_v54  ;;  %v7993_v45 = vpop.eup %7992  ;;  %v6568_v4 = vadd.f32 1.0, %v7991_v30 }
0x1141   :  { %7996 = vrcp.f32 %v6559_v38 }
0x1142   :  { %7998 = vrcp.f32 %v6568_v4 }
0x114a   :  { %v7995_v17 = vpop.eup %7994 }
0x114b   :  { %v7997_v5 = vpop.eup %7996  ;;  %v6572_v60 = vmul.f32 %v7995_v17, %v7993_v45 }
0x114c   :  { %v6571_v55 = vmul.f32 %v7997_v5, %v11007_v7  ;;  %v7999_v51 = vpop.eup %7998 }
0x114e   :  { %v6573_v21 = vadd.f32 %v6572_v60, %v6571_v55  ;;  %v6615_v57 = vpop.f32.mrb[188].mxu0  ;;  %v6656_v63 = vpop.f32.mrb[188].mxu1 }
0x114f   :  { %v6663_v32 = vadd.f32 %v6615_v57, %v11847_v37  ;;  %v6665_v12 = vadd.f32 %v6656_v63, %v11848_v49  ;;  %v6617_v52 = vpop.f32.mrb[189].mxu0  ;;  %v6658_v23 = vpop.f32.mrb[189].mxu1 }
0x1150   :  { %8000 = vtanh.f32 %v6573_v21  ;;  %v6664_v34 = vadd.f32 %v6617_v52, %v11849_v28  ;;  %v6666_v61 = vadd.f32 %v6658_v23, %v11850_v50  ;;  %v6619_v29 = vpop.f32.mrb[190].mxu0  ;;  %v6660_v8 = vpop.f32.mrb[190].mxu1 }
0x1151   :  { %v7231_v6 = vmul.f32 -1.442695, %v6663_v32  ;;  %v6620_v1 = vpop.f32.mrb[191].mxu0  ;;  %v6661_v7 = vpop.f32.mrb[191].mxu1 }
0x1152   :  { %v7232_v33 = vmul.f32 -1.442695, %v6664_v34  ;;  %v7233_v2 = vmul.f32 -1.442695, %v6666_v61 }
0x1153   :  { %8002 = vpow2.f32 %v7231_v6 }
0x1154   :  { %8004 = vpow2.f32 %v7232_v33 }
0x1155   :  { %8006 = vpow2.f32 %v7233_v2 }
0x1156   :  { %8008 = vtanh.f32 %v6665_v12 }
0x115a   :  { %v8001_v41 = vpop.eup %8000 }
0x115b   :  { %v6575_v0 = vmul.f32 %v8001_v41, %v7999_v51 }
0x115d   :  { %v8003_v20 = vpop.eup %8002  ;;  %v6692_v9 = vadd.f32 %v6575_v0, %v11851_v24 }
0x115e   :  { %v8005_v39 = vpop.eup %8004  ;;  %v6673_v46 = vadd.f32 1.0, %v8003_v20 }
0x115f   :  { %v6674_v26 = vadd.f32 1.0, %v8005_v39  ;;  %v8007_v18 = vpop.eup %8006 }
0x1160   :  { %8010 = vrcp.f32 %v6673_v46  ;;  %v8009_v44 = vpop.eup %8008  ;;  %v6683_v35 = vadd.f32 1.0, %v8007_v18 }
0x1161   :  { %8012 = vrcp.f32 %v6674_v26 }
0x1162   :  { %8014 = vrcp.f32 %v6683_v35 }
0x116a   :  { %v8011_v58 = vpop.eup %8010 }
0x116b   :  { %v8013_v59 = vpop.eup %8012  ;;  %v6687_v3 = vmul.f32 %v8011_v58, %v8009_v44 }
0x116c   :  { %v6686_v53 = vmul.f32 %v8013_v59, %v11017_v10  ;;  %v8015_v16 = vpop.eup %8014 }
0x116e   :  { %v6688_v40 = vadd.f32 %v6687_v3, %v6686_v53 }
0x1170   :  { %8016 = vtanh.f32 %v6688_v40 }
0x117a   :  { %v8017_v42 = vpop.eup %8016 }
0x117b   :  { %v6690_v27 = vmul.f32 %v8017_v42, %v8015_v16 }
0x117d   :  { %v6695_v22 = vadd.f32 %v6690_v27, %v11852_v19 }
0x117f   :  { %8018 = vtanh.f32 %v6695_v22 }
0x1180   :  { %8020 = vtanh.f32 %v6692_v9 }
0x1189   :  { %v8019_v13 = vpop.eup %8018 }
0x118a   :  { %v8021_v31 = vpop.eup %8020  ;;  %6800 = vmatprep.mubr.f32.mxu0 %v8019_v13 }
0x118b   :  { %6801 = vmatmul.mubr.f32.vlgmr.msra.gmra.mrb[192].mxu0 %v8021_v31 }
0x125e   :  { %v7267_v11 = vpop.f32.mrb[192].mxu0 }
0x125f   :  { %v7268_v14 = vpop.f32.mrb[193].mxu0 }
0x1260   :  { %v7269_v10 = vadd.f32 %v7268_v14, %v7267_v11 }
0x1262   :  { %v6803_v47 = vadd.f32 %v7269_v10, %v7234_v36 }
0x1264   :  { %6807 = vst.msk [vmem:[%s11140_s9] sm:$0xff] %vm6806_vm0, %v6803_v47 }
0x1265   :  { %6812 = vsyncpa [#allocation7], 1 }
0x1266   :  { %6813 = vsyncpa [#allocation9], 1 }

</bundles_post_ra>
